<compile_context>
chip_gen: v7x
topology: tpu7x:2x2x1
jax: 0.10.0
libtpu: 0.0.40
codegen_flags: <defaults>
</compile_context>

<pallas_src>
import jax
import jax.numpy as jnp
import numpy as np
from jax.experimental import pallas as pl
from jax.experimental.pallas import tpu as pltpu

BN_EPS = 1e-5
KSIZE = 4
CFG = ((1, 0), (2, 1), (2, 1), (2, 1))      # (stride, padding) per layer, k = 4
_H_IN = (1, 4, 8, 16)                       # input spatial size of each layer

VMEM_SPEC = pl.BlockSpec(memory_space=pltpu.MemorySpace.VMEM)


# ----------------------------- static tap metadata --------------------------

def _tap_meta():
    """For each ConvT(4, 2, 1) kernel tap (ky, kx): output phase it feeds and
    the (row, col) shift of the input read, in valid-index space."""
    meta = []
    for ky in range(KSIZE):
        for kx in range(KSIZE):
            py, px = (ky + 1) % 2, (kx + 1) % 2
            roff, coff = (py + 1 - ky) // 2, (px + 1 - kx) // 2
            meta.append((py * 2 + px, roff, coff))
    return tuple(meta)


_TAPS = _tap_meta()


def _frame_dims(h, n):
    """Zero-padded flat frame geometry for an (h x h) activation, batch n."""
    hf = h + 2                      # one zero row/col of conv padding per side
    mf = n * hf * hf                # flat frame length (lane axis)
    guard = hf + 1                  # max |tap shift| in flat coordinates
    return hf, mf, guard, mf + 2 * guard


# -------------------------- hoisted (once-per-model) prep -------------------

def _weight_taps(w):
    """(Cin, Cout, k, k) ConvTranspose2d weight -> (k*k, Cout, Cin) bf16."""
    cin, cout = w.shape[0], w.shape[1]
    return jnp.transpose(w, (2, 3, 1, 0)).reshape(
        KSIZE * KSIZE, cout, cin).astype(jnp.bfloat16)


def _layer0_scatter(n):
    """One-hot (16, N, MF1G): layer-0 tap t=(ky,kx) of image b lands at
    frame-1 position guard + b*hf^2 + (1+ky)*hf + (1+kx)."""
    hf, _, g, mfg = _frame_dims(_H_IN[1], n)
    r = np.zeros((KSIZE * KSIZE, n, mfg), np.float32)
    for ky in range(KSIZE):
        for kx in range(KSIZE):
            for b in range(n):
                r[ky * KSIZE + kx, b,
                  g + b * hf * hf + (1 + ky) * hf + (1 + kx)] = 1.0
    return jnp.asarray(r, dtype=jnp.bfloat16)


def _valid_mask(h, n):
    """(1, MF) f32 mask of valid (non zero-padding) frame positions."""
    hf, mf, _, _ = _frame_dims(h, n)
    m = np.zeros((1, mf), np.float32)
    for b in range(n):
        for u in range(h):
            for v in range(h):
                m[0, b * hf * hf + (1 + u) * hf + (1 + v)] = 1.0
    return jnp.asarray(m)


def _phase_scatter(h_in, n):
    """One-hot (4, MF_src, MFG_dst): interleaves the 4 phase outputs of a
    ConvT(4,2,1) layer (over its input frame, valid h_in x h_in) into the
    next layer's zero-padded flat frame (valid 2h_in x 2h_in)."""
    hf_s, mf_s, _, _ = _frame_dims(h_in, n)
    hf_d, _, g_d, mfg_d = _frame_dims(2 * h_in, n)
    s = np.zeros((4, mf_s, mfg_d), np.float32)
    for py in range(2):
        for px in range(2):
            p = py * 2 + px
            for b in range(n):
                for u in range(h_in):
                    for v in range(h_in):
                        src = b * hf_s * hf_s + (1 + u) * hf_s + (1 + v)
                        dst = (g_d + b * hf_d * hf_d
                               + (1 + 2 * u + py) * hf_d + (1 + 2 * v + px))
                        s[p, src, dst] = 1.0
    return jnp.asarray(s, dtype=jnp.bfloat16)


def init_params(key, latent_dim=16, num_channels=1, feature_map_gen=8):
    chans = [latent_dim, feature_map_gen * 8, feature_map_gen * 4,
             feature_map_gen * 2, num_channels]
    ws, gammas, betas = [], [], []
    for i in range(4):
        key, kw, kg, kb = jax.random.split(key, 4)
        ws.append(0.02 * jax.random.normal(
            kw, (chans[i], chans[i + 1], 4, 4), jnp.float32))
        if i < 3:  # last layer has no BatchNorm
            gammas.append(1.0 + 0.02 * jax.random.normal(
                kg, (chans[i + 1],), jnp.float32))
            betas.append(0.02 * jax.random.normal(
                kb, (chans[i + 1],), jnp.float32))
    return {"w": ws, "gamma": gammas, "beta": betas}


def prepare_generator(params, batch):
    """Hoisted prep: tap-major bf16 weights, (C,1) f32 BN params, one-hot
    scatter matrices and valid masks for this batch size (review item: keep
    weight/layout prep out of the per-step jitted path)."""
    prep = {"w%d" % i: _weight_taps(params["w"][i]) for i in range(4)}
    for i in range(3):
        prep["g%d" % i] = params["gamma"][i].astype(jnp.float32).reshape(-1, 1)
        prep["b%d" % i] = params["beta"][i].astype(jnp.float32).reshape(-1, 1)
    prep["r0"] = _layer0_scatter(batch)
    prep["m1"] = _valid_mask(_H_IN[1], batch)
    prep["s1"] = _phase_scatter(_H_IN[1], batch)
    prep["m2"] = _valid_mask(_H_IN[2], batch)
    prep["s2"] = _phase_scatter(_H_IN[2], batch)
    return prep


# ------------------------------ fused Pallas kernel -------------------------

def _build_generator_call(n, c0, c1, c2, c3, c4):
    hf1, mf1, g1, mfg1 = _frame_dims(_H_IN[1], n)
    hf2, mf2, g2, mfg2 = _frame_dims(_H_IN[2], n)
    hf3, mf3, g3, mfg3 = _frame_dims(_H_IN[3], n)

    def tap_accumulate(frame_ref, w_ref, hf, guard, mf, cout):
        """16 ConvT taps as 16 small GEMMs accumulated per output phase; each
        tap reads a shifted window of the flat zero-padded frame in VMEM."""
        accs = [jnp.zeros((cout, mf), jnp.float32) for _ in range(4)]
        for t, (p, roff, coff) in enumerate(_TAPS):
            start = guard + roff * hf + coff
            win = frame_ref[:, start:start + mf]                # (Cin, mf) bf16
            accs[p] = accs[p] + jnp.dot(
                w_ref[t], win, preferred_element_type=jnp.float32)
        return accs

    def bn_scale_shift(accs, mask, count, gamma, beta):
        """Training-mode BN stats over the valid positions of the 4 phases."""
        s = sum(jnp.sum(a * mask, axis=1, keepdims=True) for a in accs)
        q = sum(jnp.sum(a * a * mask, axis=1, keepdims=True) for a in accs)
        mean = s * (1.0 / count)
        var = jnp.maximum(q * (1.0 / count) - mean * mean, 0.0)   # clamp E[x^2]-m^2
        inv = jax.lax.rsqrt(var + BN_EPS)
        scale = gamma * inv
        return scale, beta - mean * scale

    def kernel(z_ref, w0_ref, g0_ref, b0_ref, r0_ref,
               w1_ref, g1_ref, b1_ref, m1_ref, s1_ref,
               w2_ref, g2_ref, b2_ref, m2_ref, s2_ref,
               w3_ref, o_ref, f1_ref, f2_ref, f3_ref):
        # ---- layer 0: ConvT(4,1,0) on 1x1 input (tap t == output pixel) ----
        z = z_ref[...]                                           # (C0, N) bf16
        y0 = [jnp.dot(w0_ref[t], z, preferred_element_type=jnp.float32)
              for t in range(16)]                                # 16 x (C1, N)
        scale0, shift0 = bn_scale_shift(y0, 1.0, 16 * n,
                                        g0_ref[...], b0_ref[...])
        f1 = jnp.zeros((c1, mfg1), jnp.float32)
        for t in range(16):                                      # scatter -> frame 1
            a = jnp.maximum(y0[t] * scale0 + shift0, 0.0).astype(jnp.bfloat16)
            f1 = f1 + jnp.dot(a, r0_ref[t], preferred_element_type=jnp.float32)
        f1_ref[...] = f1.astype(jnp.bfloat16)

        # ---- layer 1: ConvT(4,2,1) + BN + ReLU, 4x4 -> 8x8 ----
        accs = tap_accumulate(f1_ref, w1_ref, hf1, g1, mf1, c2)
        scale1, shift1 = bn_scale_shift(accs, m1_ref[...],
                                        4 * n * _H_IN[1] * _H_IN[1],
                                        g1_ref[...], b1_ref[...])
        f2 = jnp.zeros((c2, mfg2), jnp.float32)
        for p in range(4):                                       # interleave -> frame 2
            a = jnp.maximum(accs[p] * scale1 + shift1, 0.0).astype(jnp.bfloat16)
            f2 = f2 + jnp.dot(a, s1_ref[p], preferred_element_type=jnp.float32)
        f2_ref[...] = f2.astype(jnp.bfloat16)

        # ---- layer 2: ConvT(4,2,1) + BN + ReLU, 8x8 -> 16x16 ----
        accs = tap_accumulate(f2_ref, w2_ref, hf2, g2, mf2, c3)
        scale2, shift2 = bn_scale_shift(accs, m2_ref[...],
                                        4 * n * _H_IN[2] * _H_IN[2],
                                        g2_ref[...], b2_ref[...])
        f3 = jnp.zeros((c3, mfg3), jnp.float32)
        for p in range(4):                                       # interleave -> frame 3
            a = jnp.maximum(accs[p] * scale2 + shift2, 0.0).astype(jnp.bfloat16)
            f3 = f3 + jnp.dot(a, s2_ref[p], preferred_element_type=jnp.float32)
        f3_ref[...] = f3.astype(jnp.bfloat16)

        # ---- layer 3: ConvT(4,2,1) + tanh, 16x16 -> 32x32 (phase-stacked) ----
        accs = tap_accumulate(f3_ref, w3_ref, hf3, g3, mf3, c4)
        o_ref[...] = jnp.concatenate(
            [jnp.tanh(a) for a in accs], axis=0).astype(o_ref.dtype)

    flops = 2 * (16 * c1 * c0 * n + 16 * c1 * n * mfg1
                 + 16 * c2 * c1 * mf1 + 4 * c2 * mf1 * mfg2
                 + 16 * c3 * c2 * mf2 + 4 * c3 * mf2 * mfg3
                 + 16 * c4 * c3 * mf3)
    bytes_accessed = (2 * (c0 * n + 16 * (c1 * c0 + c2 * c1 + c3 * c2 + c4 * c3)
                           + 16 * n * mfg1 + 4 * mf1 * mfg2 + 4 * mf2 * mfg3
                           + 4 * c4 * mf3)
                      + 4 * (mf1 + mf2 + 2 * (c1 + c2 + c3)))
    cost = pl.CostEstimate(flops=int(flops),
                           transcendentals=int(4 * c4 * mf3 + c1 + c2 + c3),
                           bytes_accessed=int(bytes_accessed))

    return pl.pallas_call(
        kernel,
        out_shape=jax.ShapeDtypeStruct((4 * c4, mf3), jnp.bfloat16),
        in_specs=[VMEM_SPEC] * 16,
        out_specs=VMEM_SPEC,
        scratch_shapes=[
            pltpu.VMEM((c1, mfg1), jnp.bfloat16),   # layer-1 input frame
            pltpu.VMEM((c2, mfg2), jnp.bfloat16),   # layer-2 input frame
            pltpu.VMEM((c3, mfg3), jnp.bfloat16),   # layer-3 input frame
        ],
        compiler_params=pltpu.CompilerParams(
            vmem_limit_bytes=32 * 1024 * 1024),     # explicit scoped-VMEM cap
        cost_estimate=cost,
    )


def generator_forward(prep, x):
    """x: (N, latent, 1, 1) NCHW -> (N, num_channels, 32, 32) f32."""
    n, c0 = x.shape[0], x.shape[1]
    c1, c2, c3, c4 = (prep["w0"].shape[1], prep["w1"].shape[1],
                      prep["w2"].shape[1], prep["w3"].shape[1])
    z = jnp.transpose(x[:, :, 0, 0], (1, 0)).astype(jnp.bfloat16)  # (C0, N)

    phases = _build_generator_call(n, c0, c1, c2, c3, c4)(
        z, prep["w0"], prep["g0"], prep["b0"], prep["r0"],
        prep["w1"], prep["g1"], prep["b1"], prep["m1"], prep["s1"],
        prep["w2"], prep["g2"], prep["b2"], prep["m2"], prep["s2"],
        prep["w3"])

    # Module-boundary layout only: phase-stacked (4*C, N*18*18) -> NCHW f32.
    h3, hf3 = _H_IN[3], _H_IN[3] + 2
    y = phases.reshape(2, 2, c4, n, hf3, hf3)[:, :, :, :, 1:1 + h3, 1:1 + h3]
    y = jnp.transpose(y, (3, 2, 4, 0, 5, 1)).reshape(n, c4, 2 * h3, 2 * h3)
    return y.astype(jnp.float32)


# --------------------------- pure-JAX references ----------------------------

def reference_forward(params, x, operand_dtype=jnp.float32):
    """Reference ConvT/BN/ReLU/Tanh stack; conv operands cast to operand_dtype,
    accumulation and BN/tanh math in f32 (mirrors the Pallas pipeline)."""
    h = x
    for i in range(4):
        w = params["w"][i]
        stride, pad = CFG[i]
        k = KSIZE
        w_conv = w[:, :, ::-1, ::-1].transpose(1, 0, 2, 3)   # OIHW
        pp = k - 1 - pad
        h = jax.lax.conv_general_dilated(
            h.astype(operand_dtype), w_conv.astype(operand_dtype),
            window_strides=(1, 1), padding=[(pp, pp), (pp, pp)],
            lhs_dilation=(stride, stride),
            dimension_numbers=("NCHW", "OIHW", "NCHW"),
            preferred_element_type=jnp.float32)
        if i < 3:
            mean = jnp.mean(h, axis=(0, 2, 3), keepdims=True)
            var = jnp.var(h, axis=(0, 2, 3), keepdims=True)
            gamma = params["gamma"][i].reshape(1, -1, 1, 1)
            beta = params["beta"][i].reshape(1, -1, 1, 1)
            h = jnp.maximum(
                (h - mean) * jax.lax.rsqrt(var + BN_EPS) * gamma + beta, 0.0)
        else:
            h = jnp.tanh(h)
    return h


if __name__ == "__main__":
    # Small shapes consistent with the module: latent_dim=16, fg=8, 1 channel.
    latent_dim, num_channels, fg, batch = 16, 1, 8, 2
    key = jax.random.PRNGKey(0)
    kp, kx = jax.random.split(key)
    params = init_params(kp, latent_dim, num_channels, fg)
    x = jax.random.normal(kx, (batch, latent_dim, 1, 1), jnp.float32)

    prep = prepare_generator(params, batch)        # hoisted, once per model
    fwd = jax.jit(generator_forward)
    out = jax.block_until_ready(fwd(prep, x))

    assert out.shape == (batch, num_channels, 32, 32), out.shape
    assert bool(jnp.all(jnp.isfinite(out)))

    # Tight check against a reference with identical (bf16-operand, f32-acc)
    # precision; loose sanity check against the all-f32 reference.
    ref_bf16 = jax.block_until_ready(reference_forward(params, x, jnp.bfloat16))
    ref_f32 = jax.block_until_ready(reference_forward(params, x, jnp.float32))
    err_bf16 = float(jnp.max(jnp.abs(out - ref_bf16)))
    err_f32 = float(jnp.max(jnp.abs(out - ref_f32)))
    assert jnp.allclose(out, ref_bf16, atol=2e-2, rtol=2e-2), err_bf16
    assert jnp.allclose(out, ref_f32, atol=7.5e-2, rtol=7.5e-2), err_f32

    print("KERNEL_OK")
</pallas_src>

<mosaic_0001>
module attributes {stable_mosaic.version = 11 : i64} {
  func.func @kernel(%arg0: memref<16x2xbf16, #tpu.memory_space<vmem>>, %arg1: memref<16x64x16xbf16, #tpu.memory_space<vmem>>, %arg2: memref<64x1xf32, #tpu.memory_space<vmem>>, %arg3: memref<64x1xf32, #tpu.memory_space<vmem>>, %arg4: memref<16x2x86xbf16, #tpu.memory_space<vmem>>, %arg5: memref<16x32x64xbf16, #tpu.memory_space<vmem>>, %arg6: memref<32x1xf32, #tpu.memory_space<vmem>>, %arg7: memref<32x1xf32, #tpu.memory_space<vmem>>, %arg8: memref<1x72xf32, #tpu.memory_space<vmem>>, %arg9: memref<4x72x222xbf16, #tpu.memory_space<vmem>>, %arg10: memref<16x16x32xbf16, #tpu.memory_space<vmem>>, %arg11: memref<16x1xf32, #tpu.memory_space<vmem>>, %arg12: memref<16x1xf32, #tpu.memory_space<vmem>>, %arg13: memref<1x200xf32, #tpu.memory_space<vmem>>, %arg14: memref<4x200x686xbf16, #tpu.memory_space<vmem>>, %arg15: memref<16x1x16xbf16, #tpu.memory_space<vmem>>, %arg16: memref<4x648xbf16, #tpu.memory_space<vmem>>, %arg17: memref<64x86xbf16, #tpu.memory_space<vmem>>, %arg18: memref<32x222xbf16, #tpu.memory_space<vmem>>, %arg19: memref<16x686xbf16, #tpu.memory_space<vmem>>) attributes {dimension_semantics = [], scalar_prefetch = 0 : i64, scratch_operands = 3 : i64, tpu.core_type = #tpu.core_type<tc>} {
    %c0 = arith.constant 0 : index
    %c0_0 = arith.constant 0 : index
    %0 = vector.load %arg0[%c0, %c0_0] : memref<16x2xbf16, #tpu.memory_space<vmem>>, vector<16x2xbf16>
    %c0_1 = arith.constant 0 : index
    %c0_2 = arith.constant 0 : index
    %c0_3 = arith.constant 0 : index
    %1 = vector.load %arg1[%c0_1, %c0_2, %c0_3] : memref<16x64x16xbf16, #tpu.memory_space<vmem>>, vector<1x64x16xbf16>
    %2 = vector.shape_cast %1 : vector<1x64x16xbf16> to vector<64x16xbf16>
    %cst = arith.constant dense<0.000000e+00> : vector<64x2xf32>
    %3 = tpu.matmul %2, %0, %cst {dimension_numbers = #tpu.dot_dimension_numbers<[1], [0], [0], [1], [0, 0, 1, 1], [], []>} : vector<64x16xbf16>, vector<16x2xbf16>, vector<64x2xf32> -> vector<64x2xf32>
    %c1 = arith.constant 1 : index
    %c0_4 = arith.constant 0 : index
    %c0_5 = arith.constant 0 : index
    %4 = vector.load %arg1[%c1, %c0_4, %c0_5] : memref<16x64x16xbf16, #tpu.memory_space<vmem>>, vector<1x64x16xbf16>
    %5 = vector.shape_cast %4 : vector<1x64x16xbf16> to vector<64x16xbf16>
    %cst_6 = arith.constant dense<0.000000e+00> : vector<64x2xf32>
    %6 = tpu.matmul %5, %0, %cst_6 {dimension_numbers = #tpu.dot_dimension_numbers<[1], [0], [0], [1], [0, 0, 1, 1], [], []>} : vector<64x16xbf16>, vector<16x2xbf16>, vector<64x2xf32> -> vector<64x2xf32>
    %c2 = arith.constant 2 : index
    %c0_7 = arith.constant 0 : index
    %c0_8 = arith.constant 0 : index
    %7 = vector.load %arg1[%c2, %c0_7, %c0_8] : memref<16x64x16xbf16, #tpu.memory_space<vmem>>, vector<1x64x16xbf16>
    %8 = vector.shape_cast %7 : vector<1x64x16xbf16> to vector<64x16xbf16>
    %cst_9 = arith.constant dense<0.000000e+00> : vector<64x2xf32>
    %9 = tpu.matmul %8, %0, %cst_9 {dimension_numbers = #tpu.dot_dimension_numbers<[1], [0], [0], [1], [0, 0, 1, 1], [], []>} : vector<64x16xbf16>, vector<16x2xbf16>, vector<64x2xf32> -> vector<64x2xf32>
    %c3 = arith.constant 3 : index
    %c0_10 = arith.constant 0 : index
    %c0_11 = arith.constant 0 : index
    %10 = vector.load %arg1[%c3, %c0_10, %c0_11] : memref<16x64x16xbf16, #tpu.memory_space<vmem>>, vector<1x64x16xbf16>
    %11 = vector.shape_cast %10 : vector<1x64x16xbf16> to vector<64x16xbf16>
    %cst_12 = arith.constant dense<0.000000e+00> : vector<64x2xf32>
    %12 = tpu.matmul %11, %0, %cst_12 {dimension_numbers = #tpu.dot_dimension_numbers<[1], [0], [0], [1], [0, 0, 1, 1], [], []>} : vector<64x16xbf16>, vector<16x2xbf16>, vector<64x2xf32> -> vector<64x2xf32>
    %c4 = arith.constant 4 : index
    %c0_13 = arith.constant 0 : index
    %c0_14 = arith.constant 0 : index
    %13 = vector.load %arg1[%c4, %c0_13, %c0_14] : memref<16x64x16xbf16, #tpu.memory_space<vmem>>, vector<1x64x16xbf16>
    %14 = vector.shape_cast %13 : vector<1x64x16xbf16> to vector<64x16xbf16>
    %cst_15 = arith.constant dense<0.000000e+00> : vector<64x2xf32>
    %15 = tpu.matmul %14, %0, %cst_15 {dimension_numbers = #tpu.dot_dimension_numbers<[1], [0], [0], [1], [0, 0, 1, 1], [], []>} : vector<64x16xbf16>, vector<16x2xbf16>, vector<64x2xf32> -> vector<64x2xf32>
    %c5 = arith.constant 5 : index
    %c0_16 = arith.constant 0 : index
    %c0_17 = arith.constant 0 : index
    %16 = vector.load %arg1[%c5, %c0_16, %c0_17] : memref<16x64x16xbf16, #tpu.memory_space<vmem>>, vector<1x64x16xbf16>
    %17 = vector.shape_cast %16 : vector<1x64x16xbf16> to vector<64x16xbf16>
    %cst_18 = arith.constant dense<0.000000e+00> : vector<64x2xf32>
    %18 = tpu.matmul %17, %0, %cst_18 {dimension_numbers = #tpu.dot_dimension_numbers<[1], [0], [0], [1], [0, 0, 1, 1], [], []>} : vector<64x16xbf16>, vector<16x2xbf16>, vector<64x2xf32> -> vector<64x2xf32>
    %c6 = arith.constant 6 : index
    %c0_19 = arith.constant 0 : index
    %c0_20 = arith.constant 0 : index
    %19 = vector.load %arg1[%c6, %c0_19, %c0_20] : memref<16x64x16xbf16, #tpu.memory_space<vmem>>, vector<1x64x16xbf16>
    %20 = vector.shape_cast %19 : vector<1x64x16xbf16> to vector<64x16xbf16>
    %cst_21 = arith.constant dense<0.000000e+00> : vector<64x2xf32>
    %21 = tpu.matmul %20, %0, %cst_21 {dimension_numbers = #tpu.dot_dimension_numbers<[1], [0], [0], [1], [0, 0, 1, 1], [], []>} : vector<64x16xbf16>, vector<16x2xbf16>, vector<64x2xf32> -> vector<64x2xf32>
    %c7 = arith.constant 7 : index
    %c0_22 = arith.constant 0 : index
    %c0_23 = arith.constant 0 : index
    %22 = vector.load %arg1[%c7, %c0_22, %c0_23] : memref<16x64x16xbf16, #tpu.memory_space<vmem>>, vector<1x64x16xbf16>
    %23 = vector.shape_cast %22 : vector<1x64x16xbf16> to vector<64x16xbf16>
    %cst_24 = arith.constant dense<0.000000e+00> : vector<64x2xf32>
    %24 = tpu.matmul %23, %0, %cst_24 {dimension_numbers = #tpu.dot_dimension_numbers<[1], [0], [0], [1], [0, 0, 1, 1], [], []>} : vector<64x16xbf16>, vector<16x2xbf16>, vector<64x2xf32> -> vector<64x2xf32>
    %c8 = arith.constant 8 : index
    %c0_25 = arith.constant 0 : index
    %c0_26 = arith.constant 0 : index
    %25 = vector.load %arg1[%c8, %c0_25, %c0_26] : memref<16x64x16xbf16, #tpu.memory_space<vmem>>, vector<1x64x16xbf16>
    %26 = vector.shape_cast %25 : vector<1x64x16xbf16> to vector<64x16xbf16>
    %cst_27 = arith.constant dense<0.000000e+00> : vector<64x2xf32>
    %27 = tpu.matmul %26, %0, %cst_27 {dimension_numbers = #tpu.dot_dimension_numbers<[1], [0], [0], [1], [0, 0, 1, 1], [], []>} : vector<64x16xbf16>, vector<16x2xbf16>, vector<64x2xf32> -> vector<64x2xf32>
    %c9 = arith.constant 9 : index
    %c0_28 = arith.constant 0 : index
    %c0_29 = arith.constant 0 : index
    %28 = vector.load %arg1[%c9, %c0_28, %c0_29] : memref<16x64x16xbf16, #tpu.memory_space<vmem>>, vector<1x64x16xbf16>
    %29 = vector.shape_cast %28 : vector<1x64x16xbf16> to vector<64x16xbf16>
    %cst_30 = arith.constant dense<0.000000e+00> : vector<64x2xf32>
    %30 = tpu.matmul %29, %0, %cst_30 {dimension_numbers = #tpu.dot_dimension_numbers<[1], [0], [0], [1], [0, 0, 1, 1], [], []>} : vector<64x16xbf16>, vector<16x2xbf16>, vector<64x2xf32> -> vector<64x2xf32>
    %c10 = arith.constant 10 : index
    %c0_31 = arith.constant 0 : index
    %c0_32 = arith.constant 0 : index
    %31 = vector.load %arg1[%c10, %c0_31, %c0_32] : memref<16x64x16xbf16, #tpu.memory_space<vmem>>, vector<1x64x16xbf16>
    %32 = vector.shape_cast %31 : vector<1x64x16xbf16> to vector<64x16xbf16>
    %cst_33 = arith.constant dense<0.000000e+00> : vector<64x2xf32>
    %33 = tpu.matmul %32, %0, %cst_33 {dimension_numbers = #tpu.dot_dimension_numbers<[1], [0], [0], [1], [0, 0, 1, 1], [], []>} : vector<64x16xbf16>, vector<16x2xbf16>, vector<64x2xf32> -> vector<64x2xf32>
    %c11 = arith.constant 11 : index
    %c0_34 = arith.constant 0 : index
    %c0_35 = arith.constant 0 : index
    %34 = vector.load %arg1[%c11, %c0_34, %c0_35] : memref<16x64x16xbf16, #tpu.memory_space<vmem>>, vector<1x64x16xbf16>
    %35 = vector.shape_cast %34 : vector<1x64x16xbf16> to vector<64x16xbf16>
    %cst_36 = arith.constant dense<0.000000e+00> : vector<64x2xf32>
    %36 = tpu.matmul %35, %0, %cst_36 {dimension_numbers = #tpu.dot_dimension_numbers<[1], [0], [0], [1], [0, 0, 1, 1], [], []>} : vector<64x16xbf16>, vector<16x2xbf16>, vector<64x2xf32> -> vector<64x2xf32>
    %c12 = arith.constant 12 : index
    %c0_37 = arith.constant 0 : index
    %c0_38 = arith.constant 0 : index
    %37 = vector.load %arg1[%c12, %c0_37, %c0_38] : memref<16x64x16xbf16, #tpu.memory_space<vmem>>, vector<1x64x16xbf16>
    %38 = vector.shape_cast %37 : vector<1x64x16xbf16> to vector<64x16xbf16>
    %cst_39 = arith.constant dense<0.000000e+00> : vector<64x2xf32>
    %39 = tpu.matmul %38, %0, %cst_39 {dimension_numbers = #tpu.dot_dimension_numbers<[1], [0], [0], [1], [0, 0, 1, 1], [], []>} : vector<64x16xbf16>, vector<16x2xbf16>, vector<64x2xf32> -> vector<64x2xf32>
    %c13 = arith.constant 13 : index
    %c0_40 = arith.constant 0 : index
    %c0_41 = arith.constant 0 : index
    %40 = vector.load %arg1[%c13, %c0_40, %c0_41] : memref<16x64x16xbf16, #tpu.memory_space<vmem>>, vector<1x64x16xbf16>
    %41 = vector.shape_cast %40 : vector<1x64x16xbf16> to vector<64x16xbf16>
    %cst_42 = arith.constant dense<0.000000e+00> : vector<64x2xf32>
    %42 = tpu.matmul %41, %0, %cst_42 {dimension_numbers = #tpu.dot_dimension_numbers<[1], [0], [0], [1], [0, 0, 1, 1], [], []>} : vector<64x16xbf16>, vector<16x2xbf16>, vector<64x2xf32> -> vector<64x2xf32>
    %c14 = arith.constant 14 : index
    %c0_43 = arith.constant 0 : index
    %c0_44 = arith.constant 0 : index
    %43 = vector.load %arg1[%c14, %c0_43, %c0_44] : memref<16x64x16xbf16, #tpu.memory_space<vmem>>, vector<1x64x16xbf16>
    %44 = vector.shape_cast %43 : vector<1x64x16xbf16> to vector<64x16xbf16>
    %cst_45 = arith.constant dense<0.000000e+00> : vector<64x2xf32>
    %45 = tpu.matmul %44, %0, %cst_45 {dimension_numbers = #tpu.dot_dimension_numbers<[1], [0], [0], [1], [0, 0, 1, 1], [], []>} : vector<64x16xbf16>, vector<16x2xbf16>, vector<64x2xf32> -> vector<64x2xf32>
    %c15 = arith.constant 15 : index
    %c0_46 = arith.constant 0 : index
    %c0_47 = arith.constant 0 : index
    %46 = vector.load %arg1[%c15, %c0_46, %c0_47] : memref<16x64x16xbf16, #tpu.memory_space<vmem>>, vector<1x64x16xbf16>
    %47 = vector.shape_cast %46 : vector<1x64x16xbf16> to vector<64x16xbf16>
    %cst_48 = arith.constant dense<0.000000e+00> : vector<64x2xf32>
    %48 = tpu.matmul %47, %0, %cst_48 {dimension_numbers = #tpu.dot_dimension_numbers<[1], [0], [0], [1], [0, 0, 1, 1], [], []>} : vector<64x16xbf16>, vector<16x2xbf16>, vector<64x2xf32> -> vector<64x2xf32>
    %c0_49 = arith.constant 0 : index
    %c0_50 = arith.constant 0 : index
    %49 = vector.load %arg2[%c0_49, %c0_50] : memref<64x1xf32, #tpu.memory_space<vmem>>, vector<64x1xf32>
    %c0_51 = arith.constant 0 : index
    %c0_52 = arith.constant 0 : index
    %50 = vector.load %arg3[%c0_51, %c0_52] : memref<64x1xf32, #tpu.memory_space<vmem>>, vector<64x1xf32>
    %cst_53 = arith.constant 1.000000e+00 : f32
    %51 = vector.broadcast %cst_53 : f32 to vector<64x2xf32>
    %52 = arith.mulf %3, %51 : vector<64x2xf32>
    %cst_54 = arith.constant dense<0.000000e+00> : vector<64xf32>
    %53 = vector.multi_reduction <add>, %52, %cst_54 [1] : vector<64x2xf32> to vector<64xf32>
    %54 = vector.shape_cast %53 : vector<64xf32> to vector<64x1xf32>
    %cst_55 = arith.constant 0.000000e+00 : f32
    %55 = vector.broadcast %cst_55 : f32 to vector<64x1xf32>
    %56 = arith.addf %55, %54 : vector<64x1xf32>
    %cst_56 = arith.constant 1.000000e+00 : f32
    %57 = vector.broadcast %cst_56 : f32 to vector<64x2xf32>
    %58 = arith.mulf %6, %57 : vector<64x2xf32>
    %cst_57 = arith.constant dense<0.000000e+00> : vector<64xf32>
    %59 = vector.multi_reduction <add>, %58, %cst_57 [1] : vector<64x2xf32> to vector<64xf32>
    %60 = vector.shape_cast %59 : vector<64xf32> to vector<64x1xf32>
    %61 = arith.addf %56, %60 : vector<64x1xf32>
    %cst_58 = arith.constant 1.000000e+00 : f32
    %62 = vector.broadcast %cst_58 : f32 to vector<64x2xf32>
    %63 = arith.mulf %9, %62 : vector<64x2xf32>
    %cst_59 = arith.constant dense<0.000000e+00> : vector<64xf32>
    %64 = vector.multi_reduction <add>, %63, %cst_59 [1] : vector<64x2xf32> to vector<64xf32>
    %65 = vector.shape_cast %64 : vector<64xf32> to vector<64x1xf32>
    %66 = arith.addf %61, %65 : vector<64x1xf32>
    %cst_60 = arith.constant 1.000000e+00 : f32
    %67 = vector.broadcast %cst_60 : f32 to vector<64x2xf32>
    %68 = arith.mulf %12, %67 : vector<64x2xf32>
    %cst_61 = arith.constant dense<0.000000e+00> : vector<64xf32>
    %69 = vector.multi_reduction <add>, %68, %cst_61 [1] : vector<64x2xf32> to vector<64xf32>
    %70 = vector.shape_cast %69 : vector<64xf32> to vector<64x1xf32>
    %71 = arith.addf %66, %70 : vector<64x1xf32>
    %cst_62 = arith.constant 1.000000e+00 : f32
    %72 = vector.broadcast %cst_62 : f32 to vector<64x2xf32>
    %73 = arith.mulf %15, %72 : vector<64x2xf32>
    %cst_63 = arith.constant dense<0.000000e+00> : vector<64xf32>
    %74 = vector.multi_reduction <add>, %73, %cst_63 [1] : vector<64x2xf32> to vector<64xf32>
    %75 = vector.shape_cast %74 : vector<64xf32> to vector<64x1xf32>
    %76 = arith.addf %71, %75 : vector<64x1xf32>
    %cst_64 = arith.constant 1.000000e+00 : f32
    %77 = vector.broadcast %cst_64 : f32 to vector<64x2xf32>
    %78 = arith.mulf %18, %77 : vector<64x2xf32>
    %cst_65 = arith.constant dense<0.000000e+00> : vector<64xf32>
    %79 = vector.multi_reduction <add>, %78, %cst_65 [1] : vector<64x2xf32> to vector<64xf32>
    %80 = vector.shape_cast %79 : vector<64xf32> to vector<64x1xf32>
    %81 = arith.addf %76, %80 : vector<64x1xf32>
    %cst_66 = arith.constant 1.000000e+00 : f32
    %82 = vector.broadcast %cst_66 : f32 to vector<64x2xf32>
    %83 = arith.mulf %21, %82 : vector<64x2xf32>
    %cst_67 = arith.constant dense<0.000000e+00> : vector<64xf32>
    %84 = vector.multi_reduction <add>, %83, %cst_67 [1] : vector<64x2xf32> to vector<64xf32>
    %85 = vector.shape_cast %84 : vector<64xf32> to vector<64x1xf32>
    %86 = arith.addf %81, %85 : vector<64x1xf32>
    %cst_68 = arith.constant 1.000000e+00 : f32
    %87 = vector.broadcast %cst_68 : f32 to vector<64x2xf32>
    %88 = arith.mulf %24, %87 : vector<64x2xf32>
    %cst_69 = arith.constant dense<0.000000e+00> : vector<64xf32>
    %89 = vector.multi_reduction <add>, %88, %cst_69 [1] : vector<64x2xf32> to vector<64xf32>
    %90 = vector.shape_cast %89 : vector<64xf32> to vector<64x1xf32>
    %91 = arith.addf %86, %90 : vector<64x1xf32>
    %cst_70 = arith.constant 1.000000e+00 : f32
    %92 = vector.broadcast %cst_70 : f32 to vector<64x2xf32>
    %93 = arith.mulf %27, %92 : vector<64x2xf32>
    %cst_71 = arith.constant dense<0.000000e+00> : vector<64xf32>
    %94 = vector.multi_reduction <add>, %93, %cst_71 [1] : vector<64x2xf32> to vector<64xf32>
    %95 = vector.shape_cast %94 : vector<64xf32> to vector<64x1xf32>
    %96 = arith.addf %91, %95 : vector<64x1xf32>
    %cst_72 = arith.constant 1.000000e+00 : f32
    %97 = vector.broadcast %cst_72 : f32 to vector<64x2xf32>
    %98 = arith.mulf %30, %97 : vector<64x2xf32>
    %cst_73 = arith.constant dense<0.000000e+00> : vector<64xf32>
    %99 = vector.multi_reduction <add>, %98, %cst_73 [1] : vector<64x2xf32> to vector<64xf32>
    %100 = vector.shape_cast %99 : vector<64xf32> to vector<64x1xf32>
    %101 = arith.addf %96, %100 : vector<64x1xf32>
    %cst_74 = arith.constant 1.000000e+00 : f32
    %102 = vector.broadcast %cst_74 : f32 to vector<64x2xf32>
    %103 = arith.mulf %33, %102 : vector<64x2xf32>
    %cst_75 = arith.constant dense<0.000000e+00> : vector<64xf32>
    %104 = vector.multi_reduction <add>, %103, %cst_75 [1] : vector<64x2xf32> to vector<64xf32>
    %105 = vector.shape_cast %104 : vector<64xf32> to vector<64x1xf32>
    %106 = arith.addf %101, %105 : vector<64x1xf32>
    %cst_76 = arith.constant 1.000000e+00 : f32
    %107 = vector.broadcast %cst_76 : f32 to vector<64x2xf32>
    %108 = arith.mulf %36, %107 : vector<64x2xf32>
    %cst_77 = arith.constant dense<0.000000e+00> : vector<64xf32>
    %109 = vector.multi_reduction <add>, %108, %cst_77 [1] : vector<64x2xf32> to vector<64xf32>
    %110 = vector.shape_cast %109 : vector<64xf32> to vector<64x1xf32>
    %111 = arith.addf %106, %110 : vector<64x1xf32>
    %cst_78 = arith.constant 1.000000e+00 : f32
    %112 = vector.broadcast %cst_78 : f32 to vector<64x2xf32>
    %113 = arith.mulf %39, %112 : vector<64x2xf32>
    %cst_79 = arith.constant dense<0.000000e+00> : vector<64xf32>
    %114 = vector.multi_reduction <add>, %113, %cst_79 [1] : vector<64x2xf32> to vector<64xf32>
    %115 = vector.shape_cast %114 : vector<64xf32> to vector<64x1xf32>
    %116 = arith.addf %111, %115 : vector<64x1xf32>
    %cst_80 = arith.constant 1.000000e+00 : f32
    %117 = vector.broadcast %cst_80 : f32 to vector<64x2xf32>
    %118 = arith.mulf %42, %117 : vector<64x2xf32>
    %cst_81 = arith.constant dense<0.000000e+00> : vector<64xf32>
    %119 = vector.multi_reduction <add>, %118, %cst_81 [1] : vector<64x2xf32> to vector<64xf32>
    %120 = vector.shape_cast %119 : vector<64xf32> to vector<64x1xf32>
    %121 = arith.addf %116, %120 : vector<64x1xf32>
    %cst_82 = arith.constant 1.000000e+00 : f32
    %122 = vector.broadcast %cst_82 : f32 to vector<64x2xf32>
    %123 = arith.mulf %45, %122 : vector<64x2xf32>
    %cst_83 = arith.constant dense<0.000000e+00> : vector<64xf32>
    %124 = vector.multi_reduction <add>, %123, %cst_83 [1] : vector<64x2xf32> to vector<64xf32>
    %125 = vector.shape_cast %124 : vector<64xf32> to vector<64x1xf32>
    %126 = arith.addf %121, %125 : vector<64x1xf32>
    %cst_84 = arith.constant 1.000000e+00 : f32
    %127 = vector.broadcast %cst_84 : f32 to vector<64x2xf32>
    %128 = arith.mulf %48, %127 : vector<64x2xf32>
    %cst_85 = arith.constant dense<0.000000e+00> : vector<64xf32>
    %129 = vector.multi_reduction <add>, %128, %cst_85 [1] : vector<64x2xf32> to vector<64xf32>
    %130 = vector.shape_cast %129 : vector<64xf32> to vector<64x1xf32>
    %131 = arith.addf %126, %130 : vector<64x1xf32>
    %132 = arith.mulf %3, %3 : vector<64x2xf32>
    %cst_86 = arith.constant 1.000000e+00 : f32
    %133 = vector.broadcast %cst_86 : f32 to vector<64x2xf32>
    %134 = arith.mulf %132, %133 : vector<64x2xf32>
    %cst_87 = arith.constant dense<0.000000e+00> : vector<64xf32>
    %135 = vector.multi_reduction <add>, %134, %cst_87 [1] : vector<64x2xf32> to vector<64xf32>
    %136 = vector.shape_cast %135 : vector<64xf32> to vector<64x1xf32>
    %cst_88 = arith.constant 0.000000e+00 : f32
    %137 = vector.broadcast %cst_88 : f32 to vector<64x1xf32>
    %138 = arith.addf %137, %136 : vector<64x1xf32>
    %139 = arith.mulf %6, %6 : vector<64x2xf32>
    %cst_89 = arith.constant 1.000000e+00 : f32
    %140 = vector.broadcast %cst_89 : f32 to vector<64x2xf32>
    %141 = arith.mulf %139, %140 : vector<64x2xf32>
    %cst_90 = arith.constant dense<0.000000e+00> : vector<64xf32>
    %142 = vector.multi_reduction <add>, %141, %cst_90 [1] : vector<64x2xf32> to vector<64xf32>
    %143 = vector.shape_cast %142 : vector<64xf32> to vector<64x1xf32>
    %144 = arith.addf %138, %143 : vector<64x1xf32>
    %145 = arith.mulf %9, %9 : vector<64x2xf32>
    %cst_91 = arith.constant 1.000000e+00 : f32
    %146 = vector.broadcast %cst_91 : f32 to vector<64x2xf32>
    %147 = arith.mulf %145, %146 : vector<64x2xf32>
    %cst_92 = arith.constant dense<0.000000e+00> : vector<64xf32>
    %148 = vector.multi_reduction <add>, %147, %cst_92 [1] : vector<64x2xf32> to vector<64xf32>
    %149 = vector.shape_cast %148 : vector<64xf32> to vector<64x1xf32>
    %150 = arith.addf %144, %149 : vector<64x1xf32>
    %151 = arith.mulf %12, %12 : vector<64x2xf32>
    %cst_93 = arith.constant 1.000000e+00 : f32
    %152 = vector.broadcast %cst_93 : f32 to vector<64x2xf32>
    %153 = arith.mulf %151, %152 : vector<64x2xf32>
    %cst_94 = arith.constant dense<0.000000e+00> : vector<64xf32>
    %154 = vector.multi_reduction <add>, %153, %cst_94 [1] : vector<64x2xf32> to vector<64xf32>
    %155 = vector.shape_cast %154 : vector<64xf32> to vector<64x1xf32>
    %156 = arith.addf %150, %155 : vector<64x1xf32>
    %157 = arith.mulf %15, %15 : vector<64x2xf32>
    %cst_95 = arith.constant 1.000000e+00 : f32
    %158 = vector.broadcast %cst_95 : f32 to vector<64x2xf32>
    %159 = arith.mulf %157, %158 : vector<64x2xf32>
    %cst_96 = arith.constant dense<0.000000e+00> : vector<64xf32>
    %160 = vector.multi_reduction <add>, %159, %cst_96 [1] : vector<64x2xf32> to vector<64xf32>
    %161 = vector.shape_cast %160 : vector<64xf32> to vector<64x1xf32>
    %162 = arith.addf %156, %161 : vector<64x1xf32>
    %163 = arith.mulf %18, %18 : vector<64x2xf32>
    %cst_97 = arith.constant 1.000000e+00 : f32
    %164 = vector.broadcast %cst_97 : f32 to vector<64x2xf32>
    %165 = arith.mulf %163, %164 : vector<64x2xf32>
    %cst_98 = arith.constant dense<0.000000e+00> : vector<64xf32>
    %166 = vector.multi_reduction <add>, %165, %cst_98 [1] : vector<64x2xf32> to vector<64xf32>
    %167 = vector.shape_cast %166 : vector<64xf32> to vector<64x1xf32>
    %168 = arith.addf %162, %167 : vector<64x1xf32>
    %169 = arith.mulf %21, %21 : vector<64x2xf32>
    %cst_99 = arith.constant 1.000000e+00 : f32
    %170 = vector.broadcast %cst_99 : f32 to vector<64x2xf32>
    %171 = arith.mulf %169, %170 : vector<64x2xf32>
    %cst_100 = arith.constant dense<0.000000e+00> : vector<64xf32>
    %172 = vector.multi_reduction <add>, %171, %cst_100 [1] : vector<64x2xf32> to vector<64xf32>
    %173 = vector.shape_cast %172 : vector<64xf32> to vector<64x1xf32>
    %174 = arith.addf %168, %173 : vector<64x1xf32>
    %175 = arith.mulf %24, %24 : vector<64x2xf32>
    %cst_101 = arith.constant 1.000000e+00 : f32
    %176 = vector.broadcast %cst_101 : f32 to vector<64x2xf32>
    %177 = arith.mulf %175, %176 : vector<64x2xf32>
    %cst_102 = arith.constant dense<0.000000e+00> : vector<64xf32>
    %178 = vector.multi_reduction <add>, %177, %cst_102 [1] : vector<64x2xf32> to vector<64xf32>
    %179 = vector.shape_cast %178 : vector<64xf32> to vector<64x1xf32>
    %180 = arith.addf %174, %179 : vector<64x1xf32>
    %181 = arith.mulf %27, %27 : vector<64x2xf32>
    %cst_103 = arith.constant 1.000000e+00 : f32
    %182 = vector.broadcast %cst_103 : f32 to vector<64x2xf32>
    %183 = arith.mulf %181, %182 : vector<64x2xf32>
    %cst_104 = arith.constant dense<0.000000e+00> : vector<64xf32>
    %184 = vector.multi_reduction <add>, %183, %cst_104 [1] : vector<64x2xf32> to vector<64xf32>
    %185 = vector.shape_cast %184 : vector<64xf32> to vector<64x1xf32>
    %186 = arith.addf %180, %185 : vector<64x1xf32>
    %187 = arith.mulf %30, %30 : vector<64x2xf32>
    %cst_105 = arith.constant 1.000000e+00 : f32
    %188 = vector.broadcast %cst_105 : f32 to vector<64x2xf32>
    %189 = arith.mulf %187, %188 : vector<64x2xf32>
    %cst_106 = arith.constant dense<0.000000e+00> : vector<64xf32>
    %190 = vector.multi_reduction <add>, %189, %cst_106 [1] : vector<64x2xf32> to vector<64xf32>
    %191 = vector.shape_cast %190 : vector<64xf32> to vector<64x1xf32>
    %192 = arith.addf %186, %191 : vector<64x1xf32>
    %193 = arith.mulf %33, %33 : vector<64x2xf32>
    %cst_107 = arith.constant 1.000000e+00 : f32
    %194 = vector.broadcast %cst_107 : f32 to vector<64x2xf32>
    %195 = arith.mulf %193, %194 : vector<64x2xf32>
    %cst_108 = arith.constant dense<0.000000e+00> : vector<64xf32>
    %196 = vector.multi_reduction <add>, %195, %cst_108 [1] : vector<64x2xf32> to vector<64xf32>
    %197 = vector.shape_cast %196 : vector<64xf32> to vector<64x1xf32>
    %198 = arith.addf %192, %197 : vector<64x1xf32>
    %199 = arith.mulf %36, %36 : vector<64x2xf32>
    %cst_109 = arith.constant 1.000000e+00 : f32
    %200 = vector.broadcast %cst_109 : f32 to vector<64x2xf32>
    %201 = arith.mulf %199, %200 : vector<64x2xf32>
    %cst_110 = arith.constant dense<0.000000e+00> : vector<64xf32>
    %202 = vector.multi_reduction <add>, %201, %cst_110 [1] : vector<64x2xf32> to vector<64xf32>
    %203 = vector.shape_cast %202 : vector<64xf32> to vector<64x1xf32>
    %204 = arith.addf %198, %203 : vector<64x1xf32>
    %205 = arith.mulf %39, %39 : vector<64x2xf32>
    %cst_111 = arith.constant 1.000000e+00 : f32
    %206 = vector.broadcast %cst_111 : f32 to vector<64x2xf32>
    %207 = arith.mulf %205, %206 : vector<64x2xf32>
    %cst_112 = arith.constant dense<0.000000e+00> : vector<64xf32>
    %208 = vector.multi_reduction <add>, %207, %cst_112 [1] : vector<64x2xf32> to vector<64xf32>
    %209 = vector.shape_cast %208 : vector<64xf32> to vector<64x1xf32>
    %210 = arith.addf %204, %209 : vector<64x1xf32>
    %211 = arith.mulf %42, %42 : vector<64x2xf32>
    %cst_113 = arith.constant 1.000000e+00 : f32
    %212 = vector.broadcast %cst_113 : f32 to vector<64x2xf32>
    %213 = arith.mulf %211, %212 : vector<64x2xf32>
    %cst_114 = arith.constant dense<0.000000e+00> : vector<64xf32>
    %214 = vector.multi_reduction <add>, %213, %cst_114 [1] : vector<64x2xf32> to vector<64xf32>
    %215 = vector.shape_cast %214 : vector<64xf32> to vector<64x1xf32>
    %216 = arith.addf %210, %215 : vector<64x1xf32>
    %217 = arith.mulf %45, %45 : vector<64x2xf32>
    %cst_115 = arith.constant 1.000000e+00 : f32
    %218 = vector.broadcast %cst_115 : f32 to vector<64x2xf32>
    %219 = arith.mulf %217, %218 : vector<64x2xf32>
    %cst_116 = arith.constant dense<0.000000e+00> : vector<64xf32>
    %220 = vector.multi_reduction <add>, %219, %cst_116 [1] : vector<64x2xf32> to vector<64xf32>
    %221 = vector.shape_cast %220 : vector<64xf32> to vector<64x1xf32>
    %222 = arith.addf %216, %221 : vector<64x1xf32>
    %223 = arith.mulf %48, %48 : vector<64x2xf32>
    %cst_117 = arith.constant 1.000000e+00 : f32
    %224 = vector.broadcast %cst_117 : f32 to vector<64x2xf32>
    %225 = arith.mulf %223, %224 : vector<64x2xf32>
    %cst_118 = arith.constant dense<0.000000e+00> : vector<64xf32>
    %226 = vector.multi_reduction <add>, %225, %cst_118 [1] : vector<64x2xf32> to vector<64xf32>
    %227 = vector.shape_cast %226 : vector<64xf32> to vector<64x1xf32>
    %228 = arith.addf %222, %227 : vector<64x1xf32>
    %cst_119 = arith.constant 3.125000e-02 : f32
    %229 = vector.broadcast %cst_119 : f32 to vector<64x1xf32>
    %230 = arith.mulf %131, %229 : vector<64x1xf32>
    %cst_120 = arith.constant 3.125000e-02 : f32
    %231 = vector.broadcast %cst_120 : f32 to vector<64x1xf32>
    %232 = arith.mulf %228, %231 : vector<64x1xf32>
    %233 = arith.mulf %230, %230 : vector<64x1xf32>
    %234 = arith.subf %232, %233 : vector<64x1xf32>
    %cst_121 = arith.constant 0.000000e+00 : f32
    %235 = vector.broadcast %cst_121 : f32 to vector<64x1xf32>
    %236 = arith.maximumf %234, %235 : vector<64x1xf32>
    %cst_122 = arith.constant 9.99999974E-6 : f32
    %237 = vector.broadcast %cst_122 : f32 to vector<64x1xf32>
    %238 = arith.addf %236, %237 : vector<64x1xf32>
    %239 = math.rsqrt %238 : vector<64x1xf32>
    %240 = arith.mulf %49, %239 : vector<64x1xf32>
    %241 = arith.mulf %230, %240 : vector<64x1xf32>
    %242 = arith.subf %50, %241 : vector<64x1xf32>
    %cst_123 = arith.constant 0.000000e+00 : f32
    %243 = vector.broadcast %cst_123 : f32 to vector<64x86xf32>
    %244 = vector.broadcast %240 : vector<64x1xf32> to vector<64x2xf32>
    %245 = arith.mulf %3, %244 : vector<64x2xf32>
    %246 = vector.broadcast %242 : vector<64x1xf32> to vector<64x2xf32>
    %247 = arith.addf %245, %246 : vector<64x2xf32>
    %cst_124 = arith.constant 0.000000e+00 : f32
    %248 = vector.broadcast %cst_124 : f32 to vector<64x2xf32>
    %249 = arith.maximumf %247, %248 : vector<64x2xf32>
    %250 = arith.truncf %249 : vector<64x2xf32> to vector<64x2xbf16>
    %c0_125 = arith.constant 0 : index
    %c0_126 = arith.constant 0 : index
    %c0_127 = arith.constant 0 : index
    %251 = vector.load %arg4[%c0_125, %c0_126, %c0_127] : memref<16x2x86xbf16, #tpu.memory_space<vmem>>, vector<1x2x86xbf16>
    %252 = vector.shape_cast %251 : vector<1x2x86xbf16> to vector<2x86xbf16>
    %cst_128 = arith.constant dense<0.000000e+00> : vector<64x86xf32>
    %253 = tpu.matmul %250, %252, %cst_128 {dimension_numbers = #tpu.dot_dimension_numbers<[1], [0], [0], [1], [0, 0, 1, 1], [], []>} : vector<64x2xbf16>, vector<2x86xbf16>, vector<64x86xf32> -> vector<64x86xf32>
    %254 = arith.addf %243, %253 : vector<64x86xf32>
    %255 = vector.broadcast %240 : vector<64x1xf32> to vector<64x2xf32>
    %256 = arith.mulf %6, %255 : vector<64x2xf32>
    %257 = vector.broadcast %242 : vector<64x1xf32> to vector<64x2xf32>
    %258 = arith.addf %256, %257 : vector<64x2xf32>
    %cst_129 = arith.constant 0.000000e+00 : f32
    %259 = vector.broadcast %cst_129 : f32 to vector<64x2xf32>
    %260 = arith.maximumf %258, %259 : vector<64x2xf32>
    %261 = arith.truncf %260 : vector<64x2xf32> to vector<64x2xbf16>
    %c1_130 = arith.constant 1 : index
    %c0_131 = arith.constant 0 : index
    %c0_132 = arith.constant 0 : index
    %262 = vector.load %arg4[%c1_130, %c0_131, %c0_132] : memref<16x2x86xbf16, #tpu.memory_space<vmem>>, vector<1x2x86xbf16>
    %263 = vector.shape_cast %262 : vector<1x2x86xbf16> to vector<2x86xbf16>
    %cst_133 = arith.constant dense<0.000000e+00> : vector<64x86xf32>
    %264 = tpu.matmul %261, %263, %cst_133 {dimension_numbers = #tpu.dot_dimension_numbers<[1], [0], [0], [1], [0, 0, 1, 1], [], []>} : vector<64x2xbf16>, vector<2x86xbf16>, vector<64x86xf32> -> vector<64x86xf32>
    %265 = arith.addf %254, %264 : vector<64x86xf32>
    %266 = vector.broadcast %240 : vector<64x1xf32> to vector<64x2xf32>
    %267 = arith.mulf %9, %266 : vector<64x2xf32>
    %268 = vector.broadcast %242 : vector<64x1xf32> to vector<64x2xf32>
    %269 = arith.addf %267, %268 : vector<64x2xf32>
    %cst_134 = arith.constant 0.000000e+00 : f32
    %270 = vector.broadcast %cst_134 : f32 to vector<64x2xf32>
    %271 = arith.maximumf %269, %270 : vector<64x2xf32>
    %272 = arith.truncf %271 : vector<64x2xf32> to vector<64x2xbf16>
    %c2_135 = arith.constant 2 : index
    %c0_136 = arith.constant 0 : index
    %c0_137 = arith.constant 0 : index
    %273 = vector.load %arg4[%c2_135, %c0_136, %c0_137] : memref<16x2x86xbf16, #tpu.memory_space<vmem>>, vector<1x2x86xbf16>
    %274 = vector.shape_cast %273 : vector<1x2x86xbf16> to vector<2x86xbf16>
    %cst_138 = arith.constant dense<0.000000e+00> : vector<64x86xf32>
    %275 = tpu.matmul %272, %274, %cst_138 {dimension_numbers = #tpu.dot_dimension_numbers<[1], [0], [0], [1], [0, 0, 1, 1], [], []>} : vector<64x2xbf16>, vector<2x86xbf16>, vector<64x86xf32> -> vector<64x86xf32>
    %276 = arith.addf %265, %275 : vector<64x86xf32>
    %277 = vector.broadcast %240 : vector<64x1xf32> to vector<64x2xf32>
    %278 = arith.mulf %12, %277 : vector<64x2xf32>
    %279 = vector.broadcast %242 : vector<64x1xf32> to vector<64x2xf32>
    %280 = arith.addf %278, %279 : vector<64x2xf32>
    %cst_139 = arith.constant 0.000000e+00 : f32
    %281 = vector.broadcast %cst_139 : f32 to vector<64x2xf32>
    %282 = arith.maximumf %280, %281 : vector<64x2xf32>
    %283 = arith.truncf %282 : vector<64x2xf32> to vector<64x2xbf16>
    %c3_140 = arith.constant 3 : index
    %c0_141 = arith.constant 0 : index
    %c0_142 = arith.constant 0 : index
    %284 = vector.load %arg4[%c3_140, %c0_141, %c0_142] : memref<16x2x86xbf16, #tpu.memory_space<vmem>>, vector<1x2x86xbf16>
    %285 = vector.shape_cast %284 : vector<1x2x86xbf16> to vector<2x86xbf16>
    %cst_143 = arith.constant dense<0.000000e+00> : vector<64x86xf32>
    %286 = tpu.matmul %283, %285, %cst_143 {dimension_numbers = #tpu.dot_dimension_numbers<[1], [0], [0], [1], [0, 0, 1, 1], [], []>} : vector<64x2xbf16>, vector<2x86xbf16>, vector<64x86xf32> -> vector<64x86xf32>
    %287 = arith.addf %276, %286 : vector<64x86xf32>
    %288 = vector.broadcast %240 : vector<64x1xf32> to vector<64x2xf32>
    %289 = arith.mulf %15, %288 : vector<64x2xf32>
    %290 = vector.broadcast %242 : vector<64x1xf32> to vector<64x2xf32>
    %291 = arith.addf %289, %290 : vector<64x2xf32>
    %cst_144 = arith.constant 0.000000e+00 : f32
    %292 = vector.broadcast %cst_144 : f32 to vector<64x2xf32>
    %293 = arith.maximumf %291, %292 : vector<64x2xf32>
    %294 = arith.truncf %293 : vector<64x2xf32> to vector<64x2xbf16>
    %c4_145 = arith.constant 4 : index
    %c0_146 = arith.constant 0 : index
    %c0_147 = arith.constant 0 : index
    %295 = vector.load %arg4[%c4_145, %c0_146, %c0_147] : memref<16x2x86xbf16, #tpu.memory_space<vmem>>, vector<1x2x86xbf16>
    %296 = vector.shape_cast %295 : vector<1x2x86xbf16> to vector<2x86xbf16>
    %cst_148 = arith.constant dense<0.000000e+00> : vector<64x86xf32>
    %297 = tpu.matmul %294, %296, %cst_148 {dimension_numbers = #tpu.dot_dimension_numbers<[1], [0], [0], [1], [0, 0, 1, 1], [], []>} : vector<64x2xbf16>, vector<2x86xbf16>, vector<64x86xf32> -> vector<64x86xf32>
    %298 = arith.addf %287, %297 : vector<64x86xf32>
    %299 = vector.broadcast %240 : vector<64x1xf32> to vector<64x2xf32>
    %300 = arith.mulf %18, %299 : vector<64x2xf32>
    %301 = vector.broadcast %242 : vector<64x1xf32> to vector<64x2xf32>
    %302 = arith.addf %300, %301 : vector<64x2xf32>
    %cst_149 = arith.constant 0.000000e+00 : f32
    %303 = vector.broadcast %cst_149 : f32 to vector<64x2xf32>
    %304 = arith.maximumf %302, %303 : vector<64x2xf32>
    %305 = arith.truncf %304 : vector<64x2xf32> to vector<64x2xbf16>
    %c5_150 = arith.constant 5 : index
    %c0_151 = arith.constant 0 : index
    %c0_152 = arith.constant 0 : index
    %306 = vector.load %arg4[%c5_150, %c0_151, %c0_152] : memref<16x2x86xbf16, #tpu.memory_space<vmem>>, vector<1x2x86xbf16>
    %307 = vector.shape_cast %306 : vector<1x2x86xbf16> to vector<2x86xbf16>
    %cst_153 = arith.constant dense<0.000000e+00> : vector<64x86xf32>
    %308 = tpu.matmul %305, %307, %cst_153 {dimension_numbers = #tpu.dot_dimension_numbers<[1], [0], [0], [1], [0, 0, 1, 1], [], []>} : vector<64x2xbf16>, vector<2x86xbf16>, vector<64x86xf32> -> vector<64x86xf32>
    %309 = arith.addf %298, %308 : vector<64x86xf32>
    %310 = vector.broadcast %240 : vector<64x1xf32> to vector<64x2xf32>
    %311 = arith.mulf %21, %310 : vector<64x2xf32>
    %312 = vector.broadcast %242 : vector<64x1xf32> to vector<64x2xf32>
    %313 = arith.addf %311, %312 : vector<64x2xf32>
    %cst_154 = arith.constant 0.000000e+00 : f32
    %314 = vector.broadcast %cst_154 : f32 to vector<64x2xf32>
    %315 = arith.maximumf %313, %314 : vector<64x2xf32>
    %316 = arith.truncf %315 : vector<64x2xf32> to vector<64x2xbf16>
    %c6_155 = arith.constant 6 : index
    %c0_156 = arith.constant 0 : index
    %c0_157 = arith.constant 0 : index
    %317 = vector.load %arg4[%c6_155, %c0_156, %c0_157] : memref<16x2x86xbf16, #tpu.memory_space<vmem>>, vector<1x2x86xbf16>
    %318 = vector.shape_cast %317 : vector<1x2x86xbf16> to vector<2x86xbf16>
    %cst_158 = arith.constant dense<0.000000e+00> : vector<64x86xf32>
    %319 = tpu.matmul %316, %318, %cst_158 {dimension_numbers = #tpu.dot_dimension_numbers<[1], [0], [0], [1], [0, 0, 1, 1], [], []>} : vector<64x2xbf16>, vector<2x86xbf16>, vector<64x86xf32> -> vector<64x86xf32>
    %320 = arith.addf %309, %319 : vector<64x86xf32>
    %321 = vector.broadcast %240 : vector<64x1xf32> to vector<64x2xf32>
    %322 = arith.mulf %24, %321 : vector<64x2xf32>
    %323 = vector.broadcast %242 : vector<64x1xf32> to vector<64x2xf32>
    %324 = arith.addf %322, %323 : vector<64x2xf32>
    %cst_159 = arith.constant 0.000000e+00 : f32
    %325 = vector.broadcast %cst_159 : f32 to vector<64x2xf32>
    %326 = arith.maximumf %324, %325 : vector<64x2xf32>
    %327 = arith.truncf %326 : vector<64x2xf32> to vector<64x2xbf16>
    %c7_160 = arith.constant 7 : index
    %c0_161 = arith.constant 0 : index
    %c0_162 = arith.constant 0 : index
    %328 = vector.load %arg4[%c7_160, %c0_161, %c0_162] : memref<16x2x86xbf16, #tpu.memory_space<vmem>>, vector<1x2x86xbf16>
    %329 = vector.shape_cast %328 : vector<1x2x86xbf16> to vector<2x86xbf16>
    %cst_163 = arith.constant dense<0.000000e+00> : vector<64x86xf32>
    %330 = tpu.matmul %327, %329, %cst_163 {dimension_numbers = #tpu.dot_dimension_numbers<[1], [0], [0], [1], [0, 0, 1, 1], [], []>} : vector<64x2xbf16>, vector<2x86xbf16>, vector<64x86xf32> -> vector<64x86xf32>
    %331 = arith.addf %320, %330 : vector<64x86xf32>
    %332 = vector.broadcast %240 : vector<64x1xf32> to vector<64x2xf32>
    %333 = arith.mulf %27, %332 : vector<64x2xf32>
    %334 = vector.broadcast %242 : vector<64x1xf32> to vector<64x2xf32>
    %335 = arith.addf %333, %334 : vector<64x2xf32>
    %cst_164 = arith.constant 0.000000e+00 : f32
    %336 = vector.broadcast %cst_164 : f32 to vector<64x2xf32>
    %337 = arith.maximumf %335, %336 : vector<64x2xf32>
    %338 = arith.truncf %337 : vector<64x2xf32> to vector<64x2xbf16>
    %c8_165 = arith.constant 8 : index
    %c0_166 = arith.constant 0 : index
    %c0_167 = arith.constant 0 : index
    %339 = vector.load %arg4[%c8_165, %c0_166, %c0_167] : memref<16x2x86xbf16, #tpu.memory_space<vmem>>, vector<1x2x86xbf16>
    %340 = vector.shape_cast %339 : vector<1x2x86xbf16> to vector<2x86xbf16>
    %cst_168 = arith.constant dense<0.000000e+00> : vector<64x86xf32>
    %341 = tpu.matmul %338, %340, %cst_168 {dimension_numbers = #tpu.dot_dimension_numbers<[1], [0], [0], [1], [0, 0, 1, 1], [], []>} : vector<64x2xbf16>, vector<2x86xbf16>, vector<64x86xf32> -> vector<64x86xf32>
    %342 = arith.addf %331, %341 : vector<64x86xf32>
    %343 = vector.broadcast %240 : vector<64x1xf32> to vector<64x2xf32>
    %344 = arith.mulf %30, %343 : vector<64x2xf32>
    %345 = vector.broadcast %242 : vector<64x1xf32> to vector<64x2xf32>
    %346 = arith.addf %344, %345 : vector<64x2xf32>
    %cst_169 = arith.constant 0.000000e+00 : f32
    %347 = vector.broadcast %cst_169 : f32 to vector<64x2xf32>
    %348 = arith.maximumf %346, %347 : vector<64x2xf32>
    %349 = arith.truncf %348 : vector<64x2xf32> to vector<64x2xbf16>
    %c9_170 = arith.constant 9 : index
    %c0_171 = arith.constant 0 : index
    %c0_172 = arith.constant 0 : index
    %350 = vector.load %arg4[%c9_170, %c0_171, %c0_172] : memref<16x2x86xbf16, #tpu.memory_space<vmem>>, vector<1x2x86xbf16>
    %351 = vector.shape_cast %350 : vector<1x2x86xbf16> to vector<2x86xbf16>
    %cst_173 = arith.constant dense<0.000000e+00> : vector<64x86xf32>
    %352 = tpu.matmul %349, %351, %cst_173 {dimension_numbers = #tpu.dot_dimension_numbers<[1], [0], [0], [1], [0, 0, 1, 1], [], []>} : vector<64x2xbf16>, vector<2x86xbf16>, vector<64x86xf32> -> vector<64x86xf32>
    %353 = arith.addf %342, %352 : vector<64x86xf32>
    %354 = vector.broadcast %240 : vector<64x1xf32> to vector<64x2xf32>
    %355 = arith.mulf %33, %354 : vector<64x2xf32>
    %356 = vector.broadcast %242 : vector<64x1xf32> to vector<64x2xf32>
    %357 = arith.addf %355, %356 : vector<64x2xf32>
    %cst_174 = arith.constant 0.000000e+00 : f32
    %358 = vector.broadcast %cst_174 : f32 to vector<64x2xf32>
    %359 = arith.maximumf %357, %358 : vector<64x2xf32>
    %360 = arith.truncf %359 : vector<64x2xf32> to vector<64x2xbf16>
    %c10_175 = arith.constant 10 : index
    %c0_176 = arith.constant 0 : index
    %c0_177 = arith.constant 0 : index
    %361 = vector.load %arg4[%c10_175, %c0_176, %c0_177] : memref<16x2x86xbf16, #tpu.memory_space<vmem>>, vector<1x2x86xbf16>
    %362 = vector.shape_cast %361 : vector<1x2x86xbf16> to vector<2x86xbf16>
    %cst_178 = arith.constant dense<0.000000e+00> : vector<64x86xf32>
    %363 = tpu.matmul %360, %362, %cst_178 {dimension_numbers = #tpu.dot_dimension_numbers<[1], [0], [0], [1], [0, 0, 1, 1], [], []>} : vector<64x2xbf16>, vector<2x86xbf16>, vector<64x86xf32> -> vector<64x86xf32>
    %364 = arith.addf %353, %363 : vector<64x86xf32>
    %365 = vector.broadcast %240 : vector<64x1xf32> to vector<64x2xf32>
    %366 = arith.mulf %36, %365 : vector<64x2xf32>
    %367 = vector.broadcast %242 : vector<64x1xf32> to vector<64x2xf32>
    %368 = arith.addf %366, %367 : vector<64x2xf32>
    %cst_179 = arith.constant 0.000000e+00 : f32
    %369 = vector.broadcast %cst_179 : f32 to vector<64x2xf32>
    %370 = arith.maximumf %368, %369 : vector<64x2xf32>
    %371 = arith.truncf %370 : vector<64x2xf32> to vector<64x2xbf16>
    %c11_180 = arith.constant 11 : index
    %c0_181 = arith.constant 0 : index
    %c0_182 = arith.constant 0 : index
    %372 = vector.load %arg4[%c11_180, %c0_181, %c0_182] : memref<16x2x86xbf16, #tpu.memory_space<vmem>>, vector<1x2x86xbf16>
    %373 = vector.shape_cast %372 : vector<1x2x86xbf16> to vector<2x86xbf16>
    %cst_183 = arith.constant dense<0.000000e+00> : vector<64x86xf32>
    %374 = tpu.matmul %371, %373, %cst_183 {dimension_numbers = #tpu.dot_dimension_numbers<[1], [0], [0], [1], [0, 0, 1, 1], [], []>} : vector<64x2xbf16>, vector<2x86xbf16>, vector<64x86xf32> -> vector<64x86xf32>
    %375 = arith.addf %364, %374 : vector<64x86xf32>
    %376 = vector.broadcast %240 : vector<64x1xf32> to vector<64x2xf32>
    %377 = arith.mulf %39, %376 : vector<64x2xf32>
    %378 = vector.broadcast %242 : vector<64x1xf32> to vector<64x2xf32>
    %379 = arith.addf %377, %378 : vector<64x2xf32>
    %cst_184 = arith.constant 0.000000e+00 : f32
    %380 = vector.broadcast %cst_184 : f32 to vector<64x2xf32>
    %381 = arith.maximumf %379, %380 : vector<64x2xf32>
    %382 = arith.truncf %381 : vector<64x2xf32> to vector<64x2xbf16>
    %c12_185 = arith.constant 12 : index
    %c0_186 = arith.constant 0 : index
    %c0_187 = arith.constant 0 : index
    %383 = vector.load %arg4[%c12_185, %c0_186, %c0_187] : memref<16x2x86xbf16, #tpu.memory_space<vmem>>, vector<1x2x86xbf16>
    %384 = vector.shape_cast %383 : vector<1x2x86xbf16> to vector<2x86xbf16>
    %cst_188 = arith.constant dense<0.000000e+00> : vector<64x86xf32>
    %385 = tpu.matmul %382, %384, %cst_188 {dimension_numbers = #tpu.dot_dimension_numbers<[1], [0], [0], [1], [0, 0, 1, 1], [], []>} : vector<64x2xbf16>, vector<2x86xbf16>, vector<64x86xf32> -> vector<64x86xf32>
    %386 = arith.addf %375, %385 : vector<64x86xf32>
    %387 = vector.broadcast %240 : vector<64x1xf32> to vector<64x2xf32>
    %388 = arith.mulf %42, %387 : vector<64x2xf32>
    %389 = vector.broadcast %242 : vector<64x1xf32> to vector<64x2xf32>
    %390 = arith.addf %388, %389 : vector<64x2xf32>
    %cst_189 = arith.constant 0.000000e+00 : f32
    %391 = vector.broadcast %cst_189 : f32 to vector<64x2xf32>
    %392 = arith.maximumf %390, %391 : vector<64x2xf32>
    %393 = arith.truncf %392 : vector<64x2xf32> to vector<64x2xbf16>
    %c13_190 = arith.constant 13 : index
    %c0_191 = arith.constant 0 : index
    %c0_192 = arith.constant 0 : index
    %394 = vector.load %arg4[%c13_190, %c0_191, %c0_192] : memref<16x2x86xbf16, #tpu.memory_space<vmem>>, vector<1x2x86xbf16>
    %395 = vector.shape_cast %394 : vector<1x2x86xbf16> to vector<2x86xbf16>
    %cst_193 = arith.constant dense<0.000000e+00> : vector<64x86xf32>
    %396 = tpu.matmul %393, %395, %cst_193 {dimension_numbers = #tpu.dot_dimension_numbers<[1], [0], [0], [1], [0, 0, 1, 1], [], []>} : vector<64x2xbf16>, vector<2x86xbf16>, vector<64x86xf32> -> vector<64x86xf32>
    %397 = arith.addf %386, %396 : vector<64x86xf32>
    %398 = vector.broadcast %240 : vector<64x1xf32> to vector<64x2xf32>
    %399 = arith.mulf %45, %398 : vector<64x2xf32>
    %400 = vector.broadcast %242 : vector<64x1xf32> to vector<64x2xf32>
    %401 = arith.addf %399, %400 : vector<64x2xf32>
    %cst_194 = arith.constant 0.000000e+00 : f32
    %402 = vector.broadcast %cst_194 : f32 to vector<64x2xf32>
    %403 = arith.maximumf %401, %402 : vector<64x2xf32>
    %404 = arith.truncf %403 : vector<64x2xf32> to vector<64x2xbf16>
    %c14_195 = arith.constant 14 : index
    %c0_196 = arith.constant 0 : index
    %c0_197 = arith.constant 0 : index
    %405 = vector.load %arg4[%c14_195, %c0_196, %c0_197] : memref<16x2x86xbf16, #tpu.memory_space<vmem>>, vector<1x2x86xbf16>
    %406 = vector.shape_cast %405 : vector<1x2x86xbf16> to vector<2x86xbf16>
    %cst_198 = arith.constant dense<0.000000e+00> : vector<64x86xf32>
    %407 = tpu.matmul %404, %406, %cst_198 {dimension_numbers = #tpu.dot_dimension_numbers<[1], [0], [0], [1], [0, 0, 1, 1], [], []>} : vector<64x2xbf16>, vector<2x86xbf16>, vector<64x86xf32> -> vector<64x86xf32>
    %408 = arith.addf %397, %407 : vector<64x86xf32>
    %409 = vector.broadcast %240 : vector<64x1xf32> to vector<64x2xf32>
    %410 = arith.mulf %48, %409 : vector<64x2xf32>
    %411 = vector.broadcast %242 : vector<64x1xf32> to vector<64x2xf32>
    %412 = arith.addf %410, %411 : vector<64x2xf32>
    %cst_199 = arith.constant 0.000000e+00 : f32
    %413 = vector.broadcast %cst_199 : f32 to vector<64x2xf32>
    %414 = arith.maximumf %412, %413 : vector<64x2xf32>
    %415 = arith.truncf %414 : vector<64x2xf32> to vector<64x2xbf16>
    %c15_200 = arith.constant 15 : index
    %c0_201 = arith.constant 0 : index
    %c0_202 = arith.constant 0 : index
    %416 = vector.load %arg4[%c15_200, %c0_201, %c0_202] : memref<16x2x86xbf16, #tpu.memory_space<vmem>>, vector<1x2x86xbf16>
    %417 = vector.shape_cast %416 : vector<1x2x86xbf16> to vector<2x86xbf16>
    %cst_203 = arith.constant dense<0.000000e+00> : vector<64x86xf32>
    %418 = tpu.matmul %415, %417, %cst_203 {dimension_numbers = #tpu.dot_dimension_numbers<[1], [0], [0], [1], [0, 0, 1, 1], [], []>} : vector<64x2xbf16>, vector<2x86xbf16>, vector<64x86xf32> -> vector<64x86xf32>
    %419 = arith.addf %408, %418 : vector<64x86xf32>
    %420 = arith.truncf %419 : vector<64x86xf32> to vector<64x86xbf16>
    %c0_204 = arith.constant 0 : index
    %c0_205 = arith.constant 0 : index
    %421 = vector.load %arg17[%c0_204, %c0_205] : memref<64x86xbf16, #tpu.memory_space<vmem>>, vector<64x86xbf16>
    tpu.vector_store %arg17[%c0_204, %c0_205], %420 {strides = array<i32>} : memref<64x86xbf16, #tpu.memory_space<vmem>>, vector<64x86xbf16>,
    %cst_206 = arith.constant 0.000000e+00 : f32
    %422 = vector.broadcast %cst_206 : f32 to vector<32x72xf32>
    %cst_207 = arith.constant 0.000000e+00 : f32
    %423 = vector.broadcast %cst_207 : f32 to vector<32x72xf32>
    %cst_208 = arith.constant 0.000000e+00 : f32
    %424 = vector.broadcast %cst_208 : f32 to vector<32x72xf32>
    %cst_209 = arith.constant 0.000000e+00 : f32
    %425 = vector.broadcast %cst_209 : f32 to vector<32x72xf32>
    %c0_210 = arith.constant 0 : index
    %c14_211 = arith.constant 14 : index
    %426 = vector.load %arg17[%c0_210, %c14_211] : memref<64x86xbf16, #tpu.memory_space<vmem>>, vector<64x72xbf16>
    %c0_212 = arith.constant 0 : index
    %c0_213 = arith.constant 0 : index
    %c0_214 = arith.constant 0 : index
    %427 = vector.load %arg5[%c0_212, %c0_213, %c0_214] : memref<16x32x64xbf16, #tpu.memory_space<vmem>>, vector<1x32x64xbf16>
    %428 = vector.shape_cast %427 : vector<1x32x64xbf16> to vector<32x64xbf16>
    %cst_215 = arith.constant dense<0.000000e+00> : vector<32x72xf32>
    %429 = tpu.matmul %428, %426, %cst_215 {dimension_numbers = #tpu.dot_dimension_numbers<[1], [0], [0], [1], [0, 0, 1, 1], [], []>} : vector<32x64xbf16>, vector<64x72xbf16>, vector<32x72xf32> -> vector<32x72xf32>
    %430 = arith.addf %425, %429 : vector<32x72xf32>
    %c0_216 = arith.constant 0 : index
    %c13_217 = arith.constant 13 : index
    %431 = vector.load %arg17[%c0_216, %c13_217] : memref<64x86xbf16, #tpu.memory_space<vmem>>, vector<64x72xbf16>
    %c1_218 = arith.constant 1 : index
    %c0_219 = arith.constant 0 : index
    %c0_220 = arith.constant 0 : index
    %432 = vector.load %arg5[%c1_218, %c0_219, %c0_220] : memref<16x32x64xbf16, #tpu.memory_space<vmem>>, vector<1x32x64xbf16>
    %433 = vector.shape_cast %432 : vector<1x32x64xbf16> to vector<32x64xbf16>
    %cst_221 = arith.constant dense<0.000000e+00> : vector<32x72xf32>
    %434 = tpu.matmul %433, %431, %cst_221 {dimension_numbers = #tpu.dot_dimension_numbers<[1], [0], [0], [1], [0, 0, 1, 1], [], []>} : vector<32x64xbf16>, vector<64x72xbf16>, vector<32x72xf32> -> vector<32x72xf32>
    %435 = arith.addf %424, %434 : vector<32x72xf32>
    %c0_222 = arith.constant 0 : index
    %c13_223 = arith.constant 13 : index
    %436 = vector.load %arg17[%c0_222, %c13_223] : memref<64x86xbf16, #tpu.memory_space<vmem>>, vector<64x72xbf16>
    %c2_224 = arith.constant 2 : index
    %c0_225 = arith.constant 0 : index
    %c0_226 = arith.constant 0 : index
    %437 = vector.load %arg5[%c2_224, %c0_225, %c0_226] : memref<16x32x64xbf16, #tpu.memory_space<vmem>>, vector<1x32x64xbf16>
    %438 = vector.shape_cast %437 : vector<1x32x64xbf16> to vector<32x64xbf16>
    %cst_227 = arith.constant dense<0.000000e+00> : vector<32x72xf32>
    %439 = tpu.matmul %438, %436, %cst_227 {dimension_numbers = #tpu.dot_dimension_numbers<[1], [0], [0], [1], [0, 0, 1, 1], [], []>} : vector<32x64xbf16>, vector<64x72xbf16>, vector<32x72xf32> -> vector<32x72xf32>
    %440 = arith.addf %430, %439 : vector<32x72xf32>
    %c0_228 = arith.constant 0 : index
    %c12_229 = arith.constant 12 : index
    %441 = vector.load %arg17[%c0_228, %c12_229] : memref<64x86xbf16, #tpu.memory_space<vmem>>, vector<64x72xbf16>
    %c3_230 = arith.constant 3 : index
    %c0_231 = arith.constant 0 : index
    %c0_232 = arith.constant 0 : index
    %442 = vector.load %arg5[%c3_230, %c0_231, %c0_232] : memref<16x32x64xbf16, #tpu.memory_space<vmem>>, vector<1x32x64xbf16>
    %443 = vector.shape_cast %442 : vector<1x32x64xbf16> to vector<32x64xbf16>
    %cst_233 = arith.constant dense<0.000000e+00> : vector<32x72xf32>
    %444 = tpu.matmul %443, %441, %cst_233 {dimension_numbers = #tpu.dot_dimension_numbers<[1], [0], [0], [1], [0, 0, 1, 1], [], []>} : vector<32x64xbf16>, vector<64x72xbf16>, vector<32x72xf32> -> vector<32x72xf32>
    %445 = arith.addf %435, %444 : vector<32x72xf32>
    %c0_234 = arith.constant 0 : index
    %c8_235 = arith.constant 8 : index
    %446 = vector.load %arg17[%c0_234, %c8_235] : memref<64x86xbf16, #tpu.memory_space<vmem>>, vector<64x72xbf16>
    %c4_236 = arith.constant 4 : index
    %c0_237 = arith.constant 0 : index
    %c0_238 = arith.constant 0 : index
    %447 = vector.load %arg5[%c4_236, %c0_237, %c0_238] : memref<16x32x64xbf16, #tpu.memory_space<vmem>>, vector<1x32x64xbf16>
    %448 = vector.shape_cast %447 : vector<1x32x64xbf16> to vector<32x64xbf16>
    %cst_239 = arith.constant dense<0.000000e+00> : vector<32x72xf32>
    %449 = tpu.matmul %448, %446, %cst_239 {dimension_numbers = #tpu.dot_dimension_numbers<[1], [0], [0], [1], [0, 0, 1, 1], [], []>} : vector<32x64xbf16>, vector<64x72xbf16>, vector<32x72xf32> -> vector<32x72xf32>
    %450 = arith.addf %423, %449 : vector<32x72xf32>
    %c0_240 = arith.constant 0 : index
    %c7_241 = arith.constant 7 : index
    %451 = vector.load %arg17[%c0_240, %c7_241] : memref<64x86xbf16, #tpu.memory_space<vmem>>, vector<64x72xbf16>
    %c5_242 = arith.constant 5 : index
    %c0_243 = arith.constant 0 : index
    %c0_244 = arith.constant 0 : index
    %452 = vector.load %arg5[%c5_242, %c0_243, %c0_244] : memref<16x32x64xbf16, #tpu.memory_space<vmem>>, vector<1x32x64xbf16>
    %453 = vector.shape_cast %452 : vector<1x32x64xbf16> to vector<32x64xbf16>
    %cst_245 = arith.constant dense<0.000000e+00> : vector<32x72xf32>
    %454 = tpu.matmul %453, %451, %cst_245 {dimension_numbers = #tpu.dot_dimension_numbers<[1], [0], [0], [1], [0, 0, 1, 1], [], []>} : vector<32x64xbf16>, vector<64x72xbf16>, vector<32x72xf32> -> vector<32x72xf32>
    %455 = arith.addf %422, %454 : vector<32x72xf32>
    %c0_246 = arith.constant 0 : index
    %c7_247 = arith.constant 7 : index
    %456 = vector.load %arg17[%c0_246, %c7_247] : memref<64x86xbf16, #tpu.memory_space<vmem>>, vector<64x72xbf16>
    %c6_248 = arith.constant 6 : index
    %c0_249 = arith.constant 0 : index
    %c0_250 = arith.constant 0 : index
    %457 = vector.load %arg5[%c6_248, %c0_249, %c0_250] : memref<16x32x64xbf16, #tpu.memory_space<vmem>>, vector<1x32x64xbf16>
    %458 = vector.shape_cast %457 : vector<1x32x64xbf16> to vector<32x64xbf16>
    %cst_251 = arith.constant dense<0.000000e+00> : vector<32x72xf32>
    %459 = tpu.matmul %458, %456, %cst_251 {dimension_numbers = #tpu.dot_dimension_numbers<[1], [0], [0], [1], [0, 0, 1, 1], [], []>} : vector<32x64xbf16>, vector<64x72xbf16>, vector<32x72xf32> -> vector<32x72xf32>
    %460 = arith.addf %450, %459 : vector<32x72xf32>
    %c0_252 = arith.constant 0 : index
    %c6_253 = arith.constant 6 : index
    %461 = vector.load %arg17[%c0_252, %c6_253] : memref<64x86xbf16, #tpu.memory_space<vmem>>, vector<64x72xbf16>
    %c7_254 = arith.constant 7 : index
    %c0_255 = arith.constant 0 : index
    %c0_256 = arith.constant 0 : index
    %462 = vector.load %arg5[%c7_254, %c0_255, %c0_256] : memref<16x32x64xbf16, #tpu.memory_space<vmem>>, vector<1x32x64xbf16>
    %463 = vector.shape_cast %462 : vector<1x32x64xbf16> to vector<32x64xbf16>
    %cst_257 = arith.constant dense<0.000000e+00> : vector<32x72xf32>
    %464 = tpu.matmul %463, %461, %cst_257 {dimension_numbers = #tpu.dot_dimension_numbers<[1], [0], [0], [1], [0, 0, 1, 1], [], []>} : vector<32x64xbf16>, vector<64x72xbf16>, vector<32x72xf32> -> vector<32x72xf32>
    %465 = arith.addf %455, %464 : vector<32x72xf32>
    %c0_258 = arith.constant 0 : index
    %c8_259 = arith.constant 8 : index
    %466 = vector.load %arg17[%c0_258, %c8_259] : memref<64x86xbf16, #tpu.memory_space<vmem>>, vector<64x72xbf16>
    %c8_260 = arith.constant 8 : index
    %c0_261 = arith.constant 0 : index
    %c0_262 = arith.constant 0 : index
    %467 = vector.load %arg5[%c8_260, %c0_261, %c0_262] : memref<16x32x64xbf16, #tpu.memory_space<vmem>>, vector<1x32x64xbf16>
    %468 = vector.shape_cast %467 : vector<1x32x64xbf16> to vector<32x64xbf16>
    %cst_263 = arith.constant dense<0.000000e+00> : vector<32x72xf32>
    %469 = tpu.matmul %468, %466, %cst_263 {dimension_numbers = #tpu.dot_dimension_numbers<[1], [0], [0], [1], [0, 0, 1, 1], [], []>} : vector<32x64xbf16>, vector<64x72xbf16>, vector<32x72xf32> -> vector<32x72xf32>
    %470 = arith.addf %440, %469 : vector<32x72xf32>
    %c0_264 = arith.constant 0 : index
    %c7_265 = arith.constant 7 : index
    %471 = vector.load %arg17[%c0_264, %c7_265] : memref<64x86xbf16, #tpu.memory_space<vmem>>, vector<64x72xbf16>
    %c9_266 = arith.constant 9 : index
    %c0_267 = arith.constant 0 : index
    %c0_268 = arith.constant 0 : index
    %472 = vector.load %arg5[%c9_266, %c0_267, %c0_268] : memref<16x32x64xbf16, #tpu.memory_space<vmem>>, vector<1x32x64xbf16>
    %473 = vector.shape_cast %472 : vector<1x32x64xbf16> to vector<32x64xbf16>
    %cst_269 = arith.constant dense<0.000000e+00> : vector<32x72xf32>
    %474 = tpu.matmul %473, %471, %cst_269 {dimension_numbers = #tpu.dot_dimension_numbers<[1], [0], [0], [1], [0, 0, 1, 1], [], []>} : vector<32x64xbf16>, vector<64x72xbf16>, vector<32x72xf32> -> vector<32x72xf32>
    %475 = arith.addf %445, %474 : vector<32x72xf32>
    %c0_270 = arith.constant 0 : index
    %c7_271 = arith.constant 7 : index
    %476 = vector.load %arg17[%c0_270, %c7_271] : memref<64x86xbf16, #tpu.memory_space<vmem>>, vector<64x72xbf16>
    %c10_272 = arith.constant 10 : index
    %c0_273 = arith.constant 0 : index
    %c0_274 = arith.constant 0 : index
    %477 = vector.load %arg5[%c10_272, %c0_273, %c0_274] : memref<16x32x64xbf16, #tpu.memory_space<vmem>>, vector<1x32x64xbf16>
    %478 = vector.shape_cast %477 : vector<1x32x64xbf16> to vector<32x64xbf16>
    %cst_275 = arith.constant dense<0.000000e+00> : vector<32x72xf32>
    %479 = tpu.matmul %478, %476, %cst_275 {dimension_numbers = #tpu.dot_dimension_numbers<[1], [0], [0], [1], [0, 0, 1, 1], [], []>} : vector<32x64xbf16>, vector<64x72xbf16>, vector<32x72xf32> -> vector<32x72xf32>
    %480 = arith.addf %470, %479 : vector<32x72xf32>
    %c0_276 = arith.constant 0 : index
    %c6_277 = arith.constant 6 : index
    %481 = vector.load %arg17[%c0_276, %c6_277] : memref<64x86xbf16, #tpu.memory_space<vmem>>, vector<64x72xbf16>
    %c11_278 = arith.constant 11 : index
    %c0_279 = arith.constant 0 : index
    %c0_280 = arith.constant 0 : index
    %482 = vector.load %arg5[%c11_278, %c0_279, %c0_280] : memref<16x32x64xbf16, #tpu.memory_space<vmem>>, vector<1x32x64xbf16>
    %483 = vector.shape_cast %482 : vector<1x32x64xbf16> to vector<32x64xbf16>
    %cst_281 = arith.constant dense<0.000000e+00> : vector<32x72xf32>
    %484 = tpu.matmul %483, %481, %cst_281 {dimension_numbers = #tpu.dot_dimension_numbers<[1], [0], [0], [1], [0, 0, 1, 1], [], []>} : vector<32x64xbf16>, vector<64x72xbf16>, vector<32x72xf32> -> vector<32x72xf32>
    %485 = arith.addf %475, %484 : vector<32x72xf32>
    %c0_282 = arith.constant 0 : index
    %c2_283 = arith.constant 2 : index
    %486 = vector.load %arg17[%c0_282, %c2_283] : memref<64x86xbf16, #tpu.memory_space<vmem>>, vector<64x72xbf16>
    %c12_284 = arith.constant 12 : index
    %c0_285 = arith.constant 0 : index
    %c0_286 = arith.constant 0 : index
    %487 = vector.load %arg5[%c12_284, %c0_285, %c0_286] : memref<16x32x64xbf16, #tpu.memory_space<vmem>>, vector<1x32x64xbf16>
    %488 = vector.shape_cast %487 : vector<1x32x64xbf16> to vector<32x64xbf16>
    %cst_287 = arith.constant dense<0.000000e+00> : vector<32x72xf32>
    %489 = tpu.matmul %488, %486, %cst_287 {dimension_numbers = #tpu.dot_dimension_numbers<[1], [0], [0], [1], [0, 0, 1, 1], [], []>} : vector<32x64xbf16>, vector<64x72xbf16>, vector<32x72xf32> -> vector<32x72xf32>
    %490 = arith.addf %460, %489 : vector<32x72xf32>
    %c0_288 = arith.constant 0 : index
    %c1_289 = arith.constant 1 : index
    %491 = vector.load %arg17[%c0_288, %c1_289] : memref<64x86xbf16, #tpu.memory_space<vmem>>, vector<64x72xbf16>
    %c13_290 = arith.constant 13 : index
    %c0_291 = arith.constant 0 : index
    %c0_292 = arith.constant 0 : index
    %492 = vector.load %arg5[%c13_290, %c0_291, %c0_292] : memref<16x32x64xbf16, #tpu.memory_space<vmem>>, vector<1x32x64xbf16>
    %493 = vector.shape_cast %492 : vector<1x32x64xbf16> to vector<32x64xbf16>
    %cst_293 = arith.constant dense<0.000000e+00> : vector<32x72xf32>
    %494 = tpu.matmul %493, %491, %cst_293 {dimension_numbers = #tpu.dot_dimension_numbers<[1], [0], [0], [1], [0, 0, 1, 1], [], []>} : vector<32x64xbf16>, vector<64x72xbf16>, vector<32x72xf32> -> vector<32x72xf32>
    %495 = arith.addf %465, %494 : vector<32x72xf32>
    %c0_294 = arith.constant 0 : index
    %c1_295 = arith.constant 1 : index
    %496 = vector.load %arg17[%c0_294, %c1_295] : memref<64x86xbf16, #tpu.memory_space<vmem>>, vector<64x72xbf16>
    %c14_296 = arith.constant 14 : index
    %c0_297 = arith.constant 0 : index
    %c0_298 = arith.constant 0 : index
    %497 = vector.load %arg5[%c14_296, %c0_297, %c0_298] : memref<16x32x64xbf16, #tpu.memory_space<vmem>>, vector<1x32x64xbf16>
    %498 = vector.shape_cast %497 : vector<1x32x64xbf16> to vector<32x64xbf16>
    %cst_299 = arith.constant dense<0.000000e+00> : vector<32x72xf32>
    %499 = tpu.matmul %498, %496, %cst_299 {dimension_numbers = #tpu.dot_dimension_numbers<[1], [0], [0], [1], [0, 0, 1, 1], [], []>} : vector<32x64xbf16>, vector<64x72xbf16>, vector<32x72xf32> -> vector<32x72xf32>
    %500 = arith.addf %490, %499 : vector<32x72xf32>
    %c0_300 = arith.constant 0 : index
    %c0_301 = arith.constant 0 : index
    %501 = vector.load %arg17[%c0_300, %c0_301] : memref<64x86xbf16, #tpu.memory_space<vmem>>, vector<64x72xbf16>
    %c15_302 = arith.constant 15 : index
    %c0_303 = arith.constant 0 : index
    %c0_304 = arith.constant 0 : index
    %502 = vector.load %arg5[%c15_302, %c0_303, %c0_304] : memref<16x32x64xbf16, #tpu.memory_space<vmem>>, vector<1x32x64xbf16>
    %503 = vector.shape_cast %502 : vector<1x32x64xbf16> to vector<32x64xbf16>
    %cst_305 = arith.constant dense<0.000000e+00> : vector<32x72xf32>
    %504 = tpu.matmul %503, %501, %cst_305 {dimension_numbers = #tpu.dot_dimension_numbers<[1], [0], [0], [1], [0, 0, 1, 1], [], []>} : vector<32x64xbf16>, vector<64x72xbf16>, vector<32x72xf32> -> vector<32x72xf32>
    %505 = arith.addf %495, %504 : vector<32x72xf32>
    %c0_306 = arith.constant 0 : index
    %c0_307 = arith.constant 0 : index
    %506 = vector.load %arg8[%c0_306, %c0_307] : memref<1x72xf32, #tpu.memory_space<vmem>>, vector<1x72xf32>
    %c0_308 = arith.constant 0 : index
    %c0_309 = arith.constant 0 : index
    %507 = vector.load %arg6[%c0_308, %c0_309] : memref<32x1xf32, #tpu.memory_space<vmem>>, vector<32x1xf32>
    %c0_310 = arith.constant 0 : index
    %c0_311 = arith.constant 0 : index
    %508 = vector.load %arg7[%c0_310, %c0_311] : memref<32x1xf32, #tpu.memory_space<vmem>>, vector<32x1xf32>
    %509 = vector.broadcast %506 : vector<1x72xf32> to vector<32x72xf32>
    %510 = arith.mulf %505, %509 : vector<32x72xf32>
    %cst_312 = arith.constant dense<0.000000e+00> : vector<32xf32>
    %511 = vector.multi_reduction <add>, %510, %cst_312 [1] : vector<32x72xf32> to vector<32xf32>
    %512 = vector.shape_cast %511 : vector<32xf32> to vector<32x1xf32>
    %cst_313 = arith.constant 0.000000e+00 : f32
    %513 = vector.broadcast %cst_313 : f32 to vector<32x1xf32>
    %514 = arith.addf %513, %512 : vector<32x1xf32>
    %515 = vector.broadcast %506 : vector<1x72xf32> to vector<32x72xf32>
    %516 = arith.mulf %500, %515 : vector<32x72xf32>
    %cst_314 = arith.constant dense<0.000000e+00> : vector<32xf32>
    %517 = vector.multi_reduction <add>, %516, %cst_314 [1] : vector<32x72xf32> to vector<32xf32>
    %518 = vector.shape_cast %517 : vector<32xf32> to vector<32x1xf32>
    %519 = arith.addf %514, %518 : vector<32x1xf32>
    %520 = vector.broadcast %506 : vector<1x72xf32> to vector<32x72xf32>
    %521 = arith.mulf %485, %520 : vector<32x72xf32>
    %cst_315 = arith.constant dense<0.000000e+00> : vector<32xf32>
    %522 = vector.multi_reduction <add>, %521, %cst_315 [1] : vector<32x72xf32> to vector<32xf32>
    %523 = vector.shape_cast %522 : vector<32xf32> to vector<32x1xf32>
    %524 = arith.addf %519, %523 : vector<32x1xf32>
    %525 = vector.broadcast %506 : vector<1x72xf32> to vector<32x72xf32>
    %526 = arith.mulf %480, %525 : vector<32x72xf32>
    %cst_316 = arith.constant dense<0.000000e+00> : vector<32xf32>
    %527 = vector.multi_reduction <add>, %526, %cst_316 [1] : vector<32x72xf32> to vector<32xf32>
    %528 = vector.shape_cast %527 : vector<32xf32> to vector<32x1xf32>
    %529 = arith.addf %524, %528 : vector<32x1xf32>
    %530 = arith.mulf %505, %505 : vector<32x72xf32>
    %531 = vector.broadcast %506 : vector<1x72xf32> to vector<32x72xf32>
    %532 = arith.mulf %530, %531 : vector<32x72xf32>
    %cst_317 = arith.constant dense<0.000000e+00> : vector<32xf32>
    %533 = vector.multi_reduction <add>, %532, %cst_317 [1] : vector<32x72xf32> to vector<32xf32>
    %534 = vector.shape_cast %533 : vector<32xf32> to vector<32x1xf32>
    %cst_318 = arith.constant 0.000000e+00 : f32
    %535 = vector.broadcast %cst_318 : f32 to vector<32x1xf32>
    %536 = arith.addf %535, %534 : vector<32x1xf32>
    %537 = arith.mulf %500, %500 : vector<32x72xf32>
    %538 = vector.broadcast %506 : vector<1x72xf32> to vector<32x72xf32>
    %539 = arith.mulf %537, %538 : vector<32x72xf32>
    %cst_319 = arith.constant dense<0.000000e+00> : vector<32xf32>
    %540 = vector.multi_reduction <add>, %539, %cst_319 [1] : vector<32x72xf32> to vector<32xf32>
    %541 = vector.shape_cast %540 : vector<32xf32> to vector<32x1xf32>
    %542 = arith.addf %536, %541 : vector<32x1xf32>
    %543 = arith.mulf %485, %485 : vector<32x72xf32>
    %544 = vector.broadcast %506 : vector<1x72xf32> to vector<32x72xf32>
    %545 = arith.mulf %543, %544 : vector<32x72xf32>
    %cst_320 = arith.constant dense<0.000000e+00> : vector<32xf32>
    %546 = vector.multi_reduction <add>, %545, %cst_320 [1] : vector<32x72xf32> to vector<32xf32>
    %547 = vector.shape_cast %546 : vector<32xf32> to vector<32x1xf32>
    %548 = arith.addf %542, %547 : vector<32x1xf32>
    %549 = arith.mulf %480, %480 : vector<32x72xf32>
    %550 = vector.broadcast %506 : vector<1x72xf32> to vector<32x72xf32>
    %551 = arith.mulf %549, %550 : vector<32x72xf32>
    %cst_321 = arith.constant dense<0.000000e+00> : vector<32xf32>
    %552 = vector.multi_reduction <add>, %551, %cst_321 [1] : vector<32x72xf32> to vector<32xf32>
    %553 = vector.shape_cast %552 : vector<32xf32> to vector<32x1xf32>
    %554 = arith.addf %548, %553 : vector<32x1xf32>
    %cst_322 = arith.constant 7.812500e-03 : f32
    %555 = vector.broadcast %cst_322 : f32 to vector<32x1xf32>
    %556 = arith.mulf %529, %555 : vector<32x1xf32>
    %cst_323 = arith.constant 7.812500e-03 : f32
    %557 = vector.broadcast %cst_323 : f32 to vector<32x1xf32>
    %558 = arith.mulf %554, %557 : vector<32x1xf32>
    %559 = arith.mulf %556, %556 : vector<32x1xf32>
    %560 = arith.subf %558, %559 : vector<32x1xf32>
    %cst_324 = arith.constant 0.000000e+00 : f32
    %561 = vector.broadcast %cst_324 : f32 to vector<32x1xf32>
    %562 = arith.maximumf %560, %561 : vector<32x1xf32>
    %cst_325 = arith.constant 9.99999974E-6 : f32
    %563 = vector.broadcast %cst_325 : f32 to vector<32x1xf32>
    %564 = arith.addf %562, %563 : vector<32x1xf32>
    %565 = math.rsqrt %564 : vector<32x1xf32>
    %566 = arith.mulf %507, %565 : vector<32x1xf32>
    %567 = arith.mulf %556, %566 : vector<32x1xf32>
    %568 = arith.subf %508, %567 : vector<32x1xf32>
    %cst_326 = arith.constant 0.000000e+00 : f32
    %569 = vector.broadcast %cst_326 : f32 to vector<32x222xf32>
    %570 = vector.broadcast %566 : vector<32x1xf32> to vector<32x72xf32>
    %571 = arith.mulf %505, %570 : vector<32x72xf32>
    %572 = vector.broadcast %568 : vector<32x1xf32> to vector<32x72xf32>
    %573 = arith.addf %571, %572 : vector<32x72xf32>
    %cst_327 = arith.constant 0.000000e+00 : f32
    %574 = vector.broadcast %cst_327 : f32 to vector<32x72xf32>
    %575 = arith.maximumf %573, %574 : vector<32x72xf32>
    %576 = arith.truncf %575 : vector<32x72xf32> to vector<32x72xbf16>
    %c0_328 = arith.constant 0 : index
    %c0_329 = arith.constant 0 : index
    %c0_330 = arith.constant 0 : index
    %577 = vector.load %arg9[%c0_328, %c0_329, %c0_330] : memref<4x72x222xbf16, #tpu.memory_space<vmem>>, vector<1x72x222xbf16>
    %578 = vector.shape_cast %577 : vector<1x72x222xbf16> to vector<72x222xbf16>
    %cst_331 = arith.constant dense<0.000000e+00> : vector<32x222xf32>
    %579 = tpu.matmul %576, %578, %cst_331 {dimension_numbers = #tpu.dot_dimension_numbers<[1], [0], [0], [1], [0, 0, 1, 1], [], []>} : vector<32x72xbf16>, vector<72x222xbf16>, vector<32x222xf32> -> vector<32x222xf32>
    %580 = arith.addf %569, %579 : vector<32x222xf32>
    %581 = vector.broadcast %566 : vector<32x1xf32> to vector<32x72xf32>
    %582 = arith.mulf %500, %581 : vector<32x72xf32>
    %583 = vector.broadcast %568 : vector<32x1xf32> to vector<32x72xf32>
    %584 = arith.addf %582, %583 : vector<32x72xf32>
    %cst_332 = arith.constant 0.000000e+00 : f32
    %585 = vector.broadcast %cst_332 : f32 to vector<32x72xf32>
    %586 = arith.maximumf %584, %585 : vector<32x72xf32>
    %587 = arith.truncf %586 : vector<32x72xf32> to vector<32x72xbf16>
    %c1_333 = arith.constant 1 : index
    %c0_334 = arith.constant 0 : index
    %c0_335 = arith.constant 0 : index
    %588 = vector.load %arg9[%c1_333, %c0_334, %c0_335] : memref<4x72x222xbf16, #tpu.memory_space<vmem>>, vector<1x72x222xbf16>
    %589 = vector.shape_cast %588 : vector<1x72x222xbf16> to vector<72x222xbf16>
    %cst_336 = arith.constant dense<0.000000e+00> : vector<32x222xf32>
    %590 = tpu.matmul %587, %589, %cst_336 {dimension_numbers = #tpu.dot_dimension_numbers<[1], [0], [0], [1], [0, 0, 1, 1], [], []>} : vector<32x72xbf16>, vector<72x222xbf16>, vector<32x222xf32> -> vector<32x222xf32>
    %591 = arith.addf %580, %590 : vector<32x222xf32>
    %592 = vector.broadcast %566 : vector<32x1xf32> to vector<32x72xf32>
    %593 = arith.mulf %485, %592 : vector<32x72xf32>
    %594 = vector.broadcast %568 : vector<32x1xf32> to vector<32x72xf32>
    %595 = arith.addf %593, %594 : vector<32x72xf32>
    %cst_337 = arith.constant 0.000000e+00 : f32
    %596 = vector.broadcast %cst_337 : f32 to vector<32x72xf32>
    %597 = arith.maximumf %595, %596 : vector<32x72xf32>
    %598 = arith.truncf %597 : vector<32x72xf32> to vector<32x72xbf16>
    %c2_338 = arith.constant 2 : index
    %c0_339 = arith.constant 0 : index
    %c0_340 = arith.constant 0 : index
    %599 = vector.load %arg9[%c2_338, %c0_339, %c0_340] : memref<4x72x222xbf16, #tpu.memory_space<vmem>>, vector<1x72x222xbf16>
    %600 = vector.shape_cast %599 : vector<1x72x222xbf16> to vector<72x222xbf16>
    %cst_341 = arith.constant dense<0.000000e+00> : vector<32x222xf32>
    %601 = tpu.matmul %598, %600, %cst_341 {dimension_numbers = #tpu.dot_dimension_numbers<[1], [0], [0], [1], [0, 0, 1, 1], [], []>} : vector<32x72xbf16>, vector<72x222xbf16>, vector<32x222xf32> -> vector<32x222xf32>
    %602 = arith.addf %591, %601 : vector<32x222xf32>
    %603 = vector.broadcast %566 : vector<32x1xf32> to vector<32x72xf32>
    %604 = arith.mulf %480, %603 : vector<32x72xf32>
    %605 = vector.broadcast %568 : vector<32x1xf32> to vector<32x72xf32>
    %606 = arith.addf %604, %605 : vector<32x72xf32>
    %cst_342 = arith.constant 0.000000e+00 : f32
    %607 = vector.broadcast %cst_342 : f32 to vector<32x72xf32>
    %608 = arith.maximumf %606, %607 : vector<32x72xf32>
    %609 = arith.truncf %608 : vector<32x72xf32> to vector<32x72xbf16>
    %c3_343 = arith.constant 3 : index
    %c0_344 = arith.constant 0 : index
    %c0_345 = arith.constant 0 : index
    %610 = vector.load %arg9[%c3_343, %c0_344, %c0_345] : memref<4x72x222xbf16, #tpu.memory_space<vmem>>, vector<1x72x222xbf16>
    %611 = vector.shape_cast %610 : vector<1x72x222xbf16> to vector<72x222xbf16>
    %cst_346 = arith.constant dense<0.000000e+00> : vector<32x222xf32>
    %612 = tpu.matmul %609, %611, %cst_346 {dimension_numbers = #tpu.dot_dimension_numbers<[1], [0], [0], [1], [0, 0, 1, 1], [], []>} : vector<32x72xbf16>, vector<72x222xbf16>, vector<32x222xf32> -> vector<32x222xf32>
    %613 = arith.addf %602, %612 : vector<32x222xf32>
    %614 = arith.truncf %613 : vector<32x222xf32> to vector<32x222xbf16>
    %c0_347 = arith.constant 0 : index
    %c0_348 = arith.constant 0 : index
    %615 = vector.load %arg18[%c0_347, %c0_348] : memref<32x222xbf16, #tpu.memory_space<vmem>>, vector<32x222xbf16>
    tpu.vector_store %arg18[%c0_347, %c0_348], %614 {strides = array<i32>} : memref<32x222xbf16, #tpu.memory_space<vmem>>, vector<32x222xbf16>,
    %cst_349 = arith.constant 0.000000e+00 : f32
    %616 = vector.broadcast %cst_349 : f32 to vector<16x200xf32>
    %cst_350 = arith.constant 0.000000e+00 : f32
    %617 = vector.broadcast %cst_350 : f32 to vector<16x200xf32>
    %cst_351 = arith.constant 0.000000e+00 : f32
    %618 = vector.broadcast %cst_351 : f32 to vector<16x200xf32>
    %cst_352 = arith.constant 0.000000e+00 : f32
    %619 = vector.broadcast %cst_352 : f32 to vector<16x200xf32>
    %c0_353 = arith.constant 0 : index
    %c22 = arith.constant 22 : index
    %620 = vector.load %arg18[%c0_353, %c22] : memref<32x222xbf16, #tpu.memory_space<vmem>>, vector<32x200xbf16>
    %c0_354 = arith.constant 0 : index
    %c0_355 = arith.constant 0 : index
    %c0_356 = arith.constant 0 : index
    %621 = vector.load %arg10[%c0_354, %c0_355, %c0_356] : memref<16x16x32xbf16, #tpu.memory_space<vmem>>, vector<1x16x32xbf16>
    %622 = vector.shape_cast %621 : vector<1x16x32xbf16> to vector<16x32xbf16>
    %cst_357 = arith.constant dense<0.000000e+00> : vector<16x200xf32>
    %623 = tpu.matmul %622, %620, %cst_357 {dimension_numbers = #tpu.dot_dimension_numbers<[1], [0], [0], [1], [0, 0, 1, 1], [], []>} : vector<16x32xbf16>, vector<32x200xbf16>, vector<16x200xf32> -> vector<16x200xf32>
    %624 = arith.addf %619, %623 : vector<16x200xf32>
    %c0_358 = arith.constant 0 : index
    %c21 = arith.constant 21 : index
    %625 = vector.load %arg18[%c0_358, %c21] : memref<32x222xbf16, #tpu.memory_space<vmem>>, vector<32x200xbf16>
    %c1_359 = arith.constant 1 : index
    %c0_360 = arith.constant 0 : index
    %c0_361 = arith.constant 0 : index
    %626 = vector.load %arg10[%c1_359, %c0_360, %c0_361] : memref<16x16x32xbf16, #tpu.memory_space<vmem>>, vector<1x16x32xbf16>
    %627 = vector.shape_cast %626 : vector<1x16x32xbf16> to vector<16x32xbf16>
    %cst_362 = arith.constant dense<0.000000e+00> : vector<16x200xf32>
    %628 = tpu.matmul %627, %625, %cst_362 {dimension_numbers = #tpu.dot_dimension_numbers<[1], [0], [0], [1], [0, 0, 1, 1], [], []>} : vector<16x32xbf16>, vector<32x200xbf16>, vector<16x200xf32> -> vector<16x200xf32>
    %629 = arith.addf %618, %628 : vector<16x200xf32>
    %c0_363 = arith.constant 0 : index
    %c21_364 = arith.constant 21 : index
    %630 = vector.load %arg18[%c0_363, %c21_364] : memref<32x222xbf16, #tpu.memory_space<vmem>>, vector<32x200xbf16>
    %c2_365 = arith.constant 2 : index
    %c0_366 = arith.constant 0 : index
    %c0_367 = arith.constant 0 : index
    %631 = vector.load %arg10[%c2_365, %c0_366, %c0_367] : memref<16x16x32xbf16, #tpu.memory_space<vmem>>, vector<1x16x32xbf16>
    %632 = vector.shape_cast %631 : vector<1x16x32xbf16> to vector<16x32xbf16>
    %cst_368 = arith.constant dense<0.000000e+00> : vector<16x200xf32>
    %633 = tpu.matmul %632, %630, %cst_368 {dimension_numbers = #tpu.dot_dimension_numbers<[1], [0], [0], [1], [0, 0, 1, 1], [], []>} : vector<16x32xbf16>, vector<32x200xbf16>, vector<16x200xf32> -> vector<16x200xf32>
    %634 = arith.addf %624, %633 : vector<16x200xf32>
    %c0_369 = arith.constant 0 : index
    %c20 = arith.constant 20 : index
    %635 = vector.load %arg18[%c0_369, %c20] : memref<32x222xbf16, #tpu.memory_space<vmem>>, vector<32x200xbf16>
    %c3_370 = arith.constant 3 : index
    %c0_371 = arith.constant 0 : index
    %c0_372 = arith.constant 0 : index
    %636 = vector.load %arg10[%c3_370, %c0_371, %c0_372] : memref<16x16x32xbf16, #tpu.memory_space<vmem>>, vector<1x16x32xbf16>
    %637 = vector.shape_cast %636 : vector<1x16x32xbf16> to vector<16x32xbf16>
    %cst_373 = arith.constant dense<0.000000e+00> : vector<16x200xf32>
    %638 = tpu.matmul %637, %635, %cst_373 {dimension_numbers = #tpu.dot_dimension_numbers<[1], [0], [0], [1], [0, 0, 1, 1], [], []>} : vector<16x32xbf16>, vector<32x200xbf16>, vector<16x200xf32> -> vector<16x200xf32>
    %639 = arith.addf %629, %638 : vector<16x200xf32>
    %c0_374 = arith.constant 0 : index
    %c12_375 = arith.constant 12 : index
    %640 = vector.load %arg18[%c0_374, %c12_375] : memref<32x222xbf16, #tpu.memory_space<vmem>>, vector<32x200xbf16>
    %c4_376 = arith.constant 4 : index
    %c0_377 = arith.constant 0 : index
    %c0_378 = arith.constant 0 : index
    %641 = vector.load %arg10[%c4_376, %c0_377, %c0_378] : memref<16x16x32xbf16, #tpu.memory_space<vmem>>, vector<1x16x32xbf16>
    %642 = vector.shape_cast %641 : vector<1x16x32xbf16> to vector<16x32xbf16>
    %cst_379 = arith.constant dense<0.000000e+00> : vector<16x200xf32>
    %643 = tpu.matmul %642, %640, %cst_379 {dimension_numbers = #tpu.dot_dimension_numbers<[1], [0], [0], [1], [0, 0, 1, 1], [], []>} : vector<16x32xbf16>, vector<32x200xbf16>, vector<16x200xf32> -> vector<16x200xf32>
    %644 = arith.addf %617, %643 : vector<16x200xf32>
    %c0_380 = arith.constant 0 : index
    %c11_381 = arith.constant 11 : index
    %645 = vector.load %arg18[%c0_380, %c11_381] : memref<32x222xbf16, #tpu.memory_space<vmem>>, vector<32x200xbf16>
    %c5_382 = arith.constant 5 : index
    %c0_383 = arith.constant 0 : index
    %c0_384 = arith.constant 0 : index
    %646 = vector.load %arg10[%c5_382, %c0_383, %c0_384] : memref<16x16x32xbf16, #tpu.memory_space<vmem>>, vector<1x16x32xbf16>
    %647 = vector.shape_cast %646 : vector<1x16x32xbf16> to vector<16x32xbf16>
    %cst_385 = arith.constant dense<0.000000e+00> : vector<16x200xf32>
    %648 = tpu.matmul %647, %645, %cst_385 {dimension_numbers = #tpu.dot_dimension_numbers<[1], [0], [0], [1], [0, 0, 1, 1], [], []>} : vector<16x32xbf16>, vector<32x200xbf16>, vector<16x200xf32> -> vector<16x200xf32>
    %649 = arith.addf %616, %648 : vector<16x200xf32>
    %c0_386 = arith.constant 0 : index
    %c11_387 = arith.constant 11 : index
    %650 = vector.load %arg18[%c0_386, %c11_387] : memref<32x222xbf16, #tpu.memory_space<vmem>>, vector<32x200xbf16>
    %c6_388 = arith.constant 6 : index
    %c0_389 = arith.constant 0 : index
    %c0_390 = arith.constant 0 : index
    %651 = vector.load %arg10[%c6_388, %c0_389, %c0_390] : memref<16x16x32xbf16, #tpu.memory_space<vmem>>, vector<1x16x32xbf16>
    %652 = vector.shape_cast %651 : vector<1x16x32xbf16> to vector<16x32xbf16>
    %cst_391 = arith.constant dense<0.000000e+00> : vector<16x200xf32>
    %653 = tpu.matmul %652, %650, %cst_391 {dimension_numbers = #tpu.dot_dimension_numbers<[1], [0], [0], [1], [0, 0, 1, 1], [], []>} : vector<16x32xbf16>, vector<32x200xbf16>, vector<16x200xf32> -> vector<16x200xf32>
    %654 = arith.addf %644, %653 : vector<16x200xf32>
    %c0_392 = arith.constant 0 : index
    %c10_393 = arith.constant 10 : index
    %655 = vector.load %arg18[%c0_392, %c10_393] : memref<32x222xbf16, #tpu.memory_space<vmem>>, vector<32x200xbf16>
    %c7_394 = arith.constant 7 : index
    %c0_395 = arith.constant 0 : index
    %c0_396 = arith.constant 0 : index
    %656 = vector.load %arg10[%c7_394, %c0_395, %c0_396] : memref<16x16x32xbf16, #tpu.memory_space<vmem>>, vector<1x16x32xbf16>
    %657 = vector.shape_cast %656 : vector<1x16x32xbf16> to vector<16x32xbf16>
    %cst_397 = arith.constant dense<0.000000e+00> : vector<16x200xf32>
    %658 = tpu.matmul %657, %655, %cst_397 {dimension_numbers = #tpu.dot_dimension_numbers<[1], [0], [0], [1], [0, 0, 1, 1], [], []>} : vector<16x32xbf16>, vector<32x200xbf16>, vector<16x200xf32> -> vector<16x200xf32>
    %659 = arith.addf %649, %658 : vector<16x200xf32>
    %c0_398 = arith.constant 0 : index
    %c12_399 = arith.constant 12 : index
    %660 = vector.load %arg18[%c0_398, %c12_399] : memref<32x222xbf16, #tpu.memory_space<vmem>>, vector<32x200xbf16>
    %c8_400 = arith.constant 8 : index
    %c0_401 = arith.constant 0 : index
    %c0_402 = arith.constant 0 : index
    %661 = vector.load %arg10[%c8_400, %c0_401, %c0_402] : memref<16x16x32xbf16, #tpu.memory_space<vmem>>, vector<1x16x32xbf16>
    %662 = vector.shape_cast %661 : vector<1x16x32xbf16> to vector<16x32xbf16>
    %cst_403 = arith.constant dense<0.000000e+00> : vector<16x200xf32>
    %663 = tpu.matmul %662, %660, %cst_403 {dimension_numbers = #tpu.dot_dimension_numbers<[1], [0], [0], [1], [0, 0, 1, 1], [], []>} : vector<16x32xbf16>, vector<32x200xbf16>, vector<16x200xf32> -> vector<16x200xf32>
    %664 = arith.addf %634, %663 : vector<16x200xf32>
    %c0_404 = arith.constant 0 : index
    %c11_405 = arith.constant 11 : index
    %665 = vector.load %arg18[%c0_404, %c11_405] : memref<32x222xbf16, #tpu.memory_space<vmem>>, vector<32x200xbf16>
    %c9_406 = arith.constant 9 : index
    %c0_407 = arith.constant 0 : index
    %c0_408 = arith.constant 0 : index
    %666 = vector.load %arg10[%c9_406, %c0_407, %c0_408] : memref<16x16x32xbf16, #tpu.memory_space<vmem>>, vector<1x16x32xbf16>
    %667 = vector.shape_cast %666 : vector<1x16x32xbf16> to vector<16x32xbf16>
    %cst_409 = arith.constant dense<0.000000e+00> : vector<16x200xf32>
    %668 = tpu.matmul %667, %665, %cst_409 {dimension_numbers = #tpu.dot_dimension_numbers<[1], [0], [0], [1], [0, 0, 1, 1], [], []>} : vector<16x32xbf16>, vector<32x200xbf16>, vector<16x200xf32> -> vector<16x200xf32>
    %669 = arith.addf %639, %668 : vector<16x200xf32>
    %c0_410 = arith.constant 0 : index
    %c11_411 = arith.constant 11 : index
    %670 = vector.load %arg18[%c0_410, %c11_411] : memref<32x222xbf16, #tpu.memory_space<vmem>>, vector<32x200xbf16>
    %c10_412 = arith.constant 10 : index
    %c0_413 = arith.constant 0 : index
    %c0_414 = arith.constant 0 : index
    %671 = vector.load %arg10[%c10_412, %c0_413, %c0_414] : memref<16x16x32xbf16, #tpu.memory_space<vmem>>, vector<1x16x32xbf16>
    %672 = vector.shape_cast %671 : vector<1x16x32xbf16> to vector<16x32xbf16>
    %cst_415 = arith.constant dense<0.000000e+00> : vector<16x200xf32>
    %673 = tpu.matmul %672, %670, %cst_415 {dimension_numbers = #tpu.dot_dimension_numbers<[1], [0], [0], [1], [0, 0, 1, 1], [], []>} : vector<16x32xbf16>, vector<32x200xbf16>, vector<16x200xf32> -> vector<16x200xf32>
    %674 = arith.addf %664, %673 : vector<16x200xf32>
    %c0_416 = arith.constant 0 : index
    %c10_417 = arith.constant 10 : index
    %675 = vector.load %arg18[%c0_416, %c10_417] : memref<32x222xbf16, #tpu.memory_space<vmem>>, vector<32x200xbf16>
    %c11_418 = arith.constant 11 : index
    %c0_419 = arith.constant 0 : index
    %c0_420 = arith.constant 0 : index
    %676 = vector.load %arg10[%c11_418, %c0_419, %c0_420] : memref<16x16x32xbf16, #tpu.memory_space<vmem>>, vector<1x16x32xbf16>
    %677 = vector.shape_cast %676 : vector<1x16x32xbf16> to vector<16x32xbf16>
    %cst_421 = arith.constant dense<0.000000e+00> : vector<16x200xf32>
    %678 = tpu.matmul %677, %675, %cst_421 {dimension_numbers = #tpu.dot_dimension_numbers<[1], [0], [0], [1], [0, 0, 1, 1], [], []>} : vector<16x32xbf16>, vector<32x200xbf16>, vector<16x200xf32> -> vector<16x200xf32>
    %679 = arith.addf %669, %678 : vector<16x200xf32>
    %c0_422 = arith.constant 0 : index
    %c2_423 = arith.constant 2 : index
    %680 = vector.load %arg18[%c0_422, %c2_423] : memref<32x222xbf16, #tpu.memory_space<vmem>>, vector<32x200xbf16>
    %c12_424 = arith.constant 12 : index
    %c0_425 = arith.constant 0 : index
    %c0_426 = arith.constant 0 : index
    %681 = vector.load %arg10[%c12_424, %c0_425, %c0_426] : memref<16x16x32xbf16, #tpu.memory_space<vmem>>, vector<1x16x32xbf16>
    %682 = vector.shape_cast %681 : vector<1x16x32xbf16> to vector<16x32xbf16>
    %cst_427 = arith.constant dense<0.000000e+00> : vector<16x200xf32>
    %683 = tpu.matmul %682, %680, %cst_427 {dimension_numbers = #tpu.dot_dimension_numbers<[1], [0], [0], [1], [0, 0, 1, 1], [], []>} : vector<16x32xbf16>, vector<32x200xbf16>, vector<16x200xf32> -> vector<16x200xf32>
    %684 = arith.addf %654, %683 : vector<16x200xf32>
    %c0_428 = arith.constant 0 : index
    %c1_429 = arith.constant 1 : index
    %685 = vector.load %arg18[%c0_428, %c1_429] : memref<32x222xbf16, #tpu.memory_space<vmem>>, vector<32x200xbf16>
    %c13_430 = arith.constant 13 : index
    %c0_431 = arith.constant 0 : index
    %c0_432 = arith.constant 0 : index
    %686 = vector.load %arg10[%c13_430, %c0_431, %c0_432] : memref<16x16x32xbf16, #tpu.memory_space<vmem>>, vector<1x16x32xbf16>
    %687 = vector.shape_cast %686 : vector<1x16x32xbf16> to vector<16x32xbf16>
    %cst_433 = arith.constant dense<0.000000e+00> : vector<16x200xf32>
    %688 = tpu.matmul %687, %685, %cst_433 {dimension_numbers = #tpu.dot_dimension_numbers<[1], [0], [0], [1], [0, 0, 1, 1], [], []>} : vector<16x32xbf16>, vector<32x200xbf16>, vector<16x200xf32> -> vector<16x200xf32>
    %689 = arith.addf %659, %688 : vector<16x200xf32>
    %c0_434 = arith.constant 0 : index
    %c1_435 = arith.constant 1 : index
    %690 = vector.load %arg18[%c0_434, %c1_435] : memref<32x222xbf16, #tpu.memory_space<vmem>>, vector<32x200xbf16>
    %c14_436 = arith.constant 14 : index
    %c0_437 = arith.constant 0 : index
    %c0_438 = arith.constant 0 : index
    %691 = vector.load %arg10[%c14_436, %c0_437, %c0_438] : memref<16x16x32xbf16, #tpu.memory_space<vmem>>, vector<1x16x32xbf16>
    %692 = vector.shape_cast %691 : vector<1x16x32xbf16> to vector<16x32xbf16>
    %cst_439 = arith.constant dense<0.000000e+00> : vector<16x200xf32>
    %693 = tpu.matmul %692, %690, %cst_439 {dimension_numbers = #tpu.dot_dimension_numbers<[1], [0], [0], [1], [0, 0, 1, 1], [], []>} : vector<16x32xbf16>, vector<32x200xbf16>, vector<16x200xf32> -> vector<16x200xf32>
    %694 = arith.addf %684, %693 : vector<16x200xf32>
    %c0_440 = arith.constant 0 : index
    %c0_441 = arith.constant 0 : index
    %695 = vector.load %arg18[%c0_440, %c0_441] : memref<32x222xbf16, #tpu.memory_space<vmem>>, vector<32x200xbf16>
    %c15_442 = arith.constant 15 : index
    %c0_443 = arith.constant 0 : index
    %c0_444 = arith.constant 0 : index
    %696 = vector.load %arg10[%c15_442, %c0_443, %c0_444] : memref<16x16x32xbf16, #tpu.memory_space<vmem>>, vector<1x16x32xbf16>
    %697 = vector.shape_cast %696 : vector<1x16x32xbf16> to vector<16x32xbf16>
    %cst_445 = arith.constant dense<0.000000e+00> : vector<16x200xf32>
    %698 = tpu.matmul %697, %695, %cst_445 {dimension_numbers = #tpu.dot_dimension_numbers<[1], [0], [0], [1], [0, 0, 1, 1], [], []>} : vector<16x32xbf16>, vector<32x200xbf16>, vector<16x200xf32> -> vector<16x200xf32>
    %699 = arith.addf %689, %698 : vector<16x200xf32>
    %c0_446 = arith.constant 0 : index
    %c0_447 = arith.constant 0 : index
    %700 = vector.load %arg13[%c0_446, %c0_447] : memref<1x200xf32, #tpu.memory_space<vmem>>, vector<1x200xf32>
    %c0_448 = arith.constant 0 : index
    %c0_449 = arith.constant 0 : index
    %701 = vector.load %arg11[%c0_448, %c0_449] : memref<16x1xf32, #tpu.memory_space<vmem>>, vector<16x1xf32>
    %c0_450 = arith.constant 0 : index
    %c0_451 = arith.constant 0 : index
    %702 = vector.load %arg12[%c0_450, %c0_451] : memref<16x1xf32, #tpu.memory_space<vmem>>, vector<16x1xf32>
    %703 = vector.broadcast %700 : vector<1x200xf32> to vector<16x200xf32>
    %704 = arith.mulf %699, %703 : vector<16x200xf32>
    %cst_452 = arith.constant dense<0.000000e+00> : vector<16xf32>
    %705 = vector.multi_reduction <add>, %704, %cst_452 [1] : vector<16x200xf32> to vector<16xf32>
    %706 = vector.shape_cast %705 : vector<16xf32> to vector<16x1xf32>
    %cst_453 = arith.constant 0.000000e+00 : f32
    %707 = vector.broadcast %cst_453 : f32 to vector<16x1xf32>
    %708 = arith.addf %707, %706 : vector<16x1xf32>
    %709 = vector.broadcast %700 : vector<1x200xf32> to vector<16x200xf32>
    %710 = arith.mulf %694, %709 : vector<16x200xf32>
    %cst_454 = arith.constant dense<0.000000e+00> : vector<16xf32>
    %711 = vector.multi_reduction <add>, %710, %cst_454 [1] : vector<16x200xf32> to vector<16xf32>
    %712 = vector.shape_cast %711 : vector<16xf32> to vector<16x1xf32>
    %713 = arith.addf %708, %712 : vector<16x1xf32>
    %714 = vector.broadcast %700 : vector<1x200xf32> to vector<16x200xf32>
    %715 = arith.mulf %679, %714 : vector<16x200xf32>
    %cst_455 = arith.constant dense<0.000000e+00> : vector<16xf32>
    %716 = vector.multi_reduction <add>, %715, %cst_455 [1] : vector<16x200xf32> to vector<16xf32>
    %717 = vector.shape_cast %716 : vector<16xf32> to vector<16x1xf32>
    %718 = arith.addf %713, %717 : vector<16x1xf32>
    %719 = vector.broadcast %700 : vector<1x200xf32> to vector<16x200xf32>
    %720 = arith.mulf %674, %719 : vector<16x200xf32>
    %cst_456 = arith.constant dense<0.000000e+00> : vector<16xf32>
    %721 = vector.multi_reduction <add>, %720, %cst_456 [1] : vector<16x200xf32> to vector<16xf32>
    %722 = vector.shape_cast %721 : vector<16xf32> to vector<16x1xf32>
    %723 = arith.addf %718, %722 : vector<16x1xf32>
    %724 = arith.mulf %699, %699 : vector<16x200xf32>
    %725 = vector.broadcast %700 : vector<1x200xf32> to vector<16x200xf32>
    %726 = arith.mulf %724, %725 : vector<16x200xf32>
    %cst_457 = arith.constant dense<0.000000e+00> : vector<16xf32>
    %727 = vector.multi_reduction <add>, %726, %cst_457 [1] : vector<16x200xf32> to vector<16xf32>
    %728 = vector.shape_cast %727 : vector<16xf32> to vector<16x1xf32>
    %cst_458 = arith.constant 0.000000e+00 : f32
    %729 = vector.broadcast %cst_458 : f32 to vector<16x1xf32>
    %730 = arith.addf %729, %728 : vector<16x1xf32>
    %731 = arith.mulf %694, %694 : vector<16x200xf32>
    %732 = vector.broadcast %700 : vector<1x200xf32> to vector<16x200xf32>
    %733 = arith.mulf %731, %732 : vector<16x200xf32>
    %cst_459 = arith.constant dense<0.000000e+00> : vector<16xf32>
    %734 = vector.multi_reduction <add>, %733, %cst_459 [1] : vector<16x200xf32> to vector<16xf32>
    %735 = vector.shape_cast %734 : vector<16xf32> to vector<16x1xf32>
    %736 = arith.addf %730, %735 : vector<16x1xf32>
    %737 = arith.mulf %679, %679 : vector<16x200xf32>
    %738 = vector.broadcast %700 : vector<1x200xf32> to vector<16x200xf32>
    %739 = arith.mulf %737, %738 : vector<16x200xf32>
    %cst_460 = arith.constant dense<0.000000e+00> : vector<16xf32>
    %740 = vector.multi_reduction <add>, %739, %cst_460 [1] : vector<16x200xf32> to vector<16xf32>
    %741 = vector.shape_cast %740 : vector<16xf32> to vector<16x1xf32>
    %742 = arith.addf %736, %741 : vector<16x1xf32>
    %743 = arith.mulf %674, %674 : vector<16x200xf32>
    %744 = vector.broadcast %700 : vector<1x200xf32> to vector<16x200xf32>
    %745 = arith.mulf %743, %744 : vector<16x200xf32>
    %cst_461 = arith.constant dense<0.000000e+00> : vector<16xf32>
    %746 = vector.multi_reduction <add>, %745, %cst_461 [1] : vector<16x200xf32> to vector<16xf32>
    %747 = vector.shape_cast %746 : vector<16xf32> to vector<16x1xf32>
    %748 = arith.addf %742, %747 : vector<16x1xf32>
    %cst_462 = arith.constant 0.001953125 : f32
    %749 = vector.broadcast %cst_462 : f32 to vector<16x1xf32>
    %750 = arith.mulf %723, %749 : vector<16x1xf32>
    %cst_463 = arith.constant 0.001953125 : f32
    %751 = vector.broadcast %cst_463 : f32 to vector<16x1xf32>
    %752 = arith.mulf %748, %751 : vector<16x1xf32>
    %753 = arith.mulf %750, %750 : vector<16x1xf32>
    %754 = arith.subf %752, %753 : vector<16x1xf32>
    %cst_464 = arith.constant 0.000000e+00 : f32
    %755 = vector.broadcast %cst_464 : f32 to vector<16x1xf32>
    %756 = arith.maximumf %754, %755 : vector<16x1xf32>
    %cst_465 = arith.constant 9.99999974E-6 : f32
    %757 = vector.broadcast %cst_465 : f32 to vector<16x1xf32>
    %758 = arith.addf %756, %757 : vector<16x1xf32>
    %759 = math.rsqrt %758 : vector<16x1xf32>
    %760 = arith.mulf %701, %759 : vector<16x1xf32>
    %761 = arith.mulf %750, %760 : vector<16x1xf32>
    %762 = arith.subf %702, %761 : vector<16x1xf32>
    %cst_466 = arith.constant 0.000000e+00 : f32
    %763 = vector.broadcast %cst_466 : f32 to vector<16x686xf32>
    %764 = vector.broadcast %760 : vector<16x1xf32> to vector<16x200xf32>
    %765 = arith.mulf %699, %764 : vector<16x200xf32>
    %766 = vector.broadcast %762 : vector<16x1xf32> to vector<16x200xf32>
    %767 = arith.addf %765, %766 : vector<16x200xf32>
    %cst_467 = arith.constant 0.000000e+00 : f32
    %768 = vector.broadcast %cst_467 : f32 to vector<16x200xf32>
    %769 = arith.maximumf %767, %768 : vector<16x200xf32>
    %770 = arith.truncf %769 : vector<16x200xf32> to vector<16x200xbf16>
    %c0_468 = arith.constant 0 : index
    %c0_469 = arith.constant 0 : index
    %c0_470 = arith.constant 0 : index
    %771 = vector.load %arg14[%c0_468, %c0_469, %c0_470] : memref<4x200x686xbf16, #tpu.memory_space<vmem>>, vector<1x200x686xbf16>
    %772 = vector.shape_cast %771 : vector<1x200x686xbf16> to vector<200x686xbf16>
    %cst_471 = arith.constant dense<0.000000e+00> : vector<16x686xf32>
    %773 = tpu.matmul %770, %772, %cst_471 {dimension_numbers = #tpu.dot_dimension_numbers<[1], [0], [0], [1], [0, 0, 1, 1], [], []>} : vector<16x200xbf16>, vector<200x686xbf16>, vector<16x686xf32> -> vector<16x686xf32>
    %774 = arith.addf %763, %773 : vector<16x686xf32>
    %775 = vector.broadcast %760 : vector<16x1xf32> to vector<16x200xf32>
    %776 = arith.mulf %694, %775 : vector<16x200xf32>
    %777 = vector.broadcast %762 : vector<16x1xf32> to vector<16x200xf32>
    %778 = arith.addf %776, %777 : vector<16x200xf32>
    %cst_472 = arith.constant 0.000000e+00 : f32
    %779 = vector.broadcast %cst_472 : f32 to vector<16x200xf32>
    %780 = arith.maximumf %778, %779 : vector<16x200xf32>
    %781 = arith.truncf %780 : vector<16x200xf32> to vector<16x200xbf16>
    %c1_473 = arith.constant 1 : index
    %c0_474 = arith.constant 0 : index
    %c0_475 = arith.constant 0 : index
    %782 = vector.load %arg14[%c1_473, %c0_474, %c0_475] : memref<4x200x686xbf16, #tpu.memory_space<vmem>>, vector<1x200x686xbf16>
    %783 = vector.shape_cast %782 : vector<1x200x686xbf16> to vector<200x686xbf16>
    %cst_476 = arith.constant dense<0.000000e+00> : vector<16x686xf32>
    %784 = tpu.matmul %781, %783, %cst_476 {dimension_numbers = #tpu.dot_dimension_numbers<[1], [0], [0], [1], [0, 0, 1, 1], [], []>} : vector<16x200xbf16>, vector<200x686xbf16>, vector<16x686xf32> -> vector<16x686xf32>
    %785 = arith.addf %774, %784 : vector<16x686xf32>
    %786 = vector.broadcast %760 : vector<16x1xf32> to vector<16x200xf32>
    %787 = arith.mulf %679, %786 : vector<16x200xf32>
    %788 = vector.broadcast %762 : vector<16x1xf32> to vector<16x200xf32>
    %789 = arith.addf %787, %788 : vector<16x200xf32>
    %cst_477 = arith.constant 0.000000e+00 : f32
    %790 = vector.broadcast %cst_477 : f32 to vector<16x200xf32>
    %791 = arith.maximumf %789, %790 : vector<16x200xf32>
    %792 = arith.truncf %791 : vector<16x200xf32> to vector<16x200xbf16>
    %c2_478 = arith.constant 2 : index
    %c0_479 = arith.constant 0 : index
    %c0_480 = arith.constant 0 : index
    %793 = vector.load %arg14[%c2_478, %c0_479, %c0_480] : memref<4x200x686xbf16, #tpu.memory_space<vmem>>, vector<1x200x686xbf16>
    %794 = vector.shape_cast %793 : vector<1x200x686xbf16> to vector<200x686xbf16>
    %cst_481 = arith.constant dense<0.000000e+00> : vector<16x686xf32>
    %795 = tpu.matmul %792, %794, %cst_481 {dimension_numbers = #tpu.dot_dimension_numbers<[1], [0], [0], [1], [0, 0, 1, 1], [], []>} : vector<16x200xbf16>, vector<200x686xbf16>, vector<16x686xf32> -> vector<16x686xf32>
    %796 = arith.addf %785, %795 : vector<16x686xf32>
    %797 = vector.broadcast %760 : vector<16x1xf32> to vector<16x200xf32>
    %798 = arith.mulf %674, %797 : vector<16x200xf32>
    %799 = vector.broadcast %762 : vector<16x1xf32> to vector<16x200xf32>
    %800 = arith.addf %798, %799 : vector<16x200xf32>
    %cst_482 = arith.constant 0.000000e+00 : f32
    %801 = vector.broadcast %cst_482 : f32 to vector<16x200xf32>
    %802 = arith.maximumf %800, %801 : vector<16x200xf32>
    %803 = arith.truncf %802 : vector<16x200xf32> to vector<16x200xbf16>
    %c3_483 = arith.constant 3 : index
    %c0_484 = arith.constant 0 : index
    %c0_485 = arith.constant 0 : index
    %804 = vector.load %arg14[%c3_483, %c0_484, %c0_485] : memref<4x200x686xbf16, #tpu.memory_space<vmem>>, vector<1x200x686xbf16>
    %805 = vector.shape_cast %804 : vector<1x200x686xbf16> to vector<200x686xbf16>
    %cst_486 = arith.constant dense<0.000000e+00> : vector<16x686xf32>
    %806 = tpu.matmul %803, %805, %cst_486 {dimension_numbers = #tpu.dot_dimension_numbers<[1], [0], [0], [1], [0, 0, 1, 1], [], []>} : vector<16x200xbf16>, vector<200x686xbf16>, vector<16x686xf32> -> vector<16x686xf32>
    %807 = arith.addf %796, %806 : vector<16x686xf32>
    %808 = arith.truncf %807 : vector<16x686xf32> to vector<16x686xbf16>
    %c0_487 = arith.constant 0 : index
    %c0_488 = arith.constant 0 : index
    %809 = vector.load %arg19[%c0_487, %c0_488] : memref<16x686xbf16, #tpu.memory_space<vmem>>, vector<16x686xbf16>
    tpu.vector_store %arg19[%c0_487, %c0_488], %808 {strides = array<i32>} : memref<16x686xbf16, #tpu.memory_space<vmem>>, vector<16x686xbf16>,
    %cst_489 = arith.constant 0.000000e+00 : f32
    %810 = vector.broadcast %cst_489 : f32 to vector<1x648xf32>
    %cst_490 = arith.constant 0.000000e+00 : f32
    %811 = vector.broadcast %cst_490 : f32 to vector<1x648xf32>
    %cst_491 = arith.constant 0.000000e+00 : f32
    %812 = vector.broadcast %cst_491 : f32 to vector<1x648xf32>
    %cst_492 = arith.constant 0.000000e+00 : f32
    %813 = vector.broadcast %cst_492 : f32 to vector<1x648xf32>
    %c0_493 = arith.constant 0 : index
    %c38 = arith.constant 38 : index
    %814 = vector.load %arg19[%c0_493, %c38] : memref<16x686xbf16, #tpu.memory_space<vmem>>, vector<16x648xbf16>
    %c0_494 = arith.constant 0 : index
    %c0_495 = arith.constant 0 : index
    %c0_496 = arith.constant 0 : index
    %815 = vector.load %arg15[%c0_494, %c0_495, %c0_496] : memref<16x1x16xbf16, #tpu.memory_space<vmem>>, vector<1x1x16xbf16>
    %816 = vector.shape_cast %815 : vector<1x1x16xbf16> to vector<1x16xbf16>
    %cst_497 = arith.constant dense<0.000000e+00> : vector<1x648xf32>
    %817 = tpu.matmul %816, %814, %cst_497 {dimension_numbers = #tpu.dot_dimension_numbers<[1], [0], [0], [1], [0, 0, 1, 1], [], []>} : vector<1x16xbf16>, vector<16x648xbf16>, vector<1x648xf32> -> vector<1x648xf32>
    %818 = arith.addf %813, %817 : vector<1x648xf32>
    %c0_498 = arith.constant 0 : index
    %c37 = arith.constant 37 : index
    %819 = vector.load %arg19[%c0_498, %c37] : memref<16x686xbf16, #tpu.memory_space<vmem>>, vector<16x648xbf16>
    %c1_499 = arith.constant 1 : index
    %c0_500 = arith.constant 0 : index
    %c0_501 = arith.constant 0 : index
    %820 = vector.load %arg15[%c1_499, %c0_500, %c0_501] : memref<16x1x16xbf16, #tpu.memory_space<vmem>>, vector<1x1x16xbf16>
    %821 = vector.shape_cast %820 : vector<1x1x16xbf16> to vector<1x16xbf16>
    %cst_502 = arith.constant dense<0.000000e+00> : vector<1x648xf32>
    %822 = tpu.matmul %821, %819, %cst_502 {dimension_numbers = #tpu.dot_dimension_numbers<[1], [0], [0], [1], [0, 0, 1, 1], [], []>} : vector<1x16xbf16>, vector<16x648xbf16>, vector<1x648xf32> -> vector<1x648xf32>
    %823 = arith.addf %812, %822 : vector<1x648xf32>
    %c0_503 = arith.constant 0 : index
    %c37_504 = arith.constant 37 : index
    %824 = vector.load %arg19[%c0_503, %c37_504] : memref<16x686xbf16, #tpu.memory_space<vmem>>, vector<16x648xbf16>
    %c2_505 = arith.constant 2 : index
    %c0_506 = arith.constant 0 : index
    %c0_507 = arith.constant 0 : index
    %825 = vector.load %arg15[%c2_505, %c0_506, %c0_507] : memref<16x1x16xbf16, #tpu.memory_space<vmem>>, vector<1x1x16xbf16>
    %826 = vector.shape_cast %825 : vector<1x1x16xbf16> to vector<1x16xbf16>
    %cst_508 = arith.constant dense<0.000000e+00> : vector<1x648xf32>
    %827 = tpu.matmul %826, %824, %cst_508 {dimension_numbers = #tpu.dot_dimension_numbers<[1], [0], [0], [1], [0, 0, 1, 1], [], []>} : vector<1x16xbf16>, vector<16x648xbf16>, vector<1x648xf32> -> vector<1x648xf32>
    %828 = arith.addf %818, %827 : vector<1x648xf32>
    %c0_509 = arith.constant 0 : index
    %c36 = arith.constant 36 : index
    %829 = vector.load %arg19[%c0_509, %c36] : memref<16x686xbf16, #tpu.memory_space<vmem>>, vector<16x648xbf16>
    %c3_510 = arith.constant 3 : index
    %c0_511 = arith.constant 0 : index
    %c0_512 = arith.constant 0 : index
    %830 = vector.load %arg15[%c3_510, %c0_511, %c0_512] : memref<16x1x16xbf16, #tpu.memory_space<vmem>>, vector<1x1x16xbf16>
    %831 = vector.shape_cast %830 : vector<1x1x16xbf16> to vector<1x16xbf16>
    %cst_513 = arith.constant dense<0.000000e+00> : vector<1x648xf32>
    %832 = tpu.matmul %831, %829, %cst_513 {dimension_numbers = #tpu.dot_dimension_numbers<[1], [0], [0], [1], [0, 0, 1, 1], [], []>} : vector<1x16xbf16>, vector<16x648xbf16>, vector<1x648xf32> -> vector<1x648xf32>
    %833 = arith.addf %823, %832 : vector<1x648xf32>
    %c0_514 = arith.constant 0 : index
    %c20_515 = arith.constant 20 : index
    %834 = vector.load %arg19[%c0_514, %c20_515] : memref<16x686xbf16, #tpu.memory_space<vmem>>, vector<16x648xbf16>
    %c4_516 = arith.constant 4 : index
    %c0_517 = arith.constant 0 : index
    %c0_518 = arith.constant 0 : index
    %835 = vector.load %arg15[%c4_516, %c0_517, %c0_518] : memref<16x1x16xbf16, #tpu.memory_space<vmem>>, vector<1x1x16xbf16>
    %836 = vector.shape_cast %835 : vector<1x1x16xbf16> to vector<1x16xbf16>
    %cst_519 = arith.constant dense<0.000000e+00> : vector<1x648xf32>
    %837 = tpu.matmul %836, %834, %cst_519 {dimension_numbers = #tpu.dot_dimension_numbers<[1], [0], [0], [1], [0, 0, 1, 1], [], []>} : vector<1x16xbf16>, vector<16x648xbf16>, vector<1x648xf32> -> vector<1x648xf32>
    %838 = arith.addf %811, %837 : vector<1x648xf32>
    %c0_520 = arith.constant 0 : index
    %c19 = arith.constant 19 : index
    %839 = vector.load %arg19[%c0_520, %c19] : memref<16x686xbf16, #tpu.memory_space<vmem>>, vector<16x648xbf16>
    %c5_521 = arith.constant 5 : index
    %c0_522 = arith.constant 0 : index
    %c0_523 = arith.constant 0 : index
    %840 = vector.load %arg15[%c5_521, %c0_522, %c0_523] : memref<16x1x16xbf16, #tpu.memory_space<vmem>>, vector<1x1x16xbf16>
    %841 = vector.shape_cast %840 : vector<1x1x16xbf16> to vector<1x16xbf16>
    %cst_524 = arith.constant dense<0.000000e+00> : vector<1x648xf32>
    %842 = tpu.matmul %841, %839, %cst_524 {dimension_numbers = #tpu.dot_dimension_numbers<[1], [0], [0], [1], [0, 0, 1, 1], [], []>} : vector<1x16xbf16>, vector<16x648xbf16>, vector<1x648xf32> -> vector<1x648xf32>
    %843 = arith.addf %810, %842 : vector<1x648xf32>
    %c0_525 = arith.constant 0 : index
    %c19_526 = arith.constant 19 : index
    %844 = vector.load %arg19[%c0_525, %c19_526] : memref<16x686xbf16, #tpu.memory_space<vmem>>, vector<16x648xbf16>
    %c6_527 = arith.constant 6 : index
    %c0_528 = arith.constant 0 : index
    %c0_529 = arith.constant 0 : index
    %845 = vector.load %arg15[%c6_527, %c0_528, %c0_529] : memref<16x1x16xbf16, #tpu.memory_space<vmem>>, vector<1x1x16xbf16>
    %846 = vector.shape_cast %845 : vector<1x1x16xbf16> to vector<1x16xbf16>
    %cst_530 = arith.constant dense<0.000000e+00> : vector<1x648xf32>
    %847 = tpu.matmul %846, %844, %cst_530 {dimension_numbers = #tpu.dot_dimension_numbers<[1], [0], [0], [1], [0, 0, 1, 1], [], []>} : vector<1x16xbf16>, vector<16x648xbf16>, vector<1x648xf32> -> vector<1x648xf32>
    %848 = arith.addf %838, %847 : vector<1x648xf32>
    %c0_531 = arith.constant 0 : index
    %c18 = arith.constant 18 : index
    %849 = vector.load %arg19[%c0_531, %c18] : memref<16x686xbf16, #tpu.memory_space<vmem>>, vector<16x648xbf16>
    %c7_532 = arith.constant 7 : index
    %c0_533 = arith.constant 0 : index
    %c0_534 = arith.constant 0 : index
    %850 = vector.load %arg15[%c7_532, %c0_533, %c0_534] : memref<16x1x16xbf16, #tpu.memory_space<vmem>>, vector<1x1x16xbf16>
    %851 = vector.shape_cast %850 : vector<1x1x16xbf16> to vector<1x16xbf16>
    %cst_535 = arith.constant dense<0.000000e+00> : vector<1x648xf32>
    %852 = tpu.matmul %851, %849, %cst_535 {dimension_numbers = #tpu.dot_dimension_numbers<[1], [0], [0], [1], [0, 0, 1, 1], [], []>} : vector<1x16xbf16>, vector<16x648xbf16>, vector<1x648xf32> -> vector<1x648xf32>
    %853 = arith.addf %843, %852 : vector<1x648xf32>
    %c0_536 = arith.constant 0 : index
    %c20_537 = arith.constant 20 : index
    %854 = vector.load %arg19[%c0_536, %c20_537] : memref<16x686xbf16, #tpu.memory_space<vmem>>, vector<16x648xbf16>
    %c8_538 = arith.constant 8 : index
    %c0_539 = arith.constant 0 : index
    %c0_540 = arith.constant 0 : index
    %855 = vector.load %arg15[%c8_538, %c0_539, %c0_540] : memref<16x1x16xbf16, #tpu.memory_space<vmem>>, vector<1x1x16xbf16>
    %856 = vector.shape_cast %855 : vector<1x1x16xbf16> to vector<1x16xbf16>
    %cst_541 = arith.constant dense<0.000000e+00> : vector<1x648xf32>
    %857 = tpu.matmul %856, %854, %cst_541 {dimension_numbers = #tpu.dot_dimension_numbers<[1], [0], [0], [1], [0, 0, 1, 1], [], []>} : vector<1x16xbf16>, vector<16x648xbf16>, vector<1x648xf32> -> vector<1x648xf32>
    %858 = arith.addf %828, %857 : vector<1x648xf32>
    %c0_542 = arith.constant 0 : index
    %c19_543 = arith.constant 19 : index
    %859 = vector.load %arg19[%c0_542, %c19_543] : memref<16x686xbf16, #tpu.memory_space<vmem>>, vector<16x648xbf16>
    %c9_544 = arith.constant 9 : index
    %c0_545 = arith.constant 0 : index
    %c0_546 = arith.constant 0 : index
    %860 = vector.load %arg15[%c9_544, %c0_545, %c0_546] : memref<16x1x16xbf16, #tpu.memory_space<vmem>>, vector<1x1x16xbf16>
    %861 = vector.shape_cast %860 : vector<1x1x16xbf16> to vector<1x16xbf16>
    %cst_547 = arith.constant dense<0.000000e+00> : vector<1x648xf32>
    %862 = tpu.matmul %861, %859, %cst_547 {dimension_numbers = #tpu.dot_dimension_numbers<[1], [0], [0], [1], [0, 0, 1, 1], [], []>} : vector<1x16xbf16>, vector<16x648xbf16>, vector<1x648xf32> -> vector<1x648xf32>
    %863 = arith.addf %833, %862 : vector<1x648xf32>
    %c0_548 = arith.constant 0 : index
    %c19_549 = arith.constant 19 : index
    %864 = vector.load %arg19[%c0_548, %c19_549] : memref<16x686xbf16, #tpu.memory_space<vmem>>, vector<16x648xbf16>
    %c10_550 = arith.constant 10 : index
    %c0_551 = arith.constant 0 : index
    %c0_552 = arith.constant 0 : index
    %865 = vector.load %arg15[%c10_550, %c0_551, %c0_552] : memref<16x1x16xbf16, #tpu.memory_space<vmem>>, vector<1x1x16xbf16>
    %866 = vector.shape_cast %865 : vector<1x1x16xbf16> to vector<1x16xbf16>
    %cst_553 = arith.constant dense<0.000000e+00> : vector<1x648xf32>
    %867 = tpu.matmul %866, %864, %cst_553 {dimension_numbers = #tpu.dot_dimension_numbers<[1], [0], [0], [1], [0, 0, 1, 1], [], []>} : vector<1x16xbf16>, vector<16x648xbf16>, vector<1x648xf32> -> vector<1x648xf32>
    %868 = arith.addf %858, %867 : vector<1x648xf32>
    %c0_554 = arith.constant 0 : index
    %c18_555 = arith.constant 18 : index
    %869 = vector.load %arg19[%c0_554, %c18_555] : memref<16x686xbf16, #tpu.memory_space<vmem>>, vector<16x648xbf16>
    %c11_556 = arith.constant 11 : index
    %c0_557 = arith.constant 0 : index
    %c0_558 = arith.constant 0 : index
    %870 = vector.load %arg15[%c11_556, %c0_557, %c0_558] : memref<16x1x16xbf16, #tpu.memory_space<vmem>>, vector<1x1x16xbf16>
    %871 = vector.shape_cast %870 : vector<1x1x16xbf16> to vector<1x16xbf16>
    %cst_559 = arith.constant dense<0.000000e+00> : vector<1x648xf32>
    %872 = tpu.matmul %871, %869, %cst_559 {dimension_numbers = #tpu.dot_dimension_numbers<[1], [0], [0], [1], [0, 0, 1, 1], [], []>} : vector<1x16xbf16>, vector<16x648xbf16>, vector<1x648xf32> -> vector<1x648xf32>
    %873 = arith.addf %863, %872 : vector<1x648xf32>
    %c0_560 = arith.constant 0 : index
    %c2_561 = arith.constant 2 : index
    %874 = vector.load %arg19[%c0_560, %c2_561] : memref<16x686xbf16, #tpu.memory_space<vmem>>, vector<16x648xbf16>
    %c12_562 = arith.constant 12 : index
    %c0_563 = arith.constant 0 : index
    %c0_564 = arith.constant 0 : index
    %875 = vector.load %arg15[%c12_562, %c0_563, %c0_564] : memref<16x1x16xbf16, #tpu.memory_space<vmem>>, vector<1x1x16xbf16>
    %876 = vector.shape_cast %875 : vector<1x1x16xbf16> to vector<1x16xbf16>
    %cst_565 = arith.constant dense<0.000000e+00> : vector<1x648xf32>
    %877 = tpu.matmul %876, %874, %cst_565 {dimension_numbers = #tpu.dot_dimension_numbers<[1], [0], [0], [1], [0, 0, 1, 1], [], []>} : vector<1x16xbf16>, vector<16x648xbf16>, vector<1x648xf32> -> vector<1x648xf32>
    %878 = arith.addf %848, %877 : vector<1x648xf32>
    %c0_566 = arith.constant 0 : index
    %c1_567 = arith.constant 1 : index
    %879 = vector.load %arg19[%c0_566, %c1_567] : memref<16x686xbf16, #tpu.memory_space<vmem>>, vector<16x648xbf16>
    %c13_568 = arith.constant 13 : index
    %c0_569 = arith.constant 0 : index
    %c0_570 = arith.constant 0 : index
    %880 = vector.load %arg15[%c13_568, %c0_569, %c0_570] : memref<16x1x16xbf16, #tpu.memory_space<vmem>>, vector<1x1x16xbf16>
    %881 = vector.shape_cast %880 : vector<1x1x16xbf16> to vector<1x16xbf16>
    %cst_571 = arith.constant dense<0.000000e+00> : vector<1x648xf32>
    %882 = tpu.matmul %881, %879, %cst_571 {dimension_numbers = #tpu.dot_dimension_numbers<[1], [0], [0], [1], [0, 0, 1, 1], [], []>} : vector<1x16xbf16>, vector<16x648xbf16>, vector<1x648xf32> -> vector<1x648xf32>
    %883 = arith.addf %853, %882 : vector<1x648xf32>
    %c0_572 = arith.constant 0 : index
    %c1_573 = arith.constant 1 : index
    %884 = vector.load %arg19[%c0_572, %c1_573] : memref<16x686xbf16, #tpu.memory_space<vmem>>, vector<16x648xbf16>
    %c14_574 = arith.constant 14 : index
    %c0_575 = arith.constant 0 : index
    %c0_576 = arith.constant 0 : index
    %885 = vector.load %arg15[%c14_574, %c0_575, %c0_576] : memref<16x1x16xbf16, #tpu.memory_space<vmem>>, vector<1x1x16xbf16>
    %886 = vector.shape_cast %885 : vector<1x1x16xbf16> to vector<1x16xbf16>
    %cst_577 = arith.constant dense<0.000000e+00> : vector<1x648xf32>
    %887 = tpu.matmul %886, %884, %cst_577 {dimension_numbers = #tpu.dot_dimension_numbers<[1], [0], [0], [1], [0, 0, 1, 1], [], []>} : vector<1x16xbf16>, vector<16x648xbf16>, vector<1x648xf32> -> vector<1x648xf32>
    %888 = arith.addf %878, %887 : vector<1x648xf32>
    %c0_578 = arith.constant 0 : index
    %c0_579 = arith.constant 0 : index
    %889 = vector.load %arg19[%c0_578, %c0_579] : memref<16x686xbf16, #tpu.memory_space<vmem>>, vector<16x648xbf16>
    %c15_580 = arith.constant 15 : index
    %c0_581 = arith.constant 0 : index
    %c0_582 = arith.constant 0 : index
    %890 = vector.load %arg15[%c15_580, %c0_581, %c0_582] : memref<16x1x16xbf16, #tpu.memory_space<vmem>>, vector<1x1x16xbf16>
    %891 = vector.shape_cast %890 : vector<1x1x16xbf16> to vector<1x16xbf16>
    %cst_583 = arith.constant dense<0.000000e+00> : vector<1x648xf32>
    %892 = tpu.matmul %891, %889, %cst_583 {dimension_numbers = #tpu.dot_dimension_numbers<[1], [0], [0], [1], [0, 0, 1, 1], [], []>} : vector<1x16xbf16>, vector<16x648xbf16>, vector<1x648xf32> -> vector<1x648xf32>
    %893 = arith.addf %883, %892 : vector<1x648xf32>
    %894 = math.tanh %893 : vector<1x648xf32>
    %895 = math.tanh %888 : vector<1x648xf32>
    %896 = math.tanh %873 : vector<1x648xf32>
    %897 = math.tanh %868 : vector<1x648xf32>
    %898 = tpu.concatenate %894, %895, %896, %897 in 0 : vector<1x648xf32>, vector<1x648xf32>, vector<1x648xf32>, vector<1x648xf32> -> vector<4x648xf32>
    %899 = arith.truncf %898 : vector<4x648xf32> to vector<4x648xbf16>
    %c0_584 = arith.constant 0 : index
    %c0_585 = arith.constant 0 : index
    %900 = vector.load %arg16[%c0_584, %c0_585] : memref<4x648xbf16, #tpu.memory_space<vmem>>, vector<4x648xbf16>
    tpu.vector_store %arg16[%c0_584, %c0_585], %899 {strides = array<i32>} : memref<4x648xbf16, #tpu.memory_space<vmem>>, vector<4x648xbf16>,
    return
  }
}

</mosaic_0001>

<bundles_post_ra>
// kernel: generator_forward.1
= control target key start
LH: loop header
LB: loop body
LE: loop exit
PB: predicated region body
PF: predicated region fallthrough
CT: control target
= control target key end

     0   :  { %s20609_s0 = inlined_call_operand.vmem [shape: bf16[16,2], index: 0, kind: input, shape index: {}]   ;;  %s20610_s1 = inlined_call_operand.vmem [shape: bf16[16,64,16], index: 1, kind: input, shape index: {}]   ;;  %s20611_s2 = inlined_call_operand.vmem [shape: f32[64,1], index: 2, kind: input, shape index: {}]   ;;  %s20612_s3 = inlined_call_operand.vmem [shape: f32[64,1], index: 3, kind: input, shape index: {}]   ;;  %s20613_s4 = inlined_call_operand.hbm [shape: bf16[16,2,86], index: 4, kind: input, shape index: {}]   ;;  %s20614_s5 = inlined_call_operand.hbm [shape: bf16[16,32,64], index: 5, kind: input, shape index: {}]   ;;  %s20615_s6 = inlined_call_operand.vmem [shape: f32[32,1], index: 6, kind: input, shape index: {}]   ;;  %s20616_s7 = inlined_call_operand.vmem [shape: f32[32,1], index: 7, kind: input, shape index: {}]   ;;  %s20617_s8 = inlined_call_operand.hbm [shape: f32[1,72], index: 8, kind: input, shape index: {}]   ;;  %s20618_s9 = inlined_call_operand.hbm [shape: bf16[4,72,222], index: 9, kind: input, shape index: {}]   ;;  %s20619_s10 = inlined_call_operand.hbm [shape: bf16[16,16,32], index: 10, kind: input, shape index: {}]   ;;  %s20620_s11 = inlined_call_operand.vmem [shape: f32[16,1], index: 11, kind: input, shape index: {}]   ;;  %s20621_s12 = inlined_call_operand.vmem [shape: f32[16,1], index: 12, kind: input, shape index: {}]   ;;  %s20622_s13 = inlined_call_operand.hbm [shape: f32[1,200], index: 13, kind: input, shape index: {}]   ;;  %s20623_s14 = inlined_call_operand.hbm [shape: bf16[4,200,686], index: 14, kind: input, shape index: {}]   ;;  %s20624_s15 = inlined_call_operand.vmem [shape: bf16[16,1,16], index: 15, kind: input, shape index: {}]   ;;  %s20625_s16 = inlined_call_operand.vmem [shape: bf16[4,648], index: 16, kind: output, shape index: {}]  }
   0x1   :  { %20786 = sst [smem:[#allocation191_spill]] %s20609_s0 }
   0x2   :  { %21 = vsyncpa [#allocation6], 0 }
   0x3   :  { %22 = vsyncpa [#allocation8], 0 }
   0x4   :  { %23 = vsyncpa [#allocation11], 0 }
   0x5   :  { %24 = vsyncpa [#allocation14], 0  ;;  %s16266_s21 = smov [#allocation7]   ;;  %s16104_s25 = scalar_lea.hbm %s20614_s5, 4096 }
   0x6   :  { %s50_s22 = sshll.u32 %s16266_s21, 4  ;;  %p16105_p0 = scmp.ne.s32.totalorder %s20614_s5, %s16104_s25  ;;  %s51_s22 = int_to_ptr.vmem [resolvable:$true] %s50_s22 }
   0x7   :  { %p16108_p1 = scmp.lt.u32.totalorder %s16104_s25, %s20614_s5 }
   0x9   :  { %p16110_p2 = pnand %p16108_p1, %p16105_p0 }
   0xb   :  { %16113 = shalt.err (!%p16110_p2)
}
   0xc   :  { %s16114_s30 = scalar_lea.vmem %s51_s22, 4096  ;;  %p16119_p4 = scmp.lt.s32.totalorder %s51_s22, %s51_s22 }
   0xd   :  { %p16115_p3 = scmp.ne.s32.totalorder %s51_s22, %s16114_s30  ;;  %p16120_p5 = scmp.lt.s32.totalorder %s16114_s30, %s16114_s30 }
   0xf   :  { %p16121_p6 = por %p16120_p5, %p16119_p4 }
  0x11   :  { %p16122_p7 = pnand %p16121_p6, %p16115_p3 }
  0x13   :  { %16125 = shalt.err (!%p16122_p7)
}
  0x14   :  { %s20627_s0 = smov 64   ;;  %s20628_s17 = smov 4  }
  0x15   :  { %56 = dma.hbm_to_vmem [thread:$0]  %s20614_s5, 4096, %s51_s22, [#allocation8], %s20627_s0, %s20627_s0, %s20628_s17  }
  0x16   :  { %s16269_s20 = smov [#allocation10]   ;;  %s16126_s25 = scalar_lea.hbm %s20618_s9, 4608 }
  0x17   :  { %s76_s21 = sshll.u32 %s16269_s20, 4  ;;  %p16127_p8 = scmp.ne.s32.totalorder %s20618_s9, %s16126_s25  ;;  %s77_s21 = int_to_ptr.vmem [resolvable:$true] %s76_s21 }
  0x18   :  { %p16130_p9 = scmp.lt.u32.totalorder %s16126_s25, %s20618_s9 }
  0x1a   :  { %p16132_p10 = pnand %p16130_p9, %p16127_p8 }
  0x1c   :  { %16135 = shalt.err (!%p16132_p10)
}
  0x1d   :  { %s16136_s30 = scalar_lea.vmem %s77_s21, 4608  ;;  %p16141_p12 = scmp.lt.s32.totalorder %s77_s21, %s77_s21 }
  0x1e   :  { %p16137_p11 = scmp.ne.s32.totalorder %s77_s21, %s16136_s30  ;;  %p16142_p13 = scmp.lt.s32.totalorder %s16136_s30, %s16136_s30 }
  0x20   :  { %p16143_p0 = por %p16142_p13, %p16141_p12 }
  0x22   :  { %p16144_p1 = pnand %p16143_p0, %p16137_p11 }
  0x24   :  { %16147 = shalt.err (!%p16144_p1)
}
  0x25   :  { %s16270_s5 = smov 128   ;;  %s16271_s22 = smov 8  }
  0x26   :  { %82 = dma.hbm_to_vmem [thread:$0]  %s20618_s9, 4608, %s77_s21, [#allocation11], %s16270_s5, %s16270_s5, %s16271_s22  }
  0x27   :  { %s16272_s20 = smov [#allocation13]   ;;  %s16273_s24 = smov [#allocation5]  }
  0x28   :  { %s105_s23 = sshll.u32 %s16272_s20, 4  ;;  %s38_s26 = sshll.u32 %s16273_s24, 4  ;;  %s106_s23 = int_to_ptr.vmem [resolvable:$true] %s105_s23  ;;  %s16413_s26 = int_to_ptr.vmem [resolvable:$true] %s38_s26 }
  0x29   :  { %s16148_s28 = scalar_lea.hbm %s20622_s13, 32 }
  0x2a   :  { %p16149_p2 = scmp.ne.s32.totalorder %s20622_s13, %s16148_s28  ;;  %p16152_p3 = scmp.lt.u32.totalorder %s16148_s28, %s20622_s13 }
  0x2c   :  { %p16154_p4 = pnand %p16152_p3, %p16149_p2 }
  0x2e   :  { %16157 = shalt.err (!%p16154_p4)
}
  0x2f   :  { %s16158_s9 = scalar_lea.vmem %s106_s23, 32  ;;  %p16163_p6 = scmp.lt.s32.totalorder %s106_s23, %s106_s23 }
  0x30   :  { %p16159_p5 = scmp.ne.s32.totalorder %s106_s23, %s16158_s9  ;;  %p16164_p7 = scmp.lt.s32.totalorder %s16158_s9, %s16158_s9 }
  0x32   :  { %p16165_p8 = por %p16164_p7, %p16163_p6 }
  0x34   :  { %p16166_p9 = pnand %p16165_p8, %p16159_p5 }
  0x36   :  { %16169 = shalt.err (!%p16166_p9)
}
  0x37   :  { %108 = dma.hbm_to_vmem [thread:$0]  %s20622_s13, 32, %s106_s23, [#allocation14]  }
  0x38   :  { %s16170_s19 = scalar_lea.hbm %s20613_s4, 256 }
  0x39   :  { %p16171_p10 = scmp.ne.s32.totalorder %s20613_s4, %s16170_s19  ;;  %p16174_p11 = scmp.lt.u32.totalorder %s16170_s19, %s20613_s4 }
  0x3b   :  { %p16176_p12 = pnand %p16174_p11, %p16171_p10 }
  0x3d   :  { %16179 = shalt.err (!%p16176_p12)
}
  0x3e   :  { %s16180_s25 = scalar_lea.vmem %s16413_s26, 256  ;;  %p16185_p0 = scmp.lt.s32.totalorder %s16413_s26, %s16413_s26 }
  0x3f   :  { %p16181_p13 = scmp.ne.s32.totalorder %s16413_s26, %s16180_s25  ;;  %p16186_p1 = scmp.lt.s32.totalorder %s16180_s25, %s16180_s25 }
  0x41   :  { %p16187_p2 = por %p16186_p1, %p16185_p0 }
  0x43   :  { %p16188_p3 = pnand %p16187_p2, %p16181_p13 }
  0x45   :  { %16191 = shalt.err (!%p16188_p3)
}
  0x46   :  { %s16274_s13 = smov 16   ;;  %s16275_s23 = smov 1  }
  0x47   :  { %44 = dma.hbm_to_vmem [thread:$0]  %s20613_s4, 256, %s16413_s26, [#allocation6], %s16274_s13, %s16274_s13, %s16275_s23  }
  0x48   :  { %s16276_s29 = smov [#allocation9]   ;;  %s16277_s9 = smov [#allocation12]  }
  0x49   :  { %s67_s30 = sshll.u32 %s16276_s29, 4  ;;  %s88_s21 = sshll.u32 %s16277_s9, 4  ;;  %s68_s30 = int_to_ptr.vmem [resolvable:$true] %s67_s30  ;;  %s16444_s21 = int_to_ptr.vmem [resolvable:$true] %s88_s21 }
  0x4a   :  { %s16192_s18 = scalar_lea.hbm %s20617_s8, 16 }
  0x4b   :  { %p16193_p4 = scmp.ne.s32.totalorder %s20617_s8, %s16192_s18  ;;  %p16196_p5 = scmp.lt.u32.totalorder %s16192_s18, %s20617_s8 }
  0x4d   :  { %p16198_p6 = pnand %p16196_p5, %p16193_p4 }
  0x4f   :  { %16201 = shalt.err (!%p16198_p6)
}
  0x50   :  { %s16202_s4 = scalar_lea.vmem %s68_s30, 16  ;;  %s16206_s26 = scalar_lea.vmem %s68_s30, 32 }
  0x51   :  { %p16203_p7 = scmp.ne.s32.totalorder %s68_s30, %s16202_s4  ;;  %p16207_p8 = scmp.lt.s32.totalorder %s68_s30, %s68_s30 }
  0x52   :  { %p16208_p9 = scmp.lt.s32.totalorder %s16206_s26, %s16202_s4 }
  0x54   :  { %p16209_p10 = por %p16208_p9, %p16207_p8 }
  0x56   :  { %p16210_p11 = pnand %p16209_p10, %p16203_p7 }
  0x58   :  { %16213 = shalt.err (!%p16210_p11)
}
  0x59   :  { %70 = dma.hbm_to_vmem [thread:$0]  %s20617_s8, 16, %s68_s30, [#allocation8]  }
  0x5a   :  { %s16214_s27 = scalar_lea.hbm %s20619_s10, 2048 }
  0x5b   :  { %p16215_p12 = scmp.ne.s32.totalorder %s20619_s10, %s16214_s27  ;;  %p16218_p13 = scmp.lt.u32.totalorder %s16214_s27, %s20619_s10 }
  0x5d   :  { %p16220_p0 = pnand %p16218_p13, %p16215_p12 }
  0x5f   :  { %16223 = shalt.err (!%p16220_p0)
}
  0x60   :  { %s16224_s22 = scalar_lea.vmem %s16444_s21, 2048  ;;  %p16229_p2 = scmp.lt.s32.totalorder %s16444_s21, %s16444_s21 }
  0x61   :  { %p16225_p1 = scmp.ne.s32.totalorder %s16444_s21, %s16224_s22  ;;  %p16230_p3 = scmp.lt.s32.totalorder %s16224_s22, %s16224_s22 }
  0x63   :  { %p16231_p4 = por %p16230_p3, %p16229_p2 }
  0x65   :  { %p16232_p5 = pnand %p16231_p4, %p16225_p1 }
  0x67   :  { %16235 = shalt.err (!%p16232_p5)
}
  0x68   :  { %s20787_s8 = smov 4   ;;  %s20788_s30 = smov 64  }
  0x69   :  { %94 = dma.hbm_to_vmem [thread:$0]  %s20619_s10, 2048, %s16444_s21, [#allocation11], %s20788_s30, %s20788_s30, %s20787_s8  }
  0x6a   :  { %s16278_s20 = smov [#allocation15]   ;;  %s16236_s26 = scalar_lea.hbm %s20623_s14, 38400 }
  0x6b   :  { %s114_s0 = sshll.u32 %s16278_s20, 4  ;;  %p16237_p6 = scmp.ne.s32.totalorder %s20623_s14, %s16236_s26  ;;  %s115_s0 = int_to_ptr.vmem [resolvable:$true] %s114_s0 }
  0x6c   :  { %p16240_p7 = scmp.lt.u32.totalorder %s16236_s26, %s20623_s14 }
  0x6e   :  { %p16242_p8 = pnand %p16240_p7, %p16237_p6 }
  0x70   :  { %16245 = shalt.err (!%p16242_p8)
}
  0x71   :  { %s16246_s27 = scalar_lea.vmem %s115_s0, 38400  ;;  %p16251_p10 = scmp.lt.s32.totalorder %s115_s0, %s115_s0 }
  0x72   :  { %p16247_p9 = scmp.ne.s32.totalorder %s115_s0, %s16246_s27  ;;  %p16252_p11 = scmp.lt.s32.totalorder %s16246_s27, %s16246_s27 }
  0x74   :  { %p16253_p12 = por %p16252_p11, %p16251_p10 }
  0x76   :  { %p16254_p13 = pnand %p16253_p12, %p16247_p9 }
  0x78   :  { %16257 = shalt.err (!%p16254_p13)
}
  0x79   :  { %s16279_s10 = smov 384   ;;  %s16280_s21 = smov 24  }
  0x7a   :  { %120 = dma.hbm_to_vmem [thread:$0]  %s20623_s14, 38400, %s115_s0, [#allocation14], %s16279_s10, %s16279_s10, %s16280_s21  }
  0x7b   :  { %16258 = dma.done.wait [#allocation6], 256  }
  0x7c   :  { %16259 = vsyncadd [#allocation6], 4294967040 }
  0x7d   :  { %16260 = dma.done.wait [#allocation8], 4112  }
  0x7e   :  { %16261 = vsyncadd [#allocation8], 4294963184 }
  0x7f   :  { %16262 = dma.done.wait [#allocation11], 6656  }
  0x80   :  { %16263 = vsyncadd [#allocation11], 4294960640 }
  0x81   :  { %16264 = dma.done.wait [#allocation14], 38432  }
  0x82   :  { %16265 = vsyncadd [#allocation14], 4294928864  ;;  %s20789_s22 = sld [smem:[#allocation191_spill]]  ;;  %v15403_v1 = vld [vmem:[%s20610_s1] sm:$0xff]   ;;  %vm181_vm0 = vcmask 130048   ;;  %v15404_v2 = vld [vmem:[%s20610_s1 + $0x8] sm:$0xff]  }
  0x83   :  { %v15405_v3 = vld [vmem:[%s20610_s1 + $0xa0] sm:$0xff]   ;;  %14419 = vmatprep.mubr.msk.bf16.mxu0 %vm181_vm0, %v15403_v1  ;;  %v15406_v4 = vld [vmem:[%s20610_s1 + $0xa8] sm:$0xff]   ;;  %v15407_v5 = vld [vmem:[%s20610_s1 + $0x10] sm:$0xff]   ;;  %vm1865_vm1 = vcmask 15360   ;;  %vm3249_vm2 = vcmask 1040384   ;;  %vm5054_vm3 = vcmask 703488  }
  0x84   :  { %14469 = vmatprep.mubr.msk.bf16.mxu1 %vm181_vm0, %v15405_v3  ;;  %v15409_v6 = vld [vmem:[%s20610_s1 + $0xb0] sm:$0xff]   ;;  %v15408_v7 = vld [vmem:[%s20610_s1 + $0x18] sm:$0xff]   ;;  %v15411_v9 = vld [vmem:[%s20610_s1 + $0x20] sm:$0xff]   ;;  %vm5103_vm4 = vcmask 523264   ;;  %s16283_s26 = smov 114   ;;  %s16284_s24 = smov 116  }
  0x85   :  { %v15410_v8 = vld [vmem:[%s20610_s1 + $0xb8] sm:$0xff]   ;;  %v15413_v10 = vld [vmem:[%s20610_s1 + $0xe0] sm:$0xff]   ;;  %v15412_v11 = vld [vmem:[%s20610_s1 + $0x28] sm:$0xff]   ;;  %s16285_s25 = smov 121   ;;  %s16286_s13 = smov 120   ;;  %vm6334_vm5 = vcmask 588800  }
  0x86   :  { %v15414_v12 = vld [vmem:[%s20610_s1 + $0xe8] sm:$0xff]   ;;  %v15415_v13 = vld [vmem:[%s20610_s1 + $0x30] sm:$0xff]   ;;  %v15416_v15 = vld [vmem:[%s20610_s1 + $0x38] sm:$0xff]   ;;  %s16288_s23 = smov 126   ;;  %s16289_s27 = smov 127   ;;  %vm6685_vm6 = vcmask 1043456  }
  0x87   :  { %v15417_v14 = vld [vmem:[%s20610_s1 + $0xf0] sm:$0xff]   ;;  %v15418_v16 = vld [vmem:[%s20610_s1 + $0xf8] sm:$0xff]   ;;  %v15419_v17 = vld [vmem:[%s20610_s1 + $0x40] sm:$0xff]   ;;  %vm7144_vm7 = vcmask 769024   ;;  %s16292_s4 = smov 108   ;;  %vm7177_vm8 = vcmask 875520  }
  0x88   :  { %v16493_v0 = vld [vmem:[%s20789_s22] sm:$0xff]   ;;  %v15420_v19 = vld [vmem:[%s20610_s1 + $0x48] sm:$0xff]   ;;  %v15423_v21 = vld [vmem:[%s20610_s1 + $0x50] sm:$0xff]   ;;  %vm7244_vm9 = vcmask 867328   ;;  %vm7184_vm10 = vcmask 261120   ;;  %vm7313_vm11 = vcmask 883712  }
  0x89   :  { %14417 = vmatprep.subr.bf16.mxu0 %v16493_v0  ;;  %14467 = vmatprep.subr.bf16.mxu1 %v16493_v0  ;;  %v15421_v18 = vld [vmem:[%s20610_s1 + $0x120] sm:$0xff]   ;;  %v15422_v20 = vld [vmem:[%s20610_s1 + $0x128] sm:$0xff]   ;;  %v15425_v22 = vld [vmem:[%s20610_s1 + $0x130] sm:$0xff]   ;;  %vm7439_vm12 = vcmask 957440   ;;  %vm7505_vm13 = vcmask 949248   ;;  %vm7574_vm14 = vcmask 965632  }
  0x8a   :  { %14418 = vmatpush3.bf16.msra.mxu0 %v16493_v0  ;;  %14468 = vmatpush3.bf16.msra.mxu1 %v16493_v0  ;;  %v15424_v23 = vld [vmem:[%s20610_s1 + $0x58] sm:$0xff]   ;;  %v15427_v25 = vld [vmem:[%s20610_s1 + $0x60] sm:$0xff]   ;;  %v15428_v27 = vld [vmem:[%s20610_s1 + $0x68] sm:$0xff]   ;;  %vm7926_vm15 = vcmask 1031168   ;;  %s16297_s9 = smov 92   ;;  %s16298_s5 = smov 109  }
  0x8b   :  { %14427 = vmatprep.subr.bf16.mxu0 %v16493_v0  ;;  %14487 = vmatprep.subr.bf16.mxu1 %v16493_v0  ;;  %v15426_v24 = vld [vmem:[%s20610_s1 + $0x138] sm:$0xff]   ;;  %v15429_v26 = vld [vmem:[%s20610_s1 + $0x160] sm:$0xff]   ;;  %v15430_v28 = vld [vmem:[%s20610_s1 + $0x168] sm:$0xff]   ;;  %s16299_s8 = smov 110  }
  0x8c   :  { %v15431_v29 = vld [vmem:[%s20610_s1 + $0x70] sm:$0xff]   ;;  %v15432_v30 = vld [vmem:[%s20610_s1 + $0x78] sm:$0xff]   ;;  %v15434_v32 = vld [vmem:[%s20610_s1 + $0x80] sm:$0xff]  }
  0x8d   :  { %14420 = vmatmul.mubr.msk.bf16.vlgmr.msra.gmra.mrb[0].mxu0 %vm181_vm0, %v15404_v2  ;;  %14470 = vmatmul.mubr.msk.bf16.vlgmr.msra.gmra.mrb[0].mxu1 %vm181_vm0, %v15406_v4  ;;  %v15433_v31 = vld [vmem:[%s20610_s1 + $0x170] sm:$0xff]   ;;  %v15435_v33 = vld [vmem:[%s20610_s1 + $0x178] sm:$0xff]   ;;  %v15436_v34 = vld [vmem:[%s20610_s1 + $0x88] sm:$0xff]  }
  0x8e   :  { %14423 = vmatprep.mubr.msk.bf16.mxu0 %vm181_vm0, %v15407_v5  ;;  %14428 = vmatpush3.bf16.msra.mxu0 %v16493_v0  ;;  %v15437_v35 = vld [vmem:[%s20610_s1 + $0x1a0] sm:$0xff]   ;;  %v15438_v36 = vld [vmem:[%s20610_s1 + $0x1a8] sm:$0xff]   ;;  %v15439_v37 = vld [vmem:[%s20610_s1 + $0x90] sm:$0xff]  }
  0x8f   :  { %14488 = vmatpush3.bf16.msra.mxu1 %v16493_v0  ;;  %14437 = vmatprep.subr.bf16.mxu0 %v16493_v0  ;;  %v15440_v38 = vld [vmem:[%s20610_s1 + $0x98] sm:$0xff]   ;;  %v15441_v39 = vld [vmem:[%s20610_s1 + $0xc0] sm:$0xff]   ;;  %v15442_v40 = vld [vmem:[%s20610_s1 + $0xc8] sm:$0xff]  }
  0x90   :  { %14473 = vmatprep.mubr.msk.bf16.mxu1 %vm181_vm0, %v15409_v6  ;;  %14507 = vmatprep.subr.bf16.mxu1 %v16493_v0  ;;  %v15443_v41 = vld [vmem:[%s20610_s1 + $0xd0] sm:$0xff]   ;;  %v15444_v42 = vld [vmem:[%s20610_s1 + $0xd8] sm:$0xff]   ;;  %v15445_v43 = vld [vmem:[%s20610_s1 + $0x100] sm:$0xff]  }
  0x91   :  { %v15446_v44 = vld [vmem:[%s20610_s1 + $0x108] sm:$0xff]   ;;  %v16103_v45 = vld [vmem:[%s20789_s22] sm:$0xff]   ;;  %v15447_v46 = vld [vmem:[%s20610_s1 + $0x110] sm:$0xff]   ;;  %s16287_s22 = smov 122  }
  0x92   :  { %v15448_v47 = vld [vmem:[%s20610_s1 + $0x118] sm:$0xff]   ;;  %v15449_v48 = vld [vmem:[%s20610_s1 + $0x140] sm:$0xff]   ;;  %v15450_v49 = vld [vmem:[%s20610_s1 + $0x148] sm:$0xff]  }
  0x93   :  { %v15451_v50 = vld [vmem:[%s20610_s1 + $0x150] sm:$0xff]   ;;  %v15452_v51 = vld [vmem:[%s20610_s1 + $0x158] sm:$0xff]   ;;  %v15453_v63 = vld [vmem:[%s20610_s1 + $0x180] sm:$0xff]  }
  0x95   :  { %14424 = vmatmul.mubr.msk.bf16.gmra.mrb[4].mxu0 %vm181_vm0, %v15408_v7  ;;  %14474 = vmatmul.mubr.msk.bf16.gmra.mrb[4].mxu1 %vm181_vm0, %v15410_v8 }
  0x96   :  { %14429 = vmatprep.mubr.msk.bf16.mxu0 %vm181_vm0, %v15411_v9  ;;  %14489 = vmatprep.mubr.msk.bf16.mxu1 %vm181_vm0, %v15413_v10 }
  0x9d   :  { %14430 = vmatmul.mubr.msk.bf16.vlgmr.msra.gmra.mrb[8].mxu0 %vm181_vm0, %v15412_v11  ;;  %14490 = vmatmul.mubr.msk.bf16.vlgmr.msra.gmra.mrb[8].mxu1 %vm181_vm0, %v15414_v12 }
  0x9e   :  { %14433 = vmatprep.mubr.msk.bf16.mxu0 %vm181_vm0, %v15415_v13  ;;  %14493 = vmatprep.mubr.msk.bf16.mxu1 %vm181_vm0, %v15417_v14 }
  0x9f   :  { %14438 = vmatpush3.bf16.msra.mxu0 %v16493_v0  ;;  %14508 = vmatpush3.bf16.msra.mxu1 %v16493_v0 }
  0xa0   :  { %14447 = vmatprep.subr.bf16.mxu0 %v16493_v0  ;;  %14527 = vmatprep.subr.bf16.mxu1 %v16493_v0 }
  0xa5   :  { %14434 = vmatmul.mubr.msk.bf16.gmra.mrb[12].mxu0 %vm181_vm0, %v15416_v15  ;;  %14494 = vmatmul.mubr.msk.bf16.gmra.mrb[12].mxu1 %vm181_vm0, %v15418_v16 }
  0xa6   :  { %14439 = vmatprep.mubr.msk.bf16.mxu0 %vm181_vm0, %v15419_v17  ;;  %14509 = vmatprep.mubr.msk.bf16.mxu1 %vm181_vm0, %v15421_v18 }
  0xad   :  { %14440 = vmatmul.mubr.msk.bf16.vlgmr.msra.gmra.mrb[16].mxu0 %vm181_vm0, %v15420_v19  ;;  %14510 = vmatmul.mubr.msk.bf16.vlgmr.msra.gmra.mrb[16].mxu1 %vm181_vm0, %v15422_v20 }
  0xae   :  { %14443 = vmatprep.mubr.msk.bf16.mxu0 %vm181_vm0, %v15423_v21  ;;  %14513 = vmatprep.mubr.msk.bf16.mxu1 %vm181_vm0, %v15425_v22 }
  0xaf   :  { %14448 = vmatpush3.bf16.msra.mxu0 %v16493_v0  ;;  %14528 = vmatpush3.bf16.msra.mxu1 %v16493_v0 }
  0xb0   :  { %14457 = vmatprep.subr.bf16.mxu0 %v16493_v0  ;;  %14547 = vmatprep.subr.bf16.mxu1 %v16493_v0 }
  0xb5   :  { %14444 = vmatmul.mubr.msk.bf16.gmra.mrb[20].mxu0 %vm181_vm0, %v15424_v23  ;;  %14514 = vmatmul.mubr.msk.bf16.gmra.mrb[20].mxu1 %vm181_vm0, %v15426_v24 }
  0xb6   :  { %14449 = vmatprep.mubr.msk.bf16.mxu0 %vm181_vm0, %v15427_v25  ;;  %14529 = vmatprep.mubr.msk.bf16.mxu1 %vm181_vm0, %v15429_v26 }
  0xbd   :  { %14450 = vmatmul.mubr.msk.bf16.vlgmr.msra.gmra.mrb[24].mxu0 %vm181_vm0, %v15428_v27  ;;  %14530 = vmatmul.mubr.msk.bf16.vlgmr.msra.gmra.mrb[24].mxu1 %vm181_vm0, %v15430_v28 }
  0xbe   :  { %14458 = vmatpush3.bf16.msra.mxu0 %v16493_v0  ;;  %14548 = vmatpush3.bf16.msra.mxu1 %v16493_v0 }
  0xbf   :  { %14477 = vmatprep.subr.bf16.mxu0 %v16493_v0  ;;  %14567 = vmatprep.subr.bf16.mxu1 %v16493_v0 }
  0xc0   :  { %14453 = vmatprep.mubr.msk.bf16.mxu0 %vm181_vm0, %v15431_v29  ;;  %14533 = vmatprep.mubr.msk.bf16.mxu1 %vm181_vm0, %v15433_v31  ;;  %v15455_v29 = vld [vmem:[%s20610_s1 + $0x190] sm:$0xff]  }
  0xc5   :  { %14454 = vmatmul.mubr.msk.bf16.gmra.mrb[28].mxu0 %vm181_vm0, %v15432_v30  ;;  %14534 = vmatmul.mubr.msk.bf16.gmra.mrb[28].mxu1 %vm181_vm0, %v15435_v33  ;;  %v15456_v30 = vld [vmem:[%s20610_s1 + $0x198] sm:$0xff]  }
  0xc6   :  { %14459 = vmatprep.mubr.msk.bf16.mxu0 %vm181_vm0, %v15434_v32  ;;  %14549 = vmatprep.mubr.msk.bf16.mxu1 %vm181_vm0, %v15437_v35 }
  0xcd   :  { %14460 = vmatmul.mubr.msk.bf16.vlgmr.msra.gmra.mrb[32].mxu0 %vm181_vm0, %v15436_v34  ;;  %14550 = vmatmul.mubr.msk.bf16.vlgmr.msra.gmra.mrb[32].mxu1 %vm181_vm0, %v15438_v36 }
  0xce   :  { %14478 = vmatpush3.bf16.msra.mxu0 %v16493_v0  ;;  %14568 = vmatpush3.bf16.msra.mxu1 %v16493_v0 }
  0xcf   :  { %14497 = vmatprep.subr.bf16.mxu0 %v16493_v0  ;;  %14463 = vmatprep.mubr.msk.bf16.mxu0 %vm181_vm0, %v15439_v37 }
  0xd5   :  { %14464 = vmatmul.mubr.msk.bf16.gmra.mrb[36].mxu0 %vm181_vm0, %v15440_v38 }
  0xd6   :  { %14479 = vmatprep.mubr.msk.bf16.mxu0 %vm181_vm0, %v15441_v39 }
  0xdd   :  { %14480 = vmatmul.mubr.msk.bf16.vlgmr.msra.gmra.mrb[40].mxu0 %vm181_vm0, %v15442_v40 }
  0xde   :  { %14498 = vmatpush3.bf16.msra.mxu0 %v16493_v0  ;;  %14483 = vmatprep.mubr.msk.bf16.mxu0 %vm181_vm0, %v15443_v41 }
  0xdf   :  { %14517 = vmatprep.subr.bf16.mxu0 %v16493_v0  ;;  %v15454_v0 = vld [vmem:[%s20610_s1 + $0x188] sm:$0xff]  }
  0xe5   :  { %14484 = vmatmul.mubr.msk.bf16.gmra.mrb[44].mxu0 %vm181_vm0, %v15444_v42 }
  0xe6   :  { %14499 = vmatprep.mubr.msk.bf16.mxu0 %vm181_vm0, %v15445_v43 }
  0xed   :  { %14500 = vmatmul.mubr.msk.bf16.vlgmr.msra.gmra.mrb[48].mxu0 %vm181_vm0, %v15446_v44 }
  0xee   :  { %14518 = vmatpush3.bf16.msra.mxu0 %v16103_v45  ;;  %14503 = vmatprep.mubr.msk.bf16.mxu0 %vm181_vm0, %v15447_v46  ;;  %v15458_v46 = vld [vmem:[%s20610_s1 + $0x1c8] sm:$0xff]  }
  0xef   :  { %14537 = vmatprep.subr.bf16.mxu0 %v16103_v45 }
  0xf5   :  { %14504 = vmatmul.mubr.msk.bf16.gmra.mrb[52].mxu0 %vm181_vm0, %v15448_v47 }
  0xf6   :  { %14519 = vmatprep.mubr.msk.bf16.mxu0 %vm181_vm0, %v15449_v48 }
  0xfd   :  { %14520 = vmatmul.mubr.msk.bf16.vlgmr.msra.gmra.mrb[56].mxu0 %vm181_vm0, %v15450_v49 }
  0xfe   :  { %14538 = vmatpush3.bf16.msra.mxu0 %v16103_v45  ;;  %14523 = vmatprep.mubr.msk.bf16.mxu0 %vm181_vm0, %v15451_v50 }
  0xff   :  { %14557 = vmatprep.subr.bf16.mxu0 %v16103_v45 }
 0x105   :  { %14524 = vmatmul.mubr.msk.bf16.gmra.mrb[60].mxu0 %vm181_vm0, %v15452_v51 }
 0x106   :  { %14539 = vmatprep.mubr.msk.bf16.mxu0 %vm181_vm0, %v15453_v63 }
 0x10d   :  { %14540 = vmatmul.mubr.msk.bf16.vlgmr.msra.gmra.mrb[64].mxu0 %vm181_vm0, %v15454_v0 }
 0x10e   :  { %14558 = vmatpush3.bf16.msra.mxu0 %v16103_v45  ;;  %14543 = vmatprep.mubr.msk.bf16.mxu0 %vm181_vm0, %v15455_v29  ;;  %v15457_v45 = vld [vmem:[%s20610_s1 + $0x1c0] sm:$0xff]  }
 0x115   :  { %14544 = vmatmul.mubr.msk.bf16.gmra.mrb[68].mxu0 %vm181_vm0, %v15456_v30 }
 0x116   :  { %14559 = vmatprep.mubr.msk.bf16.mxu0 %vm181_vm0, %v15457_v45 }
 0x11d   :  { %14560 = vmatmul.mubr.msk.bf16.vlgmr.msra.gmra.mrb[72].mxu0 %vm181_vm0, %v15458_v46 }
 0x160   :  { %v16725_v52 = vpop.f32.mrb[0].mxu0  ;;  %v16727_v53 = vpop.f32.mrb[0].mxu1 }
 0x161   :  { %20790 = vst [vmem:[#allocation20_spill] sm:$0xff] %v16725_v52  ;;  %20791 = vst [vmem:[#allocation21_spill] sm:$0xff] %v16727_v53  ;;  %v16729_v54 = vpop.f32.mrb[1].mxu0  ;;  %v16731_v55 = vpop.f32.mrb[1].mxu1  ;;  %v1872_v56 = vsel %vm1865_vm1, %v16725_v52, 0.0  ;;  %v2032_v62 = vsel %vm1865_vm1, %v16727_v53, 0.0  ;;  %v2380_v14 = vmul.f32 %v16725_v52, %v16725_v52  ;;  %v2580_v20 = vmul.f32 %v16727_v53, %v16727_v53 }
 0x162   :  { %20792 = vst [vmem:[#allocation22_spill] sm:$0xff] %v16729_v54  ;;  %20793 = vst [vmem:[#allocation23_spill] sm:$0xff] %v16731_v55  ;;  %1873 = vadd.xlane.f32.xlu0 %v1872_v56  ;;  %v16735_v57 = vpop.f32.mrb[2].mxu0  ;;  %v16737_v58 = vpop.f32.mrb[2].mxu1  ;;  %v1866_v4 = vsel %vm1865_vm1, %v16729_v54, 0.0  ;;  %v2026_v13 = vsel %vm1865_vm1, %v16731_v55, 0.0  ;;  %v2378_v37 = vmul.f32 %v16729_v54, %v16729_v54  ;;  %v2578_v48 = vmul.f32 %v16731_v55, %v16731_v55 }
 0x163   :  { %20794 = vst [vmem:[#allocation24_spill] sm:$0xff] %v16735_v57  ;;  %20795 = vst [vmem:[#allocation25_spill] sm:$0xff] %v16737_v58  ;;  %v16739_v59 = vpop.f32.mrb[3].mxu0  ;;  %v16741_v60 = vpop.f32.mrb[3].mxu1  ;;  %v1875_v61 = vsel %vm1865_vm1, %v16735_v57, 0.0  ;;  %v2035_v1 = vsel %vm1865_vm1, %v16737_v58, 0.0  ;;  %v2381_v10 = vmul.f32 %v16735_v57, %v16735_v57  ;;  %v2581_v16 = vmul.f32 %v16737_v58, %v16737_v58 }
 0x164   :  { %20796 = vst [vmem:[#allocation26_spill] sm:$0xff] %v16739_v59  ;;  %20797 = vst [vmem:[#allocation27_spill] sm:$0xff] %v16741_v60  ;;  %1876 = vadd.xlane.f32.xlu1 %v1875_v61  ;;  %v2029_v9 = vsel %vm1865_vm1, %v16741_v60, 0.0  ;;  %v2392_v19 = vsel %vm1865_vm1, %v2380_v14, 0.0  ;;  %v2379_v26 = vmul.f32 %v16739_v59, %v16739_v59  ;;  %v2592_v31 = vsel %vm1865_vm1, %v2580_v20, 0.0 }
 0x165   :  { %v2395_v15 = vsel %vm1865_vm1, %v2381_v10, 0.0  ;;  %v2595_v25 = vsel %vm1865_vm1, %v2581_v16, 0.0  ;;  %v2579_v33 = vmul.f32 %v16741_v60, %v16741_v60  ;;  %v1869_v36 = vsel %vm1865_vm1, %v16739_v59, 0.0 }
 0x166   :  { %2033 = vadd.xlane.f32.xlu0 %v2032_v62  ;;  %v2389_v32 = vsel %vm1865_vm1, %v2379_v26, 0.0  ;;  %v2386_v47 = vsel %vm1865_vm1, %v2378_v37, 0.0  ;;  %v2586_v56 = vsel %vm1865_vm1, %v2578_v48, 0.0  ;;  %v15459_v48 = vld [vmem:[%s20610_s1 + $0x1b0] sm:$0xff]  }
 0x167   :  { %v2589_v42 = vsel %vm1865_vm1, %v2579_v33, 0.0  ;;  %14553 = vmatprep.mubr.msk.bf16.mxu1 %vm181_vm0, %v15459_v48 }
 0x168   :  { %2036 = vadd.xlane.f32.xlu1 %v2035_v1  ;;  %v16757_v2 = vpop.f32.mrb[4].mxu0  ;;  %v16759_v3 = vpop.f32.mrb[4].mxu1 }
 0x169   :  { %20798 = vst [vmem:[#allocation28_spill] sm:$0xff] %v16757_v2  ;;  %20799 = vst [vmem:[#allocation29_spill] sm:$0xff] %v16759_v3  ;;  %v16763_v5 = vpop.f32.mrb[5].mxu0  ;;  %v16765_v6 = vpop.f32.mrb[5].mxu1  ;;  %v1884_v10 = vsel %vm1865_vm1, %v16757_v2, 0.0  ;;  %v2044_v16 = vsel %vm1865_vm1, %v16759_v3, 0.0  ;;  %v2384_v45 = vmul.f32 %v16757_v2, %v16757_v2 }
 0x16a   :  { %20800 = vst [vmem:[#allocation30_spill] sm:$0xff] %v16763_v5  ;;  %20801 = vst [vmem:[#allocation31_spill] sm:$0xff] %v16765_v6  ;;  %1867 = vadd.xlane.f32.xlu0 %v1866_v4  ;;  %v16767_v7 = vpop.f32.mrb[6].mxu0  ;;  %v16769_v8 = vpop.f32.mrb[6].mxu1  ;;  %v1878_v33 = vsel %vm1865_vm1, %v16763_v5, 0.0 }
 0x16b   :  { %20802 = vst [vmem:[#allocation32_spill] sm:$0xff] %v16767_v7  ;;  %20803 = vst [vmem:[#allocation33_spill] sm:$0xff] %v16769_v8  ;;  %v16775_v11 = vpop.f32.mrb[7].mxu0  ;;  %v16777_v12 = vpop.f32.mrb[7].mxu1  ;;  %v1887_v49 = vsel %vm1865_vm1, %v16767_v7, 0.0  ;;  %v2047_v1 = vsel %vm1865_vm1, %v16769_v8, 0.0  ;;  %v2385_v30 = vmul.f32 %v16767_v7, %v16767_v7  ;;  %v2585_v37 = vmul.f32 %v16769_v8, %v16769_v8 }
 0x16c   :  { %20804 = vst [vmem:[#allocation34_spill] sm:$0xff] %v16775_v11  ;;  %20805 = vst [vmem:[#allocation35_spill] sm:$0xff] %v16777_v12  ;;  %2030 = vadd.xlane.f32.xlu1 %v2029_v9  ;;  %v2041_v29 = vsel %vm1865_vm1, %v16777_v12, 0.0 }
 0x16d   :  { %v2607_v46 = vsel %vm1865_vm1, %v2585_v37, 0.0 }
 0x16e   :  { %2027 = vadd.xlane.f32.xlu0 %v2026_v13  ;;  %v1881_v13 = vsel %vm1865_vm1, %v16775_v11, 0.0 }
 0x170   :  { %2396 = vadd.xlane.f32.xlu1 %v2395_v15  ;;  %v16786_v17 = vpop.f32.mrb[8].mxu0  ;;  %v16788_v18 = vpop.f32.mrb[8].mxu1 }
 0x171   :  { %20806 = vst [vmem:[#allocation36_spill] sm:$0xff] %v16786_v17  ;;  %20807 = vst [vmem:[#allocation37_spill] sm:$0xff] %v16788_v18  ;;  %v16793_v21 = vpop.f32.mrb[9].mxu0  ;;  %v16795_v22 = vpop.f32.mrb[9].mxu1 }
 0x172   :  { %20808 = vst [vmem:[#allocation38_spill] sm:$0xff] %v16793_v21  ;;  %20809 = vst [vmem:[#allocation39_spill] sm:$0xff] %v16795_v22  ;;  %2393 = vadd.xlane.f32.xlu0 %v2392_v19  ;;  %v16797_v23 = vpop.f32.mrb[10].mxu0  ;;  %v16799_v24 = vpop.f32.mrb[10].mxu1 }
 0x173   :  { %20810 = vst [vmem:[#allocation40_spill] sm:$0xff] %v16797_v23  ;;  %20811 = vst [vmem:[#allocation41_spill] sm:$0xff] %v16799_v24  ;;  %v16804_v27 = vpop.f32.mrb[11].mxu0  ;;  %v16806_v28 = vpop.f32.mrb[11].mxu1  ;;  %v2099_v8 = vsel %vm1865_vm1, %v16799_v24, 0.0 }
 0x174   :  { %20812 = vst [vmem:[#allocation42_spill] sm:$0xff] %v16804_v27  ;;  %20813 = vst [vmem:[#allocation43_spill] sm:$0xff] %v16806_v28  ;;  %2596 = vadd.xlane.f32.xlu1 %v2595_v25  ;;  %v2659_v2 = vmul.f32 %v16806_v28, %v16806_v28 }
 0x176   :  { %2593 = vadd.xlane.f32.xlu0 %v2592_v31 }
 0x178   :  { %2390 = vadd.xlane.f32.xlu1 %v2389_v32  ;;  %v16820_v34 = vpop.f32.mrb[12].mxu0  ;;  %v16822_v35 = vpop.f32.mrb[12].mxu1 }
 0x179   :  { %20814 = vst [vmem:[#allocation44_spill] sm:$0xff] %v16820_v34  ;;  %20815 = vst [vmem:[#allocation45_spill] sm:$0xff] %v16822_v35  ;;  %v16828_v38 = vpop.f32.mrb[13].mxu0  ;;  %v16830_v39 = vpop.f32.mrb[13].mxu1  ;;  %v2664_v58 = vmul.f32 %v16822_v35, %v16822_v35 }
 0x17a   :  { %20816 = vst [vmem:[#allocation46_spill] sm:$0xff] %v16828_v38  ;;  %20817 = vst [vmem:[#allocation47_spill] sm:$0xff] %v16830_v39  ;;  %1870 = vadd.xlane.f32.xlu0 %v1869_v36  ;;  %v16832_v40 = vpop.f32.mrb[14].mxu0  ;;  %v16834_v41 = vpop.f32.mrb[14].mxu1  ;;  %v2407_v36 = vsel %vm1865_vm1, %v2385_v30, 0.0 }
 0x17b   :  { %20818 = vst [vmem:[#allocation48_spill] sm:$0xff] %v16832_v40  ;;  %20819 = vst [vmem:[#allocation49_spill] sm:$0xff] %v16834_v41  ;;  %v16837_v43 = vpop.f32.mrb[15].mxu0  ;;  %v16839_v44 = vpop.f32.mrb[15].mxu1  ;;  %v2684_v57 = vsel %vm1865_vm1, %v2664_v58, 0.0 }
 0x17c   :  { %20820 = vst [vmem:[#allocation50_spill] sm:$0xff] %v16837_v43  ;;  %20821 = vst [vmem:[#allocation51_spill] sm:$0xff] %v16839_v44  ;;  %2590 = vadd.xlane.f32.xlu1 %v2589_v42  ;;  %v2038_v42 = vsel %vm1865_vm1, %v16765_v6, 0.0 }
 0x17e   :  { %2387 = vadd.xlane.f32.xlu0 %v2386_v47  ;;  %v2383_v47 = vmul.f32 %v16775_v11, %v16775_v11 }
 0x180   :  { %1888 = vadd.xlane.f32.xlu1 %v1887_v49  ;;  %v16854_v50 = vpop.f32.mrb[16].mxu0  ;;  %v16856_v51 = vpop.f32.mrb[16].mxu1  ;;  %v15460_v49 = vld [vmem:[%s20610_s1 + $0x1b8] sm:$0xff]  }
 0x181   :  { %20822 = vst [vmem:[#allocation52_spill] sm:$0xff] %v16854_v50  ;;  %20823 = vst [vmem:[#allocation53_spill] sm:$0xff] %v16856_v51  ;;  %v16859_v61 = vpop.f32.mrb[17].mxu0  ;;  %v16861_v62 = vpop.f32.mrb[17].mxu1  ;;  %14554 = vmatmul.mubr.msk.bf16.gmra.mrb[36].mxu1 %vm181_vm0, %v15460_v49  ;;  %v15461_v49 = vld [vmem:[%s20610_s1 + $0x1e0] sm:$0xff]  }
 0x182   :  { %20824 = vst [vmem:[#allocation54_spill] sm:$0xff] %v16859_v61  ;;  %20825 = vst [vmem:[#allocation55_spill] sm:$0xff] %v16861_v62  ;;  %2587 = vadd.xlane.f32.xlu0 %v2586_v56  ;;  %v16863_v63 = vpop.f32.mrb[18].mxu0  ;;  %v16865_v0 = vpop.f32.mrb[18].mxu1  ;;  %v2404_v56 = vsel %vm1865_vm1, %v2384_v45, 0.0  ;;  %14569 = vmatprep.mubr.msk.bf16.mxu1 %vm181_vm0, %v15461_v49  ;;  %v2096_v49 = vsel %vm1865_vm1, %v16788_v18, 0.0 }
 0x183   :  { %20826 = vst [vmem:[#allocation56_spill] sm:$0xff] %v16863_v63  ;;  %20827 = vst [vmem:[#allocation57_spill] sm:$0xff] %v16865_v0  ;;  %v16869_v4 = vpop.f32.mrb[19].mxu0  ;;  %v16871_v9 = vpop.f32.mrb[19].mxu1  ;;  %v2741_v53 = vmul.f32 %v16865_v0, %v16865_v0 }
 0x184   :  { %20828 = vst [vmem:[#allocation58_spill] sm:$0xff] %v16869_v4  ;;  %20829 = vst [vmem:[#allocation59_spill] sm:$0xff] %v16871_v9  ;;  %2048 = vadd.xlane.f32.xlu1 %v2047_v1  ;;  %v2584_v1 = vmul.f32 %v16759_v3, %v16759_v3 }
 0x186   :  { %1885 = vadd.xlane.f32.xlu0 %v1884_v10  ;;  %v2604_v37 = vsel %vm1865_vm1, %v2584_v1, 0.0 }
 0x188   :  { %1882 = vadd.xlane.f32.xlu1 %v1881_v13  ;;  %v16877_v14 = vpop.f32.mrb[20].mxu0  ;;  %v16879_v15 = vpop.f32.mrb[20].mxu1 }
 0x189   :  { %20830 = vst [vmem:[#allocation60_spill] sm:$0xff] %v16877_v14  ;;  %20831 = vst [vmem:[#allocation61_spill] sm:$0xff] %v16879_v15  ;;  %v16883_v19 = vpop.f32.mrb[21].mxu0  ;;  %v16885_v20 = vpop.f32.mrb[21].mxu1 }
 0x18a   :  { %20832 = vst [vmem:[#allocation62_spill] sm:$0xff] %v16883_v19  ;;  %20833 = vst [vmem:[#allocation63_spill] sm:$0xff] %v16885_v20  ;;  %2045 = vadd.xlane.f32.xlu0 %v2044_v16  ;;  %v16887_v25 = vpop.f32.mrb[22].mxu0  ;;  %v16889_v26 = vpop.f32.mrb[22].mxu1  ;;  %v2401_v16 = vsel %vm1865_vm1, %v2383_v47, 0.0 }
 0x18b   :  { %20834 = vst [vmem:[#allocation64_spill] sm:$0xff] %v16887_v25  ;;  %20835 = vst [vmem:[#allocation65_spill] sm:$0xff] %v16889_v26  ;;  %v16895_v31 = vpop.f32.mrb[23].mxu0  ;;  %v16897_v32 = vpop.f32.mrb[23].mxu1  ;;  %v1951_v55 = vsel %vm1865_vm1, %v16887_v25, 0.0 }
 0x18c   :  { %20836 = vst [vmem:[#allocation66_spill] sm:$0xff] %v16895_v31  ;;  %20837 = vst [vmem:[#allocation67_spill] sm:$0xff] %v16897_v32  ;;  %2042 = vadd.xlane.f32.xlu1 %v2041_v29  ;;  %v2583_v29 = vmul.f32 %v16777_v12, %v16777_v12  ;;  %v2669_v12 = vsel %vm1865_vm1, %v2659_v2, 0.0 }
 0x18e   :  { %1879 = vadd.xlane.f32.xlu0 %v1878_v33  ;;  %v2601_v47 = vsel %vm1865_vm1, %v2583_v29, 0.0 }
 0x190   :  { %2408 = vadd.xlane.f32.xlu1 %v2407_v36  ;;  %v16921_v10 = vpop.f32.mrb[24].mxu0  ;;  %v16933_v36 = vpop.f32.mrb[24].mxu1 }
 0x191   :  { %20838 = vst [vmem:[#allocation68_spill] sm:$0xff] %v16921_v10  ;;  %v16924_v13 = vpop.f32.mrb[25].mxu0  ;;  %20842 = vst [vmem:[#allocation72_spill] sm:$0xff] %v16933_v36  ;;  %v16938_v45 = vpop.f32.mrb[25].mxu1 }
 0x192   :  { %2039 = vadd.xlane.f32.xlu0 %v2038_v42  ;;  %20839 = vst [vmem:[#allocation69_spill] sm:$0xff] %v16924_v13  ;;  %v16929_v30 = vpop.f32.mrb[26].mxu0  ;;  %v2382_v42 = vmul.f32 %v16763_v5, %v16763_v5  ;;  %20843 = vst [vmem:[#allocation73_spill] sm:$0xff] %v16938_v45 }
 0x193   :  { %20840 = vst [vmem:[#allocation70_spill] sm:$0xff] %v16929_v30  ;;  %v16931_v33 = vpop.f32.mrb[27].mxu0 }
 0x194   :  { %2608 = vadd.xlane.f32.xlu1 %v2607_v46  ;;  %20841 = vst [vmem:[#allocation71_spill] sm:$0xff] %v16931_v33  ;;  %v16940_v46 = vpop.f32.mrb[26].mxu1  ;;  %v2398_v1 = vsel %vm1865_vm1, %v2382_v42, 0.0  ;;  %v1904_v42 = vsel %vm1865_vm1, %v16786_v17, 0.0 }
 0x195   :  { %20844 = vst [vmem:[#allocation74_spill] sm:$0xff] %v16940_v46  ;;  %v16943_v48 = vpop.f32.mrb[27].mxu1 }
 0x196   :  { %2405 = vadd.xlane.f32.xlu0 %v2404_v56  ;;  %20845 = vst [vmem:[#allocation75_spill] sm:$0xff] %v16943_v48  ;;  %v15462_v56 = vld [vmem:[%s20610_s1 + $0x1e8] sm:$0xff]  }
 0x197   :  { %14570 = vmatmul.mubr.msk.bf16.vlgmr.msra.gmra.mrb[40].mxu1 %vm181_vm0, %v15462_v56  ;;  %v1901_v56 = vsel %vm1865_vm1, %v16804_v27, 0.0 }
 0x198   :  { %2402 = vadd.xlane.f32.xlu1 %v2401_v16  ;;  %v1898_v16 = vsel %vm1865_vm1, %v16793_v21, 0.0  ;;  %v16986_v7 = vpop.f32.mrb[28].mxu0 }
 0x199   :  { %20846 = vst [vmem:[#allocation76_spill] sm:$0xff] %v16986_v7 }
 0x19a   :  { %2605 = vadd.xlane.f32.xlu0 %v2604_v37  ;;  %v2582_v37 = vmul.f32 %v16765_v6, %v16765_v6 }
 0x19c   :  { %2602 = vadd.xlane.f32.xlu1 %v2601_v47  ;;  %v2598_v29 = vsel %vm1865_vm1, %v2582_v37, 0.0  ;;  %v1907_v47 = vsel %vm1865_vm1, %v16797_v23, 0.0  ;;  %v2093_v37 = vsel %vm1865_vm1, %v16806_v28, 0.0  ;;  %v2102_v28 = vsel %vm1865_vm1, %v16830_v39, 0.0 }
 0x19e   :  { %2399 = vadd.xlane.f32.xlu0 %v2398_v1  ;;  %v2090_v1 = vsel %vm1865_vm1, %v16795_v22, 0.0 }
 0x1a0   :  { %1899 = vadd.xlane.f32.xlu1 %v1898_v16  ;;  %v2420_v16 = vmul.f32 %v16786_v17, %v16786_v17 }
 0x1a2   :  { %2599 = vadd.xlane.f32.xlu0 %v2598_v29  ;;  %v2432_v29 = vsel %vm1865_vm1, %v2420_v16, 0.0 }
 0x1a4   :  { %1908 = vadd.xlane.f32.xlu1 %v1907_v47  ;;  %v2660_v47 = vmul.f32 %v16788_v18, %v16788_v18  ;;  %v2740_v18 = vmul.f32 %v16856_v51, %v16856_v51 }
 0x1a6   :  { %1905 = vadd.xlane.f32.xlu0 %v1904_v42 }
 0x1a8   :  { %2100 = vadd.xlane.f32.xlu1 %v2099_v8  ;;  %v2421_v8 = vmul.f32 %v16797_v23, %v16797_v23 }
 0x1aa   :  { %2097 = vadd.xlane.f32.xlu0 %v2096_v49  ;;  %v2435_v42 = vsel %vm1865_vm1, %v2421_v8, 0.0  ;;  %v2661_v49 = vmul.f32 %v16799_v24, %v16799_v24 }
 0x1ac   :  { %1902 = vadd.xlane.f32.xlu1 %v1901_v56  ;;  %v2672_v56 = vsel %vm1865_vm1, %v2660_v47, 0.0  ;;  %v2675_v16 = vsel %vm1865_vm1, %v2661_v49, 0.0 }
 0x1ae   :  { %2091 = vadd.xlane.f32.xlu0 %v2090_v1  ;;  %v2418_v1 = vmul.f32 %v16793_v21, %v16793_v21 }
 0x1b0   :  { %2094 = vadd.xlane.f32.xlu1 %v2093_v37  ;;  %v16988_v37 = vpop.f32.mrb[29].mxu0  ;;  %v2426_v47 = vsel %vm1865_vm1, %v2418_v1, 0.0  ;;  %v1919_v1 = vsel %vm1865_vm1, %v16832_v40, 0.0 }
 0x1b1   :  { %20847 = vst [vmem:[#allocation77_spill] sm:$0xff] %v16988_v37  ;;  %v16993_v8 = vpop.f32.mrb[30].mxu0 }
 0x1b2   :  { %2433 = vadd.xlane.f32.xlu0 %v2432_v29  ;;  %v2419_v29 = vmul.f32 %v16804_v27, %v16804_v27  ;;  %20848 = vst [vmem:[#allocation78_spill] sm:$0xff] %v16993_v8  ;;  %v16995_v3 = vpop.f32.mrb[31].mxu0  ;;  %v2425_v27 = vmul.f32 %v16832_v40, %v16832_v40  ;;  %v2422_v40 = vmul.f32 %v16828_v38, %v16828_v38 }
 0x1b3   :  { %20849 = vst [vmem:[#allocation79_spill] sm:$0xff] %v16995_v3 }
 0x1b4   :  { %2436 = vadd.xlane.f32.xlu1 %v2435_v42  ;;  %v2658_v42 = vmul.f32 %v16795_v22, %v16795_v22 }
 0x1b6   :  { %2673 = vadd.xlane.f32.xlu0 %v2672_v56  ;;  %v2429_v56 = vsel %vm1865_vm1, %v2419_v29, 0.0  ;;  %v2666_v49 = vsel %vm1865_vm1, %v2658_v42, 0.0  ;;  %v2108_v29 = vsel %vm1865_vm1, %v16822_v35, 0.0  ;;  %v17015_v42 = vpop.f32.mrb[32].mxu0 }
 0x1b7   :  { %20852 = vst [vmem:[#allocation82_spill] sm:$0xff] %v17015_v42 }
 0x1b8   :  { %2676 = vadd.xlane.f32.xlu1 %v2675_v16  ;;  %v1916_v16 = vsel %vm1865_vm1, %v16820_v34, 0.0 }
 0x1ba   :  { %2427 = vadd.xlane.f32.xlu0 %v2426_v47  ;;  %v17011_v47 = vpop.f32.mrb[28].mxu1 }
 0x1bb   :  { %20850 = vst [vmem:[#allocation80_spill] sm:$0xff] %v17011_v47  ;;  %v2169_v47 = vsel %vm1865_vm1, %v16897_v32, 0.0  ;;  %v2820_v32 = vmul.f32 %v16933_v36, %v16933_v36 }
 0x1bc   :  { %2430 = vadd.xlane.f32.xlu1 %v2429_v56  ;;  %v17013_v56 = vpop.f32.mrb[29].mxu1 }
 0x1bd   :  { %20851 = vst [vmem:[#allocation81_spill] sm:$0xff] %v17013_v56  ;;  %v17017_v2 = vpop.f32.mrb[30].mxu1  ;;  %v1965_v56 = vsel %vm1865_vm1, %v16931_v33, 0.0 }
 0x1be   :  { %2667 = vadd.xlane.f32.xlu0 %v2666_v49  ;;  %20853 = vst [vmem:[#allocation83_spill] sm:$0xff] %v17017_v2  ;;  %v17019_v49 = vpop.f32.mrb[33].mxu0 }
 0x1bf   :  { %20854 = vst [vmem:[#allocation84_spill] sm:$0xff] %v17019_v49  ;;  %v17025_v11 = vpop.f32.mrb[34].mxu0 }
 0x1c0   :  { %2670 = vadd.xlane.f32.xlu1 %v2669_v12  ;;  %v2111_v12 = vsel %vm1865_vm1, %v16834_v41, 0.0  ;;  %20856 = vst [vmem:[#allocation86_spill] sm:$0xff] %v17025_v11  ;;  %v17029_v6 = vpop.f32.mrb[35].mxu0 }
 0x1c1   :  { %20857 = vst [vmem:[#allocation87_spill] sm:$0xff] %v17029_v6 }
 0x1c2   :  { %1917 = vadd.xlane.f32.xlu0 %v1916_v16  ;;  %v17023_v16 = vpop.f32.mrb[31].mxu1 }
 0x1c3   :  { %20855 = vst [vmem:[#allocation85_spill] sm:$0xff] %v17023_v16  ;;  %v17033_v5 = vpop.f32.mrb[32].mxu1  ;;  %v1962_v16 = vsel %vm1865_vm1, %v16924_v13, 0.0 }
 0x1c4   :  { %1920 = vadd.xlane.f32.xlu1 %v1919_v1  ;;  %v1910_v1 = vsel %vm1865_vm1, %v16828_v38, 0.0  ;;  %20858 = vst [vmem:[#allocation88_spill] sm:$0xff] %v17033_v5  ;;  %v17039_v60 = vpop.f32.mrb[33].mxu1  ;;  %v15466_v38 = vld [vmem:[%s20610_s1 + $0x1f8] sm:$0xff]  }
 0x1c5   :  { %20859 = vst [vmem:[#allocation89_spill] sm:$0xff] %v17039_v60  ;;  %v17041_v59 = vpop.f32.mrb[34].mxu1 }
 0x1c6   :  { %2109 = vadd.xlane.f32.xlu0 %v2108_v29  ;;  %v1913_v29 = vsel %vm1865_vm1, %v16837_v43, 0.0  ;;  %20860 = vst [vmem:[#allocation90_spill] sm:$0xff] %v17041_v59 }
 0x1c8   :  { %2112 = vadd.xlane.f32.xlu1 %v2111_v12  ;;  %v2424_v12 = vmul.f32 %v16820_v34, %v16820_v34  ;;  %v2447_v34 = vsel %vm1865_vm1, %v2425_v27, 0.0  ;;  %v2662_v27 = vmul.f32 %v16830_v39, %v16830_v39  ;;  %v2461_v39 = vmul.f32 %v16863_v63, %v16863_v63 }
 0x1ca   :  { %1911 = vadd.xlane.f32.xlu0 %v1910_v1  ;;  %v2105_v1 = vsel %vm1865_vm1, %v16839_v44, 0.0  ;;  %v2444_v24 = vsel %vm1865_vm1, %v2424_v12, 0.0  ;;  %v2423_v12 = vmul.f32 %v16837_v43, %v16837_v43  ;;  %v2157_v43 = vsel %vm1865_vm1, %v16871_v9, 0.0 }
 0x1cc   :  { %1914 = vadd.xlane.f32.xlu1 %v1913_v29  ;;  %v17047_v29 = vpop.f32.mrb[35].mxu1  ;;  %v2441_v58 = vsel %vm1865_vm1, %v2423_v12, 0.0  ;;  %v15463_v12 = vld [vmem:[%s20610_s1 + $0x1d0] sm:$0xff]  }
 0x1cd   :  { %20861 = vst [vmem:[#allocation91_spill] sm:$0xff] %v17047_v29  ;;  %14563 = vmatprep.mubr.msk.bf16.mxu0 %vm181_vm0, %v15463_v12 }
 0x1ce   :  { %2103 = vadd.xlane.f32.xlu0 %v2102_v28  ;;  %v2665_v28 = vmul.f32 %v16834_v41, %v16834_v41  ;;  %v17064_v41 = vpop.f32.mrb[36].mxu0 }
 0x1cf   :  { %20862 = vst [vmem:[#allocation92_spill] sm:$0xff] %v17064_v41 }
 0x1d0   :  { %2106 = vadd.xlane.f32.xlu1 %v2105_v1  ;;  %v2687_v1 = vsel %vm1865_vm1, %v2665_v28, 0.0 }
 0x1d2   :  { %2445 = vadd.xlane.f32.xlu0 %v2444_v24  ;;  %v2438_v24 = vsel %vm1865_vm1, %v2422_v40, 0.0 }
 0x1d4   :  { %2448 = vadd.xlane.f32.xlu1 %v2447_v34  ;;  %v2663_v34 = vmul.f32 %v16839_v44, %v16839_v44 }
 0x1d6   :  { %2685 = vadd.xlane.f32.xlu0 %v2684_v57  ;;  %v17069_v57 = vpop.f32.mrb[37].mxu0  ;;  %v2681_v40 = vsel %vm1865_vm1, %v2663_v34, 0.0  ;;  %v2160_v34 = vsel %vm1865_vm1, %v16856_v51, 0.0  ;;  %v2458_v51 = vmul.f32 %v16859_v61, %v16859_v61 }
 0x1d7   :  { %20863 = vst [vmem:[#allocation93_spill] sm:$0xff] %v17069_v57  ;;  %v17071_v28 = vpop.f32.mrb[38].mxu0 }
 0x1d8   :  { %2688 = vadd.xlane.f32.xlu1 %v2687_v1  ;;  %20864 = vst [vmem:[#allocation94_spill] sm:$0xff] %v17071_v28  ;;  %v2678_v1 = vsel %vm1865_vm1, %v2662_v27, 0.0  ;;  %v17074_v35 = vpop.f32.mrb[39].mxu0  ;;  %v1939_v27 = vsel %vm1865_vm1, %v16863_v63, 0.0 }
 0x1d9   :  { %20865 = vst [vmem:[#allocation95_spill] sm:$0xff] %v17074_v35  ;;  %v17095_v12 = vpop.f32.mrb[40].mxu0 }
 0x1da   :  { %2439 = vadd.xlane.f32.xlu0 %v2438_v24  ;;  %v1936_v24 = vsel %vm1865_vm1, %v16854_v50, 0.0  ;;  %20866 = vst [vmem:[#allocation96_spill] sm:$0xff] %v17095_v12 }
 0x1dc   :  { %2442 = vadd.xlane.f32.xlu1 %v2441_v58  ;;  %v15464_v58 = vld [vmem:[%s20610_s1 + $0x1d8] sm:$0xff]  }
 0x1dd   :  { %14564 = vmatmul.mubr.msk.bf16.gmra.mrb[76].mxu0 %vm181_vm0, %v15464_v58  ;;  %v17099_v58 = vpop.f32.mrb[41].mxu0 }
 0x1de   :  { %2679 = vadd.xlane.f32.xlu0 %v2678_v1  ;;  %v2163_v1 = vsel %vm1865_vm1, %v16865_v0, 0.0  ;;  %20867 = vst [vmem:[#allocation97_spill] sm:$0xff] %v17099_v58  ;;  %v17101_v44 = vpop.f32.mrb[42].mxu0  ;;  %v2738_v0 = vmul.f32 %v16861_v62, %v16861_v62 }
 0x1df   :  { %20868 = vst [vmem:[#allocation98_spill] sm:$0xff] %v17101_v44 }
 0x1e0   :  { %2682 = vadd.xlane.f32.xlu1 %v2681_v40  ;;  %v1930_v40 = vsel %vm1865_vm1, %v16859_v61, 0.0 }
 0x1e2   :  { %1937 = vadd.xlane.f32.xlu0 %v1936_v24  ;;  %v1933_v24 = vsel %vm1865_vm1, %v16869_v4, 0.0 }
 0x1e4   :  { %1940 = vadd.xlane.f32.xlu1 %v1939_v27  ;;  %v2154_v27 = vsel %vm1865_vm1, %v16861_v62, 0.0 }
 0x1e6   :  { %2161 = vadd.xlane.f32.xlu0 %v2160_v34  ;;  %v2460_v34 = vmul.f32 %v16854_v50, %v16854_v50 }
 0x1e8   :  { %2164 = vadd.xlane.f32.xlu1 %v2163_v1  ;;  %v17107_v1 = vpop.f32.mrb[43].mxu0 }
 0x1e9   :  { %20869 = vst [vmem:[#allocation99_spill] sm:$0xff] %v17107_v1 }
 0x1ea   :  { %1931 = vadd.xlane.f32.xlu0 %v1930_v40 }
 0x1ec   :  { %1934 = vadd.xlane.f32.xlu1 %v1933_v24  ;;  %v15465_v24 = vld [vmem:[%s20610_s1 + $0x1f0] sm:$0xff]  }
 0x1ed   :  { %14573 = vmatprep.mubr.msk.bf16.mxu1 %vm181_vm0, %v15465_v24 }
 0x1ee   :  { %2155 = vadd.xlane.f32.xlu0 %v2154_v27  ;;  %v2472_v27 = vsel %vm1865_vm1, %v2460_v34, 0.0  ;;  %14574 = vmatmul.mubr.msk.bf16.gmra.mrb[44].mxu1 %vm181_vm0, %v15466_v38  ;;  %v2752_v34 = vsel %vm1865_vm1, %v2740_v18, 0.0  ;;  %v2755_v38 = vsel %vm1865_vm1, %v2741_v53, 0.0  ;;  %v17148_v18 = vpop.f32.mrb[44].mxu0  ;;  %v2739_v53 = vmul.f32 %v16871_v9, %v16871_v9 }
 0x1ef   :  { %v17109_v40 = vpop.xlane.xlu0 %1873  ;;  %20873 = vst [vmem:[#allocation103_spill] sm:$0xff] %v17148_v18  ;;  %v17155_v17 = vpop.f32.mrb[45].mxu0 }
 0x1f0   :  { %2158 = vadd.xlane.f32.xlu1 %v2157_v43  ;;  %v2475_v43 = vsel %vm1865_vm1, %v2461_v39, 0.0  ;;  %20875 = vst [vmem:[#allocation105_spill] sm:$0xff] %v17155_v17  ;;  %v2749_v22 = vsel %vm1865_vm1, %v2739_v53, 0.0 }
 0x1f1   :  { %v17121_v23 = vpop.xlane.xlu1 %1876 }
 0x1f2   :  { %2473 = vadd.xlane.f32.xlu0 %v2472_v27  ;;  %v2459_v27 = vmul.f32 %v16869_v4, %v16869_v4 }
 0x1f3   :  { %v17128_v63 = vpop.xlane.xlu0 %2033 }
 0x1f4   :  { %20870 = vst [vmem:[#allocation100_spill] sm:$0xff] %v17128_v63  ;;  %2476 = vadd.xlane.f32.xlu1 %v2475_v43  ;;  %v2466_v43 = vsel %vm1865_vm1, %v2458_v51, 0.0  ;;  %v2746_v51 = vsel %vm1865_vm1, %v2738_v0, 0.0  ;;  %v2172_v0 = vsel %vm1865_vm1, %v16879_v15, 0.0  ;;  %v2221_v15 = vsel %vm1865_vm1, %v16943_v48, 0.0 }
 0x1f5   :  { %v17133_v50 = vpop.xlane.xlu1 %2036 }
 0x1f6   :  { %20871 = vst [vmem:[#allocation101_spill] sm:$0xff] %v17133_v50  ;;  %2753 = vadd.xlane.f32.xlu0 %v2752_v34  ;;  %v2469_v34 = vsel %vm1865_vm1, %v2459_v27, 0.0  ;;  %v1948_v27 = vsel %vm1865_vm1, %v16877_v14, 0.0  ;;  %v2462_v50 = vmul.f32 %v16883_v19, %v16883_v19 }
 0x1f7   :  { %v17138_v24 = vpop.xlane.xlu0 %1867 }
 0x1f8   :  { %2756 = vadd.xlane.f32.xlu1 %v2755_v38  ;;  %v17157_v38 = vpop.f32.mrb[46].mxu0 }
 0x1f9   :  { %v17143_v39 = vpop.xlane.xlu1 %2030  ;;  %20876 = vst [vmem:[#allocation106_spill] sm:$0xff] %v17157_v38  ;;  %v17162_v62 = vpop.f32.mrb[47].mxu0 }
 0x1fa   :  { %20872 = vst [vmem:[#allocation102_spill] sm:$0xff] %v17143_v39  ;;  %2467 = vadd.xlane.f32.xlu0 %v2466_v43  ;;  %20877 = vst [vmem:[#allocation107_spill] sm:$0xff] %v17162_v62  ;;  %v17187_v54 = vpop.f32.mrb[48].mxu0 }
 0x1fb   :  { %v17150_v52 = vpop.xlane.xlu0 %2027  ;;  %20881 = vst [vmem:[#allocation111_spill] sm:$0xff] %v17187_v54 }
 0x1fc   :  { %20874 = vst [vmem:[#allocation104_spill] sm:$0xff] %v17150_v52  ;;  %2470 = vadd.xlane.f32.xlu1 %v2469_v34 }
 0x1fd   :  { %v17159_v4 = vpop.xlane.xlu1 %2396 }
 0x1fe   :  { %2747 = vadd.xlane.f32.xlu0 %v2746_v51 }
 0x1ff   :  { %v17164_v43 = vpop.xlane.xlu0 %2393 }
 0x200   :  { %2750 = vadd.xlane.f32.xlu1 %v2749_v22  ;;  %v2175_v22 = vsel %vm1865_vm1, %v16889_v26, 0.0 }
 0x201   :  { %v17169_v9 = vpop.xlane.xlu1 %2596 }
 0x202   :  { %20878 = vst [vmem:[#allocation108_spill] sm:$0xff] %v17169_v9  ;;  %1949 = vadd.xlane.f32.xlu0 %v1948_v27  ;;  %v1942_v27 = vsel %vm1865_vm1, %v16883_v19, 0.0 }
 0x203   :  { %v17171_v34 = vpop.xlane.xlu0 %2593 }
 0x204   :  { %20879 = vst [vmem:[#allocation109_spill] sm:$0xff] %v17171_v34  ;;  %1952 = vadd.xlane.f32.xlu1 %v1951_v55  ;;  %v1945_v55 = vsel %vm1865_vm1, %v16895_v31, 0.0 }
 0x205   :  { %v17177_v51 = vpop.xlane.xlu1 %2390 }
 0x206   :  { %2173 = vadd.xlane.f32.xlu0 %v2172_v0  ;;  %v17193_v0 = vpop.f32.mrb[49].mxu0 }
 0x207   :  { %v17179_v53 = vpop.xlane.xlu0 %1870  ;;  %20882 = vst [vmem:[#allocation112_spill] sm:$0xff] %v17193_v0  ;;  %v17195_v9 = vpop.f32.mrb[50].mxu0 }
 0x208   :  { %2176 = vadd.xlane.f32.xlu1 %v2175_v22  ;;  %20883 = vst [vmem:[#allocation113_spill] sm:$0xff] %v17195_v9  ;;  %v2166_v22 = vsel %vm1865_vm1, %v16885_v20, 0.0 }
 0x209   :  { %v17183_v61 = vpop.xlane.xlu1 %2590 }
 0x20a   :  { %20880 = vst [vmem:[#allocation110_spill] sm:$0xff] %v17183_v61  ;;  %1943 = vadd.xlane.f32.xlu0 %v1942_v27  ;;  %v2464_v27 = vmul.f32 %v16877_v14, %v16877_v14  ;;  %v17203_v61 = vpop.f32.mrb[51].mxu0 }
 0x20b   :  { %v17189_v21 = vpop.xlane.xlu0 %2387  ;;  %20884 = vst [vmem:[#allocation114_spill] sm:$0xff] %v17203_v61 }
 0x20c   :  { %1946 = vadd.xlane.f32.xlu1 %v1945_v55  ;;  %v2465_v55 = vmul.f32 %v16887_v25, %v16887_v25  ;;  %v2484_v52 = vsel %vm1865_vm1, %v2464_v27, 0.0 }
 0x20d   :  { %v17197_v2 = vpop.xlane.xlu1 %1888 }
 0x20e   :  { %2167 = vadd.xlane.f32.xlu0 %v2166_v22  ;;  %v2487_v22 = vsel %vm1865_vm1, %v2465_v55, 0.0  ;;  %v17231_v55 = vpop.f32.mrb[52].mxu0 }
 0x20f   :  { %v17205_v34 = vpop.xlane.xlu0 %2587  ;;  %20889 = vst [vmem:[#allocation119_spill] sm:$0xff] %v17231_v55 }
 0x210   :  { %20885 = vst [vmem:[#allocation115_spill] sm:$0xff] %v17205_v34  ;;  %2170 = vadd.xlane.f32.xlu1 %v2169_v47  ;;  %v2463_v34 = vmul.f32 %v16895_v31, %v16895_v31  ;;  %v2478_v47 = vsel %vm1865_vm1, %v2462_v50, 0.0  ;;  %v2224_v50 = vsel %vm1865_vm1, %v16933_v36, 0.0  ;;  %v2832_v36 = vsel %vm1865_vm1, %v2820_v32, 0.0 }
 0x211   :  { %v17211_v39 = vpop.xlane.xlu1 %2048 }
 0x212   :  { %20886 = vst [vmem:[#allocation116_spill] sm:$0xff] %v17211_v39  ;;  %2485 = vadd.xlane.f32.xlu0 %v2484_v52  ;;  %v2481_v27 = vsel %vm1865_vm1, %v2463_v34, 0.0  ;;  %v1968_v52 = vsel %vm1865_vm1, %v16921_v10, 0.0 }
 0x213   :  { %v17216_v14 = vpop.xlane.xlu0 %1885 }
 0x214   :  { %2488 = vadd.xlane.f32.xlu1 %v2487_v22  ;;  %v1971_v22 = vsel %vm1865_vm1, %v16929_v30, 0.0 }
 0x215   :  { %v17221_v63 = vpop.xlane.xlu1 %1882 }
 0x216   :  { %2479 = vadd.xlane.f32.xlu0 %v2478_v47  ;;  %v17239_v47 = vpop.f32.mrb[53].mxu0 }
 0x217   :  { %v17224_v25 = vpop.xlane.xlu0 %2045  ;;  %20890 = vst [vmem:[#allocation120_spill] sm:$0xff] %v17239_v47  ;;  %v17241_v34 = vpop.f32.mrb[54].mxu0 }
 0x218   :  { %20887 = vst [vmem:[#allocation117_spill] sm:$0xff] %v17224_v25  ;;  %2482 = vadd.xlane.f32.xlu1 %v2481_v27  ;;  %20891 = vst [vmem:[#allocation121_spill] sm:$0xff] %v17241_v34  ;;  %v17245_v27 = vpop.f32.mrb[55].mxu0 }
 0x219   :  { %v17229_v19 = vpop.xlane.xlu1 %2042  ;;  %20892 = vst [vmem:[#allocation122_spill] sm:$0xff] %v17245_v27 }
 0x21a   :  { %20888 = vst [vmem:[#allocation118_spill] sm:$0xff] %v17229_v19  ;;  %1969 = vadd.xlane.f32.xlu0 %v1968_v52  ;;  %v2227_v19 = vsel %vm1865_vm1, %v16940_v46, 0.0 }
 0x21b   :  { %v17233_v31 = vpop.xlane.xlu0 %1879 }
 0x21c   :  { %1972 = vadd.xlane.f32.xlu1 %v1971_v22 }
 0x21d   :  { %v17243_v39 = vpop.xlane.xlu1 %2408 }
 0x21e   :  { %2225 = vadd.xlane.f32.xlu0 %v2224_v50  ;;  %v2500_v50 = vmul.f32 %v16921_v10, %v16921_v10 }
 0x21f   :  { %v17247_v52 = vpop.xlane.xlu0 %2039 }
 0x220   :  { %20893 = vst [vmem:[#allocation123_spill] sm:$0xff] %v17247_v52  ;;  %2228 = vadd.xlane.f32.xlu1 %v2227_v19  ;;  %v2218_v19 = vsel %vm1865_vm1, %v16938_v45, 0.0 }
 0x221   :  { %v17251_v25 = vpop.xlane.xlu1 %2608 }
 0x222   :  { %20894 = vst [vmem:[#allocation124_spill] sm:$0xff] %v17251_v25  ;;  %1963 = vadd.xlane.f32.xlu0 %v1962_v16  ;;  %v17265_v25 = vpop.f32.mrb[56].mxu0  ;;  %v2501_v16 = vmul.f32 %v16929_v30, %v16929_v30  ;;  %v2821_v30 = vmul.f32 %v16940_v46, %v16940_v46 }
 0x223   :  { %v17255_v22 = vpop.xlane.xlu0 %2405  ;;  %20895 = vst [vmem:[#allocation125_spill] sm:$0xff] %v17265_v25 }
 0x224   :  { %1966 = vadd.xlane.f32.xlu1 %v1965_v56  ;;  %v17273_v56 = vpop.f32.mrb[57].mxu0  ;;  %v2515_v59 = vsel %vm1865_vm1, %v2501_v16, 0.0  ;;  %v2835_v46 = vsel %vm1865_vm1, %v2821_v30, 0.0 }
 0x225   :  { %v17261_v52 = vpop.xlane.xlu1 %2402  ;;  %20897 = vst [vmem:[#allocation127_spill] sm:$0xff] %v17273_v56  ;;  %v17275_v10 = vpop.f32.mrb[58].mxu0 }
 0x226   :  { %2219 = vadd.xlane.f32.xlu0 %v2218_v19  ;;  %20898 = vst [vmem:[#allocation128_spill] sm:$0xff] %v17275_v10  ;;  %v2512_v19 = vsel %vm1865_vm1, %v2500_v50, 0.0  ;;  %v17282_v5 = vpop.f32.mrb[59].mxu0  ;;  %v2499_v50 = vmul.f32 %v16931_v33, %v16931_v33 }
 0x227   :  { %v17269_v26 = vpop.xlane.xlu0 %2605  ;;  %20900 = vst [vmem:[#allocation130_spill] sm:$0xff] %v17282_v5 }
 0x228   :  { %20896 = vst [vmem:[#allocation126_spill] sm:$0xff] %v17269_v26  ;;  %2222 = vadd.xlane.f32.xlu1 %v2221_v15  ;;  %v2498_v15 = vmul.f32 %v16924_v13, %v16924_v13  ;;  %v2509_v30 = vsel %vm1865_vm1, %v2499_v50, 0.0 }
 0x229   :  { %v17279_v20 = vpop.xlane.xlu1 %2602 }
 0x22a   :  { %20899 = vst [vmem:[#allocation129_spill] sm:$0xff] %v17279_v20  ;;  %2513 = vadd.xlane.f32.xlu0 %v2512_v19  ;;  %v2506_v13 = vsel %vm1865_vm1, %v2498_v15, 0.0 }
 0x22b   :  { %v17286_v26 = vpop.xlane.xlu0 %2399 }
 0x22c   :  { %2516 = vadd.xlane.f32.xlu1 %v2515_v59  ;;  %v2818_v59 = vmul.f32 %v16938_v45, %v16938_v45 }
 0x22d   :  { %v1900_v56 = vpop.xlane.xlu1 %1899 }
 0x22e   :  { %v17293_v20 = vadd.f32 %v1900_v56, %v17138_v24  ;;  %2833 = vadd.xlane.f32.xlu0 %v2832_v36  ;;  %v17306_v24 = vpop.f32.mrb[60].mxu0  ;;  %v2819_v36 = vmul.f32 %v16943_v48, %v16943_v48  ;;  %v1980_v48 = vsel %vm1865_vm1, %v16986_v7, 0.0 }
 0x22f   :  { %v17297_v19 = vpop.xlane.xlu0 %2599  ;;  %20902 = vst [vmem:[#allocation132_spill] sm:$0xff] %v17306_v24 }
 0x230   :  { %20901 = vst [vmem:[#allocation131_spill] sm:$0xff] %v17297_v19  ;;  %2836 = vadd.xlane.f32.xlu1 %v2835_v46  ;;  %v17313_v46 = vpop.f32.mrb[61].mxu0 }
 0x231   :  { %v1909_v16 = vpop.xlane.xlu1 %1908  ;;  %20903 = vst [vmem:[#allocation133_spill] sm:$0xff] %v17313_v46  ;;  %v17315_v33 = vpop.f32.mrb[62].mxu0 }
 0x232   :  { %v17304_v32 = vadd.f32 %v1909_v16, %v17121_v23  ;;  %2507 = vadd.xlane.f32.xlu0 %v2506_v13  ;;  %20904 = vst [vmem:[#allocation134_spill] sm:$0xff] %v17315_v33  ;;  %v2826_v23 = vsel %vm1865_vm1, %v2818_v59, 0.0  ;;  %v17320_v15 = vpop.f32.mrb[63].mxu0  ;;  %v2829_v16 = vsel %vm1865_vm1, %v2819_v36, 0.0  ;;  %v1983_v59 = vsel %vm1865_vm1, %v16993_v8, 0.0 }
 0x233   :  { %v17310_v56 = vpop.xlane.xlu0 %1905  ;;  %20906 = vst [vmem:[#allocation136_spill] sm:$0xff] %v17320_v15  ;;  %v17330_v19 = vpop.f32.mrb[64].mxu0 }
 0x234   :  { %2510 = vadd.xlane.f32.xlu1 %v2509_v30  ;;  %20908 = vst [vmem:[#allocation138_spill] sm:$0xff] %v17330_v19 }
 0x235   :  { %v17317_v45 = vpop.xlane.xlu1 %2100 }
 0x236   :  { %20905 = vst [vmem:[#allocation135_spill] sm:$0xff] %v17317_v45  ;;  %2827 = vadd.xlane.f32.xlu0 %v2826_v23  ;;  %v17336_v23 = vpop.f32.mrb[65].mxu0 }
 0x237   :  { %v17322_v13 = vpop.xlane.xlu0 %2097  ;;  %20910 = vst [vmem:[#allocation140_spill] sm:$0xff] %v17336_v23  ;;  %v17338_v36 = vpop.f32.mrb[66].mxu0 }
 0x238   :  { %20907 = vst [vmem:[#allocation137_spill] sm:$0xff] %v17322_v13  ;;  %2830 = vadd.xlane.f32.xlu1 %v2829_v16  ;;  %20911 = vst [vmem:[#allocation141_spill] sm:$0xff] %v17338_v36  ;;  %v2504_v16 = vmul.f32 %v16986_v7, %v16986_v7  ;;  %v2502_v7 = vmul.f32 %v16988_v37, %v16988_v37 }
 0x239   :  { %v1903_v50 = vpop.xlane.xlu1 %1902 }
 0x23a   :  { %v17328_v30 = vadd.f32 %v1903_v50, %v17179_v53  ;;  %1981 = vadd.xlane.f32.xlu0 %v1980_v48  ;;  %v1974_v48 = vsel %vm1865_vm1, %v16988_v37, 0.0  ;;  %v17346_v53 = vpop.f32.mrb[67].mxu0  ;;  %v2505_v50 = vmul.f32 %v16993_v8, %v16993_v8  ;;  %v2524_v24 = vsel %vm1865_vm1, %v2504_v16, 0.0 }
 0x23b   :  { %v17332_v45 = vpop.xlane.xlu0 %2091  ;;  %20913 = vst [vmem:[#allocation143_spill] sm:$0xff] %v17346_v53  ;;  %v2000_v16 = vsel %vm1865_vm1, %v17015_v42, 0.0  ;;  %v17376_v37 = vpop.f32.mrb[68].mxu0 }
 0x23c   :  { %20909 = vst [vmem:[#allocation139_spill] sm:$0xff] %v17332_v45  ;;  %1984 = vadd.xlane.f32.xlu1 %v1983_v59  ;;  %v1977_v59 = vsel %vm1865_vm1, %v16995_v3, 0.0  ;;  %v2527_v15 = vsel %vm1865_vm1, %v2505_v50, 0.0  ;;  %20916 = vst [vmem:[#allocation146_spill] sm:$0xff] %v17376_v37 }
 0x23d   :  { %v17342_v13 = vpop.xlane.xlu1 %2094 }
 0x23e   :  { %20912 = vst [vmem:[#allocation142_spill] sm:$0xff] %v17342_v13  ;;  %1975 = vadd.xlane.f32.xlu0 %v1974_v48  ;;  %v2503_v48 = vmul.f32 %v16995_v3, %v16995_v3 }
 0x23f   :  { %v2434_v45 = vpop.xlane.xlu0 %2433 }
 0x240   :  { %v17353_v33 = vadd.f32 %v2434_v45, %v17164_v43  ;;  %1978 = vadd.xlane.f32.xlu1 %v1977_v59  ;;  %v2518_v45 = vsel %vm1865_vm1, %v2502_v7, 0.0  ;;  %v2521_v59 = vsel %vm1865_vm1, %v2503_v48, 0.0  ;;  %v2003_v7 = vsel %vm1865_vm1, %v17025_v11, 0.0 }
 0x241   :  { %v17357_v13 = vpop.xlane.xlu1 %2436 }
 0x242   :  { %2525 = vadd.xlane.f32.xlu0 %v2524_v24 }
 0x243   :  { %v17362_v8 = vpop.xlane.xlu0 %2673 }
 0x244   :  { %20914 = vst [vmem:[#allocation144_spill] sm:$0xff] %v17362_v8  ;;  %2528 = vadd.xlane.f32.xlu1 %v2527_v15  ;;  %v17378_v15 = vpop.f32.mrb[69].mxu0 }
 0x245   :  { %v17365_v46 = vpop.xlane.xlu1 %2676  ;;  %20917 = vst [vmem:[#allocation147_spill] sm:$0xff] %v17378_v15  ;;  %v17384_v48 = vpop.f32.mrb[70].mxu0 }
 0x246   :  { %20915 = vst [vmem:[#allocation145_spill] sm:$0xff] %v17365_v46  ;;  %2519 = vadd.xlane.f32.xlu0 %v2518_v45  ;;  %20919 = vst [vmem:[#allocation149_spill] sm:$0xff] %v17384_v48  ;;  %v17386_v45 = vpop.f32.mrb[71].mxu0  ;;  %v2541_v48 = vmul.f32 %v17025_v11, %v17025_v11  ;;  %v2539_v11 = vmul.f32 %v17029_v6, %v17029_v6 }
 0x247   :  { %v2428_v43 = vpop.xlane.xlu0 %2427  ;;  %20920 = vst [vmem:[#allocation150_spill] sm:$0xff] %v17386_v45 }
 0x248   :  { %v17372_v24 = vadd.f32 %v2428_v43, %v17189_v21  ;;  %2522 = vadd.xlane.f32.xlu1 %v2521_v59  ;;  %v1994_v43 = vsel %vm1865_vm1, %v17019_v49, 0.0  ;;  %v2555_v15 = vsel %vm1865_vm1, %v2541_v48, 0.0 }
 0x249   :  { %v17374_v3 = vpop.xlane.xlu1 %2430 }
 0x24a   :  { %2001 = vadd.xlane.f32.xlu0 %v2000_v16  ;;  %v1997_v16 = vsel %vm1865_vm1, %v17029_v6, 0.0 }
 0x24b   :  { %v17380_v50 = vpop.xlane.xlu0 %2667 }
 0x24c   :  { %20918 = vst [vmem:[#allocation148_spill] sm:$0xff] %v17380_v50  ;;  %2004 = vadd.xlane.f32.xlu1 %v2003_v7  ;;  %v2282_v50 = vsel %vm1865_vm1, %v17039_v60, 0.0  ;;  %v2540_v7 = vmul.f32 %v17015_v42, %v17015_v42  ;;  %v2538_v42 = vmul.f32 %v17019_v49, %v17019_v49 }
 0x24d   :  { %v17388_v21 = vpop.xlane.xlu1 %2670 }
 0x24e   :  { %20921 = vst [vmem:[#allocation151_spill] sm:$0xff] %v17388_v21  ;;  %1995 = vadd.xlane.f32.xlu0 %v1994_v43  ;;  %v17403_v21 = vpop.f32.mrb[72].mxu0 }
 0x24f   :  { %v1918_v59 = vpop.xlane.xlu0 %1917  ;;  %20922 = vst [vmem:[#allocation152_spill] sm:$0xff] %v17403_v21  ;;  %v17405_v43 = vpop.f32.mrb[73].mxu0 }
 0x250   :  { %v17397_v46 = vadd.f32 %v1918_v59, %v17216_v14  ;;  %1998 = vadd.xlane.f32.xlu1 %v1997_v16  ;;  %20923 = vst [vmem:[#allocation153_spill] sm:$0xff] %v17405_v43  ;;  %v2285_v14 = vsel %vm1865_vm1, %v17047_v29, 0.0  ;;  %v17413_v59 = vpop.f32.mrb[74].mxu0 }
 0x251   :  { %v17401_v8 = vpop.xlane.xlu1 %1920  ;;  %20925 = vst [vmem:[#allocation155_spill] sm:$0xff] %v17413_v59  ;;  %v17415_v16 = vpop.f32.mrb[75].mxu0  ;;  %v2546_v59 = vsel %vm1865_vm1, %v2538_v42, 0.0  ;;  %v2544_v42 = vmul.f32 %v17064_v41, %v17064_v41 }
 0x252   :  { %2283 = vadd.xlane.f32.xlu0 %v2282_v50  ;;  %20926 = vst [vmem:[#allocation156_spill] sm:$0xff] %v17415_v16  ;;  %v2552_v50 = vsel %vm1865_vm1, %v2540_v7, 0.0  ;;  %v2549_v7 = vsel %vm1865_vm1, %v2539_v11, 0.0  ;;  %v2006_v11 = vsel %vm1865_vm1, %v17069_v57, 0.0 }
 0x253   :  { %v17409_v37 = vpop.xlane.xlu0 %2109 }
 0x254   :  { %20924 = vst [vmem:[#allocation154_spill] sm:$0xff] %v17409_v37  ;;  %2286 = vadd.xlane.f32.xlu1 %v2285_v14 }
 0x255   :  { %v17419_v45 = vpop.xlane.xlu1 %2112 }
 0x256   :  { %20927 = vst [vmem:[#allocation157_spill] sm:$0xff] %v17419_v45  ;;  %2553 = vadd.xlane.f32.xlu0 %v2552_v50  ;;  %v2012_v50 = vsel %vm1865_vm1, %v17064_v41, 0.0 }
 0x257   :  { %v1912_v37 = vpop.xlane.xlu0 %1911 }
 0x258   :  { %v17426_v21 = vadd.f32 %v1912_v37, %v17233_v31  ;;  %2556 = vadd.xlane.f32.xlu1 %v2555_v15  ;;  %v2015_v31 = vsel %vm1865_vm1, %v17071_v28, 0.0 }
 0x259   :  { %v17428_v14 = vpop.xlane.xlu1 %1914 }
 0x25a   :  { %2547 = vadd.xlane.f32.xlu0 %v2546_v59  ;;  %v2545_v59 = vmul.f32 %v17071_v28, %v17071_v28 }
 0x25b   :  { %v17431_v49 = vpop.xlane.xlu0 %2103 }
 0x25c   :  { %20928 = vst [vmem:[#allocation158_spill] sm:$0xff] %v17431_v49  ;;  %2550 = vadd.xlane.f32.xlu1 %v2549_v7  ;;  %v2567_v28 = vsel %vm1865_vm1, %v2545_v59, 0.0  ;;  %v2064_v59 = vsel %vm1865_vm1, %v17095_v12, 0.0 }
 0x25d   :  { %v17436_v6 = vpop.xlane.xlu1 %2106 }
 0x25e   :  { %20929 = vst [vmem:[#allocation159_spill] sm:$0xff] %v17436_v6  ;;  %2013 = vadd.xlane.f32.xlu0 %v2012_v50  ;;  %v2009_v50 = vsel %vm1865_vm1, %v17074_v35, 0.0 }
 0x25f   :  { %v2446_v48 = vpop.xlane.xlu0 %2445 }
 0x260   :  { %v17441_v37 = vadd.f32 %v2446_v48, %v17255_v22  ;;  %2016 = vadd.xlane.f32.xlu1 %v2015_v31  ;;  %v2542_v22 = vmul.f32 %v17069_v57, %v17069_v57  ;;  %v2564_v31 = vsel %vm1865_vm1, %v2544_v42, 0.0  ;;  %v17469_v57 = vpop.f32.mrb[36].mxu1 }
 0x261   :  { %v17445_v15 = vpop.xlane.xlu1 %2448  ;;  %20932 = vst [vmem:[#allocation162_spill] sm:$0xff] %v17469_v57 }
 0x262   :  { %2007 = vadd.xlane.f32.xlu0 %v2006_v11  ;;  %v2543_v11 = vmul.f32 %v17074_v35, %v17074_v35 }
 0x263   :  { %v17451_v7 = vpop.xlane.xlu0 %2685 }
 0x264   :  { %20930 = vst [vmem:[#allocation160_spill] sm:$0xff] %v17451_v7  ;;  %2010 = vadd.xlane.f32.xlu1 %v2009_v50  ;;  %v2558_v50 = vsel %vm1865_vm1, %v2542_v22, 0.0 }
 0x265   :  { %v17457_v48 = vpop.xlane.xlu1 %2688 }
 0x266   :  { %20931 = vst [vmem:[#allocation161_spill] sm:$0xff] %v17457_v48  ;;  %2565 = vadd.xlane.f32.xlu0 %v2564_v31  ;;  %v17471_v48 = vpop.f32.mrb[37].mxu1  ;;  %v2561_v31 = vsel %vm1865_vm1, %v2543_v11, 0.0  ;;  %v2620_v11 = vmul.f32 %v17095_v12, %v17095_v12 }
 0x267   :  { %v2440_v41 = vpop.xlane.xlu0 %2439  ;;  %20933 = vst [vmem:[#allocation163_spill] sm:$0xff] %v17471_v48  ;;  %v17478_v35 = vpop.f32.mrb[38].mxu1 }
 0x268   :  { %v17464_v7 = vadd.f32 %v2440_v41, %v17286_v26  ;;  %2568 = vadd.xlane.f32.xlu1 %v2567_v28  ;;  %20935 = vst [vmem:[#allocation165_spill] sm:$0xff] %v17478_v35  ;;  %v17480_v41 = vpop.f32.mrb[39].mxu1  ;;  %v1924_v28 = vadd.f32 %v17310_v56, %v17109_v40  ;;  %v2621_v56 = vmul.f32 %v17101_v44, %v17101_v44 }
 0x269   :  { %v17466_v45 = vpop.xlane.xlu1 %2442  ;;  %20936 = vst [vmem:[#allocation166_spill] sm:$0xff] %v17480_v41 }
 0x26a   :  { %2559 = vadd.xlane.f32.xlu0 %v2558_v50  ;;  %v2067_v50 = vsel %vm1865_vm1, %v17101_v44, 0.0  ;;  %v17494_v49 = vpop.f32.mrb[40].mxu1  ;;  %v2619_v44 = vmul.f32 %v17107_v1, %v17107_v1 }
 0x26b   :  { %v17473_v42 = vpop.xlane.xlu0 %2679  ;;  %20938 = vst [vmem:[#allocation168_spill] sm:$0xff] %v17494_v49  ;;  %v17499_v40 = vpop.f32.mrb[41].mxu1 }
 0x26c   :  { %20934 = vst [vmem:[#allocation164_spill] sm:$0xff] %v17473_v42  ;;  %2562 = vadd.xlane.f32.xlu1 %v2561_v31  ;;  %v2058_v31 = vsel %vm1865_vm1, %v17099_v58, 0.0  ;;  %20939 = vst [vmem:[#allocation169_spill] sm:$0xff] %v17499_v40 }
 0x26d   :  { %v17482_v26 = vpop.xlane.xlu1 %2682 }
 0x26e   :  { %20937 = vst [vmem:[#allocation167_spill] sm:$0xff] %v17482_v26  ;;  %2065 = vadd.xlane.f32.xlu0 %v2064_v59 }
 0x26f   :  { %v1938_v22 = vpop.xlane.xlu0 %1937 }
 0x270   :  { %v17488_v42 = vadd.f32 %v1938_v22, %v1924_v28  ;;  %2068 = vadd.xlane.f32.xlu1 %v2067_v50  ;;  %v2061_v28 = vsel %vm1865_vm1, %v17107_v1, 0.0  ;;  %v17507_v22 = vpop.f32.mrb[42].mxu1 }
 0x271   :  { %v1941_v6 = vpop.xlane.xlu1 %1940  ;;  %20941 = vst [vmem:[#allocation171_spill] sm:$0xff] %v17507_v22  ;;  %v17509_v50 = vpop.f32.mrb[43].mxu1 }
 0x272   :  { %v17497_v26 = vadd.f32 %v1941_v6, %v17304_v32  ;;  %2059 = vadd.xlane.f32.xlu0 %v2058_v31  ;;  %20942 = vst [vmem:[#allocation172_spill] sm:$0xff] %v17509_v50  ;;  %v2618_v6 = vmul.f32 %v17099_v58, %v17099_v58  ;;  %v2632_v31 = vsel %vm1865_vm1, %v2620_v11, 0.0  ;;  %v2629_v11 = vsel %vm1865_vm1, %v2619_v44, 0.0 }
 0x273   :  { %v17503_v59 = vpop.xlane.xlu0 %2161  ;;  %v2624_v44 = vmul.f32 %v17148_v18, %v17148_v18 }
 0x274   :  { %20940 = vst [vmem:[#allocation170_spill] sm:$0xff] %v17503_v59  ;;  %2062 = vadd.xlane.f32.xlu1 %v2061_v28  ;;  %v2635_v59 = vsel %vm1865_vm1, %v2621_v56, 0.0  ;;  %v2626_v57 = vsel %vm1865_vm1, %v2618_v6, 0.0  ;;  %v2070_v6 = vsel %vm1865_vm1, %v17155_v17, 0.0 }
 0x275   :  { %v17513_v32 = vpop.xlane.xlu1 %2164 }
 0x276   :  { %20943 = vst [vmem:[#allocation173_spill] sm:$0xff] %v17513_v32  ;;  %2633 = vadd.xlane.f32.xlu0 %v2632_v31  ;;  %v2076_v31 = vsel %vm1865_vm1, %v17148_v18, 0.0 }
 0x277   :  { %v1932_v12 = vpop.xlane.xlu0 %1931 }
 0x278   :  { %v17520_v35 = vadd.f32 %v1932_v12, %v17293_v20  ;;  %2636 = vadd.xlane.f32.xlu1 %v2635_v59  ;;  %v2079_v12 = vsel %vm1865_vm1, %v17157_v38, 0.0 }
 0x279   :  { %v1935_v28 = vpop.xlane.xlu1 %1934 }
 0x27a   :  { %v17524_v58 = vadd.f32 %v1935_v28, %v17328_v30  ;;  %2627 = vadd.xlane.f32.xlu0 %v2626_v57  ;;  %v2453_v30 = vadd.f32 %v17357_v13, %v17159_v4  ;;  %v2073_v4 = vsel %vm1865_vm1, %v17162_v62, 0.0 }
 0x27b   :  { %v17526_v32 = vpop.xlane.xlu0 %2155 }
 0x27c   :  { %2630 = vadd.xlane.f32.xlu1 %v2629_v11  ;;  %v2625_v11 = vmul.f32 %v17157_v38, %v17157_v38 }
 0x27d   :  { %v17531_v56 = vpop.xlane.xlu1 %2158 }
 0x27e   :  { %2077 = vadd.xlane.f32.xlu0 %v2076_v31 }
 0x27f   :  { %v2474_v20 = vpop.xlane.xlu0 %2473 }
 0x280   :  { %v17538_v57 = vadd.f32 %v2474_v20, %v17353_v33  ;;  %2080 = vadd.xlane.f32.xlu1 %v2079_v12  ;;  %v2622_v33 = vmul.f32 %v17155_v17, %v17155_v17  ;;  %v2644_v20 = vsel %vm1865_vm1, %v2624_v44, 0.0  ;;  %v2623_v12 = vmul.f32 %v17162_v62, %v17162_v62 }
 0x281   :  { %v2477_v59 = vpop.xlane.xlu1 %2476 }
 0x282   :  { %v17544_v28 = vadd.f32 %v2477_v59, %v2453_v30  ;;  %2071 = vadd.xlane.f32.xlu0 %v2070_v6  ;;  %v2647_v59 = vsel %vm1865_vm1, %v2625_v11, 0.0  ;;  %v2451_v6 = vadd.f32 %v17374_v3, %v17177_v51  ;;  %v2638_v18 = vsel %vm1865_vm1, %v2622_v33, 0.0 }
 0x283   :  { %v17548_v31 = vpop.xlane.xlu0 %2753  ;;  %v2128_v11 = vsel %vm1865_vm1, %v17187_v54, 0.0  ;;  %v2131_v51 = vsel %vm1865_vm1, %v17195_v9, 0.0  ;;  %v2700_v33 = vmul.f32 %v17187_v54, %v17187_v54  ;;  %v2256_v54 = vsel %vm1865_vm1, %v17330_v19, 0.0 }
 0x284   :  { %2074 = vadd.xlane.f32.xlu1 %v2073_v4 }
 0x285   :  { %v17554_v13 = vpop.xlane.xlu1 %2756 }
 0x286   :  { %20944 = vst [vmem:[#allocation174_spill] sm:$0xff] %v17554_v13  ;;  %2645 = vadd.xlane.f32.xlu0 %v2644_v20  ;;  %v2641_v20 = vsel %vm1865_vm1, %v2623_v12, 0.0  ;;  %v20972_v13 = vld [vmem:[#allocation155_spill] sm:$0xff] }
 0x287   :  { %v2468_v30 = vpop.xlane.xlu0 %2467 }
 0x288   :  { %v17563_v38 = vadd.f32 %v2468_v30, %v17372_v24  ;;  %2648 = vadd.xlane.f32.xlu1 %v2647_v59  ;;  %v1929_v24 = vadd.f32 %v17401_v8, %v17197_v2  ;;  %v2122_v30 = vsel %vm1865_vm1, %v17193_v0, 0.0  ;;  %v2125_v8 = vsel %vm1865_vm1, %v17203_v61, 0.0 }
 0x289   :  { %v2471_v4 = vpop.xlane.xlu1 %2470  ;;  %v2698_v2 = vmul.f32 %v17193_v0, %v17193_v0 }
 0x28a   :  { %v17566_v17 = vadd.f32 %v2471_v4, %v2451_v6  ;;  %2639 = vadd.xlane.f32.xlu0 %v2638_v18  ;;  %v2701_v6 = vmul.f32 %v17195_v9, %v17195_v9  ;;  %v20956_v9 = vld [vmem:[#allocation88_spill] sm:$0xff] }
 0x28b   :  { %v17568_v44 = vpop.xlane.xlu0 %2747 }
 0x28c   :  { %2642 = vadd.xlane.f32.xlu1 %v2641_v20  ;;  %v2712_v20 = vsel %vm1865_vm1, %v2700_v33, 0.0 }
 0x28d   :  { %v17573_v62 = vpop.xlane.xlu1 %2750 }
 0x28e   :  { %2129 = vadd.xlane.f32.xlu0 %v2128_v11  ;;  %v2699_v11 = vmul.f32 %v17203_v61, %v17203_v61 }
 0x28f   :  { %v1950_v3 = vpop.xlane.xlu0 %1949 }
 0x290   :  { %v17580_v18 = vadd.f32 %v1950_v3, %v17397_v46  ;;  %2132 = vadd.xlane.f32.xlu1 %v2131_v51  ;;  %v2715_v51 = vsel %vm1865_vm1, %v2701_v6, 0.0  ;;  %v2140_v6 = vsel %vm1865_vm1, %v17231_v55, 0.0 }
 0x291   :  { %v1953_v12 = vpop.xlane.xlu1 %1952 }
 0x292   :  { %v17586_v59 = vadd.f32 %v1953_v12, %v1929_v24  ;;  %2123 = vadd.xlane.f32.xlu0 %v2122_v30  ;;  %v1927_v24 = vadd.f32 %v17428_v14, %v17221_v63  ;;  %v2457_v14 = vadd.f32 %v17445_v15, %v17243_v39  ;;  %v2137_v39 = vsel %vm1865_vm1, %v17245_v27, 0.0 }
 0x293   :  { %v17590_v4 = vpop.xlane.xlu0 %2173 }
 0x294   :  { %20945 = vst [vmem:[#allocation175_spill] sm:$0xff] %v17590_v4  ;;  %2126 = vadd.xlane.f32.xlu1 %v2125_v8  ;;  %v2706_v8 = vsel %vm1865_vm1, %v2698_v2, 0.0 }
 0x295   :  { %v17596_v46 = vpop.xlane.xlu1 %2176 }
 0x296   :  { %20946 = vst [vmem:[#allocation176_spill] sm:$0xff] %v17596_v46  ;;  %2713 = vadd.xlane.f32.xlu0 %v2712_v20  ;;  %v2709_v20 = vsel %vm1865_vm1, %v2699_v11, 0.0  ;;  %v2702_v11 = vmul.f32 %v17239_v47, %v17239_v47 }
 0x297   :  { %v1944_v3 = vpop.xlane.xlu0 %1943 }
 0x298   :  { %v17605_v12 = vadd.f32 %v1944_v3, %v17426_v21  ;;  %2716 = vadd.xlane.f32.xlu1 %v2715_v51  ;;  %v2143_v21 = vsel %vm1865_vm1, %v17241_v34, 0.0  ;;  %v2134_v51 = vsel %vm1865_vm1, %v17239_v47, 0.0 }
 0x299   :  { %v1947_v30 = vpop.xlane.xlu1 %1946 }
 0x29a   :  { %v17608_v1 = vadd.f32 %v1947_v30, %v1927_v24  ;;  %2707 = vadd.xlane.f32.xlu0 %v2706_v8  ;;  %v2703_v30 = vmul.f32 %v17245_v27, %v17245_v27 }
 0x29b   :  { %v17610_v33 = vpop.xlane.xlu0 %2167 }
 0x29c   :  { %20947 = vst [vmem:[#allocation177_spill] sm:$0xff] %v17610_v33  ;;  %2710 = vadd.xlane.f32.xlu1 %v2709_v20 }
 0x29d   :  { %v17615_v61 = vpop.xlane.xlu1 %2170 }
 0x29e   :  { %20948 = vst [vmem:[#allocation178_spill] sm:$0xff] %v17615_v61  ;;  %2141 = vadd.xlane.f32.xlu0 %v2140_v6  ;;  %v2718_v6 = vsel %vm1865_vm1, %v2702_v11, 0.0  ;;  %v2195_v11 = vsel %vm1865_vm1, %v17275_v10, 0.0 }
 0x29f   :  { %v2486_v63 = vpop.xlane.xlu0 %2485 }
 0x2a0   :  { %v17622_v2 = vadd.f32 %v2486_v63, %v17441_v37  ;;  %2144 = vadd.xlane.f32.xlu1 %v2143_v21  ;;  %v2455_v37 = vadd.f32 %v17466_v45, %v17261_v52 }
 0x2a1   :  { %v2489_v3 = vpop.xlane.xlu1 %2488 }
 0x2a2   :  { %v17628_v24 = vadd.f32 %v2489_v3, %v2457_v14  ;;  %2135 = vadd.xlane.f32.xlu0 %v2134_v51  ;;  %v2721_v14 = vsel %vm1865_vm1, %v2703_v30, 0.0  ;;  %v2192_v3 = vsel %vm1865_vm1, %v17265_v25, 0.0  ;;  %v2780_v30 = vmul.f32 %v17265_v25, %v17265_v25 }
 0x2a3   :  { %v2480_v8 = vpop.xlane.xlu0 %2479 }
 0x2a4   :  { %v17637_v15 = vadd.f32 %v2480_v8, %v17464_v7  ;;  %2138 = vadd.xlane.f32.xlu1 %v2137_v39  ;;  %v20950_v39 = vld [vmem:[#allocation127_spill] sm:$0xff] }
 0x2a5   :  { %v2483_v20 = vpop.xlane.xlu1 %2482 }
 0x2a6   :  { %v17640_v63 = vadd.f32 %v2483_v20, %v2455_v37  ;;  %2719 = vadd.xlane.f32.xlu0 %v2718_v6  ;;  %v2778_v6 = vmul.f32 %v20950_v39, %v20950_v39 }
 0x2a7   :  { %v1970_v21 = vpop.xlane.xlu0 %1969 }
 0x2a8   :  { %v17646_v51 = vadd.f32 %v1970_v21, %v17488_v42  ;;  %2722 = vadd.xlane.f32.xlu1 %v2721_v14  ;;  %v2186_v42 = vsel %vm1865_vm1, %v20950_v39, 0.0  ;;  %v2792_v14 = vsel %vm1865_vm1, %v2780_v30, 0.0 }
 0x2a9   :  { %v1973_v52 = vpop.xlane.xlu1 %1972 }
 0x2aa   :  { %v17649_v45 = vadd.f32 %v1973_v52, %v17497_v26  ;;  %2193 = vadd.xlane.f32.xlu0 %v2192_v3  ;;  %v2189_v26 = vsel %vm1865_vm1, %v17282_v5, 0.0  ;;  %v2781_v52 = vmul.f32 %v17275_v10, %v17275_v10 }
 0x2ab   :  { %v17651_v7 = vpop.xlane.xlu0 %2225 }
 0x2ac   :  { %2196 = vadd.xlane.f32.xlu1 %v2195_v11 }
 0x2ad   :  { %v17657_v8 = vpop.xlane.xlu1 %2228 }
 0x2ae   :  { %20949 = vst [vmem:[#allocation179_spill] sm:$0xff] %v17657_v8  ;;  %2187 = vadd.xlane.f32.xlu0 %v2186_v42  ;;  %v20951_v42 = vld [vmem:[#allocation90_spill] sm:$0xff] }
 0x2af   :  { %v1964_v37 = vpop.xlane.xlu0 %1963 }
 0x2b0   :  { %v17664_v20 = vadd.f32 %v1964_v37, %v17520_v35  ;;  %2190 = vadd.xlane.f32.xlu1 %v2189_v26  ;;  %v2291_v35 = vsel %vm1865_vm1, %v20951_v42, 0.0  ;;  %v2786_v26 = vsel %vm1865_vm1, %v2778_v6, 0.0  ;;  %v17681_v27 = vpop.f32.mrb[76].mxu0 }
 0x2b1   :  { %v1967_v21 = vpop.xlane.xlu1 %1966  ;;  %20952 = vst [vmem:[#allocation180_spill] sm:$0xff] %v17681_v27  ;;  %v17683_v30 = vpop.f32.mrb[77].mxu0 }
 0x2b2   :  { %v17670_v3 = vadd.f32 %v1967_v21, %v17524_v58  ;;  %2793 = vadd.xlane.f32.xlu0 %v2792_v14  ;;  %20953 = vst [vmem:[#allocation181_spill] sm:$0xff] %v17683_v30  ;;  %v2779_v58 = vmul.f32 %v17282_v5, %v17282_v5  ;;  %v2795_v14 = vsel %vm1865_vm1, %v2781_v52, 0.0  ;;  %v17688_v47 = vpop.f32.mrb[78].mxu0 }
 0x2b3   :  { %v17674_v11 = vpop.xlane.xlu0 %2219  ;;  %20954 = vst [vmem:[#allocation182_spill] sm:$0xff] %v17688_v47 }
 0x2b4   :  { %2292 = vadd.xlane.f32.xlu1 %v2291_v35  ;;  %v17693_v35 = vpop.f32.mrb[79].mxu0  ;;  %v2789_v52 = vsel %vm1865_vm1, %v2779_v58, 0.0  ;;  %v2250_v58 = vsel %vm1865_vm1, %v17336_v23, 0.0 }
 0x2b5   :  { %v17678_v37 = vpop.xlane.xlu1 %2222  ;;  %20955 = vst [vmem:[#allocation183_spill] sm:$0xff] %v17693_v35 }
 0x2b6   :  { %2787 = vadd.xlane.f32.xlu0 %v2786_v26  ;;  %v2288_v26 = vsel %vm1865_vm1, %v20956_v9, 0.0 }
 0x2b7   :  { %v2514_v21 = vpop.xlane.xlu0 %2513 }
 0x2b8   :  { %v17691_v10 = vadd.f32 %v2514_v21, %v17538_v57  ;;  %2796 = vadd.xlane.f32.xlu1 %v2795_v14  ;;  %v2259_v14 = vsel %vm1865_vm1, %v17338_v36, 0.0 }
 0x2b9   :  { %v2517_v6 = vpop.xlane.xlu1 %2516 }
 0x2ba   :  { %v17698_v25 = vadd.f32 %v2517_v6, %v17544_v28  ;;  %2289 = vadd.xlane.f32.xlu0 %v2288_v26  ;;  %v2858_v28 = vmul.f32 %v17336_v23, %v17336_v23 }
 0x2bb   :  { %v17700_v5 = vpop.xlane.xlu0 %2833 }
 0x2bc   :  { %20957 = vst [vmem:[#allocation184_spill] sm:$0xff] %v17700_v5  ;;  %2790 = vadd.xlane.f32.xlu1 %v2789_v52  ;;  %v2866_v23 = vsel %vm1865_vm1, %v2858_v28, 0.0  ;;  %v2860_v28 = vmul.f32 %v17330_v19, %v17330_v19 }
 0x2bd   :  { %v17705_v57 = vpop.xlane.xlu1 %2836 }
 0x2be   :  { %20958 = vst [vmem:[#allocation185_spill] sm:$0xff] %v17705_v57  ;;  %2257 = vadd.xlane.f32.xlu0 %v2256_v54  ;;  %v2705_v54 = vmul.f32 %v17241_v34, %v17241_v34  ;;  %v2872_v19 = vsel %vm1865_vm1, %v2860_v28, 0.0 }
 0x2bf   :  { %v2508_v21 = vpop.xlane.xlu0 %2507 }
 0x2c0   :  { %v17710_v39 = vadd.f32 %v2508_v21, %v17563_v38  ;;  %2260 = vadd.xlane.f32.xlu1 %v2259_v14  ;;  %v2253_v38 = vsel %vm1865_vm1, %v17346_v53, 0.0  ;;  %v2704_v21 = vmul.f32 %v17231_v55, %v17231_v55  ;;  %v2727_v34 = vsel %vm1865_vm1, %v2705_v54, 0.0 }
 0x2c1   :  { %v2511_v6 = vpop.xlane.xlu1 %2510  ;;  %v17730_v0 = vpop.f32.mrb[44].mxu1  ;;  %v2861_v54 = vmul.f32 %v17338_v36, %v17338_v36  ;;  %v2317_v36 = vsel %vm1865_vm1, %v17415_v16, 0.0 }
 0x2c2   :  { %v17717_v26 = vadd.f32 %v2511_v6, %v17566_v17  ;;  %2251 = vadd.xlane.f32.xlu0 %v2250_v58  ;;  %20959 = vst [vmem:[#allocation186_spill] sm:$0xff] %v17730_v0  ;;  %v17732_v17 = vpop.f32.mrb[45].mxu1  ;;  %v2859_v6 = vmul.f32 %v17346_v53, %v17346_v53  ;;  %v2724_v4 = vsel %vm1865_vm1, %v2704_v21, 0.0 }
 0x2c3   :  { %v17721_v52 = vpop.xlane.xlu0 %2827  ;;  %20960 = vst [vmem:[#allocation187_spill] sm:$0xff] %v17732_v17  ;;  %v17737_v46 = vpop.f32.mrb[46].mxu1 }
 0x2c4   :  { %2254 = vadd.xlane.f32.xlu1 %v2253_v38  ;;  %20961 = vst [vmem:[#allocation188_spill] sm:$0xff] %v17737_v46  ;;  %v17742_v55 = vpop.f32.mrb[47].mxu1 }
 0x2c5   :  { %v17727_v14 = vpop.xlane.xlu1 %2830  ;;  %20962 = vst [vmem:[#allocation189_spill] sm:$0xff] %v17742_v55 }
 0x2c6   :  { %2867 = vadd.xlane.f32.xlu0 %v2866_v23 }
 0x2c7   :  { %v1982_v58 = vpop.xlane.xlu0 %1981 }
 0x2c8   :  { %v17740_v38 = vadd.f32 %v1982_v58, %v17580_v18  ;;  %2728 = vadd.xlane.f32.xlu1 %v2727_v34  ;;  %v2869_v18 = vsel %vm1865_vm1, %v2859_v6, 0.0  ;;  %v20963_v6 = vld [vmem:[#allocation133_spill] sm:$0xff] }
 0x2c9   :  { %v1985_v23 = vpop.xlane.xlu1 %1984 }
 0x2ca   :  { %v17748_v61 = vadd.f32 %v1985_v23, %v17586_v59  ;;  %2725 = vadd.xlane.f32.xlu0 %v2724_v4  ;;  %v2875_v4 = vsel %vm1865_vm1, %v2861_v54, 0.0 }
 0x2cb   :  { %v1976_v53 = vpop.xlane.xlu0 %1975 }
 0x2cc   :  { %v17754_v34 = vadd.f32 %v1976_v53, %v17605_v12  ;;  %2870 = vadd.xlane.f32.xlu1 %v2869_v18  ;;  %v2198_v53 = vsel %vm1865_vm1, %v20963_v6, 0.0  ;;  %v20964_v18 = vld [vmem:[#allocation136_spill] sm:$0xff] }
 0x2cd   :  { %v1979_v58 = vpop.xlane.xlu1 %1978 }
 0x2ce   :  { %v17758_v33 = vadd.f32 %v1979_v58, %v17608_v1  ;;  %2873 = vadd.xlane.f32.xlu0 %v2872_v19  ;;  %v2201_v1 = vsel %vm1865_vm1, %v20964_v18, 0.0  ;;  %v2314_v19 = vsel %vm1865_vm1, %v17405_v43, 0.0 }
 0x2cf   :  { %v2526_v59 = vpop.xlane.xlu0 %2525 }
 0x2d0   :  { %v17762_v21 = vadd.f32 %v2526_v59, %v17622_v2  ;;  %2876 = vadd.xlane.f32.xlu1 %v2875_v4  ;;  %v20965_v2 = vld [vmem:[#allocation63_spill] sm:$0xff] }
 0x2d1   :  { %v2529_v23 = vpop.xlane.xlu1 %2528  ;;  %v2742_v58 = vmul.f32 %v20965_v2, %v20965_v2 }
 0x2d2   :  { %v17767_v12 = vadd.f32 %v2529_v23, %v17628_v24  ;;  %2199 = vadd.xlane.f32.xlu0 %v2198_v53  ;;  %v20966_v24 = vld [vmem:[#allocation67_spill] sm:$0xff] }
 0x2d3   :  { %v2520_v28 = vpop.xlane.xlu0 %2519  ;;  %v2743_v23 = vmul.f32 %v20966_v24, %v20966_v24 }
 0x2d4   :  { %v17774_v54 = vadd.f32 %v2520_v28, %v17637_v15  ;;  %2202 = vadd.xlane.f32.xlu1 %v2201_v1  ;;  %v2898_v15 = vmul.f32 %v17039_v60, %v17039_v60  ;;  %v2758_v1 = vsel %vm1865_vm1, %v2742_v58, 0.0 }
 0x2d5   :  { %v2523_v59 = vpop.xlane.xlu1 %2522  ;;  %v2761_v24 = vsel %vm1865_vm1, %v2743_v23, 0.0 }
 0x2d6   :  { %v17779_v4 = vadd.f32 %v2523_v59, %v17640_v63  ;;  %2315 = vadd.xlane.f32.xlu0 %v2314_v19  ;;  %v2899_v19 = vmul.f32 %v17047_v29, %v17047_v29 }
 0x2d7   :  { %v2002_v53 = vpop.xlane.xlu0 %2001 }
 0x2d8   :  { %v17786_v57 = vadd.f32 %v2002_v53, %v17646_v51  ;;  %2318 = vadd.xlane.f32.xlu1 %v2317_v36  ;;  %v2906_v53 = vsel %vm1865_vm1, %v2898_v15, 0.0  ;;  %v2909_v58 = vsel %vm1865_vm1, %v2899_v19, 0.0  ;;  %v20970_v19 = vld [vmem:[#allocation152_spill] sm:$0xff] }
 0x2d9   :  { %v2005_v28 = vpop.xlane.xlu1 %2004 }
 0x2da   :  { %v17792_v63 = vadd.f32 %v2005_v28, %v17649_v45  ;;  %2759 = vadd.xlane.f32.xlu0 %v2758_v1  ;;  %v20967_v1 = vld [vmem:[#allocation132_spill] sm:$0xff] }
 0x2db   :  { %v1996_v59 = vpop.xlane.xlu0 %1995  ;;  %v2204_v23 = vsel %vm1865_vm1, %v20967_v1, 0.0 }
 0x2dc   :  { %v17798_v51 = vadd.f32 %v1996_v59, %v17664_v20  ;;  %2762 = vadd.xlane.f32.xlu1 %v2761_v24  ;;  %v20968_v24 = vld [vmem:[#allocation134_spill] sm:$0xff] }
 0x2dd   :  { %v1999_v36 = vpop.xlane.xlu1 %1998  ;;  %v2207_v59 = vsel %vm1865_vm1, %v20968_v24, 0.0 }
 0x2de   :  { %v17802_v2 = vadd.f32 %v1999_v36, %v17670_v3  ;;  %2907 = vadd.xlane.f32.xlu0 %v2906_v53  ;;  %v20969_v3 = vld [vmem:[#allocation61_spill] sm:$0xff] }
 0x2df   :  { %v17804_v45 = vpop.xlane.xlu0 %2283  ;;  %v2744_v36 = vmul.f32 %v20969_v3, %v20969_v3 }
 0x2e0   :  { %2910 = vadd.xlane.f32.xlu1 %v2909_v58  ;;  %v2320_v58 = vsel %vm1865_vm1, %v20970_v19, 0.0 }
 0x2e1   :  { %v17807_v28 = vpop.xlane.xlu1 %2286  ;;  %v2764_v8 = vsel %vm1865_vm1, %v2744_v36, 0.0 }
 0x2e2   :  { %2205 = vadd.xlane.f32.xlu0 %v2204_v23  ;;  %v20971_v23 = vld [vmem:[#allocation65_spill] sm:$0xff] }
 0x2e3   :  { %v2554_v20 = vpop.xlane.xlu0 %2553  ;;  %v2745_v60 = vmul.f32 %v20971_v23, %v20971_v23 }
 0x2e4   :  { %v17814_v15 = vadd.f32 %v2554_v20, %v17691_v10  ;;  %2208 = vadd.xlane.f32.xlu1 %v2207_v59  ;;  %v2323_v10 = vsel %vm1865_vm1, %v20972_v13, 0.0  ;;  %v2900_v59 = vmul.f32 %v20956_v9, %v20956_v9 }
 0x2e5   :  { %v2557_v53 = vpop.xlane.xlu1 %2556  ;;  %v2767_v23 = vsel %vm1865_vm1, %v2745_v60, 0.0  ;;  %v20973_v60 = vld [vmem:[#allocation81_spill] sm:$0xff] }
 0x2e6   :  { %v17821_v29 = vadd.f32 %v2557_v53, %v17698_v25  ;;  %2321 = vadd.xlane.f32.xlu0 %v2320_v58  ;;  %v2901_v53 = vmul.f32 %v20951_v42, %v20951_v42 }
 0x2e7   :  { %v2548_v5 = vpop.xlane.xlu0 %2547 }
 0x2e8   :  { %v17828_v20 = vadd.f32 %v2548_v5, %v17710_v39  ;;  %2324 = vadd.xlane.f32.xlu1 %v2323_v10  ;;  %v2912_v10 = vsel %vm1865_vm1, %v2900_v59, 0.0 }
 0x2e9   :  { %v2551_v3 = vpop.xlane.xlu1 %2550 }
 0x2ea   :  { %v17834_v25 = vadd.f32 %v2551_v3, %v17717_v26  ;;  %2765 = vadd.xlane.f32.xlu0 %v2764_v8  ;;  %v2915_v8 = vsel %vm1865_vm1, %v2901_v53, 0.0 }
 0x2eb   :  { %v2014_v58 = vpop.xlane.xlu0 %2013 }
 0x2ec   :  { %v17840_v5 = vadd.f32 %v2014_v58, %v17740_v38  ;;  %2768 = vadd.xlane.f32.xlu1 %v2767_v23  ;;  %v2230_v38 = vsel %vm1865_vm1, %v20973_v60, 0.0  ;;  %v20974_v58 = vld [vmem:[#allocation85_spill] sm:$0xff] }
 0x2ed   :  { %v2017_v39 = vpop.xlane.xlu1 %2016 }
 0x2ee   :  { %v17844_v9 = vadd.f32 %v2017_v39, %v17748_v61  ;;  %2913 = vadd.xlane.f32.xlu0 %v2912_v10  ;;  %v2233_v61 = vsel %vm1865_vm1, %v20974_v58, 0.0  ;;  %v2346_v39 = vsel %vm1865_vm1, %v17499_v40, 0.0 }
 0x2ef   :  { %v2008_v26 = vpop.xlane.xlu0 %2007 }
 0x2f0   :  { %v17848_v3 = vadd.f32 %v2008_v26, %v17754_v34  ;;  %2916 = vadd.xlane.f32.xlu1 %v2915_v8  ;;  %v2782_v34 = vmul.f32 %v20963_v6, %v20963_v6 }
 0x2f1   :  { %v2011_v36 = vpop.xlane.xlu1 %2010 }
 0x2f2   :  { %v17853_v23 = vadd.f32 %v2011_v36, %v17758_v33  ;;  %2231 = vadd.xlane.f32.xlu0 %v2230_v38  ;;  %v2783_v33 = vmul.f32 %v20964_v18, %v20964_v18  ;;  %v2349_v36 = vsel %vm1865_vm1, %v17509_v50, 0.0  ;;  %v2939_v18 = vmul.f32 %v17415_v16, %v17415_v16 }
 0x2f3   :  { %v2566_v59 = vpop.xlane.xlu0 %2565 }
 0x2f4   :  { %v17860_v53 = vadd.f32 %v2566_v59, %v17762_v21  ;;  %2234 = vadd.xlane.f32.xlu1 %v2233_v61  ;;  %v2938_v21 = vmul.f32 %v17405_v43, %v17405_v43  ;;  %v2798_v61 = vsel %vm1865_vm1, %v2782_v34, 0.0  ;;  %v2949_v16 = vsel %vm1865_vm1, %v2939_v18, 0.0 }
 0x2f5   :  { %v2569_v10 = vpop.xlane.xlu1 %2568 }
 0x2f6   :  { %v17865_v26 = vadd.f32 %v2569_v10, %v17767_v12  ;;  %2347 = vadd.xlane.f32.xlu0 %v2346_v39  ;;  %v20975_v39 = vld [vmem:[#allocation100_spill] sm:$0xff] }
 0x2f7   :  { %v2560_v8 = vpop.xlane.xlu0 %2559  ;;  %v2052_v10 = vadd.f32 %v20975_v39, %v17786_v57  ;;  %v20977_v57 = vld [vmem:[#allocation104_spill] sm:$0xff] }
 0x2f8   :  { %v17872_v38 = vadd.f32 %v2560_v8, %v17774_v54  ;;  %2350 = vadd.xlane.f32.xlu1 %v2349_v36  ;;  %v2801_v54 = vsel %vm1865_vm1, %v2783_v33, 0.0  ;;  %v20976_v36 = vld [vmem:[#allocation101_spill] sm:$0xff] }
 0x2f9   :  { %v2563_v59 = vpop.xlane.xlu1 %2562  ;;  %v2053_v42 = vadd.f32 %v20976_v36, %v17792_v63  ;;  %v20979_v63 = vld [vmem:[#allocation80_spill] sm:$0xff] }
 0x2fa   :  { %v17878_v12 = vadd.f32 %v2563_v59, %v17779_v4  ;;  %2799 = vadd.xlane.f32.xlu0 %v2798_v61  ;;  %v2946_v4 = vsel %vm1865_vm1, %v2938_v21, 0.0  ;;  %v2050_v61 = vadd.f32 %v20977_v57, %v17798_v51  ;;  %v2784_v57 = vmul.f32 %v20967_v1, %v20967_v1 }
 0x2fb   :  { %v2066_v6 = vpop.xlane.xlu0 %2065 }
 0x2fc   :  { %v17885_v8 = vadd.f32 %v2066_v6, %v2052_v10  ;;  %2802 = vadd.xlane.f32.xlu1 %v2801_v54  ;;  %v20978_v6 = vld [vmem:[#allocation102_spill] sm:$0xff]  ;;  %v2236_v54 = vsel %vm1865_vm1, %v20979_v63, 0.0 }
 0x2fd   :  { %v2069_v34 = vpop.xlane.xlu1 %2068  ;;  %v2051_v33 = vadd.f32 %v20978_v6, %v17802_v2 }
 0x2fe   :  { %v17890_v59 = vadd.f32 %v2069_v34, %v2053_v42  ;;  %2947 = vadd.xlane.f32.xlu0 %v2946_v4  ;;  %v20980_v42 = vld [vmem:[#allocation109_spill] sm:$0xff]  ;;  %v20981_v34 = vld [vmem:[#allocation83_spill] sm:$0xff] }
 0x2ff   :  { %v2060_v39 = vpop.xlane.xlu0 %2059  ;;  %v2612_v36 = vadd.f32 %v20980_v42, %v17814_v15  ;;  %v2239_v18 = vsel %vm1865_vm1, %v20981_v34, 0.0  ;;  %v20983_v15 = vld [vmem:[#allocation115_spill] sm:$0xff] }
 0x300   :  { %v17895_v43 = vadd.f32 %v2060_v39, %v2050_v61  ;;  %2950 = vadd.xlane.f32.xlu1 %v2949_v16  ;;  %v20982_v16 = vld [vmem:[#allocation108_spill] sm:$0xff]  ;;  %v2352_v39 = vsel %vm1865_vm1, %v17494_v49, 0.0 }
 0x301   :  { %v2063_v10 = vpop.xlane.xlu1 %2062  ;;  %v2613_v2 = vadd.f32 %v20982_v16, %v17821_v29  ;;  %v2355_v29 = vsel %vm1865_vm1, %v17507_v22, 0.0 }
 0x302   :  { %v17901_v21 = vadd.f32 %v2063_v10, %v2051_v33  ;;  %2237 = vadd.xlane.f32.xlu0 %v2236_v54  ;;  %v2610_v33 = vadd.f32 %v20983_v15, %v17828_v20  ;;  %v2785_v10 = vmul.f32 %v20968_v24, %v20968_v24  ;;  %v2941_v15 = vmul.f32 %v20972_v13, %v20972_v13 }
 0x303   :  { %v2634_v51 = vpop.xlane.xlu0 %2633 }
 0x304   :  { %v17907_v4 = vadd.f32 %v2634_v51, %v2612_v36  ;;  %2240 = vadd.xlane.f32.xlu1 %v2239_v18  ;;  %v20984_v36 = vld [vmem:[#allocation110_spill] sm:$0xff]  ;;  %v2940_v18 = vmul.f32 %v20970_v19, %v20970_v19  ;;  %v2984_v19 = vmul.f32 %v17730_v0, %v17730_v0 }
 0x305   :  { %v2637_v61 = vpop.xlane.xlu1 %2636  ;;  %v2611_v51 = vadd.f32 %v20984_v36, %v17834_v25  ;;  %v20986_v25 = vld [vmem:[#allocation116_spill] sm:$0xff] }
 0x306   :  { %v17915_v6 = vadd.f32 %v2637_v61, %v2613_v2  ;;  %2353 = vadd.xlane.f32.xlu0 %v2352_v39  ;;  %v2804_v2 = vsel %vm1865_vm1, %v2784_v57, 0.0  ;;  %v20985_v61 = vld [vmem:[#allocation117_spill] sm:$0xff]  ;;  %v2057_v36 = vadd.f32 %v20986_v25, %v17844_v9  ;;  %v2952_v57 = vsel %vm1865_vm1, %v2940_v18, 0.0  ;;  %v20990_v18 = vld [vmem:[#allocation147_spill] sm:$0xff] }
 0x307   :  { %v2628_v54 = vpop.xlane.xlu0 %2627  ;;  %v2056_v39 = vadd.f32 %v20985_v61, %v17840_v5  ;;  %v20988_v5 = vld [vmem:[#allocation123_spill] sm:$0xff]  ;;  %v2955_v61 = vsel %vm1865_vm1, %v2941_v15, 0.0  ;;  %v2822_v9 = vmul.f32 %v20973_v60, %v20973_v60  ;;  %v2823_v15 = vmul.f32 %v20974_v58, %v20974_v58 }
 0x308   :  { %v17923_v42 = vadd.f32 %v2628_v54, %v2610_v33  ;;  %2356 = vadd.xlane.f32.xlu1 %v2355_v29  ;;  %v2807_v54 = vsel %vm1865_vm1, %v2785_v10, 0.0  ;;  %v20989_v10 = vld [vmem:[#allocation118_spill] sm:$0xff] }
 0x309   :  { %v2631_v16 = vpop.xlane.xlu1 %2630 }
 0x30a   :  { %v17930_v20 = vadd.f32 %v2631_v16, %v2611_v51  ;;  %2805 = vadd.xlane.f32.xlu0 %v2804_v2  ;;  %v2054_v16 = vadd.f32 %v20988_v5, %v17848_v3  ;;  %v20991_v3 = vld [vmem:[#allocation126_spill] sm:$0xff] }
 0x30b   :  { %v2078_v33 = vpop.xlane.xlu0 %2077  ;;  %v2616_v25 = vadd.f32 %v20991_v3, %v17860_v53  ;;  %v2979_v3 = vmul.f32 %v17509_v50, %v17509_v50  ;;  %v2364_v50 = vsel %vm1865_vm1, %v17730_v0, 0.0 }
 0x30c   :  { %v17937_v29 = vadd.f32 %v2078_v33, %v2056_v39  ;;  %2808 = vadd.xlane.f32.xlu1 %v2807_v54  ;;  %v2055_v39 = vadd.f32 %v20989_v10, %v17853_v23 }
 0x30d   :  { %v2081_v24 = vpop.xlane.xlu1 %2080 }
 0x30e   :  { %v17942_v51 = vadd.f32 %v2081_v24, %v2057_v36  ;;  %2953 = vadd.xlane.f32.xlu0 %v2952_v57  ;;  %v2262_v24 = vsel %vm1865_vm1, %v20990_v18, 0.0  ;;  %v20992_v57 = vld [vmem:[#allocation150_spill] sm:$0xff] }
 0x30f   :  { %v2072_v2 = vpop.xlane.xlu0 %2071  ;;  %v2265_v23 = vsel %vm1865_vm1, %v20992_v57, 0.0 }
 0x310   :  { %20987 = vst [vmem:[#allocation100_spill] sm:$0xff] %v17942_v51  ;;  %v17947_v1 = vadd.f32 %v2072_v2, %v2054_v16  ;;  %2956 = vadd.xlane.f32.xlu1 %v2955_v61  ;;  %v20994_v16 = vld [vmem:[#allocation124_spill] sm:$0xff]  ;;  %v2978_v61 = vmul.f32 %v17499_v40, %v17499_v40 }
 0x311   :  { %v2075_v33 = vpop.xlane.xlu1 %2074  ;;  %v2617_v2 = vadd.f32 %v20994_v16, %v17865_v26  ;;  %v20998_v26 = vld [vmem:[#allocation129_spill] sm:$0xff] }
 0x312   :  { %v17955_v54 = vadd.f32 %v2075_v33, %v2055_v39  ;;  %2263 = vadd.xlane.f32.xlu0 %v2262_v24  ;;  %v2838_v39 = vsel %vm1865_vm1, %v2822_v9, 0.0  ;;  %v20996_v33 = vld [vmem:[#allocation131_spill] sm:$0xff]  ;;  %v2615_v16 = vadd.f32 %v20998_v26, %v17878_v12  ;;  %v2986_v9 = vsel %vm1865_vm1, %v2978_v61, 0.0  ;;  %v21002_v61 = vld [vmem:[#allocation146_spill] sm:$0xff] }
 0x313   :  { %v2646_v36 = vpop.xlane.xlu0 %2645  ;;  %v2614_v24 = vadd.f32 %v20996_v33, %v17872_v38  ;;  %v21000_v38 = vld [vmem:[#allocation137_spill] sm:$0xff]  ;;  %v2989_v33 = vsel %vm1865_vm1, %v2979_v3, 0.0  ;;  %v2824_v12 = vmul.f32 %v20979_v63, %v20979_v63  ;;  %v2825_v3 = vmul.f32 %v20981_v34, %v20981_v34 }
 0x314   :  { %v17963_v5 = vadd.f32 %v2646_v36, %v2616_v25  ;;  %2266 = vadd.xlane.f32.xlu1 %v2265_v23  ;;  %v2841_v36 = vsel %vm1865_vm1, %v2823_v15, 0.0  ;;  %v21001_v15 = vld [vmem:[#allocation135_spill] sm:$0xff] }
 0x315   :  { %v2649_v10 = vpop.xlane.xlu1 %2648 }
 0x316   :  { %20993 = vst [vmem:[#allocation101_spill] sm:$0xff] %v17963_v5  ;;  %v17970_v53 = vadd.f32 %v2649_v10, %v2617_v2  ;;  %2839 = vadd.xlane.f32.xlu0 %v2838_v39  ;;  %v2116_v10 = vadd.f32 %v21000_v38, %v17885_v8  ;;  %v21003_v8 = vld [vmem:[#allocation139_spill] sm:$0xff] }
 0x317   :  { %v2640_v25 = vpop.xlane.xlu0 %2639  ;;  %v2114_v26 = vadd.f32 %v21003_v8, %v17895_v43  ;;  %v2981_v8 = vmul.f32 %v17507_v22, %v17507_v22 }
 0x318   :  { %20995 = vst [vmem:[#allocation104_spill] sm:$0xff] %v17970_v53  ;;  %v17977_v23 = vadd.f32 %v2640_v25, %v2614_v24  ;;  %2842 = vadd.xlane.f32.xlu1 %v2841_v36  ;;  %v2117_v24 = vadd.f32 %v21001_v15, %v17890_v59 }
 0x319   :  { %v2643_v58 = vpop.xlane.xlu1 %2642 }
 0x31a   :  { %20997 = vst [vmem:[#allocation102_spill] sm:$0xff] %v17977_v23  ;;  %v17982_v2 = vadd.f32 %v2643_v58, %v2615_v16  ;;  %2987 = vadd.xlane.f32.xlu0 %v2986_v9  ;;  %v2268_v58 = vsel %vm1865_vm1, %v21002_v61, 0.0  ;;  %v21004_v9 = vld [vmem:[#allocation149_spill] sm:$0xff] }
 0x31b   :  { %v2130_v39 = vpop.xlane.xlu0 %2129  ;;  %v2271_v59 = vsel %vm1865_vm1, %v21004_v9, 0.0 }
 0x31c   :  { %20999 = vst [vmem:[#allocation109_spill] sm:$0xff] %v17982_v2  ;;  %v17987_v60 = vadd.f32 %v2130_v39, %v2116_v10  ;;  %2990 = vadd.xlane.f32.xlu1 %v2989_v33  ;;  %v21005_v10 = vld [vmem:[#allocation142_spill] sm:$0xff]  ;;  %v2980_v33 = vmul.f32 %v17494_v49, %v17494_v49 }
 0x31d   :  { %v2133_v25 = vpop.xlane.xlu1 %2132  ;;  %v2115_v39 = vadd.f32 %v21005_v10, %v17901_v21  ;;  %v21007_v21 = vld [vmem:[#allocation145_spill] sm:$0xff] }
 0x31e   :  { %v17995_v36 = vadd.f32 %v2133_v25, %v2117_v24  ;;  %2269 = vadd.xlane.f32.xlu0 %v2268_v58  ;;  %v2844_v24 = vsel %vm1865_vm1, %v2824_v12, 0.0  ;;  %v21006_v25 = vld [vmem:[#allocation144_spill] sm:$0xff]  ;;  %v2693_v10 = vadd.f32 %v21007_v21, %v17915_v6  ;;  %v2992_v12 = vsel %vm1865_vm1, %v2980_v33, 0.0 }
 0x31f   :  { %v2124_v16 = vpop.xlane.xlu0 %2123  ;;  %v2692_v58 = vadd.f32 %v21006_v25, %v17907_v4  ;;  %v21008_v4 = vld [vmem:[#allocation148_spill] sm:$0xff]  ;;  %v2995_v25 = vsel %vm1865_vm1, %v2981_v8, 0.0  ;;  %v2862_v6 = vmul.f32 %v20990_v18, %v20990_v18 }
 0x320   :  { %v18003_v38 = vadd.f32 %v2124_v16, %v2114_v26  ;;  %2272 = vadd.xlane.f32.xlu1 %v2271_v59  ;;  %v2847_v16 = vsel %vm1865_vm1, %v2825_v3, 0.0  ;;  %v21009_v3 = vld [vmem:[#allocation151_spill] sm:$0xff] }
 0x321   :  { %v2127_v15 = vpop.xlane.xlu1 %2126  ;;  %v2878_v21 = vsel %vm1865_vm1, %v2862_v6, 0.0  ;;  %v21015_v6 = vld [vmem:[#allocation165_spill] sm:$0xff] }
 0x322   :  { %v18010_v43 = vadd.f32 %v2127_v15, %v2115_v39  ;;  %2845 = vadd.xlane.f32.xlu0 %v2844_v24  ;;  %v2690_v15 = vadd.f32 %v21008_v4, %v17923_v42  ;;  %v2863_v42 = vmul.f32 %v20992_v57, %v20992_v57  ;;  %v2864_v4 = vmul.f32 %v21002_v61, %v21002_v61 }
 0x323   :  { %v2714_v26 = vpop.xlane.xlu0 %2713  ;;  %v20763_v57 = vmov 0  }
 0x324   :  { %v18017_v59 = vadd.f32 %v2714_v26, %v2692_v58  ;;  %2848 = vadd.xlane.f32.xlu1 %v2847_v16  ;;  %v2691_v58 = vadd.f32 %v21009_v3, %v17930_v20  ;;  %v2297_v16 = vsel %vm1865_vm1, %v17480_v41, 0.0  ;;  %v2865_v3 = vmul.f32 %v21004_v9, %v21004_v9  ;;  %15400 = vset.pattern.permute.xlu0 %v20763_v57 }
 0x325   :  { %v2717_v34 = vpop.xlane.xlu1 %2716  ;;  %15401 = vset.pattern.permute.xlu1 %v20763_v57 }
 0x326   :  { %v18022_v39 = vadd.f32 %v2717_v34, %v2693_v10  ;;  %2993 = vadd.xlane.f32.xlu0 %v2992_v12  ;;  %v2294_v34 = vsel %vm1865_vm1, %v17471_v48, 0.0  ;;  %v2881_v12 = vsel %vm1865_vm1, %v2863_v42, 0.0  ;;  %v2884_v42 = vsel %vm1865_vm1, %v2864_v4, 0.0 }
 0x327   :  { %v2708_v24 = vpop.xlane.xlu0 %2707  ;;  %v2329_v4 = vsel %vm1865_vm1, %v17693_v35, 0.0 }
 0x328   :  { %v18027_v63 = vadd.f32 %v2708_v24, %v2690_v15  ;;  %2996 = vadd.xlane.f32.xlu1 %v2995_v25  ;;  %v21013_v24 = vld [vmem:[#allocation162_spill] sm:$0xff] }
 0x329   :  { %v2711_v26 = vpop.xlane.xlu1 %2710  ;;  %v2300_v25 = vsel %vm1865_vm1, %v21013_v24, 0.0 }
 0x32a   :  { %v18035_v33 = vadd.f32 %v2711_v26, %v2691_v58  ;;  %2295 = vadd.xlane.f32.xlu0 %v2294_v34  ;;  %v2303_v26 = vsel %vm1865_vm1, %v21015_v6, 0.0 }
 0x32b   :  { %v18039_v8 = vpop.xlane.xlu0 %2141 }
 0x32c   :  { %21010 = vst [vmem:[#allocation108_spill] sm:$0xff] %v18039_v8  ;;  %2298 = vadd.xlane.f32.xlu1 %v2297_v16 }
 0x32d   :  { %v18043_v20 = vpop.xlane.xlu1 %2144 }
 0x32e   :  { %21011 = vst [vmem:[#allocation115_spill] sm:$0xff] %v18043_v20  ;;  %2879 = vadd.xlane.f32.xlu0 %v2878_v21  ;;  %v2887_v21 = vsel %vm1865_vm1, %v2865_v3, 0.0 }
 0x32f   :  { %v18046_v10 = vpop.xlane.xlu0 %2135 }
 0x330   :  { %2882 = vadd.xlane.f32.xlu1 %v2881_v12  ;;  %v2326_v12 = vsel %vm1865_vm1, %v17683_v30, 0.0 }
 0x331   :  { %v18051_v15 = vpop.xlane.xlu1 %2138 }
 0x332   :  { %21012 = vst [vmem:[#allocation110_spill] sm:$0xff] %v18051_v15  ;;  %2301 = vadd.xlane.f32.xlu0 %v2300_v25  ;;  %v2902_v25 = vmul.f32 %v17471_v48, %v17471_v48 }
 0x333   :  { %v18057_v58 = vpop.xlane.xlu0 %2719 }
 0x334   :  { %21014 = vst [vmem:[#allocation117_spill] sm:$0xff] %v18057_v58  ;;  %2304 = vadd.xlane.f32.xlu1 %v2303_v26  ;;  %v2903_v26 = vmul.f32 %v17480_v41, %v17480_v41 }
 0x335   :  { %v18061_v34 = vpop.xlane.xlu1 %2722 }
 0x336   :  { %21016 = vst [vmem:[#allocation116_spill] sm:$0xff] %v18061_v34  ;;  %2885 = vadd.xlane.f32.xlu0 %v2884_v42  ;;  %v2918_v42 = vsel %vm1865_vm1, %v2902_v25, 0.0  ;;  %v2921_v48 = vsel %vm1865_vm1, %v2903_v26, 0.0  ;;  %v2905_v25 = vmul.f32 %v21015_v6, %v21015_v6  ;;  %v2335_v26 = vsel %vm1865_vm1, %v17688_v47, 0.0 }
 0x337   :  { %v18064_v16 = vpop.xlane.xlu0 %2193  ;;  %v2942_v6 = vmul.f32 %v17683_v30, %v17683_v30 }
 0x338   :  { %2888 = vadd.xlane.f32.xlu1 %v2887_v21  ;;  %v2927_v18 = vsel %vm1865_vm1, %v2905_v25, 0.0 }
 0x339   :  { %v18071_v9 = vpop.xlane.xlu1 %2196 }
 0x33a   :  { %2327 = vadd.xlane.f32.xlu0 %v2326_v12  ;;  %v2904_v12 = vmul.f32 %v21013_v24, %v21013_v24 }
 0x33b   :  { %v18075_v61 = vpop.xlane.xlu0 %2187 }
 0x33c   :  { %2330 = vadd.xlane.f32.xlu1 %v2329_v4  ;;  %v2332_v4 = vsel %vm1865_vm1, %v17681_v27, 0.0 }
 0x33d   :  { %v18079_v3 = vpop.xlane.xlu1 %2190 }
 0x33e   :  { %2919 = vadd.xlane.f32.xlu0 %v2918_v42 }
 0x33f   :  { %v18082_v21 = vpop.xlane.xlu0 %2793 }
 0x340   :  { %2922 = vadd.xlane.f32.xlu1 %v2921_v48  ;;  %v2924_v48 = vsel %vm1865_vm1, %v2904_v12, 0.0  ;;  %v2361_v12 = vsel %vm1865_vm1, %v17742_v55, 0.0 }
 0x341   :  { %v18089_v41 = vpop.xlane.xlu1 %2292 }
 0x342   :  { %2333 = vadd.xlane.f32.xlu0 %v2332_v4  ;;  %v2358_v4 = vsel %vm1865_vm1, %v17732_v17, 0.0 }
 0x343   :  { %v18095_v42 = vpop.xlane.xlu0 %2787 }
 0x344   :  { %2336 = vadd.xlane.f32.xlu1 %v2335_v26  ;;  %v2943_v26 = vmul.f32 %v17693_v35, %v17693_v35 }
 0x345   :  { %v18099_v57 = vpop.xlane.xlu1 %2796 }
 0x346   :  { %2925 = vadd.xlane.f32.xlu0 %v2924_v48  ;;  %v2958_v48 = vsel %vm1865_vm1, %v2942_v6, 0.0  ;;  %v2961_v30 = vsel %vm1865_vm1, %v2943_v26, 0.0  ;;  %v2367_v6 = vsel %vm1865_vm1, %v17737_v46, 0.0 }
 0x347   :  { %v18102_v24 = vpop.xlane.xlu0 %2289 }
 0x348   :  { %2928 = vadd.xlane.f32.xlu1 %v2927_v18 }
 0x349   :  { %v18109_v22 = vpop.xlane.xlu1 %2790 }
 0x34a   :  { %2359 = vadd.xlane.f32.xlu0 %v2358_v4  ;;  %v2944_v4 = vmul.f32 %v17681_v27, %v17681_v27 }
 0x34b   :  { %v18113_v49 = vpop.xlane.xlu0 %2257 }
 0x34c   :  { %2362 = vadd.xlane.f32.xlu1 %v2361_v12  ;;  %v2945_v12 = vmul.f32 %v17688_v47, %v17688_v47 }
 0x34d   :  { %v18117_v25 = vpop.xlane.xlu1 %2260 }
 0x34e   :  { %2959 = vadd.xlane.f32.xlu0 %v2958_v48  ;;  %v2964_v48 = vsel %vm1865_vm1, %v2944_v4, 0.0  ;;  %v2967_v47 = vsel %vm1865_vm1, %v2945_v12, 0.0  ;;  %v2985_v4 = vmul.f32 %v17737_v46, %v17737_v46 }
 0x34f   :  { %v18120_v18 = vpop.xlane.xlu0 %2251 }
 0x350   :  { %2962 = vadd.xlane.f32.xlu1 %v2961_v30  ;;  %v2982_v30 = vmul.f32 %v17732_v17, %v17732_v17  ;;  %v3007_v0 = vsel %vm1865_vm1, %v2985_v4, 0.0 }
 0x351   :  { %v18125_v35 = vpop.xlane.xlu1 %2254 }
 0x352   :  { %2365 = vadd.xlane.f32.xlu0 %v2364_v50  ;;  %v2983_v50 = vmul.f32 %v17742_v55, %v17742_v55  ;;  %v2998_v17 = vsel %vm1865_vm1, %v2982_v30, 0.0 }
 0x353   :  { %v18131_v13 = vpop.xlane.xlu0 %2867 }
 0x354   :  { %2368 = vadd.xlane.f32.xlu1 %v2367_v6  ;;  %v3001_v55 = vsel %vm1865_vm1, %v2983_v50, 0.0 }
 0x355   :  { %v18137_v26 = vpop.xlane.xlu1 %2728 }
 0x356   :  { %21017 = vst [vmem:[#allocation123_spill] sm:$0xff] %v18137_v26  ;;  %2965 = vadd.xlane.f32.xlu0 %v2964_v48 }
 0x357   :  { %v18142_v27 = vpop.xlane.xlu0 %2725 }
 0x358   :  { %21018 = vst [vmem:[#allocation118_spill] sm:$0xff] %v18142_v27  ;;  %2968 = vadd.xlane.f32.xlu1 %v2967_v47  ;;  %v3004_v47 = vsel %vm1865_vm1, %v2984_v19, 0.0 }
 0x359   :  { %v18147_v6 = vpop.xlane.xlu1 %2870 }
 0x35a   :  { %2999 = vadd.xlane.f32.xlu0 %v2998_v17 }
 0x35b   :  { %v18152_v48 = vpop.xlane.xlu0 %2873 }
 0x35c   :  { %3002 = vadd.xlane.f32.xlu1 %v3001_v55 }
 0x35d   :  { %v18155_v40 = vpop.xlane.xlu1 %2876 }
 0x35e   :  { %3005 = vadd.xlane.f32.xlu0 %v3004_v47 }
 0x35f   :  { %v18158_v12 = vpop.xlane.xlu0 %2199 }
 0x360   :  { %21019 = vst [vmem:[#allocation126_spill] sm:$0xff] %v18158_v12  ;;  %3008 = vadd.xlane.f32.xlu1 %v3007_v0 }
 0x361   :  { %v18161_v30 = vpop.xlane.xlu1 %2202 }
 0x362   :  { %21020 = vst [vmem:[#allocation124_spill] sm:$0xff] %v18161_v30 }
 0x363   :  { %v2316_v17 = vpop.xlane.xlu0 %2315 }
 0x365   :  { %v2319_v27 = vpop.xlane.xlu1 %2318 }
 0x367   :  { %v18163_v46 = vpop.xlane.xlu0 %2759 }
 0x368   :  { %21021 = vst [vmem:[#allocation131_spill] sm:$0xff] %v18163_v46 }
 0x369   :  { %v18165_v26 = vpop.xlane.xlu1 %2762 }
 0x36a   :  { %21022 = vst [vmem:[#allocation129_spill] sm:$0xff] %v18165_v26 }
 0x36b   :  { %v2908_v50 = vpop.xlane.xlu0 %2907 }
 0x36d   :  { %v2911_v55 = vpop.xlane.xlu1 %2910 }
 0x36f   :  { %v18167_v5 = vpop.xlane.xlu0 %2205 }
 0x370   :  { %21023 = vst [vmem:[#allocation137_spill] sm:$0xff] %v18167_v5 }
 0x371   :  { %v18169_v34 = vpop.xlane.xlu1 %2208 }
 0x372   :  { %21024 = vst [vmem:[#allocation135_spill] sm:$0xff] %v18169_v34 }
 0x373   :  { %v18171_v19 = vpop.xlane.xlu0 %2321 }
 0x375   :  { %v18173_v47 = vpop.xlane.xlu1 %2324 }
 0x377   :  { %v18175_v4 = vpop.xlane.xlu0 %2765 }
 0x378   :  { %21025 = vst [vmem:[#allocation139_spill] sm:$0xff] %v18175_v4 }
 0x379   :  { %v18177_v0 = vpop.xlane.xlu1 %2768 }
 0x37a   :  { %21026 = vst [vmem:[#allocation142_spill] sm:$0xff] %v18177_v0  ;;  %v2178_v0 = vadd.f32 %v17526_v32, %v18003_v38  ;;  %v2770_v32 = vadd.f32 %v17568_v44, %v18027_v63 }
 0x37b   :  { %v18179_v58 = vpop.xlane.xlu0 %2913 }
 0x37d   :  { %v18181_v30 = vpop.xlane.xlu1 %2916 }
 0x37f   :  { %v18183_v46 = vpop.xlane.xlu0 %2231 }
 0x380   :  { %21027 = vst [vmem:[#allocation144_spill] sm:$0xff] %v18183_v46  ;;  %v2210_v46 = vadd.f32 %v18075_v61, %v2178_v0 }
 0x381   :  { %v18185_v26 = vpop.xlane.xlu1 %2234 }
 0x382   :  { %21028 = vst [vmem:[#allocation145_spill] sm:$0xff] %v18185_v26  ;;  %v2179_v26 = vadd.f32 %v17531_v56, %v18010_v43  ;;  %v2810_v56 = vadd.f32 %v18095_v42, %v2770_v32  ;;  %v2771_v43 = vadd.f32 %v17573_v62, %v18035_v33 }
 0x383   :  { %v2348_v53 = vpop.xlane.xlu0 %2347 }
 0x384   :  { %v2811_v44 = vadd.f32 %v18109_v22, %v2771_v43  ;;  %v2850_v62 = vadd.f32 %v17721_v52, %v2810_v56 }
 0x385   :  { %v2351_v5 = vpop.xlane.xlu1 %2350 }
 0x386   :  { %v2890_v22 = vadd.f32 %v18131_v13, %v2850_v62  ;;  %v21037_v62 = vld [vmem:[#allocation185_spill] sm:$0xff] }
 0x387   :  { %v18187_v12 = vpop.xlane.xlu0 %2799 }
 0x388   :  { %21029 = vst [vmem:[#allocation148_spill] sm:$0xff] %v18187_v12  ;;  %v2930_v52 = vadd.f32 %v2908_v50, %v2890_v22 }
 0x389   :  { %v18189_v34 = vpop.xlane.xlu1 %2802 }
 0x38a   :  { %21030 = vst [vmem:[#allocation151_spill] sm:$0xff] %v18189_v34  ;;  %v2211_v34 = vadd.f32 %v18079_v3, %v2179_v26 }
 0x38b   :  { %v2948_v2 = vpop.xlane.xlu0 %2947 }
 0x38c   :  { %v2243_v61 = vadd.f32 %v17678_v37, %v2211_v34  ;;  %v21033_v37 = vld [vmem:[#allocation173_spill] sm:$0xff] }
 0x38d   :  { %v2951_v23 = vpop.xlane.xlu1 %2950 }
 0x38e   :  { %v2275_v3 = vadd.f32 %v18125_v35, %v2243_v61 }
 0x38f   :  { %v18191_v20 = vpop.xlane.xlu0 %2237 }
 0x390   :  { %21031 = vst [vmem:[#allocation190_spill] sm:$0xff] %v18191_v20  ;;  %v2242_v20 = vadd.f32 %v17674_v11, %v2210_v46  ;;  %v21032_v46 = vld [vmem:[#allocation170_spill] sm:$0xff]  ;;  %v2307_v35 = vadd.f32 %v17807_v28, %v2275_v3  ;;  %v2772_v28 = vadd.f32 %v17548_v31, %v18017_v59 }
 0x391   :  { %v18193_v4 = vpop.xlane.xlu1 %2240  ;;  %v2180_v11 = vadd.f32 %v21032_v46, %v17987_v60 }
 0x392   :  { %v2274_v38 = vadd.f32 %v18120_v18, %v2242_v20  ;;  %v2181_v20 = vadd.f32 %v21033_v37, %v17995_v36  ;;  %v2339_v60 = vadd.f32 %v2319_v27, %v2307_v35  ;;  %v2812_v3 = vadd.f32 %v18082_v21, %v2772_v28 }
 0x393   :  { %v18197_v51 = vpop.xlane.xlu0 %2353  ;;  %v2212_v42 = vadd.f32 %v18064_v16, %v2180_v11 }
 0x394   :  { %v2306_v63 = vadd.f32 %v17804_v45, %v2274_v38  ;;  %v2213_v18 = vadd.f32 %v18071_v9, %v2181_v20  ;;  %v2851_v45 = vadd.f32 %v17727_v14, %v2811_v44  ;;  %v21034_v9 = vld [vmem:[#allocation179_spill] sm:$0xff] }
 0x395   :  { %v18202_v8 = vpop.xlane.xlu1 %2356  ;;  %v2244_v61 = vadd.f32 %v17651_v7, %v2212_v42  ;;  %v21035_v7 = vld [vmem:[#allocation174_spill] sm:$0xff] }
 0x396   :  { %v2338_v33 = vadd.f32 %v2316_v17, %v2306_v63  ;;  %v2891_v16 = vadd.f32 %v18147_v6, %v2851_v45  ;;  %v2371_v17 = vadd.f32 %v2351_v5, %v2339_v60  ;;  %v2245_v56 = vadd.f32 %v21034_v9, %v2213_v18  ;;  %v21036_v63 = vld [vmem:[#allocation184_spill] sm:$0xff] }
 0x397   :  { %v18205_v12 = vpop.xlane.xlu0 %2805  ;;  %v2276_v13 = vadd.f32 %v18113_v49, %v2244_v61  ;;  %v2773_v6 = vadd.f32 %v21035_v7, %v18022_v39  ;;  %v2852_v37 = vadd.f32 %v21036_v63, %v2812_v3 }
 0x398   :  { %v2370_v38 = vadd.f32 %v2348_v53, %v2338_v33  ;;  %v2931_v14 = vadd.f32 %v2911_v55, %v2891_v16  ;;  %v2970_v53 = vadd.f32 %v2948_v2, %v2930_v52  ;;  %v2277_v5 = vadd.f32 %v18117_v25, %v2245_v56 }
 0x399   :  { %v18208_v15 = vpop.xlane.xlu1 %2808  ;;  %v18254_v46 = vmul.f32 0.03125, %v2371_v17  ;;  %v2813_v11 = vadd.f32 %v18099_v57, %v2773_v6  ;;  %v2308_v49 = vadd.f32 %v18102_v24, %v2276_v13  ;;  %v2892_v24 = vadd.f32 %v18152_v48, %v2852_v37 }
 0x39a   :  { %v18248_v27 = vmul.f32 0.03125, %v2370_v38  ;;  %v2971_v31 = vadd.f32 %v2951_v23, %v2931_v14  ;;  %v2309_v39 = vadd.f32 %v18089_v41, %v2277_v5 }
 0x39b   :  { %v18214_v0 = vpop.xlane.xlu0 %2953  ;;  %v2340_v20 = vadd.f32 %v18171_v19, %v2308_v49  ;;  %v3035_v23 = vmul.f32 %v18254_v46, %v18254_v46  ;;  %v2853_v33 = vadd.f32 %v21037_v62, %v2813_v11  ;;  %v2932_v38 = vadd.f32 %v18179_v58, %v2892_v24  ;;  %v1850_v49 = vld [vmem:[%s20611_s2 + $0x8] sm:$0xff]  ;;  %v1851_v62 = vld [vmem:[%s20611_s2 + $0x10] sm:$0xff] }
 0x39c   :  { %v3034_v2 = vmul.f32 %v18248_v27, %v18248_v27  ;;  %v2341_v18 = vadd.f32 %v18173_v47, %v2309_v39 }
 0x39d   :  { %v18220_v26 = vpop.xlane.xlu1 %2956  ;;  %v2372_v22 = vadd.f32 %v18197_v51, %v2340_v20  ;;  %v2893_v60 = vadd.f32 %v18155_v40, %v2853_v33  ;;  %v2972_v47 = vadd.f32 %v18214_v0, %v2932_v38 }
 0x39e   :  { %v2373_v61 = vadd.f32 %v18202_v8, %v2341_v18 }
 0x39f   :  { %v18228_v34 = vpop.xlane.xlu0 %2263  ;;  %v2933_v52 = vadd.f32 %v18181_v30, %v2893_v60  ;;  %v3020_v28 = vmul.f32 0.03125, %v2372_v22 }
 0x3a0   :  { %v3021_v56 = vmul.f32 0.03125, %v2373_v61 }
 0x3a1   :  { %v18234_v32 = vpop.xlane.xlu1 %2266  ;;  %v2973_v40 = vadd.f32 %v18220_v26, %v2933_v52  ;;  %v3036_v14 = vmul.f32 %v3020_v28, %v3020_v28  ;;  %v21038_v52 = vld [vmem:[#allocation158_spill] sm:$0xff] }
 0x3a2   :  { %v3037_v30 = vmul.f32 %v3021_v56, %v3021_v56 }
 0x3a3   :  { %v18238_v36 = vpop.xlane.xlu0 %2839 }
 0x3a5   :  { %v18245_v43 = vpop.xlane.xlu1 %2842 }
 0x3a7   :  { %v2988_v50 = vpop.xlane.xlu0 %2987 }
 0x3a8   :  { %v3010_v59 = vadd.f32 %v2988_v50, %v2970_v53 }
 0x3a9   :  { %v2991_v44 = vpop.xlane.xlu1 %2990 }
 0x3aa   :  { %v3026_v55 = vmul.f32 0.03125, %v3010_v59  ;;  %v3011_v21 = vadd.f32 %v2991_v44, %v2971_v31  ;;  %v1849_v31 = vld [vmem:[%s20611_s2] sm:$0xff] }
 0x3ab   :  { %v18262_v25 = vpop.xlane.xlu0 %2269 }
 0x3ac   :  { %v3042_v57 = vsub.f32 %v3026_v55, %v3034_v2  ;;  %v3027_v42 = vmul.f32 0.03125, %v3011_v21 }
 0x3ad   :  { %v18269_v35 = vpop.xlane.xlu1 %2272 }
 0x3ae   :  { %v3050_v41 = vmax.f32 %v3042_v57, 0.0  ;;  %v3043_v45 = vsub.f32 %v3027_v42, %v3035_v23 }
 0x3af   :  { %v18274_v19 = vpop.xlane.xlu0 %2845 }
 0x3b0   :  { %v3058_v16 = vadd.f32 1e-05, %v3050_v41  ;;  %v3051_v48 = vmax.f32 %v3043_v45, 0.0 }
 0x3b1   :  { %v18279_v17 = vpop.xlane.xlu1 %2848 }
 0x3b2   :  { %16027 = vrsqrt.f32 %v3058_v16  ;;  %v3059_v51 = vadd.f32 1e-05, %v3051_v48 }
 0x3b3   :  { %v2994_v9 = vpop.xlane.xlu0 %2993 }
 0x3b4   :  { %16029 = vrsqrt.f32 %v3059_v51  ;;  %v3012_v13 = vadd.f32 %v2994_v9, %v2972_v47  ;;  %v2118_v47 = vadd.f32 %v21038_v52, %v17947_v1  ;;  %v21039_v51 = vld [vmem:[#allocation159_spill] sm:$0xff]  ;;  %v21042_v1 = vld [vmem:[#allocation108_spill] sm:$0xff] }
 0x3b5   :  { %v2997_v58 = vpop.xlane.xlu1 %2996  ;;  %v2119_v9 = vadd.f32 %v21039_v51, %v17955_v54  ;;  %v21044_v54 = vld [vmem:[#allocation157_spill] sm:$0xff] }
 0x3b6   :  { %v3028_v8 = vmul.f32 0.03125, %v3012_v13  ;;  %v3013_v53 = vadd.f32 %v2997_v58, %v2973_v40  ;;  %v2150_v13 = vadd.f32 %v18046_v10, %v2118_v47  ;;  %v21055_v47 = vld [vmem:[#allocation124_spill] sm:$0xff] }
 0x3b7   :  { %v18283_v3 = vpop.xlane.xlu0 %2295 }
 0x3b8   :  { %v3044_v7 = vsub.f32 %v3028_v8, %v3036_v14  ;;  %v3029_v6 = vmul.f32 0.03125, %v3013_v53  ;;  %v21041_v14 = vld [vmem:[#allocation110_spill] sm:$0xff] }
 0x3b9   :  { %v18285_v5 = vpop.xlane.xlu1 %2298  ;;  %v2151_v8 = vadd.f32 %v21041_v14, %v2119_v9  ;;  %v21056_v9 = vld [vmem:[#allocation175_spill] sm:$0xff] }
 0x3ba   :  { %v3052_v0 = vmax.f32 %v3044_v7, 0.0  ;;  %v3045_v50 = vsub.f32 %v3029_v6, %v3037_v30  ;;  %v21043_v7 = vld [vmem:[#allocation100_spill] sm:$0xff] }
 0x3bb   :  { %v18290_v26 = vpop.xlane.xlu0 %2879  ;;  %v2121_v6 = vadd.f32 %v21044_v54, %v21043_v7  ;;  %v21059_v7 = vld [vmem:[#allocation101_spill] sm:$0xff]  ;;  %v21060_v54 = vld [vmem:[#allocation160_spill] sm:$0xff] }
 0x3bc   :  { %v16028_v59 = vpop.eup %16027  ;;  %v3060_v11 = vadd.f32 1e-05, %v3052_v0  ;;  %v3053_v44 = vmax.f32 %v3045_v50, 0.0  ;;  %v21045_v50 = vld [vmem:[#allocation177_spill] sm:$0xff] }
 0x3bd   :  { %v18295_v2 = vpop.xlane.xlu1 %2882  ;;  %v3074_v55 = vmul.f32 %v16028_v59, %v1849_v31  ;;  %v2182_v31 = vadd.f32 %v21045_v50, %v2150_v13  ;;  %v1857_v59 = vld [vmem:[%s20612_s3] sm:$0xff] }
 0x3be   :  { %v16030_v21 = vpop.eup %16029  ;;  %16031 = vrsqrt.f32 %v3060_v11  ;;  %v3061_v63 = vadd.f32 1e-05, %v3053_v44  ;;  %v21047_v44 = vld [vmem:[#allocation178_spill] sm:$0xff] }
 0x3bf   :  { %v18297_v37 = vpop.xlane.xlu0 %2301  ;;  %3100 = vperm.xlu0 %15400, %v3074_v55   ;;  %v3075_v39 = vmul.f32 %v16030_v21, %v1850_v49  ;;  %v3082_v20 = vmul.f32 %v3074_v55, %v18248_v27  ;;  %v1852_v27 = vld [vmem:[%s20611_s2 + $0x18] sm:$0xff]  ;;  %v2183_v49 = vadd.f32 %v21047_v44, %v2151_v8  ;;  %v21058_v8 = vld [vmem:[#allocation116_spill] sm:$0xff] }
 0x3c0   :  { %16033 = vrsqrt.f32 %v3061_v63  ;;  %v21048_v21 = vld [vmem:[#allocation102_spill] sm:$0xff]  ;;  %v21049_v63 = vld [vmem:[#allocation164_spill] sm:$0xff] }
 0x3c1   :  { %v18300_v23 = vpop.xlane.xlu1 %2304  ;;  %v18303_v57 = vmul.f32 %v3075_v39, %v18254_v46  ;;  %v2215_v51 = vadd.f32 %v21055_v47, %v2183_v49  ;;  %v21063_v49 = vld [vmem:[#allocation137_spill] sm:$0xff]  ;;  %v21069_v47 = vld [vmem:[#allocation135_spill] sm:$0xff] }
 0x3c3   :  { %v18305_v42 = vpop.xlane.xlu0 %2885 }
 0x3c5   :  { %v18307_v24 = vpop.xlane.xlu1 %2888 }
 0x3c7   :  { %v18312_v33 = vpop.xlane.xlu0 %2327 }
 0x3c8   :  { %v16032_v18 = vpop.eup %16031 }
 0x3c9   :  { %v18317_v22 = vpop.xlane.xlu1 %2330  ;;  %v3076_v41 = vmul.f32 %v16032_v18, %v1851_v62  ;;  %v21050_v62 = vld [vmem:[#allocation109_spill] sm:$0xff]  ;;  %v21051_v18 = vld [vmem:[#allocation167_spill] sm:$0xff] }
 0x3ca   :  { %v16034_v46 = vpop.eup %16033 }
 0x3cb   :  { %v18319_v45 = vpop.xlane.xlu0 %2919  ;;  %3110 = vperm.xlu1 %15401, %v3076_v41   ;;  %v3077_v60 = vmul.f32 %v16034_v46, %v1852_v27  ;;  %v3084_v38 = vmul.f32 %v3076_v41, %v3020_v28  ;;  %v1859_v28 = vld [vmem:[%s20612_s3 + $0x10] sm:$0xff]  ;;  %v2695_v27 = vadd.f32 %v21051_v18, %v21050_v62 }
 0x3cc   :  { %v21052_v41 = vld [vmem:[#allocation126_spill] sm:$0xff] }
 0x3cd   :  { %v18321_v61 = vpop.xlane.xlu1 %2922  ;;  %v18323_v16 = vmul.f32 %v3077_v60, %v3021_v56  ;;  %v21040_v56 = vld [vmem:[#allocation154_spill] sm:$0xff]  ;;  %v3092_v10 = vsub.f32 %v1859_v28, %v3084_v38  ;;  %v2214_v46 = vadd.f32 %v21052_v41, %v2182_v31  ;;  %v21054_v38 = vld [vmem:[#allocation161_spill] sm:$0xff] }
 0x3ce   :  { %v2120_v58 = vadd.f32 %v21040_v56, %v17937_v29  ;;  %v21046_v29 = vld [vmem:[#allocation115_spill] sm:$0xff]  ;;  %v3090_v56 = vsub.f32 %v1857_v59, %v3082_v20  ;;  %v1858_v31 = vld [vmem:[%s20612_s3 + $0x8] sm:$0xff]  ;;  %v21066_v62 = vld [vmem:[#allocation118_spill] sm:$0xff] }
 0x3cf   :  { %v18325_v48 = vpop.xlane.xlu0 %2333  ;;  %3115 = vperm.xlu1 %15401, %v3077_v60   ;;  %v2153_v11 = vadd.f32 %v21046_v29, %v2121_v6  ;;  %v21053_v60 = vld [vmem:[#allocation104_spill] sm:$0xff]  ;;  %v2696_v6 = vadd.f32 %v21060_v54, %v21059_v7  ;;  %v21062_v29 = vld [vmem:[#allocation123_spill] sm:$0xff]  ;;  %v21065_v20 = vld [vmem:[#allocation145_spill] sm:$0xff] }
 0x3d0   :  { %v2152_v30 = vadd.f32 %v21042_v1, %v2120_v58  ;;  %v2697_v52 = vadd.f32 %v21054_v38, %v21053_v60  ;;  %v21057_v58 = vld [vmem:[#allocation117_spill] sm:$0xff]  ;;  %v2735_v1 = vadd.f32 %v21058_v8, %v2695_v27  ;;  %v2247_v59 = vadd.f32 %v21065_v20, %v2215_v51  ;;  %v21067_v27 = vld [vmem:[#allocation131_spill] sm:$0xff] }
 0x3d1   :  { %v18331_v40 = vpop.xlane.xlu1 %2336  ;;  %v2736_v18 = vadd.f32 %v21066_v62, %v2696_v6  ;;  %v21068_v60 = vld [vmem:[#allocation129_spill] sm:$0xff]  ;;  %v21071_v51 = vld [vmem:[#allocation139_spill] sm:$0xff]  ;;  %v21073_v6 = vld [vmem:[#allocation148_spill] sm:$0xff] }
 0x3d2   :  { %v2184_v13 = vadd.f32 %v21056_v9, %v2152_v30  ;;  %v2737_v44 = vadd.f32 %v21062_v29, %v2697_v52  ;;  %v21064_v30 = vld [vmem:[#allocation176_spill] sm:$0xff]  ;;  %v3236_v62 = vld [vmem:[#allocation5 + $0x1] sm:$0x1] }
 0x3d3   :  { %v18340_v53 = vpop.xlane.xlu0 %2925  ;;  %3105 = vperm.xlu1 %15401, %v3075_v39   ;;  %v2694_v39 = vadd.f32 %v21049_v63, %v21048_v21  ;;  %v2185_v63 = vadd.f32 %v21064_v30, %v2153_v11  ;;  %v3091_v11 = vsub.f32 %v1858_v31, %v18303_v57  ;;  %v2776_v7 = vadd.f32 %v21071_v51, %v2736_v18 }
 0x3d4   :  { %v2216_v21 = vadd.f32 %v21063_v49, %v2184_v13  ;;  %v2279_v13 = vadd.f32 %v18234_v32, %v2247_v59  ;;  %15349 = vmatprep.subr.msk.bf16.mxu0 %vm3249_vm2, %v3236_v62 }
 0x3d5   :  { %v18345_v0 = vpop.xlane.xlu1 %2928  ;;  %v2734_v14 = vadd.f32 %v21057_v58, %v2694_v39  ;;  %v2217_v9 = vadd.f32 %v21069_v47, %v2185_v63  ;;  %v21070_v58 = vld [vmem:[#allocation190_spill] sm:$0xff] }
 0x3d6   :  { %v2248_v52 = vadd.f32 %v21070_v58, %v2216_v21  ;;  %v2311_v57 = vadd.f32 %v18285_v5, %v2279_v13 }
 0x3d7   :  { %v2360_v55 = vpop.xlane.xlu0 %2359  ;;  %3158 = vperm.xlu1 %15401, %v3092_v10   ;;  %v21061_v10 = vld [vmem:[#allocation144_spill] sm:$0xff]  ;;  %v2774_v41 = vadd.f32 %v21067_v27, %v2734_v14  ;;  %v2249_v29 = vadd.f32 %v18193_v4, %v2217_v9 }
 0x3d8   :  { %v2246_v50 = vadd.f32 %v21061_v10, %v2214_v46  ;;  %v2775_v46 = vadd.f32 %v21068_v60, %v2735_v1  ;;  %v21074_v1 = vld [vmem:[#allocation151_spill] sm:$0xff]  ;;  %v2280_v32 = vadd.f32 %v18262_v25, %v2248_v52  ;;  %v2343_v4 = vadd.f32 %v18317_v22, %v2311_v57 }
 0x3d9   :  { %v2363_v28 = vpop.xlane.xlu1 %2362  ;;  %v2814_v10 = vadd.f32 %v21073_v6, %v2774_v41  ;;  %v2281_v30 = vadd.f32 %v18269_v35, %v2249_v29 }
 0x3da   :  { %v2278_v38 = vadd.f32 %v18228_v34, %v2246_v50  ;;  %v1860_v34 = vld [vmem:[%s20612_s3 + $0x18] sm:$0xff]  ;;  %v2815_v50 = vadd.f32 %v21074_v1, %v2775_v46  ;;  %v2312_v63 = vadd.f32 %v18297_v37, %v2280_v32 }
 0x3db   :  { %v2960_v39 = vpop.xlane.xlu0 %2959  ;;  %3148 = vperm.xlu1 %15401, %v3090_v56   ;;  %v21072_v56 = vld [vmem:[#allocation142_spill] sm:$0xff]  ;;  %v3093_v25 = vsub.f32 %v1860_v34, %v18323_v16 }
 0x3dc   :  { %v2777_v54 = vadd.f32 %v21072_v56, %v2737_v44  ;;  %v2310_v14 = vadd.f32 %v18283_v3, %v2278_v38  ;;  %v2816_v44 = vadd.f32 %v18205_v12, %v2776_v7  ;;  %v2854_v3 = vadd.f32 %v18238_v36, %v2814_v10 }
 0x3dd   :  { %v2963_v8 = vpop.xlane.xlu1 %2962  ;;  %v2855_v5 = vadd.f32 %v18245_v43, %v2815_v50  ;;  %v2344_v36 = vadd.f32 %v18325_v48, %v2312_v63  ;;  %v1854_v63 = vld [vmem:[%s20611_s2 + $0x28] sm:$0xff] }
 0x3de   :  { %v2817_v49 = vadd.f32 %v18208_v15, %v2777_v54  ;;  %v2342_v21 = vadd.f32 %v18312_v33, %v2310_v14  ;;  %v2894_v59 = vadd.f32 %v18290_v26, %v2854_v3  ;;  %v2313_v15 = vadd.f32 %v18300_v23, %v2281_v30 }
 0x3df   :  { %v2366_v31 = vpop.xlane.xlu0 %2365  ;;  %3153 = vperm.xlu1 %15401, %v3091_v11   ;;  %v2375_v33 = vadd.f32 %v2363_v28, %v2343_v4  ;;  %v2856_v37 = vadd.f32 %v18274_v19, %v2816_v44  ;;  %v2895_v22 = vadd.f32 %v18295_v2, %v2855_v5  ;;  %v3251_v23 = vsel %vm3249_vm2, %v3236_v62, 0  ;;  %v1856_v62 = vld [vmem:[%s20611_s2 + $0x38] sm:$0xff] }
 0x3e0   :  { %v2374_v12 = vadd.f32 %v2360_v55, %v2342_v21  ;;  %v2934_v43 = vadd.f32 %v18319_v45, %v2894_v59  ;;  %v2857_v26 = vadd.f32 %v18279_v17, %v2817_v49  ;;  %v2345_v16 = vadd.f32 %v18331_v40, %v2313_v15  ;;  %14578 = vmatpush3.bf16.msra.mxu0 %v3251_v23  ;;  %v1853_v21 = vld [vmem:[%s20611_s2 + $0x20] sm:$0xff]  ;;  %v1864_v23 = vld [vmem:[%s20612_s3 + $0x38] sm:$0xff] }
 0x3e1   :  { %v2369_v20 = vpop.xlane.xlu1 %2368  ;;  %v2376_v55 = vadd.f32 %v2366_v31, %v2344_v36  ;;  %v2896_v48 = vadd.f32 %v18305_v42, %v2856_v37  ;;  %v2935_v28 = vadd.f32 %v18321_v61, %v2895_v22  ;;  %v3023_v2 = vmul.f32 0.03125, %v2375_v33 }
 0x3e2   :  { %v3022_v27 = vmul.f32 0.03125, %v2374_v12  ;;  %v2974_v41 = vadd.f32 %v2960_v39, %v2934_v43  ;;  %v2897_v19 = vadd.f32 %v18307_v24, %v2857_v26  ;;  %v2377_v60 = vadd.f32 %v2369_v20, %v2345_v16  ;;  %v1862_v43 = vld [vmem:[%s20612_s3 + $0x28] sm:$0xff] }
 0x3e3   :  { %v2966_v35 = vpop.xlane.xlu0 %2965  ;;  %3163 = vperm.xlu1 %15401, %v3093_v25   ;;  %v2936_v17 = vadd.f32 %v18340_v53, %v2896_v48  ;;  %v2975_v46 = vadd.f32 %v2963_v8, %v2935_v28  ;;  %v3024_v47 = vmul.f32 0.03125, %v2376_v55  ;;  %v3039_v13 = vmul.f32 %v3023_v2, %v3023_v2  ;;  %v1855_v25 = vld [vmem:[%s20611_s2 + $0x30] sm:$0xff] }
 0x3e4   :  { %v2937_v38 = vadd.f32 %v18345_v0, %v2897_v19  ;;  %v3038_v58 = vmul.f32 %v3022_v27, %v3022_v27  ;;  %v3025_v39 = vmul.f32 0.03125, %v2377_v60  ;;  %v1863_v55 = vld [vmem:[%s20612_s3 + $0x30] sm:$0xff] }
 0x3e5   :  { %v2969_v18 = vpop.xlane.xlu1 %2968  ;;  %v2976_v42 = vadd.f32 %v2966_v35, %v2936_v17  ;;  %v3040_v54 = vmul.f32 %v3024_v47, %v3024_v47  ;;  %v1861_v35 = vld [vmem:[%s20612_s3 + $0x20] sm:$0xff]  ;;  %v21075_v19 = vld [vmem:[#allocation38_spill] sm:$0xff]  ;;  %s16282_s3 = smov 115  }
 0x3e6   :  { %v2977_v51 = vadd.f32 %v2969_v18, %v2937_v38  ;;  %v3041_v0 = vmul.f32 %v3025_v39, %v3025_v39  ;;  %v21078_v38 = vld [vmem:[#allocation69_spill] sm:$0xff] }
 0x3e7   :  { %v3000_v45 = vpop.xlane.xlu0 %2999 }
 0x3e8   :  { %v3014_v40 = vadd.f32 %v3000_v45, %v2974_v41  ;;  %v21076_v45 = vld [vmem:[#allocation22_spill] sm:$0xff] }
 0x3e9   :  { %v3003_v9 = vpop.xlane.xlu1 %3002 }
 0x3ea   :  { %v3030_v52 = vmul.f32 0.03125, %v3014_v40  ;;  %v3015_v61 = vadd.f32 %v3003_v9, %v2975_v46  ;;  %v21077_v46 = vld [vmem:[#allocation54_spill] sm:$0xff]  ;;  %v21079_v9 = vld [vmem:[#allocation84_spill] sm:$0xff] }
 0x3eb   :  { %v3006_v11 = vpop.xlane.xlu0 %3005 }
 0x3ec   :  { %v3046_v24 = vsub.f32 %v3030_v52, %v3038_v58  ;;  %v3031_v7 = vmul.f32 0.03125, %v3015_v61  ;;  %v3016_v56 = vadd.f32 %v3006_v11, %v2976_v42  ;;  %v21080_v42 = vld [vmem:[#allocation23_spill] sm:$0xff]  ;;  %v21081_v61 = vld [vmem:[#allocation97_spill] sm:$0xff] }
 0x3ed   :  { %v3009_v6 = vpop.xlane.xlu1 %3008  ;;  %v21083_v11 = vld [vmem:[#allocation39_spill] sm:$0xff] }
 0x3ee   :  { %v3054_v53 = vmax.f32 %v3046_v24, 0.0  ;;  %v3047_v8 = vsub.f32 %v3031_v7, %v3039_v13  ;;  %v3032_v10 = vmul.f32 0.03125, %v3016_v56  ;;  %v3017_v14 = vadd.f32 %v3009_v6, %v2977_v51  ;;  %v21084_v24 = vld [vmem:[#allocation112_spill] sm:$0xff]  ;;  %v21085_v56 = vld [vmem:[#allocation55_spill] sm:$0xff] }
 0x3ef   :  { %v21086_v6 = vld [vmem:[#allocation127_spill] sm:$0xff] }
 0x3f0   :  { %v3062_v34 = vadd.f32 1e-05, %v3054_v53  ;;  %v3055_v1 = vmax.f32 %v3047_v8, 0.0  ;;  %v3048_v50 = vsub.f32 %v3032_v10, %v3040_v54  ;;  %v3033_v29 = vmul.f32 0.03125, %v3017_v14  ;;  %v21087_v8 = vld [vmem:[#allocation73_spill] sm:$0xff]  ;;  %v21088_v14 = vld [vmem:[#allocation140_spill] sm:$0xff] }
 0x3f2   :  { %16035 = vrsqrt.f32 %v3062_v34  ;;  %v3063_v32 = vadd.f32 1e-05, %v3055_v1  ;;  %v3056_v57 = vmax.f32 %v3048_v50, 0.0  ;;  %v3049_v31 = vsub.f32 %v3033_v29, %v3041_v0  ;;  %v21090_v34 = vld [vmem:[#allocation89_spill] sm:$0xff] }
 0x3f3   :  { %v21092_v50 = vld [vmem:[#allocation153_spill] sm:$0xff] }
 0x3f4   :  { %16037 = vrsqrt.f32 %v3063_v32  ;;  %v3064_v44 = vadd.f32 1e-05, %v3056_v57  ;;  %v3057_v49 = vmax.f32 %v3049_v31, 0.0  ;;  %v21094_v32 = vld [vmem:[#allocation36_spill] sm:$0xff] }
 0x3f5   :  { %v21095_v31 = vld [vmem:[#allocation20_spill] sm:$0xff] }
 0x3f6   :  { %16039 = vrsqrt.f32 %v3064_v44  ;;  %v3065_v3 = vadd.f32 1e-05, %v3057_v49  ;;  %v21096_v49 = vld [vmem:[#allocation52_spill] sm:$0xff] }
 0x3f8   :  { %16041 = vrsqrt.f32 %v3065_v3 }
 0x3fc   :  { %v16036_v30 = vpop.eup %16035 }
 0x3fd   :  { %v3078_v4 = vmul.f32 %v16036_v30, %v1853_v21  ;;  %v21097_v21 = vld [vmem:[#allocation169_spill] sm:$0xff] }
 0x3fe   :  { %v16038_v20 = vpop.eup %16037 }
 0x3ff   :  { %3120 = vperm.xlu1 %15401, %v3078_v4   ;;  %v3079_v5 = vmul.f32 %v16038_v20, %v1854_v63  ;;  %v3086_v59 = vmul.f32 %v3078_v4, %v3022_v27  ;;  %v3206_v27 = vld [vmem:[#allocation5] sm:$0x1]  ;;  %v21099_v63 = vld [vmem:[#allocation68_spill] sm:$0xff]  ;;  %v21100_v20 = vld [vmem:[#allocation82_spill] sm:$0xff] }
 0x400   :  { %v16040_v12 = vpop.eup %16039  ;;  %15350 = vmatprep.subr.msk.bf16.mxu0 %vm3249_vm2, %v3206_v27  ;;  %v18446_v60 = vsel %vm3249_vm2, %v3206_v27, 0 }
 0x401   :  { %3125 = vperm.xlu0 %15400, %v3079_v5   ;;  %v3080_v15 = vmul.f32 %v16040_v12, %v1855_v25  ;;  %v3087_v36 = vmul.f32 %v3079_v5, %v3023_v2  ;;  %v3094_v26 = vsub.f32 %v1861_v35, %v3086_v59  ;;  %v21101_v5 = vld [vmem:[#allocation21_spill] sm:$0xff]  ;;  %v21102_v12 = vld [vmem:[#allocation96_spill] sm:$0xff]  ;;  %v21105_v35 = vld [vmem:[#allocation111_spill] sm:$0xff] }
 0x402   :  { %v16042_v33 = vpop.eup %16041 }
 0x403   :  { %3130 = vperm.xlu1 %15401, %v3080_v15   ;;  %v3081_v37 = vmul.f32 %v16042_v33, %v1856_v62  ;;  %v3088_v22 = vmul.f32 %v3080_v15, %v3024_v47  ;;  %v3095_v18 = vsub.f32 %v1862_v43, %v3087_v36  ;;  %v21104_v36 = vld [vmem:[#allocation37_spill] sm:$0xff] }
 0x405   :  { %3135 = vperm.xlu0 %15400, %v3081_v37   ;;  %v3089_v16 = vmul.f32 %v3081_v37, %v3025_v39  ;;  %v3096_v48 = vsub.f32 %v1863_v55, %v3088_v22  ;;  %v21106_v22 = vld [vmem:[#allocation53_spill] sm:$0xff]  ;;  %v21108_v55 = vld [vmem:[#allocation72_spill] sm:$0xff] }
 0x407   :  { %3168 = vperm.xlu1 %15401, %v3094_v26   ;;  %v3097_v28 = vsub.f32 %v1864_v23, %v3089_v16  ;;  %v21107_v26 = vld [vmem:[#allocation125_spill] sm:$0xff]  ;;  %v21110_v23 = vld [vmem:[#allocation138_spill] sm:$0xff] }
 0x409   :  { %3173 = vperm.xlu0 %15400, %v3095_v18  }
 0x40b   :  { %3178 = vperm.xlu1 %15401, %v3096_v48  }
 0x40d   :  { %3183 = vperm.xlu0 %15400, %v3097_v28   ;;  %v21112_v28 = vld [vmem:[#allocation88_spill] sm:$0xff] }
 0x43e   :  { %v3101_v41 = vpop.permute.xlu0 %3100 }
 0x43f   :  { %v18443_v2 = vmul.f32 %v3101_v41, %v21075_v19  ;;  %v18449_v17 = vmul.f32 %v3101_v41, %v21076_v45  ;;  %v18452_v40 = vmul.f32 %v3101_v41, %v21077_v46  ;;  %v18455_v47 = vmul.f32 %v3101_v41, %v21078_v38  ;;  %v21116_v45 = vld [vmem:[#allocation40_spill] sm:$0xff] }
 0x440   :  { %v18458_v58 = vmul.f32 %v3101_v41, %v21079_v9  ;;  %v18461_v52 = vmul.f32 %v3101_v41, %v21080_v42  ;;  %v18464_v13 = vmul.f32 %v3101_v41, %v21081_v61  ;;  %v18469_v51 = vmul.f32 %v3101_v41, %v21083_v11  ;;  %v21117_v38 = vld [vmem:[#allocation24_spill] sm:$0xff]  ;;  %v21119_v11 = vld [vmem:[#allocation70_spill] sm:$0xff] }
 0x441   :  { %v18472_v7 = vmul.f32 %v3101_v41, %v21084_v24  ;;  %v18475_v54 = vmul.f32 %v3101_v41, %v21085_v56  ;;  %v18478_v53 = vmul.f32 %v3101_v41, %v21086_v6  ;;  %v18481_v10 = vmul.f32 %v3101_v41, %v21087_v8  ;;  %v21118_v42 = vld [vmem:[#allocation56_spill] sm:$0xff]  ;;  %v21120_v56 = vld [vmem:[#allocation86_spill] sm:$0xff]  ;;  %v21121_v8 = vld [vmem:[#allocation25_spill] sm:$0xff] }
 0x442   :  { %v18484_v0 = vmul.f32 %v3101_v41, %v21088_v14  ;;  %v18487_v1 = vmul.f32 %v3101_v41, %v21090_v34  ;;  %v18490_v29 = vmul.f32 %v3101_v41, %v21092_v50  ;;  %v18499_v30 = vmul.f32 %v3101_v41, %v21097_v21  ;;  %v21114_v41 = vld [vmem:[#allocation152_spill] sm:$0xff]  ;;  %v21122_v34 = vld [vmem:[#allocation98_spill] sm:$0xff]  ;;  %v21125_v21 = vld [vmem:[#allocation113_spill] sm:$0xff] }
 0x444   :  { %21089 = vst [vmem:[#allocation173_spill] sm:$0xff] %v18484_v0  ;;  %21091 = vst [vmem:[#allocation179_spill] sm:$0xff] %v18487_v1  ;;  %v21153_v1 = vld [vmem:[#allocation156_spill] sm:$0xff] }
 0x445   :  { %21093 = vst [vmem:[#allocation174_spill] sm:$0xff] %v18490_v29  ;;  %21098 = vst [vmem:[#allocation184_spill] sm:$0xff] %v18499_v30  ;;  %v21145_v30 = vld [vmem:[#allocation59_spill] sm:$0xff] }
 0x44a   :  { %v18466_v39 = vpop.permute.xlu1 %3110 }
 0x44b   :  { %21082 = vst [vmem:[#allocation170_spill] sm:$0xff] %v18466_v39  ;;  %v3209_v57 = vmul.f32 %v21094_v32, %v18466_v39  ;;  %v3140_v44 = vmul.f32 %v21095_v31, %v18466_v39  ;;  %v3400_v3 = vmul.f32 %v21096_v49, %v18466_v39  ;;  %v3518_v4 = vmul.f32 %v21099_v63, %v18466_v39  ;;  %v21123_v32 = vld [vmem:[#allocation41_spill] sm:$0xff] }
 0x44c   :  { %v3636_v25 = vmul.f32 %v21100_v20, %v18466_v39  ;;  %v3754_v59 = vmul.f32 %v21101_v5, %v18466_v39  ;;  %v3872_v62 = vmul.f32 %v21102_v12, %v18466_v39  ;;  %v3990_v33 = vmul.f32 %v21104_v36, %v18466_v39  ;;  %v21126_v20 = vld [vmem:[#allocation57_spill] sm:$0xff]  ;;  %v21127_v12 = vld [vmem:[#allocation128_spill] sm:$0xff] }
 0x44d   :  { %v18515_v37 = vmul.f32 %v21105_v35, %v18466_v39  ;;  %v18519_v43 = vmul.f32 %v21106_v22, %v18466_v39  ;;  %v18523_v16 = vmul.f32 %v21107_v26, %v18466_v39  ;;  %v18527_v18 = vmul.f32 %v21108_v55, %v18466_v39  ;;  %v21128_v35 = vld [vmem:[#allocation74_spill] sm:$0xff] }
 0x44e   :  { %v18509_v15 = vpop.permute.xlu1 %3115  ;;  %v18531_v48 = vmul.f32 %v21110_v23, %v18466_v39  ;;  %v18535_v27 = vmul.f32 %v21112_v28, %v18466_v39  ;;  %v18539_v19 = vmul.f32 %v21114_v41, %v18466_v39  ;;  %v21130_v26 = vld [vmem:[#allocation42_spill] sm:$0xff]  ;;  %v21131_v23 = vld [vmem:[#allocation141_spill] sm:$0xff] }
 0x44f   :  { %21103 = vst [vmem:[#allocation185_spill] sm:$0xff] %v18509_v15  ;;  %21109 = vst [vmem:[#allocation158_spill] sm:$0xff] %v18527_v18  ;;  %v18543_v46 = vmul.f32 %v21116_v45, %v18509_v15  ;;  %v18547_v9 = vmul.f32 %v21117_v38, %v18509_v15  ;;  %v18551_v61 = vmul.f32 %v21118_v42, %v18509_v15  ;;  %v21133_v41 = vld [vmem:[#allocation90_spill] sm:$0xff]  ;;  %v21135_v38 = vld [vmem:[#allocation155_spill] sm:$0xff] }
 0x450   :  { %21111 = vst [vmem:[#allocation159_spill] sm:$0xff] %v18531_v48  ;;  %21113 = vst [vmem:[#allocation154_spill] sm:$0xff] %v18535_v27  ;;  %v18555_v24 = vmul.f32 %v21119_v11, %v18509_v15  ;;  %v18559_v6 = vmul.f32 %v21120_v56, %v18509_v15  ;;  %v18563_v14 = vmul.f32 %v21121_v8, %v18509_v15  ;;  %v21137_v11 = vld [vmem:[#allocation26_spill] sm:$0xff] }
 0x451   :  { %21115 = vst [vmem:[#allocation110_spill] sm:$0xff] %v18539_v19  ;;  %v18567_v50 = vmul.f32 %v21122_v34, %v18509_v15  ;;  %v18571_v31 = vmul.f32 %v21123_v32, %v18509_v15  ;;  %v18577_v63 = vmul.f32 %v21125_v21, %v18509_v15  ;;  %v18581_v5 = vmul.f32 %v21126_v20, %v18509_v15  ;;  %v21138_v8 = vld [vmem:[#allocation58_spill] sm:$0xff]  ;;  %v21139_v32 = vld [vmem:[#allocation71_spill] sm:$0xff] }
 0x452   :  { %v18573_v49 = vpop.permute.xlu1 %3105  ;;  %v18585_v36 = vmul.f32 %v21127_v12, %v18509_v15  ;;  %v18589_v22 = vmul.f32 %v21128_v35, %v18509_v15  ;;  %v18595_v28 = vmul.f32 %v21131_v23, %v18509_v15  ;;  %v18599_v45 = vmul.f32 %v21133_v41, %v18509_v15  ;;  %v21140_v20 = vld [vmem:[#allocation87_spill] sm:$0xff]  ;;  %v21144_v39 = vld [vmem:[#allocation114_spill] sm:$0xff] }
 0x453   :  { %21124 = vst [vmem:[#allocation108_spill] sm:$0xff] %v18573_v49  ;;  %v3208_v55 = vmul.f32 %v18573_v49, %v21130_v26  ;;  %v18603_v42 = vmul.f32 %v21135_v38, %v18509_v15  ;;  %v3139_v56 = vmul.f32 %v18573_v49, %v21137_v11  ;;  %v3399_v34 = vmul.f32 %v18573_v49, %v21138_v8  ;;  %v21141_v35 = vld [vmem:[#allocation27_spill] sm:$0xff] }
 0x454   :  { %21129 = vst [vmem:[#allocation100_spill] sm:$0xff] %v18589_v22  ;;  %21132 = vst [vmem:[#allocation157_spill] sm:$0xff] %v18595_v28  ;;  %v3517_v21 = vmul.f32 %v18573_v49, %v21139_v32  ;;  %v3635_v12 = vmul.f32 %v18573_v49, %v21140_v20  ;;  %v3753_v26 = vmul.f32 %v18573_v49, %v21141_v35  ;;  %v21142_v23 = vld [vmem:[#allocation99_spill] sm:$0xff]  ;;  %v21146_v20 = vld [vmem:[#allocation130_spill] sm:$0xff] }
 0x455   :  { %21134 = vst [vmem:[#allocation177_spill] sm:$0xff] %v18599_v45  ;;  %21136 = vst [vmem:[#allocation115_spill] sm:$0xff] %v18603_v42  ;;  %v3871_v41 = vmul.f32 %v18573_v49, %v21142_v23  ;;  %v21143_v38 = vld [vmem:[#allocation43_spill] sm:$0xff]  ;;  %v18621_v11 = vmul.f32 %v18573_v49, %v21144_v39  ;;  %v18627_v32 = vmul.f32 %v18573_v49, %v21145_v30 }
 0x456   :  { %v3989_v15 = vmul.f32 %v18573_v49, %v21143_v38  ;;  %v18623_v8 = vpop.permute.xlu1 %3158  ;;  %v18631_v42 = vmul.f32 %v18573_v49, %v21146_v20  ;;  %v21147_v35 = vld [vmem:[#allocation75_spill] sm:$0xff] }
 0x457   :  { %v18635_v23 = vmul.f32 %v18573_v49, %v21147_v35  ;;  %v21149_v19 = vld [vmem:[#allocation143_spill] sm:$0xff]  ;;  %v18642_v39 = vadd.f32 %v3209_v57, %v18623_v8  ;;  %v18645_v29 = vadd.f32 %v18623_v8, %v3140_v44  ;;  %v18648_v30 = vadd.f32 %v3400_v3, %v18623_v8 }
 0x458   :  { %v18639_v38 = vmul.f32 %v18573_v49, %v21149_v19  ;;  %v18651_v20 = vadd.f32 %v3518_v4, %v18623_v8  ;;  %v18654_v45 = vadd.f32 %v3636_v25, %v18623_v8  ;;  %v18657_v35 = vadd.f32 %v3754_v59, %v18623_v8  ;;  %v21151_v57 = vld [vmem:[#allocation91_spill] sm:$0xff] }
 0x459   :  { %21148 = vst [vmem:[#allocation178_spill] sm:$0xff] %v18635_v23  ;;  %v18660_v19 = vadd.f32 %v3872_v62, %v18623_v8  ;;  %v18664_v27 = vmul.f32 %v18573_v49, %v21151_v57  ;;  %v3225_v44 = vmax.f32 %v18642_v39, 0.0  ;;  %v3196_v3 = vmax.f32 %v18645_v29, 0.0 }
 0x45a   :  { %21150 = vst [vmem:[#allocation102_spill] sm:$0xff] %v18639_v38  ;;  %v18669_v4 = vadd.f32 %v3990_v33, %v18623_v8  ;;  %v18673_v25 = vmul.f32 %v18573_v49, %v21153_v1  ;;  %v18675_v59 = vpop.permute.xlu1 %3148  ;;  %v3416_v62 = vmax.f32 %v18648_v30, 0.0  ;;  %v3534_v28 = vmax.f32 %v18651_v20, 0.0 }
 0x45b   :  { %21152 = vst [vmem:[#allocation164_spill] sm:$0xff] %v18664_v27  ;;  %v3215_v29 = vadd.f32 %v18443_v2, %v18675_v59  ;;  %v3186_v33 = vadd.f32 %v18675_v59, %v18449_v17  ;;  %v3406_v1 = vadd.f32 %v18452_v40, %v18675_v59  ;;  %v3524_v39 = vadd.f32 %v18455_v47, %v18675_v59 }
 0x45c   :  { %21154 = vst [vmem:[#allocation109_spill] sm:$0xff] %v18673_v25  ;;  %v3642_v30 = vadd.f32 %v18458_v58, %v18675_v59  ;;  %v3760_v20 = vadd.f32 %v18461_v52, %v18675_v59  ;;  %v3878_v27 = vadd.f32 %v18464_v13, %v18675_v59  ;;  %v3996_v40 = vadd.f32 %v18469_v51, %v18675_v59 }
 0x45d   :  { %v3223_v57 = vmax.f32 %v3215_v29, 0.0  ;;  %v3194_v49 = vmax.f32 %v3186_v33, 0.0  ;;  %v3414_v17 = vmax.f32 %v3406_v1, 0.0  ;;  %v3532_v47 = vmax.f32 %v3524_v39, 0.0 }
 0x45e   :  { %v18698_v25 = vpop.permute.xlu1 %3153  ;;  %v3650_v48 = vmax.f32 %v3642_v30, 0.0  ;;  %v3768_v38 = vmax.f32 %v3760_v20, 0.0  ;;  %v3886_v58 = vmax.f32 %v3878_v27, 0.0 }
 0x45f   :  { %v3216_v0 = vadd.f32 %v3208_v55, %v18698_v25  ;;  %v3187_v52 = vadd.f32 %v18698_v25, %v3139_v56  ;;  %v3407_v13 = vadd.f32 %v3399_v34, %v18698_v25  ;;  %v3525_v2 = vadd.f32 %v3517_v21, %v18698_v25 }
 0x460   :  { %v3643_v29 = vadd.f32 %v3635_v12, %v18698_v25  ;;  %v3761_v33 = vadd.f32 %v3753_v26, %v18698_v25  ;;  %v3879_v51 = vadd.f32 %v3871_v41, %v18698_v25  ;;  %v3997_v1 = vadd.f32 %v3989_v15, %v18698_v25 }
 0x461   :  { %v3224_v39 = vmax.f32 %v3216_v0, 0.0  ;;  %v3195_v30 = vmax.f32 %v3187_v52, 0.0  ;;  %v3415_v20 = vmax.f32 %v3407_v13, 0.0  ;;  %v3533_v27 = vmax.f32 %v3525_v2, 0.0 }
 0x462   :  { %v18708_v22 = vpop.permute.xlu1 %3163  ;;  %v3651_v55 = vmax.f32 %v3643_v29, 0.0  ;;  %v3769_v56 = vmax.f32 %v3761_v33, 0.0  ;;  %v3887_v18 = vmax.f32 %v3879_v51, 0.0  ;;  %v4004_v34 = vmax.f32 %v3996_v40, 0.0 }
 0x463   :  { %21155 = vst [vmem:[#allocation167_spill] sm:$0xff] %v18708_v22  ;;  %v3231_v23 = vpack.c.bf16 %v3224_v39, %v3223_v57  ;;  %v3218_v21 = vadd.f32 %v18543_v46, %v18708_v22  ;;  %v18712_v12 = vpack.c.bf16 %v3195_v30, %v3194_v49  ;;  %v3189_v26 = vadd.f32 %v18708_v22, %v18547_v9 }
 0x464   :  { %v18716_v15 = vpack.c.bf16 %v3415_v20, %v3414_v17  ;;  %v3409_v0 = vadd.f32 %v18551_v61, %v18708_v22  ;;  %v18720_v41 = vpack.c.bf16 %v3533_v27, %v3532_v47  ;;  %v3527_v2 = vadd.f32 %v18555_v24, %v18708_v22 }
 0x465   :  { %14579 = vmatprep.mubr.msk.bf16.mxu0 %vm1865_vm1, %v3231_v23  ;;  %v3226_v57 = vmax.f32 %v3218_v21, 0.0  ;;  %v3197_v40 = vmax.f32 %v3189_v26, 0.0  ;;  %v18725_v46 = vpack.c.bf16 %v3651_v55, %v3650_v48  ;;  %v3645_v49 = vadd.f32 %v18559_v6, %v18708_v22  ;;  %v18737_v23 = vld [vmem:[#allocation5 + $0x2] sm:$0x1] }
 0x466   :  { %21156 = vst [vmem:[#allocation126_spill] sm:$0xff] %v18720_v41  ;;  %v3417_v9 = vmax.f32 %v3409_v0, 0.0  ;;  %v3535_v17 = vmax.f32 %v3527_v2, 0.0  ;;  %v18729_v52 = vpack.c.bf16 %v3769_v56, %v3768_v38  ;;  %v3763_v61 = vadd.f32 %v18563_v14, %v18708_v22 }
 0x467   :  { %21157 = vst [vmem:[#allocation104_spill] sm:$0xff] %v18725_v46  ;;  %v3232_v47 = vpack.c.bf16 %v3226_v57, %v3225_v44  ;;  %v18733_v13 = vpack.c.bf16 %v3197_v40, %v3196_v3  ;;  %v3653_v24 = vmax.f32 %v3645_v49, 0.0  ;;  %v18735_v29 = vpack.c.bf16 %v3887_v18, %v3886_v58 }
 0x468   :  { %21158 = vst [vmem:[#allocation161_spill] sm:$0xff] %v18729_v52  ;;  %v18739_v48 = vpack.c.bf16 %v3417_v9, %v3416_v62  ;;  %v18741_v33 = vpack.c.bf16 %v3535_v17, %v3534_v28  ;;  %v3771_v6 = vmax.f32 %v3763_v61, 0.0  ;;  %v3881_v38 = vadd.f32 %v18567_v50, %v18708_v22 }
 0x469   :  { %21159 = vst [vmem:[#allocation124_spill] sm:$0xff] %v18735_v29  ;;  %14580 = vmatmul.mubr.msk.bf16.vlgmr.msra.gmra.mrb[80].mxu0 %vm1865_vm1, %v3232_v47  ;;  %v21161_v14 = vmax.f32 %v18654_v45, 0.0  ;;  %v4005_v3 = vmax.f32 %v3997_v1, 0.0  ;;  %v3999_v18 = vadd.f32 %v18571_v31, %v18708_v22  ;;  %v4114_v62 = vadd.f32 %v18472_v7, %v18675_v59 }
 0x46a   :  { %21160 = vst [vmem:[#allocation175_spill] sm:$0xff] %v18741_v33  ;;  %14588 = vmatpush3.bf16.msra.mxu0 %v18446_v60  ;;  %v21163_v28 = vmax.f32 %v18657_v35, 0.0  ;;  %v3889_v50 = vmax.f32 %v3881_v38, 0.0  ;;  %v4115_v51 = vadd.f32 %v18621_v11, %v18698_v25  ;;  %v4116_v45 = vadd.f32 %v18515_v37, %v18623_v8  ;;  %v21176_v38 = vld [vmem:[#allocation100_spill] sm:$0xff] }
 0x46b   :  { %v18748_v44 = vpack.c.bf16 %v3653_v24, %v21161_v14  ;;  %15351 = vmatprep.subr.msk.bf16.mxu0 %vm3249_vm2, %v18737_v23  ;;  %v18765_v31 = vpack.c.bf16 %v4005_v3, %v4004_v34  ;;  %v4006_v7 = vmax.f32 %v18669_v4, 0.0  ;;  %v4007_v1 = vmax.f32 %v3999_v18, 0.0 }
 0x46c   :  { %v18757_v58 = vpack.c.bf16 %v3771_v6, %v21163_v28  ;;  %v4117_v60 = vadd.f32 %v18577_v63, %v18708_v22  ;;  %v21166_v35 = vmax.f32 %v18660_v19, 0.0  ;;  %v4122_v30 = vmax.f32 %v4114_v62, 0.0  ;;  %v21175_v6 = vld [vmem:[#allocation158_spill] sm:$0xff] }
 0x46d   :  { %21162 = vst [vmem:[#allocation117_spill] sm:$0xff] %v18748_v44  ;;  %21165 = vst [vmem:[#allocation101_spill] sm:$0xff] %v18765_v31  ;;  %v4123_v11 = vmax.f32 %v4115_v51, 0.0  ;;  %v4232_v37 = vadd.f32 %v18475_v54, %v18675_v59  ;;  %v18776_v20 = vpack.c.bf16 %v4007_v1, %v4006_v7  ;;  %v4124_v27 = vmax.f32 %v4116_v45, 0.0  ;;  %v21179_v28 = vld [vmem:[#allocation102_spill] sm:$0xff]  ;;  %v21180_v7 = vld [vmem:[#allocation159_spill] sm:$0xff] }
 0x46e   :  { %21164 = vst [vmem:[#allocation116_spill] sm:$0xff] %v18757_v58  ;;  %v18772_v39 = vpack.c.bf16 %v3889_v50, %v21166_v35  ;;  %v4125_v55 = vmax.f32 %v4117_v60, 0.0  ;;  %v4233_v4 = vadd.f32 %v18627_v32, %v18698_v25  ;;  %v4234_v63 = vadd.f32 %v18519_v43, %v18623_v8  ;;  %v21181_v60 = vld [vmem:[#allocation157_spill] sm:$0xff] }
 0x46f   :  { %21168 = vst [vmem:[#allocation144_spill] sm:$0xff] %v18776_v20  ;;  %v18780_v56 = vpack.c.bf16 %v4123_v11, %v4122_v30  ;;  %v4240_v34 = vmax.f32 %v4232_v37, 0.0  ;;  %v4235_v19 = vadd.f32 %v18581_v5, %v18708_v22  ;;  %v4350_v54 = vadd.f32 %v18478_v53, %v18675_v59 }
 0x470   :  { %21167 = vst [vmem:[#allocation160_spill] sm:$0xff] %v18772_v39  ;;  %v18786_v21 = vpack.c.bf16 %v4125_v55, %v4124_v27  ;;  %v4241_v26 = vmax.f32 %v4233_v4, 0.0  ;;  %v4351_v0 = vadd.f32 %v18631_v42, %v18698_v25  ;;  %v4242_v2 = vmax.f32 %v4234_v63, 0.0  ;;  %v21173_v42 = vld [vmem:[#allocation178_spill] sm:$0xff]  ;;  %v21183_v27 = vld [vmem:[#allocation179_spill] sm:$0xff] }
 0x471   :  { %21169 = vst [vmem:[#allocation123_spill] sm:$0xff] %v18780_v56  ;;  %v4243_v32 = vmax.f32 %v4235_v19, 0.0  ;;  %v4352_v57 = vadd.f32 %v18523_v16, %v18623_v8  ;;  %v4353_v43 = vadd.f32 %v18585_v36, %v18708_v22  ;;  %v4358_v5 = vmax.f32 %v4350_v54, 0.0  ;;  %v21185_v19 = vld [vmem:[#allocation164_spill] sm:$0xff] }
 0x472   :  { %21170 = vst [vmem:[#allocation137_spill] sm:$0xff] %v18786_v21  ;;  %v18796_v40 = vpack.c.bf16 %v4241_v26, %v4240_v34  ;;  %v4359_v49 = vmax.f32 %v4351_v0, 0.0  ;;  %v4468_v9 = vadd.f32 %v18481_v10, %v18675_v59  ;;  %v4469_v47 = vadd.f32 %v21173_v42, %v18698_v25  ;;  %v21178_v10 = vld [vmem:[#allocation173_spill] sm:$0xff] }
 0x473   :  { %v18800_v17 = vpack.c.bf16 %v4243_v32, %v4242_v2  ;;  %v4360_v53 = vmax.f32 %v4352_v57, 0.0  ;;  %v4361_v61 = vmax.f32 %v4353_v43, 0.0  ;;  %v4470_v36 = vadd.f32 %v21175_v6, %v18623_v8  ;;  %v21187_v2 = vld [vmem:[#allocation154_spill] sm:$0xff]  ;;  %v21188_v57 = vld [vmem:[#allocation177_spill] sm:$0xff] }
 0x474   :  { %21171 = vst [vmem:[#allocation176_spill] sm:$0xff] %v18796_v40  ;;  %v18804_v24 = vpack.c.bf16 %v4359_v49, %v4358_v5  ;;  %v4476_v16 = vmax.f32 %v4468_v9, 0.0  ;;  %v4471_v14 = vadd.f32 %v21176_v38, %v18708_v22  ;;  %v4477_v18 = vmax.f32 %v4469_v47, 0.0  ;;  %v21190_v9 = vld [vmem:[#allocation174_spill] sm:$0xff]  ;;  %v18840_v47 = vld [vmem:[#allocation5 + $0x3] sm:$0x1] }
 0x475   :  { %21172 = vst [vmem:[#allocation145_spill] sm:$0xff] %v18800_v17  ;;  %v18810_v3 = vpack.c.bf16 %v4361_v61, %v4360_v53  ;;  %v4586_v62 = vadd.f32 %v21178_v10, %v18675_v59  ;;  %v4587_v50 = vadd.f32 %v21179_v28, %v18698_v25  ;;  %v4478_v51 = vmax.f32 %v4470_v36, 0.0  ;;  %v21191_v61 = vld [vmem:[#allocation109_spill] sm:$0xff]  ;;  %v21192_v36 = vld [vmem:[#allocation110_spill] sm:$0xff] }
 0x476   :  { %21174 = vst [vmem:[#allocation118_spill] sm:$0xff] %v18804_v24  ;;  %v4479_v45 = vmax.f32 %v4471_v14, 0.0  ;;  %v4588_v1 = vadd.f32 %v21180_v7, %v18623_v8  ;;  %v4589_v35 = vadd.f32 %v21181_v60, %v18708_v22  ;;  %v18820_v30 = vpack.c.bf16 %v4477_v18, %v4476_v16  ;;  %v21193_v14 = vld [vmem:[#allocation115_spill] sm:$0xff]  ;;  %v21197_v60 = vld [vmem:[#allocation172_spill] sm:$0xff] }
 0x477   :  { %21177 = vst [vmem:[#allocation131_spill] sm:$0xff] %v18810_v3  ;;  %v4594_v11 = vmax.f32 %v4586_v62, 0.0  ;;  %v4595_v37 = vmax.f32 %v4587_v50, 0.0  ;;  %v4704_v55 = vadd.f32 %v21183_v27, %v18675_v59  ;;  %v4705_v26 = vadd.f32 %v21185_v19, %v18698_v25  ;;  %v21195_v50 = vld [vmem:[#allocation184_spill] sm:$0xff] }
 0x478   :  { %21182 = vst [vmem:[#allocation129_spill] sm:$0xff] %v18820_v30  ;;  %v18824_v4 = vpack.c.bf16 %v4479_v45, %v4478_v51  ;;  %v4596_v34 = vmax.f32 %v4588_v1, 0.0  ;;  %v4597_v63 = vmax.f32 %v4589_v35, 0.0  ;;  %v4706_v32 = vadd.f32 %v21187_v2, %v18623_v8  ;;  %v21198_v35 = vld [vmem:[#allocation108_spill] sm:$0xff] }
 0x479   :  { %v18828_v54 = vpack.c.bf16 %v4595_v37, %v4594_v11  ;;  %v4712_v0 = vmax.f32 %v4704_v55, 0.0  ;;  %v4707_v43 = vadd.f32 %v21188_v57, %v18708_v22  ;;  %v4713_v49 = vmax.f32 %v4705_v26, 0.0  ;;  %v21201_v26 = vld [vmem:[#allocation170_spill] sm:$0xff] }
 0x47a   :  { %21184 = vst [vmem:[#allocation135_spill] sm:$0xff] %v18824_v4  ;;  %v18834_v5 = vpack.c.bf16 %v4597_v63, %v4596_v34  ;;  %v4822_v53 = vadd.f32 %v21190_v9, %v18675_v59  ;;  %v4823_v42 = vadd.f32 %v21191_v61, %v18698_v25  ;;  %v4714_v16 = vmax.f32 %v4706_v32, 0.0  ;;  %v21204_v57 = vld [vmem:[#allocation30_spill] sm:$0xff]  ;;  %v21228_v4 = vld [vmem:[#allocation32_spill] sm:$0xff] }
 0x47b   :  { %21186 = vst [vmem:[#allocation190_spill] sm:$0xff] %v18828_v54  ;;  %v4715_v6 = vmax.f32 %v4707_v43, 0.0  ;;  %v4824_v38 = vadd.f32 %v21192_v36, %v18623_v8  ;;  %v4825_v18 = vadd.f32 %v21193_v14, %v18708_v22  ;;  %v18846_v10 = vpack.c.bf16 %v4713_v49, %v4712_v0  ;;  %v21202_v0 = vld [vmem:[#allocation168_spill] sm:$0xff]  ;;  %v21205_v49 = vld [vmem:[#allocation62_spill] sm:$0xff] }
 0x47c   :  { %21189 = vst [vmem:[#allocation139_spill] sm:$0xff] %v18834_v5  ;;  %v4830_v62 = vmax.f32 %v4822_v53, 0.0  ;;  %v4831_v28 = vmax.f32 %v4823_v42, 0.0  ;;  %v18850_v51 = vadd.f32 %v21195_v50, %v18675_v59  ;;  %v4933_v11 = vmul.f32 %v21198_v35, %v21197_v60  ;;  %v21206_v53 = vld [vmem:[#allocation77_spill] sm:$0xff]  ;;  %v21213_v60 = vld [vmem:[#allocation66_spill] sm:$0xff] }
 0x47d   :  { %21194 = vst [vmem:[#allocation142_spill] sm:$0xff] %v18846_v10  ;;  %v18852_v45 = vpack.c.bf16 %v4715_v6, %v4714_v16  ;;  %v4832_v7 = vmax.f32 %v4824_v38, 0.0  ;;  %v4833_v1 = vmax.f32 %v4825_v18, 0.0  ;;  %v18858_v37 = vsel %vm3249_vm2, %v18737_v23, 0  ;;  %v21203_v23 = vld [vmem:[#allocation46_spill] sm:$0xff]  ;;  %v21207_v42 = vld [vmem:[#allocation93_spill] sm:$0xff] }
 0x47e   :  { %v18862_v27 = vsel %vm3249_vm2, %v18840_v47, 0  ;;  %v18864_v55 = vpack.c.bf16 %v4831_v28, %v4830_v62  ;;  %v18866_v34 = vpop.permute.xlu1 %3120  ;;  %v18871_v63 = vadd.f32 %v4933_v11, %v18698_v25  ;;  %v18876_v2 = vmul.f32 %v21202_v0, %v21201_v26  ;;  %v21208_v6 = vld [vmem:[#allocation31_spill] sm:$0xff]  ;;  %v21209_v38 = vld [vmem:[#allocation105_spill] sm:$0xff]  ;;  %v21211_v28 = vld [vmem:[#allocation50_spill] sm:$0xff] }
 0x47f   :  { %21196 = vst [vmem:[#allocation148_spill] sm:$0xff] %v18852_v45  ;;  %v18868_v59 = vpack.c.bf16 %v4833_v1, %v4832_v7  ;;  %v3211_v32 = vmul.f32 %v18866_v34, %v21203_v23  ;;  %v3142_v43 = vmul.f32 %v18866_v34, %v21204_v57  ;;  %v3402_v9 = vmul.f32 %v18866_v34, %v21205_v49  ;;  %v21210_v18 = vld [vmem:[#allocation47_spill] sm:$0xff]  ;;  %v21212_v7 = vld [vmem:[#allocation34_spill] sm:$0xff] }
 0x480   :  { %21199 = vst [vmem:[#allocation151_spill] sm:$0xff] %v18864_v55  ;;  %v3520_v61 = vmul.f32 %v18866_v34, %v21206_v53  ;;  %v18886_v25 = vpop.permute.xlu0 %3125  ;;  %v3638_v16 = vmul.f32 %v18866_v34, %v21207_v42  ;;  %v3756_v36 = vmul.f32 %v18866_v34, %v21208_v6  ;;  %v3874_v14 = vmul.f32 %v18866_v34, %v21209_v38  ;;  %v21214_v11 = vld [vmem:[#allocation79_spill] sm:$0xff] }
 0x481   :  { %21200 = vst [vmem:[#allocation38_spill] sm:$0xff] %v18868_v59  ;;  %v3992_v62 = vmul.f32 %v18866_v34, %v21210_v18  ;;  %v3212_v50 = vmul.f32 %v18886_v25, %v21211_v28  ;;  %v3143_v1 = vmul.f32 %v18886_v25, %v21212_v7  ;;  %v3403_v35 = vmul.f32 %v18886_v25, %v21213_v60  ;;  %v21215_v23 = vld [vmem:[#allocation95_spill] sm:$0xff]  ;;  %v21219_v28 = vld [vmem:[#allocation44_spill] sm:$0xff] }
 0x482   :  { %v3521_v26 = vmul.f32 %v18886_v25, %v21214_v11  ;;  %v18904_v0 = vpop.permute.xlu1 %3130  ;;  %v18908_v57 = vmul.f32 %v18886_v25, %v21215_v23  ;;  %v21216_v49 = vld [vmem:[#allocation35_spill] sm:$0xff]  ;;  %v21220_v60 = vld [vmem:[#allocation28_spill] sm:$0xff] }
 0x483   :  { %v18912_v53 = vmul.f32 %v18886_v25, %v21216_v49  ;;  %v21217_v42 = vld [vmem:[#allocation107_spill] sm:$0xff]  ;;  %v3213_v7 = vmul.f32 %v21219_v28, %v18904_v0  ;;  %v3144_v11 = vmul.f32 %v21220_v60, %v18904_v0  ;;  %v21221_v23 = vld [vmem:[#allocation60_spill] sm:$0xff]  ;;  %v21226_v60 = vld [vmem:[#allocation45_spill] sm:$0xff] }
 0x484   :  { %v18916_v6 = vmul.f32 %v18886_v25, %v21217_v42  ;;  %v21218_v38 = vld [vmem:[#allocation51_spill] sm:$0xff]  ;;  %v3404_v19 = vmul.f32 %v21221_v23, %v18904_v0  ;;  %v21222_v49 = vld [vmem:[#allocation76_spill] sm:$0xff]  ;;  %v18930_v55 = vpop.permute.xlu0 %3135  ;;  %v18944_v54 = vmul.f32 %v21226_v60, %v18904_v0  ;;  %v21232_v60 = vld [vmem:[#allocation33_spill] sm:$0xff] }
 0x485   :  { %v18920_v18 = vmul.f32 %v18886_v25, %v21218_v38  ;;  %v3522_v59 = vmul.f32 %v21222_v49, %v18904_v0  ;;  %v21223_v42 = vld [vmem:[#allocation92_spill] sm:$0xff]  ;;  %v21224_v38 = vld [vmem:[#allocation29_spill] sm:$0xff]  ;;  %v21225_v28 = vld [vmem:[#allocation103_spill] sm:$0xff]  ;;  %v3145_v30 = vmul.f32 %v21228_v4, %v18930_v55  ;;  %v18960_v21 = vmul.f32 %v21232_v60, %v18930_v55 }
 0x486   :  { %v3640_v45 = vmul.f32 %v21223_v42, %v18904_v0  ;;  %v18936_v10 = vmul.f32 %v21224_v38, %v18904_v0  ;;  %v18940_v5 = vmul.f32 %v21225_v28, %v18904_v0  ;;  %v21227_v23 = vld [vmem:[#allocation48_spill] sm:$0xff]  ;;  %v21230_v38 = vld [vmem:[#allocation78_spill] sm:$0xff]  ;;  %v18954_v17 = vpop.permute.xlu1 %3168  ;;  %v21234_v4 = vld [vmem:[#allocation49_spill] sm:$0xff] }
 0x487   :  { %v3214_v49 = vmul.f32 %v21227_v23, %v18930_v55  ;;  %v21229_v42 = vld [vmem:[#allocation64_spill] sm:$0xff]  ;;  %v3523_v24 = vmul.f32 %v21230_v38, %v18930_v55  ;;  %v21231_v28 = vld [vmem:[#allocation94_spill] sm:$0xff]  ;;  %v18968_v20 = vmul.f32 %v21234_v4, %v18930_v55  ;;  %v3190_v38 = vadd.f32 %v18954_v17, %v3142_v43 }
 0x488   :  { %v3405_v3 = vmul.f32 %v21229_v42, %v18930_v55  ;;  %v3641_v40 = vmul.f32 %v21231_v28, %v18930_v55  ;;  %v21233_v23 = vld [vmem:[#allocation106_spill] sm:$0xff]  ;;  %v3219_v42 = vadd.f32 %v3211_v32, %v18954_v17  ;;  %v3410_v31 = vadd.f32 %v3402_v9, %v18954_v17  ;;  %v18974_v39 = vpop.permute.xlu0 %3173 }
 0x489   :  { %v18964_v56 = vmul.f32 %v21233_v23, %v18930_v55  ;;  %v3528_v28 = vadd.f32 %v3520_v61, %v18954_v17  ;;  %v3646_v60 = vadd.f32 %v3638_v16, %v18954_v17  ;;  %v18978_v29 = vadd.f32 %v3756_v36, %v18954_v17 }
 0x48a   :  { %v18981_v23 = vadd.f32 %v3874_v14, %v18954_v17  ;;  %v18984_v4 = vadd.f32 %v3992_v62, %v18954_v17  ;;  %v3220_v32 = vadd.f32 %v3212_v50, %v18974_v39  ;;  %v3227_v43 = vmax.f32 %v3219_v42, 0.0  ;;  %v18988_v61 = vpop.permute.xlu1 %3178 }
 0x48b   :  { %v3191_v9 = vadd.f32 %v18974_v39, %v3143_v1  ;;  %v3198_v58 = vmax.f32 %v3190_v38, 0.0  ;;  %v3411_v52 = vadd.f32 %v3403_v35, %v18974_v39  ;;  %v3418_v16 = vmax.f32 %v3410_v31, 0.0 }
 0x48c   :  { %v3529_v36 = vadd.f32 %v3521_v26, %v18974_v39  ;;  %v3536_v44 = vmax.f32 %v3528_v28, 0.0  ;;  %v3228_v46 = vmax.f32 %v3220_v32, 0.0  ;;  %v3221_v14 = vadd.f32 %v3213_v7, %v18988_v61  ;;  %v18994_v41 = vpop.permute.xlu0 %3183 }
 0x48d   :  { %v3199_v33 = vmax.f32 %v3191_v9, 0.0  ;;  %v3192_v62 = vadd.f32 %v18988_v61, %v3144_v11  ;;  %v3419_v50 = vmax.f32 %v3411_v52, 0.0  ;;  %v3412_v1 = vadd.f32 %v3404_v19, %v18988_v61 }
 0x48e   :  { %v3537_v42 = vmax.f32 %v3529_v36, 0.0  ;;  %v3530_v38 = vadd.f32 %v3522_v59, %v18988_v61  ;;  %v3233_v22 = vpack.c.bf16 %v3228_v46, %v3227_v43  ;;  %v3222_v31 = vadd.f32 %v3214_v49, %v18994_v41 }
 0x48f   :  { %v3229_v35 = vmax.f32 %v3221_v14, 0.0  ;;  %v3204_v26 = vpack.c.bf16 %v3199_v33, %v3198_v58  ;;  %v3193_v28 = vadd.f32 %v18994_v41, %v3145_v30  ;;  %v3200_v32 = vmax.f32 %v3192_v62, 0.0 }
 0x490   :  { %v19000_v7 = vpack.c.bf16 %v3419_v50, %v3418_v16  ;;  %v3413_v11 = vadd.f32 %v3405_v3, %v18994_v41  ;;  %14583 = vmatprep.mubr.msk.bf16.mxu0 %vm1865_vm1, %v3233_v22  ;;  %v3230_v52 = vmax.f32 %v3222_v31, 0.0  ;;  %v3420_v9 = vmax.f32 %v3412_v1, 0.0 }
 0x491   :  { %v19004_v19 = vpack.c.bf16 %v3537_v42, %v3536_v44  ;;  %v3531_v59 = vadd.f32 %v3523_v24, %v18994_v41  ;;  %v3201_v46 = vmax.f32 %v3193_v28, 0.0  ;;  %v3538_v49 = vmax.f32 %v3530_v38, 0.0 }
 0x492   :  { %v3421_v43 = vmax.f32 %v3413_v11, 0.0  ;;  %v3647_v33 = vadd.f32 %v18908_v57, %v18974_v39  ;;  %v3234_v58 = vpack.c.bf16 %v3230_v52, %v3229_v35  ;;  %v3654_v16 = vmax.f32 %v3646_v60, 0.0 }
 0x493   :  { %v3539_v30 = vmax.f32 %v3531_v59, 0.0  ;;  %v3648_v36 = vadd.f32 %v3640_v45, %v18988_v61  ;;  %v19010_v3 = vpack.c.bf16 %v3201_v46, %v3200_v32  ;;  %v3649_v44 = vadd.f32 %v3641_v40, %v18994_v41  ;;  %v21235_v46 = vld [vmem:[#allocation120_spill] sm:$0xff] }
 0x494   :  { %v19012_v22 = vpack.c.bf16 %v3421_v43, %v3420_v9  ;;  %v3655_v14 = vmax.f32 %v3647_v33, 0.0  ;;  %14584 = vmatmul.mubr.msk.bf16.gmra.mrb[84].mxu0 %vm1865_vm1, %v3234_v58  ;;  %v3765_v57 = vadd.f32 %v18912_v53, %v18974_v39  ;;  %v3772_v50 = vmax.f32 %v18978_v29, 0.0  ;;  %v21236_v33 = vld [vmem:[#allocation122_spill] sm:$0xff] }
 0x495   :  { %v19016_v24 = vpack.c.bf16 %v3539_v30, %v3538_v49  ;;  %v3656_v62 = vmax.f32 %v3648_v36, 0.0  ;;  %14589 = vmatprep.mubr.msk.bf16.mxu0 %vm1865_vm1, %v18712_v12  ;;  %v3657_v60 = vmax.f32 %v3649_v44, 0.0  ;;  %v3766_v1 = vadd.f32 %v18936_v10, %v18988_v61  ;;  %v21237_v30 = vld [vmem:[#allocation185_spill] sm:$0xff] }
 0x496   :  { %v19023_v45 = vpack.c.bf16 %v3655_v14, %v3654_v16  ;;  %v3767_v40 = vadd.f32 %v18960_v21, %v18994_v41  ;;  %v3773_v42 = vmax.f32 %v3765_v57, 0.0  ;;  %v3883_v38 = vadd.f32 %v18916_v6, %v18974_v39  ;;  %v21239_v14 = vld [vmem:[#allocation119_spill] sm:$0xff]  ;;  %v21240_v57 = vld [vmem:[#allocation121_spill] sm:$0xff] }
 0x497   :  { %v3890_v53 = vmax.f32 %v18981_v23, 0.0  ;;  %v3884_v29 = vadd.f32 %v18940_v5, %v18988_v61  ;;  %v19034_v31 = vpack.c.bf16 %v3657_v60, %v3656_v62  ;;  %v3774_v12 = vmax.f32 %v3766_v1, 0.0  ;;  %v21241_v60 = vld [vmem:[#allocation63_spill] sm:$0xff] }
 0x498   :  { %v3775_v35 = vmax.f32 %v3767_v40, 0.0  ;;  %v3885_v28 = vadd.f32 %v18964_v56, %v18994_v41  ;;  %v19038_v10 = vpack.c.bf16 %v3773_v42, %v3772_v50  ;;  %v3891_v32 = vmax.f32 %v3883_v38, 0.0 }
 0x499   :  { %v3892_v21 = vmax.f32 %v3884_v29, 0.0  ;;  %v4001_v11 = vadd.f32 %v18920_v18, %v18974_v39  ;;  %v4008_v52 = vmax.f32 %v18984_v4, 0.0  ;;  %v4002_v5 = vadd.f32 %v18944_v54, %v18988_v61  ;;  %v21238_v4 = vld [vmem:[#allocation171_spill] sm:$0xff] }
 0x49a   :  { %v19042_v6 = vpack.c.bf16 %v3775_v35, %v3774_v12  ;;  %v3893_v23 = vmax.f32 %v3885_v28, 0.0  ;;  %v19047_v9 = vpack.c.bf16 %v3891_v32, %v3890_v53  ;;  %v4003_v56 = vadd.f32 %v18968_v20, %v18994_v41  ;;  %v21243_v32 = vld [vmem:[#allocation61_spill] sm:$0xff] }
 0x49b   :  { %v4009_v59 = vmax.f32 %v4001_v11, 0.0  ;;  %v4110_v43 = vmul.f32 %v18866_v34, %v21235_v46  ;;  %v4010_v18 = vmax.f32 %v4002_v5, 0.0  ;;  %v4111_v58 = vmul.f32 %v18886_v25, %v21236_v33  ;;  %v21244_v11 = vld [vmem:[#allocation65_spill] sm:$0xff] }
 0x49c   :  { %v19053_v49 = vpack.c.bf16 %v3893_v23, %v3892_v21  ;;  %v19059_v16 = vmul.f32 %v21238_v4, %v21237_v30  ;;  %14590 = vmatmul.mubr.msk.bf16.vlgmr.msra.gmra.mrb[80].mxu0 %vm1865_vm1, %v18733_v13  ;;  %v4011_v36 = vmax.f32 %v4003_v56, 0.0  ;;  %v4112_v44 = vmul.f32 %v21239_v14, %v18904_v0  ;;  %v21247_v4 = vld [vmem:[#allocation132_spill] sm:$0xff] }
 0x49d   :  { %v19063_v54 = vpack.c.bf16 %v4009_v59, %v4008_v52  ;;  %v4118_v20 = vadd.f32 %v4110_v43, %v18954_v17  ;;  %14593 = vmatprep.mubr.msk.bf16.mxu0 %vm1865_vm1, %v3204_v26  ;;  %14598 = vmatpush3.bf16.msra.mxu0 %v18858_v37  ;;  %v4119_v62 = vadd.f32 %v4111_v58, %v18974_v39  ;;  %v4949_v1 = vmax.f32 %v18871_v63, 0.0  ;;  %v21242_v26 = vld [vmem:[#allocation67_spill] sm:$0xff] }
 0x49e   :  { %v4113_v50 = vmul.f32 %v21240_v57, %v18930_v55  ;;  %v4228_v13 = vmul.f32 %v18866_v34, %v21241_v60  ;;  %15352 = vmatprep.subr.msk.bf16.mxu0 %vm3249_vm2, %v18840_v47  ;;  %v19078_v40 = vpack.c.bf16 %v4011_v36, %v4010_v18  ;;  %v4120_v42 = vadd.f32 %v4112_v44, %v18988_v61  ;;  %v21246_v18 = vld [vmem:[#allocation136_spill] sm:$0xff] }
 0x49f   :  { %v4229_v37 = vmul.f32 %v18886_v25, %v21242_v26  ;;  %v19085_v38 = vadd.f32 %v18876_v2, %v18623_v8  ;;  %v4126_v53 = vmax.f32 %v4118_v20, 0.0  ;;  %v4127_v29 = vmax.f32 %v4119_v62, 0.0  ;;  %v21245_v2 = vld [vmem:[#allocation133_spill] sm:$0xff]  ;;  %v21248_v20 = vld [vmem:[#allocation134_spill] sm:$0xff] }
 0x4a0   :  { %v4121_v12 = vadd.f32 %v4113_v50, %v18994_v41  ;;  %v4236_v35 = vadd.f32 %v4228_v13, %v18954_v17  ;;  %v4128_v28 = vmax.f32 %v4120_v42, 0.0  ;;  %v4230_v21 = vmul.f32 %v21243_v32, %v18904_v0  ;;  %v21249_v26 = vld [vmem:[#allocation81_spill] sm:$0xff] }
 0x4a1   :  { %v4237_v47 = vadd.f32 %v4229_v37, %v18974_v39  ;;  %v4231_v23 = vmul.f32 %v21244_v11, %v18930_v55  ;;  %v19094_v52 = vpack.c.bf16 %v4127_v29, %v4126_v53  ;;  %v4346_v59 = vmul.f32 %v18866_v34, %v21245_v2  ;;  %v21250_v29 = vld [vmem:[#allocation85_spill] sm:$0xff]  ;;  %v21253_v2 = vld [vmem:[#allocation147_spill] sm:$0xff] }
 0x4a2   :  { %v4129_v5 = vmax.f32 %v4121_v12, 0.0  ;;  %v4244_v8 = vmax.f32 %v4236_v35, 0.0  ;;  %v4238_v46 = vadd.f32 %v4230_v21, %v18988_v61  ;;  %v4347_v33 = vmul.f32 %v18886_v25, %v21246_v18  ;;  %v21251_v35 = vld [vmem:[#allocation80_spill] sm:$0xff]  ;;  %v21252_v21 = vld [vmem:[#allocation83_spill] sm:$0xff]  ;;  %v21254_v18 = vld [vmem:[#allocation150_spill] sm:$0xff] }
 0x4a3   :  { %v4245_v56 = vmax.f32 %v4237_v47, 0.0  ;;  %v4239_v43 = vadd.f32 %v4231_v23, %v18994_v41  ;;  %v4354_v30 = vadd.f32 %v4346_v59, %v18954_v17  ;;  %v4348_v36 = vmul.f32 %v21247_v4, %v18904_v0 }
 0x4a4   :  { %v19102_v58 = vpack.c.bf16 %v4129_v5, %v4128_v28  ;;  %v4349_v14 = vmul.f32 %v21248_v20, %v18930_v55  ;;  %14594 = vmatmul.mubr.msk.bf16.gmra.mrb[84].mxu0 %vm1865_vm1, %v19010_v3  ;;  %v4246_v62 = vmax.f32 %v4238_v46, 0.0  ;;  %v4355_v50 = vadd.f32 %v4347_v33, %v18974_v39  ;;  %v21255_v20 = vld [vmem:[#allocation146_spill] sm:$0xff] }
 0x4a5   :  { %v19111_v44 = vpack.c.bf16 %v4245_v56, %v4244_v8  ;;  %v4247_v57 = vmax.f32 %v4239_v43, 0.0  ;;  %14599 = vmatprep.mubr.msk.bf16.mxu0 %vm1865_vm1, %v18716_v15  ;;  %v4362_v60 = vmax.f32 %v4354_v30, 0.0  ;;  %v4356_v13 = vadd.f32 %v4348_v36, %v18988_v61 }
 0x4a6   :  { %v4357_v42 = vadd.f32 %v4349_v14, %v18994_v41  ;;  %v4464_v37 = vmul.f32 %v18866_v34, %v21249_v26  ;;  %v4363_v3 = vmax.f32 %v4355_v50, 0.0  ;;  %v4465_v12 = vmul.f32 %v18886_v25, %v21250_v29 }
 0x4a7   :  { %v19120_v53 = vpack.c.bf16 %v4247_v57, %v4246_v62  ;;  %v4466_v28 = vmul.f32 %v21251_v35, %v18904_v0  ;;  %v4364_v47 = vmax.f32 %v4356_v13, 0.0  ;;  %v4467_v11 = vmul.f32 %v21252_v21, %v18930_v55  ;;  %v19143_v62 = vld [vmem:[#allocation5 + $0x4] sm:$0x1] }
 0x4a8   :  { %v4365_v32 = vmax.f32 %v4357_v42, 0.0  ;;  %v4472_v15 = vadd.f32 %v4464_v37, %v18954_v17  ;;  %v19129_v23 = vpack.c.bf16 %v4363_v3, %v4362_v60  ;;  %v4473_v5 = vadd.f32 %v4465_v12, %v18974_v39  ;;  %v21256_v60 = vld [vmem:[#allocation149_spill] sm:$0xff]  ;;  %v21257_v42 = vld [vmem:[#allocation163_spill] sm:$0xff]  ;;  %v21258_v12 = vld [vmem:[#allocation166_spill] sm:$0xff] }
 0x4a9   :  { %v4474_v8 = vadd.f32 %v4466_v28, %v18988_v61  ;;  %v4582_v59 = vmul.f32 %v18866_v34, %v21253_v2  ;;  %v4475_v43 = vadd.f32 %v4467_v11, %v18994_v41  ;;  %v4583_v33 = vmul.f32 %v18886_v25, %v21254_v18  ;;  %v21259_v11 = vld [vmem:[#allocation162_spill] sm:$0xff] }
 0x4aa   :  { %v19135_v56 = vpack.c.bf16 %v4365_v32, %v4364_v47  ;;  %v4480_v46 = vmax.f32 %v4472_v15, 0.0  ;;  %v4481_v30 = vmax.f32 %v4473_v5, 0.0  ;;  %v4584_v14 = vmul.f32 %v21255_v20, %v18904_v0 }
 0x4ab   :  { %v4482_v4 = vmax.f32 %v4474_v8, 0.0  ;;  %v4590_v36 = vadd.f32 %v4582_v59, %v18954_v17  ;;  %v4483_v57 = vmax.f32 %v4475_v43, 0.0  ;;  %v4591_v50 = vadd.f32 %v4583_v33, %v18974_v39  ;;  %v21260_v59 = vld [vmem:[#allocation165_spill] sm:$0xff] }
 0x4ac   :  { %v4585_v13 = vmul.f32 %v21256_v60, %v18930_v55  ;;  %v4700_v26 = vmul.f32 %v18866_v34, %v21257_v42  ;;  %14600 = vmatmul.mubr.msk.bf16.vlgmr.msra.gmra.mrb[80].mxu0 %vm1865_vm1, %v18739_v48  ;;  %v19152_v37 = vpack.c.bf16 %v4481_v30, %v4480_v46  ;;  %v4592_v29 = vadd.f32 %v4584_v14, %v18988_v61  ;;  %v21261_v33 = vld [vmem:[#allocation181_spill] sm:$0xff]  ;;  %v21263_v14 = vld [vmem:[#allocation180_spill] sm:$0xff] }
 0x4ad   :  { %v4598_v3 = vmax.f32 %v4590_v36, 0.0  ;;  %v4701_v35 = vmul.f32 %v18886_v25, %v21258_v12  ;;  %14603 = vmatprep.mubr.msk.bf16.mxu0 %vm1865_vm1, %v19000_v7  ;;  %14608 = vmatpush3.bf16.msra.mxu0 %v18862_v27  ;;  %v19160_v28 = vpack.c.bf16 %v4483_v57, %v4482_v4  ;;  %v4599_v47 = vmax.f32 %v4591_v50, 0.0  ;;  %v21262_v4 = vld [vmem:[#allocation183_spill] sm:$0xff]  ;;  %v21264_v50 = vld [vmem:[#allocation182_spill] sm:$0xff] }
 0x4ae   :  { %v4593_v32 = vadd.f32 %v4585_v13, %v18994_v41  ;;  %v4708_v48 = vadd.f32 %v4700_v26, %v18954_v17  ;;  %15353 = vmatprep.subr.msk.bf16.mxu0 %vm3249_vm2, %v19143_v62  ;;  %v4600_v15 = vmax.f32 %v4592_v29, 0.0  ;;  %v4702_v5 = vmul.f32 %v21259_v11, %v18904_v0 }
 0x4af   :  { %v4709_v21 = vadd.f32 %v4701_v35, %v18974_v39  ;;  %v4950_v7 = vmax.f32 %v19085_v38, 0.0  ;;  %v19170_v8 = vpack.c.bf16 %v4599_v47, %v4598_v3  ;;  %v4703_v46 = vmul.f32 %v21260_v59, %v18930_v55 }
 0x4b0   :  { %v4601_v27 = vmax.f32 %v4593_v32, 0.0  ;;  %v4716_v2 = vmax.f32 %v4708_v48, 0.0  ;;  %v4710_v18 = vadd.f32 %v4702_v5, %v18988_v61  ;;  %v4818_v30 = vmul.f32 %v18866_v34, %v21261_v33  ;;  %v21267_v5 = vld [vmem:[#allocation187_spill] sm:$0xff] }
 0x4b1   :  { %v4717_v43 = vmax.f32 %v4709_v21, 0.0  ;;  %v4819_v36 = vmul.f32 %v18886_v25, %v21262_v4  ;;  %v4711_v38 = vadd.f32 %v4703_v46, %v18994_v41  ;;  %v4820_v57 = vmul.f32 %v21263_v14, %v18904_v0  ;;  %v21266_v21 = vld [vmem:[#allocation167_spill] sm:$0xff]  ;;  %v21271_v4 = vld [vmem:[#allocation188_spill] sm:$0xff] }
 0x4b2   :  { %v19179_v20 = vpack.c.bf16 %v4601_v27, %v4600_v15  ;;  %v4821_v60 = vmul.f32 %v21264_v50, %v18930_v55  ;;  %v4718_v42 = vmax.f32 %v4710_v18, 0.0  ;;  %v4826_v26 = vadd.f32 %v4818_v30, %v18954_v17 }
 0x4b3   :  { %v19186_v13 = vpack.c.bf16 %v4717_v43, %v4716_v2  ;;  %v4827_v3 = vadd.f32 %v4819_v36, %v18974_v39  ;;  %v4719_v29 = vmax.f32 %v4711_v38, 0.0  ;;  %v4828_v12 = vadd.f32 %v4820_v57, %v18988_v61  ;;  %v21268_v2 = vld [vmem:[#allocation126_spill] sm:$0xff] }
 0x4b4   :  { %v4829_v35 = vadd.f32 %v4821_v60, %v18994_v41  ;;  %v21265_v47 = vmax.f32 %v18850_v51, 0.0  ;;  %14604 = vmatmul.mubr.msk.bf16.gmra.mrb[84].mxu0 %vm1865_vm1, %v19012_v22  ;;  %v4834_v48 = vmax.f32 %v4826_v26, 0.0  ;;  %v4943_v11 = vadd.f32 %v19059_v16, %v21266_v21  ;;  %v21270_v16 = vld [vmem:[#allocation186_spill] sm:$0xff]  ;;  %v21282_v21 = vld [vmem:[#allocation137_spill] sm:$0xff] }
 0x4b5   :  { %v4835_v15 = vmax.f32 %v4827_v3, 0.0  ;;  %v4936_v27 = vmul.f32 %v18866_v34, %v21267_v5  ;;  %14609 = vmatprep.mubr.msk.bf16.mxu0 %vm1865_vm1, %v21268_v2  ;;  %v19206_v59 = vpack.c.bf16 %v4719_v29, %v4718_v42  ;;  %v4836_v51 = vmax.f32 %v4828_v12, 0.0  ;;  %v3781_v60 = vld [vmem:[#allocation5 + $0x5] sm:$0x1]  ;;  %v4017_v3 = vld [vmem:[#allocation5 + $0x7] sm:$0x1] }
 0x4b6   :  { %v19196_v32 = vpack.c.bf16 %v4949_v1, %v21265_v47  ;;  %v4837_v63 = vmax.f32 %v4829_v35, 0.0  ;;  %v21269_v1 = vld [vmem:[#allocation189_spill] sm:$0xff]  ;;  %v4951_v22 = vmax.f32 %v4943_v11, 0.0  ;;  %v4938_v33 = vmul.f32 %v21270_v16, %v18904_v0  ;;  %v21276_v29 = vld [vmem:[#allocation116_spill] sm:$0xff]  ;;  %v4135_v12 = vld [vmem:[#allocation5 + $0x8] sm:$0x1] }
 0x4b7   :  { %v4937_v46 = vmul.f32 %v18886_v25, %v21269_v1  ;;  %v19210_v43 = vpack.c.bf16 %v4835_v15, %v4834_v48  ;;  %v4944_v18 = vadd.f32 %v4936_v27, %v18954_v17  ;;  %v4939_v36 = vmul.f32 %v21271_v4, %v18930_v55  ;;  %v21278_v35 = vld [vmem:[#allocation160_spill] sm:$0xff]  ;;  %v4253_v47 = vld [vmem:[#allocation5 + $0x9] sm:$0x1]  ;;  %v4371_v15 = vld [vmem:[#allocation5 + $0xa] sm:$0x1] }
 0x4b8   :  { %v19215_v30 = vpack.c.bf16 %v4837_v63, %v4836_v51  ;;  %v19220_v38 = vpack.c.bf16 %v4951_v22, %v4950_v7  ;;  %v4946_v14 = vadd.f32 %v4938_v33, %v18988_v61  ;;  %v3677_v17 = vsel %vm3249_vm2, %v19143_v62, 0  ;;  %v3899_v62 = vld [vmem:[#allocation5 + $0x6] sm:$0x1]  ;;  %v21274_v7 = vld [vmem:[#allocation117_spill] sm:$0xff]  ;;  %v21280_v48 = vld [vmem:[#allocation144_spill] sm:$0xff] }
 0x4b9   :  { %v4945_v34 = vadd.f32 %v4937_v46, %v18974_v39  ;;  %v4952_v25 = vmax.f32 %v4944_v18, 0.0  ;;  %v4947_v50 = vadd.f32 %v4939_v36, %v18994_v41  ;;  %v21272_v39 = vld [vmem:[#allocation175_spill] sm:$0xff]  ;;  %v21273_v41 = vld [vmem:[#allocation104_spill] sm:$0xff]  ;;  %v3795_v61 = vsel %vm3249_vm2, %v3781_v60, 0  ;;  %v4489_v11 = vld [vmem:[#allocation5 + $0xb] sm:$0x1] }
 0x4ba   :  { %v4954_v42 = vmax.f32 %v4946_v14, 0.0  ;;  %v21284_v5 = vld [vmem:[#allocation145_spill] sm:$0xff]  ;;  %v4607_v27 = vld [vmem:[#allocation5 + $0xc] sm:$0x1]  ;;  %v4725_v51 = vld [vmem:[#allocation5 + $0xd] sm:$0x1] }
 0x4bb   :  { %v4953_v57 = vmax.f32 %v4945_v34, 0.0  ;;  %v4955_v26 = vmax.f32 %v4947_v50, 0.0  ;;  %v21286_v2 = vld [vmem:[#allocation131_spill] sm:$0xff]  ;;  %v21292_v18 = vld [vmem:[#allocation148_spill] sm:$0xff]  ;;  %v21294_v16 = vld [vmem:[#allocation38_spill] sm:$0xff] }
 0x4bc   :  { %14610 = vmatmul.mubr.msk.bf16.vlgmr.msra.gmra.mrb[80].mxu0 %vm1865_vm1, %v21272_v39  ;;  %v21288_v63 = vld [vmem:[#allocation135_spill] sm:$0xff] }
 0x4bd   :  { %v19226_v0 = vpack.c.bf16 %v4953_v57, %v4952_v25  ;;  %14613 = vmatprep.mubr.msk.bf16.mxu0 %vm1865_vm1, %v19004_v19  ;;  %14618 = vmatpush3.bf16.msra.mxu0 %v3677_v17  ;;  %v19232_v55 = vpack.c.bf16 %v4955_v26, %v4954_v42  ;;  %v21275_v19 = vld [vmem:[#allocation161_spill] sm:$0xff]  ;;  %v4843_v1 = vld [vmem:[#allocation5 + $0xe] sm:$0x1]  ;;  %v4961_v22 = vld [vmem:[#allocation5 + $0xf] sm:$0x1] }
 0x4be   :  { %15354 = vmatprep.subr.msk.bf16.mxu0 %vm3249_vm2, %v3781_v60  ;;  %v21290_v46 = vld [vmem:[#allocation139_spill] sm:$0xff] }
 0x4bf   :  { %v15467_v60 = vld [vmem:[#allocation7 + $0x20] sm:$0xff]  }
 0x4c0   :  { %14745 = vmatprep.mubr.msk.bf16.mxu1 %vm5103_vm4, %v15467_v60  ;;  %v15494_v60 = vld [vmem:[#allocation7 + $0xd8] sm:$0xff]  }
 0x4c4   :  { %14614 = vmatmul.mubr.msk.bf16.gmra.mrb[84].mxu0 %vm1865_vm1, %v19016_v24  ;;  %v3913_v24 = vsel %vm3249_vm2, %v3899_v62, 0 }
 0x4c5   :  { %14619 = vmatprep.mubr.msk.bf16.mxu0 %vm1865_vm1, %v21273_v41 }
 0x4cc   :  { %14620 = vmatmul.mubr.msk.bf16.vlgmr.msra.gmra.mrb[80].mxu0 %vm1865_vm1, %v21274_v7  ;;  %v15469_v7 = vld [vmem:[#allocation7] sm:$0xff]  }
 0x4cd   :  { %14623 = vmatprep.mubr.msk.bf16.mxu0 %vm1865_vm1, %v19023_v45  ;;  %14628 = vmatpush3.bf16.msra.mxu0 %v3795_v61  ;;  %v21277_v45 = vld [vmem:[#allocation124_spill] sm:$0xff] }
 0x4ce   :  { %15355 = vmatprep.subr.msk.bf16.mxu0 %vm3249_vm2, %v3899_v62  ;;  %v15468_v61 = vld [vmem:[#allocation7 + $0x28] sm:$0xff]  }
 0x4d4   :  { %14624 = vmatmul.mubr.msk.bf16.gmra.mrb[84].mxu0 %vm1865_vm1, %v19034_v31  ;;  %v4031_v31 = vsel %vm3249_vm2, %v4017_v3, 0 }
 0x4d5   :  { %14629 = vmatprep.mubr.msk.bf16.mxu0 %vm1865_vm1, %v21275_v19 }
 0x4dc   :  { %14630 = vmatmul.mubr.msk.bf16.vlgmr.msra.gmra.mrb[80].mxu0 %vm1865_vm1, %v21276_v29  ;;  %v15470_v29 = vld [vmem:[#allocation7 + $0x8] sm:$0xff]  }
 0x4dd   :  { %14633 = vmatprep.mubr.msk.bf16.mxu0 %vm1865_vm1, %v19038_v10  ;;  %14638 = vmatpush3.bf16.msra.mxu0 %v3913_v24  ;;  %v21279_v10 = vld [vmem:[#allocation101_spill] sm:$0xff] }
 0x4de   :  { %15356 = vmatprep.subr.msk.bf16.mxu0 %vm3249_vm2, %v4017_v3 }
 0x4e4   :  { %14634 = vmatmul.mubr.msk.bf16.gmra.mrb[84].mxu0 %vm1865_vm1, %v19042_v6  ;;  %v4149_v6 = vsel %vm3249_vm2, %v4135_v12, 0 }
 0x4e5   :  { %14639 = vmatprep.mubr.msk.bf16.mxu0 %vm1865_vm1, %v21277_v45 }
 0x4ec   :  { %14640 = vmatmul.mubr.msk.bf16.vlgmr.msra.gmra.mrb[80].mxu0 %vm1865_vm1, %v21278_v35 }
 0x4ed   :  { %14643 = vmatprep.mubr.msk.bf16.mxu0 %vm1865_vm1, %v19047_v9  ;;  %14648 = vmatpush3.bf16.msra.mxu0 %v4031_v31  ;;  %v21281_v9 = vld [vmem:[#allocation123_spill] sm:$0xff]  ;;  %v15471_v31 = vld [vmem:[#allocation7 + $0x30] sm:$0xff]  }
 0x4ee   :  { %15357 = vmatprep.subr.msk.bf16.mxu0 %vm3249_vm2, %v4135_v12 }
 0x4f4   :  { %14644 = vmatmul.mubr.msk.bf16.gmra.mrb[84].mxu0 %vm1865_vm1, %v19053_v49  ;;  %v4267_v49 = vsel %vm3249_vm2, %v4253_v47, 0 }
 0x4f5   :  { %14649 = vmatprep.mubr.msk.bf16.mxu0 %vm1865_vm1, %v21279_v10 }
 0x4fc   :  { %14650 = vmatmul.mubr.msk.bf16.vlgmr.msra.gmra.mrb[80].mxu0 %vm1865_vm1, %v21280_v48  ;;  %v15474_v48 = vld [vmem:[#allocation7 + $0x18] sm:$0xff]  }
 0x4fd   :  { %14653 = vmatprep.mubr.msk.bf16.mxu0 %vm1865_vm1, %v19063_v54  ;;  %14658 = vmatpush3.bf16.msra.mxu0 %v4149_v6  ;;  %v21283_v54 = vld [vmem:[#allocation176_spill] sm:$0xff]  ;;  %v15472_v6 = vld [vmem:[#allocation7 + $0x38] sm:$0xff]  }
 0x4fe   :  { %15358 = vmatprep.subr.msk.bf16.mxu0 %vm3249_vm2, %v4253_v47  ;;  %v15473_v47 = vld [vmem:[#allocation7 + $0x10] sm:$0xff]  }
 0x504   :  { %14654 = vmatmul.mubr.msk.bf16.gmra.mrb[84].mxu0 %vm1865_vm1, %v19078_v40  ;;  %v4385_v40 = vsel %vm3249_vm2, %v4371_v15, 0 }
 0x505   :  { %14659 = vmatprep.mubr.msk.bf16.mxu0 %vm1865_vm1, %v21281_v9 }
 0x50c   :  { %14660 = vmatmul.mubr.msk.bf16.vlgmr.msra.gmra.mrb[80].mxu0 %vm1865_vm1, %v21282_v21 }
 0x50d   :  { %14663 = vmatprep.mubr.msk.bf16.mxu0 %vm1865_vm1, %v19094_v52  ;;  %14668 = vmatpush3.bf16.msra.mxu0 %v4267_v49  ;;  %v21285_v52 = vld [vmem:[#allocation118_spill] sm:$0xff]  ;;  %v15475_v49 = vld [vmem:[#allocation7 + $0x60] sm:$0xff]  }
 0x50e   :  { %15359 = vmatprep.subr.msk.bf16.mxu0 %vm3249_vm2, %v4371_v15 }
 0x514   :  { %14664 = vmatmul.mubr.msk.bf16.gmra.mrb[84].mxu0 %vm1865_vm1, %v19102_v58  ;;  %v4503_v58 = vsel %vm3249_vm2, %v4489_v11, 0 }
 0x515   :  { %14669 = vmatprep.mubr.msk.bf16.mxu0 %vm1865_vm1, %v21283_v54 }
 0x51c   :  { %14670 = vmatmul.mubr.msk.bf16.vlgmr.msra.gmra.mrb[80].mxu0 %vm1865_vm1, %v21284_v5  ;;  %v15477_v5 = vld [vmem:[#allocation7 + $0x40] sm:$0xff]  }
 0x51d   :  { %14673 = vmatprep.mubr.msk.bf16.mxu0 %vm1865_vm1, %v19111_v44  ;;  %14678 = vmatpush3.bf16.msra.mxu0 %v4385_v40  ;;  %v21287_v44 = vld [vmem:[#allocation129_spill] sm:$0xff] }
 0x51e   :  { %15360 = vmatprep.subr.msk.bf16.mxu0 %vm3249_vm2, %v4489_v11  ;;  %v15476_v40 = vld [vmem:[#allocation7 + $0x68] sm:$0xff]  }
 0x524   :  { %14674 = vmatmul.mubr.msk.bf16.gmra.mrb[84].mxu0 %vm1865_vm1, %v19120_v53  ;;  %v4621_v53 = vsel %vm3249_vm2, %v4607_v27, 0 }
 0x525   :  { %14679 = vmatprep.mubr.msk.bf16.mxu0 %vm1865_vm1, %v21285_v52 }
 0x52c   :  { %14680 = vmatmul.mubr.msk.bf16.vlgmr.msra.gmra.mrb[80].mxu0 %vm1865_vm1, %v21286_v2  ;;  %v15478_v2 = vld [vmem:[#allocation7 + $0x48] sm:$0xff]  }
 0x52d   :  { %14683 = vmatprep.mubr.msk.bf16.mxu0 %vm1865_vm1, %v19129_v23  ;;  %14688 = vmatpush3.bf16.msra.mxu0 %v4503_v58  ;;  %v21289_v23 = vld [vmem:[#allocation190_spill] sm:$0xff] }
 0x52e   :  { %15361 = vmatprep.subr.msk.bf16.mxu0 %vm3249_vm2, %v4607_v27 }
 0x534   :  { %14684 = vmatmul.mubr.msk.bf16.gmra.mrb[84].mxu0 %vm1865_vm1, %v19135_v56  ;;  %v4739_v56 = vsel %vm3249_vm2, %v4725_v51, 0 }
 0x535   :  { %14689 = vmatprep.mubr.msk.bf16.mxu0 %vm1865_vm1, %v21287_v44 }
 0x53c   :  { %14690 = vmatmul.mubr.msk.bf16.vlgmr.msra.gmra.mrb[80].mxu0 %vm1865_vm1, %v21288_v63 }
 0x53d   :  { %14693 = vmatprep.mubr.msk.bf16.mxu0 %vm1865_vm1, %v19152_v37  ;;  %14698 = vmatpush3.bf16.msra.mxu0 %v4621_v53  ;;  %v21291_v37 = vld [vmem:[#allocation142_spill] sm:$0xff] }
 0x53e   :  { %15362 = vmatprep.subr.msk.bf16.mxu0 %vm3249_vm2, %v4725_v51  ;;  %v15479_v53 = vld [vmem:[#allocation7 + $0x70] sm:$0xff]  }
 0x544   :  { %14694 = vmatmul.mubr.msk.bf16.gmra.mrb[84].mxu0 %vm1865_vm1, %v19160_v28  ;;  %v4857_v28 = vsel %vm3249_vm2, %v4843_v1, 0 }
 0x545   :  { %14699 = vmatprep.mubr.msk.bf16.mxu0 %vm1865_vm1, %v21289_v23 }
 0x54c   :  { %14700 = vmatmul.mubr.msk.bf16.vlgmr.msra.gmra.mrb[80].mxu0 %vm1865_vm1, %v21290_v46  ;;  %v15482_v46 = vld [vmem:[#allocation7 + $0x58] sm:$0xff]  }
 0x54d   :  { %14703 = vmatprep.mubr.msk.bf16.mxu0 %vm1865_vm1, %v19170_v8  ;;  %14708 = vmatpush3.bf16.msra.mxu0 %v4739_v56  ;;  %v21293_v8 = vld [vmem:[#allocation151_spill] sm:$0xff] }
 0x54e   :  { %15363 = vmatprep.subr.msk.bf16.mxu0 %vm3249_vm2, %v4843_v1  ;;  %v15480_v56 = vld [vmem:[#allocation7 + $0x78] sm:$0xff]   ;;  %v15481_v1 = vld [vmem:[#allocation7 + $0x50] sm:$0xff]  }
 0x554   :  { %14704 = vmatmul.mubr.msk.bf16.gmra.mrb[84].mxu0 %vm1865_vm1, %v19179_v20  ;;  %v4975_v20 = vsel %vm3249_vm2, %v4961_v22, 0 }
 0x555   :  { %14709 = vmatprep.mubr.msk.bf16.mxu0 %vm1865_vm1, %v21291_v37  ;;  %v15483_v37 = vld [vmem:[#allocation7 + $0x80] sm:$0xff]  }
 0x55c   :  { %14710 = vmatmul.mubr.msk.bf16.vlgmr.msra.gmra.mrb[80].mxu0 %vm1865_vm1, %v21292_v18  ;;  %v15486_v18 = vld [vmem:[#allocation7 + $0x98] sm:$0xff]  }
 0x55d   :  { %14713 = vmatprep.mubr.msk.bf16.mxu0 %vm1865_vm1, %v19186_v13  ;;  %14718 = vmatpush3.bf16.msra.mxu0 %v4857_v28  ;;  %v21295_v13 = vmov 0   ;;  %v15484_v28 = vld [vmem:[#allocation7 + $0x88] sm:$0xff]  }
 0x55e   :  { %15364 = vmatprep.subr.msk.bf16.mxu0 %vm3249_vm2, %v4961_v22  ;;  %v15485_v22 = vld [vmem:[#allocation7 + $0x90] sm:$0xff]  }
 0x564   :  { %14714 = vmatmul.mubr.msk.bf16.gmra.mrb[84].mxu0 %vm1865_vm1, %v19206_v59 }
 0x565   :  { %14719 = vmatprep.mubr.msk.bf16.mxu0 %vm1865_vm1, %v21293_v8  ;;  %v15487_v8 = vld [vmem:[#allocation7 + $0xa0] sm:$0xff]  }
 0x56c   :  { %14720 = vmatmul.mubr.msk.bf16.vlgmr.msra.gmra.mrb[80].mxu0 %vm1865_vm1, %v21294_v16  ;;  %v15489_v16 = vld [vmem:[#allocation7 + $0xb0] sm:$0xff]  }
 0x56d   :  { %14723 = vmatprep.mubr.msk.bf16.mxu0 %vm1865_vm1, %v19210_v43  ;;  %14728 = vmatpush3.bf16.msra.mxu0 %v4975_v20  ;;  %v15488_v20 = vld [vmem:[#allocation7 + $0xa8] sm:$0xff]  }
 0x574   :  { %14724 = vmatmul.mubr.msk.bf16.gmra.mrb[84].mxu0 %vm1865_vm1, %v19215_v30 }
 0x575   :  { %14729 = vmatprep.mubr.msk.bf16.mxu0 %vm1865_vm1, %v19196_v32 }
 0x57c   :  { %14730 = vmatmul.mubr.msk.bf16.vlgmr.msra.gmra.mrb[80].mxu0 %vm1865_vm1, %v19220_v38 }
 0x57d   :  { %14733 = vmatprep.mubr.msk.bf16.mxu0 %vm1865_vm1, %v19226_v0 }
 0x584   :  { %14734 = vmatmul.mubr.msk.bf16.gmra.mrb[84].mxu0 %vm1865_vm1, %v19232_v55  ;;  %vm7999_vm1 = vcmask 1039360  }
 0x585   :  { %6724 = vmatprep.mubr.bf16.mxu0 %v21295_v13 }
 0x64f   :  { %v14731_v59 = vpop.f32.mrb[80].mxu0 }
 0x650   :  { %v5011_v43 = vpop.f32.mrb[81].mxu0 }
 0x651   :  { %v14732_v33 = vpop.f32.mrb[82].mxu0 }
 0x652   :  { %v5051_v34 = vpack.c.bf16 %v14732_v33, %v14731_v59  ;;  %v5014_v30 = vpop.f32.mrb[83].mxu0  ;;  %v15490_v59 = vld [vmem:[#allocation7 + $0xb8] sm:$0xff]   ;;  %v15491_v33 = vld [vmem:[#allocation7 + $0xc0] sm:$0xff]  }
 0x653   :  { %v5050_v4 = vpack.c.bf16 %v5014_v30, %v5011_v43 }
 0x654   :  { %5056 = vst.msk [vmem:[#allocation2 + $0x8] sm:$0xff] %vm5054_vm3, %v5051_v34 }
 0x655   :  { %5055 = vst.msk [vmem:[#allocation2] sm:$0xff] %vm5054_vm3, %v5050_v4 }
 0x657   :  { %v14735_v32 = vpop.f32.mrb[84].mxu0 }
 0x658   :  { %v5027_v36 = vpop.f32.mrb[85].mxu0 }
 0x659   :  { %v14736_v38 = vpop.f32.mrb[86].mxu0 }
 0x65a   :  { %v5053_v14 = vpack.c.bf16 %v14736_v38, %v14735_v32  ;;  %v5030_v25 = vpop.f32.mrb[87].mxu0  ;;  %v15492_v32 = vld [vmem:[#allocation7 + $0xc8] sm:$0xff]   ;;  %v15493_v38 = vld [vmem:[#allocation7 + $0xd0] sm:$0xff]  }
 0x65b   :  { %v5052_v57 = vpack.c.bf16 %v5030_v25, %v5027_v36  ;;  %v19357_v50 = vld [vmem:[#allocation2 + $0x8] sm:$0xff] }
 0x65c   :  { %5058 = vst.msk [vmem:[#allocation2 + $0x18] sm:$0xff] %vm5054_vm3, %v5053_v14  ;;  %5093 = vrot.lane.b32.xlu0 %v19357_v50, %s16282_s3  ;;  %v19361_v17 = vld [vmem:[#allocation2] sm:$0xff] }
 0x65d   :  { %5057 = vst.msk [vmem:[#allocation2 + $0x10] sm:$0xff] %vm5054_vm3, %v5052_v57  ;;  %5091 = vrot.lane.b32.xlu1 %v19361_v17, %s16282_s3  ;;  %vm10850_vm3 = vcmask 375808  }
 0x663   :  { %v19366_v0 = vld [vmem:[#allocation2 + $0x18] sm:$0xff] }
 0x664   :  { %5097 = vrot.lane.b32.xlu0 %v19366_v0, %s16282_s3  ;;  %v19369_v42 = vld [vmem:[#allocation2 + $0x10] sm:$0xff] }
 0x665   :  { %5095 = vrot.lane.b32.xlu1 %v19369_v42, %s16282_s3  ;;  %s16293_s3 = smov 117  }
 0x668   :  { %5171 = vrot.lane.b32.xlu0 %v19357_v50, %s16283_s26 }
 0x669   :  { %5169 = vrot.lane.b32.xlu1 %v19361_v17, %s16283_s26 }
 0x66c   :  { %5175 = vrot.lane.b32.xlu0 %v19366_v0, %s16283_s26 }
 0x66d   :  { %5173 = vrot.lane.b32.xlu1 %v19369_v42, %s16283_s26  ;;  %s16294_s26 = smov 118  }
 0x670   :  { %5253 = vrot.lane.b32.xlu0 %v19357_v50, %s16284_s24 }
 0x671   :  { %5251 = vrot.lane.b32.xlu1 %v19361_v17, %s16284_s24 }
 0x674   :  { %5257 = vrot.lane.b32.xlu0 %v19366_v0, %s16284_s24 }
 0x675   :  { %5255 = vrot.lane.b32.xlu1 %v19369_v42, %s16284_s24 }
 0x678   :  { %5410 = vrot.lane.b32.xlu0 %v19357_v50, %s16285_s25 }
 0x679   :  { %5408 = vrot.lane.b32.xlu1 %v19361_v17, %s16285_s25 }
 0x67c   :  { %5414 = vrot.lane.b32.xlu0 %v19366_v0, %s16285_s25 }
 0x67d   :  { %5412 = vrot.lane.b32.xlu1 %v19369_v42, %s16285_s25 }
 0x680   :  { %5487 = vrot.lane.b32.xlu0 %v19357_v50, %s16286_s13 }
 0x681   :  { %5485 = vrot.lane.b32.xlu1 %v19361_v17, %s16286_s13 }
 0x684   :  { %5491 = vrot.lane.b32.xlu0 %v19366_v0, %s16286_s13 }
 0x685   :  { %5489 = vrot.lane.b32.xlu1 %v19369_v42, %s16286_s13 }
 0x688   :  { %5569 = vrot.lane.b32.xlu0 %v19357_v50, %s16287_s22 }
 0x689   :  { %5567 = vrot.lane.b32.xlu1 %v19361_v17, %s16287_s22 }
 0x68c   :  { %5573 = vrot.lane.b32.xlu0 %v19366_v0, %s16287_s22 }
 0x68d   :  { %5571 = vrot.lane.b32.xlu1 %v19369_v42, %s16287_s22 }
 0x690   :  { %6012 = vrot.lane.b32.xlu0 %v19357_v50, %s16288_s23 }
 0x691   :  { %6010 = vrot.lane.b32.xlu1 %v19361_v17, %s16288_s23 }
 0x694   :  { %6016 = vrot.lane.b32.xlu0 %v19366_v0, %s16288_s23 }
 0x695   :  { %6014 = vrot.lane.b32.xlu1 %v19369_v42, %s16288_s23 }
 0x698   :  { %6098 = vrot.lane.b32.xlu0 %v19357_v50, %s16289_s27 }
 0x699   :  { %6096 = vrot.lane.b32.xlu1 %v19361_v17, %s16289_s27 }
 0x69c   :  { %6102 = vrot.lane.b32.xlu0 %v19366_v0, %s16289_s27 }
 0x69d   :  { %6100 = vrot.lane.b32.xlu1 %v19369_v42, %s16289_s27 }
 0x6ce   :  { %v5094_v39 = vpop.permute.xlu0 %5093 }
 0x6cf   :  { %v5092_v26 = vpop.permute.xlu1 %5091 }
 0x6d0   :  { %14737 = vmatprep.subr.bf16.mxu1 %v5092_v26 }
 0x6d1   :  { %14738 = vmatpush3.bf16.msra.mxu1 %v5092_v26 }
 0x6d2   :  { %14739 = vmatprep.subr.bf16.mxu1 %v5094_v39 }
 0x6d5   :  { %14740 = vmatpush3.bf16.msra.mxu1 %v5094_v39 }
 0x6d6   :  { %v5098_v41 = vpop.permute.xlu0 %5097 }
 0x6d7   :  { %v5096_v55 = vpop.permute.xlu1 %5095 }
 0x6d8   :  { %14741 = vmatprep.subr.bf16.mxu1 %v5096_v55 }
 0x6d9   :  { %14742 = vmatpush3.bf16.msra.mxu1 %v5096_v55 }
 0x6da   :  { %14743 = vmatprep.subr.bf16.mxu1 %v5098_v41  ;;  %v5172_v19 = vpop.permute.xlu0 %5171 }
 0x6db   :  { %v5170_v62 = vpop.permute.xlu1 %5169 }
 0x6dd   :  { %14744 = vmatpush3.bf16.msra.mxu1 %v5098_v41 }
 0x6de   :  { %14749 = vmatprep.subr.bf16.mxu1 %v5170_v62  ;;  %v5176_v3 = vpop.permute.xlu0 %5175 }
 0x6df   :  { %v5174_v24 = vpop.permute.xlu1 %5173 }
 0x6e0   :  { %14746 = vmatmul.mubr.msk.bf16.vlgmr.msra.gmra.mrb[48].mxu1 %vm5103_vm4, %v15468_v61 }
 0x6e1   :  { %14750 = vmatpush3.bf16.msra.mxu1 %v5170_v62  ;;  %14757 = vmatprep.mubr.msk.bf16.mxu1 %vm5103_vm4, %v15469_v7 }
 0x6e2   :  { %14751 = vmatprep.subr.bf16.mxu1 %v5172_v19  ;;  %v5254_v12 = vpop.permute.xlu0 %5253 }
 0x6e3   :  { %v5252_v45 = vpop.permute.xlu1 %5251 }
 0x6e5   :  { %14752 = vmatpush3.bf16.msra.mxu1 %v5172_v19 }
 0x6e6   :  { %14753 = vmatprep.subr.bf16.mxu1 %v5174_v24  ;;  %v5258_v10 = vpop.permute.xlu0 %5257 }
 0x6e7   :  { %v5256_v35 = vpop.permute.xlu1 %5255 }
 0x6e9   :  { %14754 = vmatpush3.bf16.msra.mxu1 %v5174_v24 }
 0x6ea   :  { %14755 = vmatprep.subr.bf16.mxu1 %v5176_v3  ;;  %v19422_v15 = vpop.permute.xlu0 %5410 }
 0x6eb   :  { %v19418_v9 = vpop.permute.xlu1 %5408 }
 0x6ed   :  { %14756 = vmatpush3.bf16.msra.mxu1 %v5176_v3 }
 0x6ee   :  { %14761 = vmatprep.subr.bf16.mxu1 %v5252_v45  ;;  %v19431_v54 = vpop.permute.xlu0 %5414 }
 0x6ef   :  { %v19427_v21 = vpop.permute.xlu1 %5412 }
 0x6f0   :  { %14758 = vmatmul.mubr.msk.bf16.vlgmr.msra.gmra.mrb[48].mxu1 %vm5103_vm4, %v15470_v29 }
 0x6f1   :  { %14762 = vmatpush3.bf16.msra.mxu1 %v5252_v45  ;;  %14769 = vmatprep.mubr.msk.bf16.mxu1 %vm5103_vm4, %v15471_v31 }
 0x6f2   :  { %14763 = vmatprep.subr.bf16.mxu1 %v5254_v12  ;;  %v5488_v52 = vpop.permute.xlu0 %5487 }
 0x6f3   :  { %v5486_v11 = vpop.permute.xlu1 %5485 }
 0x6f5   :  { %14764 = vmatpush3.bf16.msra.mxu1 %v5254_v12 }
 0x6f6   :  { %14765 = vmatprep.subr.bf16.mxu1 %v5256_v35  ;;  %v5492_v27 = vpop.permute.xlu0 %5491 }
 0x6f7   :  { %v5490_v58 = vpop.permute.xlu1 %5489 }
 0x6f9   :  { %14766 = vmatpush3.bf16.msra.mxu1 %v5256_v35 }
 0x6fa   :  { %14767 = vmatprep.subr.bf16.mxu1 %v5258_v10  ;;  %v19442_v51 = vpop.permute.xlu0 %5569 }
 0x6fb   :  { %v19438_v44 = vpop.permute.xlu1 %5567 }
 0x6fd   :  { %14768 = vmatpush3.bf16.msra.mxu1 %v5258_v10 }
 0x6fe   :  { %14773 = vmatprep.subr.bf16.mxu1 %v5092_v26  ;;  %v19451_v23 = vpop.permute.xlu0 %5573 }
 0x6ff   :  { %v19447_v63 = vpop.permute.xlu1 %5571 }
 0x700   :  { %14770 = vmatmul.mubr.msk.bf16.vlgmr.msra.gmra.mrb[52].mxu1 %vm5103_vm4, %v15472_v6 }
 0x701   :  { %14774 = vmatpush3.bf16.msra.mxu1 %v5092_v26  ;;  %14781 = vmatprep.mubr.msk.bf16.mxu1 %vm5103_vm4, %v15473_v47  ;;  %v15495_v26 = vld [vmem:[#allocation7 + $0xe0] sm:$0xff]  }
 0x702   :  { %14775 = vmatprep.subr.bf16.mxu1 %v5094_v39  ;;  %v6013_v34 = vpop.permute.xlu0 %6012 }
 0x703   :  { %v6011_v43 = vpop.permute.xlu1 %6010 }
 0x705   :  { %14776 = vmatpush3.bf16.msra.mxu1 %v5094_v39  ;;  %v15496_v39 = vld [vmem:[#allocation7 + $0xe8] sm:$0xff]  }
 0x706   :  { %14777 = vmatprep.subr.bf16.mxu1 %v5096_v55  ;;  %v6017_v4 = vpop.permute.xlu0 %6016 }
 0x707   :  { %v6015_v30 = vpop.permute.xlu1 %6014 }
 0x709   :  { %14778 = vmatpush3.bf16.msra.mxu1 %v5096_v55  ;;  %v15497_v55 = vld [vmem:[#allocation7 + $0xf0] sm:$0xff]  }
 0x70a   :  { %14779 = vmatprep.subr.bf16.mxu1 %v5098_v41  ;;  %v6099_v14 = vpop.permute.xlu0 %6098 }
 0x70b   :  { %v6097_v36 = vpop.permute.xlu1 %6096 }
 0x70d   :  { %14780 = vmatpush3.bf16.msra.mxu1 %v5098_v41  ;;  %v15498_v41 = vld [vmem:[#allocation7 + $0xf8] sm:$0xff]  }
 0x70e   :  { %14785 = vmatprep.subr.bf16.mxu1 %v19418_v9  ;;  %v6103_v57 = vpop.permute.xlu0 %6102 }
 0x70f   :  { %v6101_v25 = vpop.permute.xlu1 %6100 }
 0x710   :  { %14782 = vmatmul.mubr.msk.bf16.vlgmr.msra.gmra.mrb[52].mxu1 %vm5103_vm4, %v15474_v48 }
 0x711   :  { %14786 = vmatpush3.bf16.msra.mxu1 %v19418_v9  ;;  %14793 = vmatprep.mubr.msk.bf16.mxu1 %vm5103_vm4, %v15475_v49 }
 0x712   :  { %14787 = vmatprep.subr.bf16.mxu1 %v19422_v15 }
 0x715   :  { %14788 = vmatpush3.bf16.msra.mxu1 %v19422_v15 }
 0x716   :  { %14789 = vmatprep.subr.bf16.mxu1 %v19427_v21 }
 0x719   :  { %14790 = vmatpush3.bf16.msra.mxu1 %v19427_v21 }
 0x71a   :  { %14791 = vmatprep.subr.bf16.mxu1 %v19431_v54 }
 0x71d   :  { %14792 = vmatpush3.bf16.msra.mxu1 %v19431_v54 }
 0x71e   :  { %14797 = vmatprep.subr.bf16.mxu1 %v5486_v11 }
 0x720   :  { %14794 = vmatmul.mubr.msk.bf16.vlgmr.msra.gmra.mrb[56].mxu1 %vm5103_vm4, %v15476_v40 }
 0x721   :  { %14798 = vmatpush3.bf16.msra.mxu1 %v5486_v11  ;;  %14805 = vmatprep.mubr.msk.bf16.mxu1 %vm5103_vm4, %v15477_v5 }
 0x722   :  { %14799 = vmatprep.subr.bf16.mxu1 %v5488_v52 }
 0x725   :  { %14800 = vmatpush3.bf16.msra.mxu1 %v5488_v52 }
 0x726   :  { %14801 = vmatprep.subr.bf16.mxu1 %v5490_v58 }
 0x729   :  { %14802 = vmatpush3.bf16.msra.mxu1 %v5490_v58 }
 0x72a   :  { %14803 = vmatprep.subr.bf16.mxu1 %v5492_v27 }
 0x72d   :  { %14804 = vmatpush3.bf16.msra.mxu1 %v5492_v27 }
 0x72e   :  { %14809 = vmatprep.subr.bf16.mxu1 %v19438_v44 }
 0x730   :  { %14806 = vmatmul.mubr.msk.bf16.vlgmr.msra.gmra.mrb[56].mxu1 %vm5103_vm4, %v15478_v2 }
 0x731   :  { %14810 = vmatpush3.bf16.msra.mxu1 %v19438_v44  ;;  %14817 = vmatprep.mubr.msk.bf16.mxu1 %vm5103_vm4, %v15479_v53 }
 0x732   :  { %14811 = vmatprep.subr.bf16.mxu1 %v19442_v51 }
 0x735   :  { %14812 = vmatpush3.bf16.msra.mxu1 %v19442_v51 }
 0x736   :  { %14813 = vmatprep.subr.bf16.mxu1 %v19447_v63 }
 0x739   :  { %14814 = vmatpush3.bf16.msra.mxu1 %v19447_v63 }
 0x73a   :  { %14815 = vmatprep.subr.bf16.mxu1 %v19451_v23 }
 0x73d   :  { %14816 = vmatpush3.bf16.msra.mxu1 %v19451_v23 }
 0x73e   :  { %14821 = vmatprep.subr.bf16.mxu1 %v19418_v9 }
 0x740   :  { %14818 = vmatmul.mubr.msk.bf16.vlgmr.msra.gmra.mrb[60].mxu1 %vm5103_vm4, %v15480_v56 }
 0x741   :  { %14822 = vmatpush3.bf16.msra.mxu1 %v19418_v9  ;;  %14829 = vmatprep.mubr.msk.bf16.mxu1 %vm5103_vm4, %v15481_v1 }
 0x742   :  { %14823 = vmatprep.subr.bf16.mxu1 %v19422_v15 }
 0x745   :  { %14824 = vmatpush3.bf16.msra.mxu1 %v19422_v15 }
 0x746   :  { %14825 = vmatprep.subr.bf16.mxu1 %v19427_v21 }
 0x749   :  { %14826 = vmatpush3.bf16.msra.mxu1 %v19427_v21 }
 0x74a   :  { %14827 = vmatprep.subr.bf16.mxu1 %v19431_v54 }
 0x74d   :  { %14828 = vmatpush3.bf16.msra.mxu1 %v19431_v54 }
 0x74e   :  { %14833 = vmatprep.subr.bf16.mxu1 %v5486_v11 }
 0x750   :  { %14830 = vmatmul.mubr.msk.bf16.vlgmr.msra.gmra.mrb[60].mxu1 %vm5103_vm4, %v15482_v46 }
 0x751   :  { %14834 = vmatpush3.bf16.msra.mxu1 %v5486_v11  ;;  %14841 = vmatprep.mubr.msk.bf16.mxu1 %vm5103_vm4, %v15483_v37 }
 0x752   :  { %14835 = vmatprep.subr.bf16.mxu1 %v5488_v52 }
 0x755   :  { %14836 = vmatpush3.bf16.msra.mxu1 %v5488_v52 }
 0x756   :  { %14837 = vmatprep.subr.bf16.mxu1 %v5490_v58 }
 0x759   :  { %14838 = vmatpush3.bf16.msra.mxu1 %v5490_v58 }
 0x75a   :  { %14839 = vmatprep.subr.bf16.mxu1 %v5492_v27 }
 0x75d   :  { %14840 = vmatpush3.bf16.msra.mxu1 %v5492_v27 }
 0x75e   :  { %14845 = vmatprep.subr.bf16.mxu1 %v19418_v9 }
 0x760   :  { %14842 = vmatmul.mubr.msk.bf16.vlgmr.msra.gmra.mrb[48].mxu1 %vm5103_vm4, %v15484_v28 }
 0x761   :  { %14846 = vmatpush3.bf16.msra.mxu1 %v19418_v9  ;;  %14853 = vmatprep.mubr.msk.bf16.mxu1 %vm5103_vm4, %v15485_v22 }
 0x762   :  { %14847 = vmatprep.subr.bf16.mxu1 %v19422_v15 }
 0x765   :  { %14848 = vmatpush3.bf16.msra.mxu1 %v19422_v15 }
 0x766   :  { %14849 = vmatprep.subr.bf16.mxu1 %v19427_v21 }
 0x769   :  { %14850 = vmatpush3.bf16.msra.mxu1 %v19427_v21 }
 0x76a   :  { %14851 = vmatprep.subr.bf16.mxu1 %v19431_v54 }
 0x76d   :  { %14852 = vmatpush3.bf16.msra.mxu1 %v19431_v54 }
 0x76e   :  { %14857 = vmatprep.subr.bf16.mxu1 %v19418_v9 }
 0x770   :  { %14854 = vmatmul.mubr.msk.bf16.vlgmr.msra.gmra.mrb[52].mxu1 %vm5103_vm4, %v15486_v18 }
 0x771   :  { %14858 = vmatpush3.bf16.msra.mxu1 %v19418_v9  ;;  %14865 = vmatprep.mubr.msk.bf16.mxu1 %vm5103_vm4, %v15487_v8 }
 0x772   :  { %14859 = vmatprep.subr.bf16.mxu1 %v19422_v15 }
 0x775   :  { %14860 = vmatpush3.bf16.msra.mxu1 %v19422_v15 }
 0x776   :  { %14861 = vmatprep.subr.bf16.mxu1 %v19427_v21 }
 0x779   :  { %14862 = vmatpush3.bf16.msra.mxu1 %v19427_v21 }
 0x77a   :  { %14863 = vmatprep.subr.bf16.mxu1 %v19431_v54 }
 0x77d   :  { %14864 = vmatpush3.bf16.msra.mxu1 %v19431_v54 }
 0x77e   :  { %14869 = vmatprep.subr.bf16.mxu1 %v19438_v44 }
 0x780   :  { %14866 = vmatmul.mubr.msk.bf16.vlgmr.msra.gmra.mrb[48].mxu1 %vm5103_vm4, %v15488_v20 }
 0x781   :  { %14870 = vmatpush3.bf16.msra.mxu1 %v19438_v44  ;;  %14877 = vmatprep.mubr.msk.bf16.mxu1 %vm5103_vm4, %v15489_v16 }
 0x782   :  { %14871 = vmatprep.subr.bf16.mxu1 %v19442_v51 }
 0x785   :  { %14872 = vmatpush3.bf16.msra.mxu1 %v19442_v51 }
 0x786   :  { %14873 = vmatprep.subr.bf16.mxu1 %v19447_v63 }
 0x789   :  { %14874 = vmatpush3.bf16.msra.mxu1 %v19447_v63 }
 0x78a   :  { %14875 = vmatprep.subr.bf16.mxu1 %v19451_v23 }
 0x78d   :  { %14876 = vmatpush3.bf16.msra.mxu1 %v19451_v23 }
 0x78e   :  { %14881 = vmatprep.subr.bf16.mxu1 %v6011_v43 }
 0x790   :  { %14878 = vmatmul.mubr.msk.bf16.vlgmr.msra.gmra.mrb[52].mxu1 %vm5103_vm4, %v15490_v59 }
 0x791   :  { %14882 = vmatpush3.bf16.msra.mxu1 %v6011_v43  ;;  %14889 = vmatprep.mubr.msk.bf16.mxu1 %vm5103_vm4, %v15491_v33 }
 0x792   :  { %14883 = vmatprep.subr.bf16.mxu1 %v6013_v34 }
 0x795   :  { %14884 = vmatpush3.bf16.msra.mxu1 %v6013_v34 }
 0x796   :  { %14885 = vmatprep.subr.bf16.mxu1 %v6015_v30 }
 0x799   :  { %14886 = vmatpush3.bf16.msra.mxu1 %v6015_v30 }
 0x79a   :  { %14887 = vmatprep.subr.bf16.mxu1 %v6017_v4 }
 0x79d   :  { %14888 = vmatpush3.bf16.msra.mxu1 %v6017_v4 }
 0x79e   :  { %14893 = vmatprep.subr.bf16.mxu1 %v6097_v36 }
 0x7a0   :  { %14890 = vmatmul.mubr.msk.bf16.vlgmr.msra.gmra.mrb[56].mxu1 %vm5103_vm4, %v15492_v32 }
 0x7a1   :  { %14894 = vmatpush3.bf16.msra.mxu1 %v6097_v36  ;;  %14901 = vmatprep.mubr.msk.bf16.mxu1 %vm5103_vm4, %v15493_v38 }
 0x7a2   :  { %14895 = vmatprep.subr.bf16.mxu1 %v6099_v14 }
 0x7a5   :  { %14896 = vmatpush3.bf16.msra.mxu1 %v6099_v14 }
 0x7a6   :  { %14897 = vmatprep.subr.bf16.mxu1 %v6101_v25 }
 0x7a9   :  { %14898 = vmatpush3.bf16.msra.mxu1 %v6101_v25 }
 0x7aa   :  { %14899 = vmatprep.subr.bf16.mxu1 %v6103_v57 }
 0x7ad   :  { %14900 = vmatpush3.bf16.msra.mxu1 %v6103_v57 }
 0x7ae   :  { %14905 = vmatprep.subr.bf16.mxu1 %v6097_v36 }
 0x7b0   :  { %14902 = vmatmul.mubr.msk.bf16.vlgmr.msra.gmra.mrb[60].mxu1 %vm5103_vm4, %v15494_v60 }
 0x7b1   :  { %14906 = vmatpush3.bf16.msra.mxu1 %v6097_v36  ;;  %14913 = vmatprep.mubr.msk.bf16.mxu1 %vm5103_vm4, %v15495_v26 }
 0x7b2   :  { %14907 = vmatprep.subr.bf16.mxu1 %v6099_v14 }
 0x7b5   :  { %14908 = vmatpush3.bf16.msra.mxu1 %v6099_v14 }
 0x7b6   :  { %14909 = vmatprep.subr.bf16.mxu1 %v6101_v25 }
 0x7b9   :  { %14910 = vmatpush3.bf16.msra.mxu1 %v6101_v25 }
 0x7ba   :  { %14911 = vmatprep.subr.bf16.mxu1 %v6103_v57 }
 0x7bd   :  { %14912 = vmatpush3.bf16.msra.mxu1 %v6103_v57 }
 0x7be   :  { %14917 = vmatprep.subr.bf16.mxu1 %v19361_v17 }
 0x7c0   :  { %14914 = vmatmul.mubr.msk.bf16.vlgmr.msra.gmra.mrb[56].mxu1 %vm5103_vm4, %v15496_v39 }
 0x7c1   :  { %14918 = vmatpush3.bf16.msra.mxu1 %v19361_v17  ;;  %14925 = vmatprep.mubr.msk.bf16.mxu1 %vm5103_vm4, %v15497_v55  ;;  %v19516_v17 = vld [vmem:[#allocation9] ss:$0 sm:$0xff] }
 0x7c2   :  { %14919 = vmatprep.subr.bf16.mxu1 %v19357_v50 }
 0x7c5   :  { %14920 = vmatpush3.bf16.msra.mxu1 %v19357_v50 }
 0x7c6   :  { %14921 = vmatprep.subr.bf16.mxu1 %v19369_v42 }
 0x7c9   :  { %14922 = vmatpush3.bf16.msra.mxu1 %v19369_v42 }
 0x7ca   :  { %14923 = vmatprep.subr.bf16.mxu1 %v19366_v0 }
 0x7cd   :  { %14924 = vmatpush3.bf16.msra.mxu1 %v19366_v0 }
 0x7d0   :  { %14926 = vmatmul.mubr.msk.bf16.vlgmr.msra.gmra.mrb[60].mxu1 %vm5103_vm4, %v15498_v41  ;;  %vm10881_vm4 = vcmask 744448  }
 0x7d1   :  { %7220 = vmatprep.mubr.bf16.mxu1 %v21295_v13 }
 0x853   :  { %v19518_v61 = vpop.f32.mrb[48].mxu1 }
 0x854   :  { %v19520_v62 = vpop.f32.mrb[49].mxu1 }
 0x855   :  { %v6391_v50 = vmul.f32 %v19516_v17, %v19520_v62  ;;  %v6483_v42 = vmul.f32 %v19520_v62, %v19520_v62  ;;  %v19526_v7 = vpop.f32.mrb[50].mxu1 }
 0x856   :  { %v19528_v0 = vpop.f32.mrb[51].mxu1 }
 0x857   :  { %v6392_v19 = vmul.f32 %v19516_v17, %v19528_v0  ;;  %v6484_v24 = vmul.f32 %v19528_v0, %v19528_v0  ;;  %v6395_v3 = vsel %vm6334_vm5, %v6391_v50, 0.0  ;;  %v6487_v29 = vmul.f32 %v19516_v17, %v6483_v42 }
 0x858   :  { %6396 = vadd.xlane.f32.xlu0 %v6395_v3 }
 0x859   :  { %v6398_v45 = vsel %vm6334_vm5, %v6392_v19, 0.0  ;;  %v6488_v31 = vmul.f32 %v19516_v17, %v6484_v24  ;;  %v6491_v12 = vsel %vm6334_vm5, %v6487_v29, 0.0 }
 0x85a   :  { %6399 = vadd.xlane.f32.xlu1 %v6398_v45 }
 0x85b   :  { %v6494_v35 = vsel %vm6334_vm5, %v6488_v31, 0.0 }
 0x85c   :  { %6492 = vadd.xlane.f32.xlu0 %v6491_v12 }
 0x85e   :  { %6495 = vadd.xlane.f32.xlu1 %v6494_v35 }
 0x863   :  { %v19540_v10 = vpop.f32.mrb[52].mxu1 }
 0x864   :  { %v6373_v6 = vmul.f32 %v19540_v10, %v19516_v17  ;;  %v19544_v47 = vpop.f32.mrb[53].mxu1 }
 0x865   :  { %v19546_v48 = vpop.f32.mrb[54].mxu1  ;;  %v6371_v9 = vmul.f32 %v19516_v17, %v19544_v47  ;;  %v6459_v49 = vmul.f32 %v19544_v47, %v19544_v47 }
 0x866   :  { %v6374_v15 = vmul.f32 %v19546_v48, %v19516_v17  ;;  %v19554_v21 = vpop.f32.mrb[55].mxu1  ;;  %v6381_v54 = vsel %vm6334_vm5, %v6373_v6, 0.0 }
 0x867   :  { %6382 = vadd.xlane.f32.xlu0 %v6381_v54  ;;  %v6372_v40 = vmul.f32 %v19516_v17, %v19554_v21  ;;  %v6460_v11 = vmul.f32 %v19554_v21, %v19554_v21  ;;  %v6375_v52 = vsel %vm6334_vm5, %v6371_v9, 0.0  ;;  %v6463_v58 = vmul.f32 %v19516_v17, %v6459_v49 }
 0x868   :  { %v6384_v5 = vsel %vm6334_vm5, %v6374_v15, 0.0 }
 0x869   :  { %6385 = vadd.xlane.f32.xlu1 %v6384_v5  ;;  %v6378_v27 = vsel %vm6334_vm5, %v6372_v40, 0.0  ;;  %v6464_v2 = vmul.f32 %v19516_v17, %v6460_v11  ;;  %v6467_v44 = vsel %vm6334_vm5, %v6463_v58, 0.0  ;;  %v6393_v11 = vmul.f32 %v19518_v61, %v19516_v17 }
 0x86a   :  { %v6461_v5 = vmul.f32 %v19540_v10, %v19540_v10  ;;  %v6394_v58 = vmul.f32 %v19526_v7, %v19516_v17 }
 0x86b   :  { %6376 = vadd.xlane.f32.xlu0 %v6375_v52  ;;  %v6470_v53 = vsel %vm6334_vm5, %v6464_v2, 0.0 }
 0x86d   :  { %6379 = vadd.xlane.f32.xlu1 %v6378_v27  ;;  %v6462_v27 = vmul.f32 %v19546_v48, %v19546_v48 }
 0x86f   :  { %6468 = vadd.xlane.f32.xlu0 %v6467_v44  ;;  %v6485_v44 = vmul.f32 %v19518_v61, %v19518_v61 }
 0x871   :  { %6471 = vadd.xlane.f32.xlu1 %v6470_v53  ;;  %v6401_v53 = vsel %vm6334_vm5, %v6393_v11, 0.0 }
 0x893   :  { %v19568_v51 = vpop.f32.mrb[56].mxu1 }
 0x894   :  { %v6353_v63 = vmul.f32 %v19568_v51, %v19516_v17  ;;  %v19572_v23 = vpop.f32.mrb[57].mxu1  ;;  %v6437_v45 = vmul.f32 %v19568_v51, %v19568_v51 }
 0x895   :  { %v19574_v56 = vpop.f32.mrb[58].mxu1  ;;  %v6351_v1 = vmul.f32 %v19516_v17, %v19572_v23  ;;  %v6435_v46 = vmul.f32 %v19572_v23, %v19572_v23 }
 0x896   :  { %v6354_v37 = vmul.f32 %v19574_v56, %v19516_v17  ;;  %v19582_v28 = vpop.f32.mrb[59].mxu1  ;;  %v6361_v22 = vsel %vm6334_vm5, %v6353_v63, 0.0  ;;  %v6438_v35 = vmul.f32 %v19574_v56, %v19574_v56  ;;  %v6441_v15 = vmul.f32 %v19516_v17, %v6437_v45 }
 0x897   :  { %6362 = vadd.xlane.f32.xlu0 %v6361_v22  ;;  %v6352_v18 = vmul.f32 %v19516_v17, %v19582_v28  ;;  %v6436_v8 = vmul.f32 %v19582_v28, %v19582_v28  ;;  %v6355_v16 = vsel %vm6334_vm5, %v6351_v1, 0.0  ;;  %v6439_v59 = vmul.f32 %v19516_v17, %v6435_v46 }
 0x898   :  { %v6364_v20 = vsel %vm6334_vm5, %v6354_v37, 0.0  ;;  %v6442_v40 = vmul.f32 %v19516_v17, %v6438_v35  ;;  %v6449_v52 = vsel %vm6334_vm5, %v6441_v15, 0.0  ;;  %v6465_v63 = vmul.f32 %v19516_v17, %v6461_v5 }
 0x899   :  { %6365 = vadd.xlane.f32.xlu1 %v6364_v20  ;;  %v6358_v43 = vsel %vm6334_vm5, %v6352_v18, 0.0  ;;  %v6440_v33 = vmul.f32 %v19516_v17, %v6436_v8  ;;  %v6443_v34 = vsel %vm6334_vm5, %v6439_v59, 0.0  ;;  %v6486_v1 = vmul.f32 %v19526_v7, %v19526_v7 }
 0x89a   :  { %v6452_v2 = vsel %vm6334_vm5, %v6442_v40, 0.0  ;;  %v6404_v46 = vsel %vm6334_vm5, %v6394_v58, 0.0  ;;  %v6466_v37 = vmul.f32 %v19516_v17, %v6462_v27  ;;  %v6473_v22 = vsel %vm6334_vm5, %v6465_v63, 0.0 }
 0x89b   :  { %6356 = vadd.xlane.f32.xlu0 %v6355_v16  ;;  %v6446_v30 = vsel %vm6334_vm5, %v6440_v33, 0.0  ;;  %v6489_v18 = vmul.f32 %v19516_v17, %v6485_v44  ;;  %v6490_v20 = vmul.f32 %v19516_v17, %v6486_v1  ;;  %v15501_v33 = vld [vmem:[#allocation10 + $0x4c] ss:$8 sps:$4 sm:$0xff]  }
 0x89c   :  { %v6476_v8 = vsel %vm6334_vm5, %v6466_v37, 0.0  ;;  %6692 = vmatprep.subr.bf16.mxu0 %v15501_v33 }
 0x89d   :  { %6359 = vadd.xlane.f32.xlu1 %v6358_v43  ;;  %v6497_v16 = vsel %vm6334_vm5, %v6489_v18, 0.0  ;;  %v6500_v59 = vsel %vm6334_vm5, %v6490_v20, 0.0  ;;  %v15499_v43 = vld [vmem:[#allocation10 + $0x48] ss:$8 sps:$4 sm:$0xff]  }
 0x89e   :  { %6693 = vmatpush1.bf16.msra.mxu0 %v15499_v43 }
 0x89f   :  { %6444 = vadd.xlane.f32.xlu0 %v6443_v34  ;;  %v15504_v34 = vld [vmem:[#allocation10 + $0x5c] ss:$8 sps:$4 sm:$0xff]  }
 0x8a0   :  { %6694 = vmatprep.subr.bf16.mxu0 %v15504_v34 }
 0x8a1   :  { %6447 = vadd.xlane.f32.xlu1 %v6446_v30  ;;  %v15502_v30 = vld [vmem:[#allocation10 + $0x58] ss:$8 sps:$4 sm:$0xff]  }
 0x8a2   :  { %6695 = vmatpush1.bf16.msra.mxu0 %v15502_v30 }
 0x8a3   :  { %v19596_v4 = vpop.f32.mrb[60].mxu1 }
 0x8a4   :  { %v6332_v32 = vmul.f32 %v19596_v4, %v19516_v17  ;;  %v6413_v36 = vmul.f32 %v19596_v4, %v19596_v4  ;;  %v19602_v38 = vpop.f32.mrb[61].mxu1 }
 0x8a5   :  { %v6330_v14 = vmul.f32 %v19516_v17, %v19602_v38  ;;  %v19606_v25 = vpop.f32.mrb[62].mxu1  ;;  %v6411_v50 = vmul.f32 %v19602_v38, %v19602_v38 }
 0x8a6   :  { %v19608_v57 = vpop.f32.mrb[63].mxu1  ;;  %v6341_v60 = vsel %vm6334_vm5, %v6332_v32, 0.0  ;;  %v6417_v26 = vmul.f32 %v19516_v17, %v6413_v36  ;;  %v6333_v39 = vmul.f32 %v19606_v25, %v19516_v17  ;;  %v6414_v55 = vmul.f32 %v19606_v25, %v19606_v25  ;;  %v15507_v32 = vld [vmem:[#allocation10 + $0x6c] ss:$8 sps:$4 sm:$0xff]   ;;  %v15505_v36 = vld [vmem:[#allocation10 + $0x68] ss:$8 sps:$4 sm:$0xff]  }
 0x8a7   :  { %6342 = vadd.xlane.f32.xlu0 %v6341_v60  ;;  %v6335_v41 = vsel %vm6334_vm5, %v6330_v14, 0.0  ;;  %v6331_v42 = vmul.f32 %v19516_v17, %v19608_v57  ;;  %v6412_v24 = vmul.f32 %v19608_v57, %v19608_v57  ;;  %v6415_v12 = vmul.f32 %v19516_v17, %v6411_v50  ;;  %6696 = vmatprep.subr.bf16.mxu0 %v15507_v32 }
 0x8a8   :  { %6336 = vadd.xlane.f32.xlu1 %v6335_v41  ;;  %v6425_v19 = vsel %vm6334_vm5, %v6417_v26, 0.0  ;;  %v6344_v3 = vsel %vm6334_vm5, %v6333_v39, 0.0  ;;  %v6418_v29 = vmul.f32 %v19516_v17, %v6414_v55  ;;  %6697 = vmatpush1.bf16.msra.mxu0 %v15505_v36 }
 0x8a9   :  { %v6338_v31 = vsel %vm6334_vm5, %v6331_v42, 0.0  ;;  %v6416_v9 = vmul.f32 %v19516_v17, %v6412_v24  ;;  %v6419_v49 = vsel %vm6334_vm5, %v6415_v12, 0.0 }
 0x8aa   :  { %v6428_v6 = vsel %vm6334_vm5, %v6418_v29, 0.0 }
 0x8ab   :  { %6426 = vadd.xlane.f32.xlu0 %v6425_v19  ;;  %v6422_v54 = vsel %vm6334_vm5, %v6416_v9, 0.0 }
 0x8ac   :  { %6345 = vadd.xlane.f32.xlu1 %v6344_v3 }
 0x8af   :  { %6339 = vadd.xlane.f32.xlu0 %v6338_v31 }
 0x8b0   :  { %6429 = vadd.xlane.f32.xlu1 %v6428_v6 }
 0x8b3   :  { %6420 = vadd.xlane.f32.xlu0 %v6419_v49 }
 0x8b4   :  { %6423 = vadd.xlane.f32.xlu1 %v6422_v54 }
 0x8b7   :  { %6450 = vadd.xlane.f32.xlu0 %v6449_v52 }
 0x8b8   :  { %6453 = vadd.xlane.f32.xlu1 %v6452_v2 }
 0x8bb   :  { %6402 = vadd.xlane.f32.xlu0 %v6401_v53 }
 0x8bc   :  { %6405 = vadd.xlane.f32.xlu1 %v6404_v46 }
 0x8bf   :  { %6474 = vadd.xlane.f32.xlu0 %v6473_v22 }
 0x8c0   :  { %6477 = vadd.xlane.f32.xlu1 %v6476_v8 }
 0x8c3   :  { %6498 = vadd.xlane.f32.xlu0 %v6497_v16 }
 0x8c4   :  { %6501 = vadd.xlane.f32.xlu1 %v6500_v59 }
 0x8e5   :  { %v6397_v17 = vpop.xlane.xlu0 %6396 }
 0x8e7   :  { %v6400_v14 = vpop.xlane.xlu1 %6399 }
 0x8e9   :  { %v6493_v60 = vpop.xlane.xlu0 %6492 }
 0x8eb   :  { %v6496_v26 = vpop.xlane.xlu1 %6495 }
 0x8f4   :  { %v6383_v39 = vpop.xlane.xlu0 %6382 }
 0x8f6   :  { %v6386_v55 = vpop.xlane.xlu1 %6385 }
 0x8f8   :  { %v6377_v41 = vpop.xlane.xlu0 %6376 }
 0x8fa   :  { %v6380_v50 = vpop.xlane.xlu1 %6379 }
 0x8fc   :  { %v6469_v42 = vpop.xlane.xlu0 %6468 }
 0x8fe   :  { %v6472_v19 = vpop.xlane.xlu1 %6471 }
 0x924   :  { %v6363_v24 = vpop.xlane.xlu0 %6362 }
 0x926   :  { %v6366_v3 = vpop.xlane.xlu1 %6365 }
 0x928   :  { %v6357_v29 = vpop.xlane.xlu0 %6356 }
 0x92a   :  { %v6360_v45 = vpop.xlane.xlu1 %6359 }
 0x92c   :  { %v6445_v31 = vpop.xlane.xlu0 %6444 }
 0x92e   :  { %v6448_v12 = vpop.xlane.xlu1 %6447 }
 0x934   :  { %v6343_v35 = vpop.xlane.xlu0 %6342 }
 0x935   :  { %v6337_v6 = vpop.xlane.xlu1 %6336  ;;  %v6369_v8 = vadd.f32 %v6363_v24, %v6343_v35 }
 0x936   :  { %v6367_v9 = vadd.f32 %v6357_v29, %v6337_v6 }
 0x938   :  { %v6427_v49 = vpop.xlane.xlu0 %6426  ;;  %v6387_v54 = vadd.f32 %v6377_v41, %v6367_v9 }
 0x939   :  { %v6346_v15 = vpop.xlane.xlu1 %6345 }
 0x93a   :  { %v6407_v52 = vadd.f32 %v6397_v17, %v6387_v54  ;;  %v6370_v59 = vadd.f32 %v6366_v3, %v6346_v15 }
 0x93c   :  { %v6340_v40 = vpop.xlane.xlu0 %6339  ;;  %v6507_v1 = vmul.f32 0.0078125, %v6407_v52  ;;  %v6390_v29 = vadd.f32 %v6386_v55, %v6370_v59 }
 0x93d   :  { %v6368_v11 = vadd.f32 %v6360_v45, %v6340_v40  ;;  %v6430_v5 = vpop.xlane.xlu1 %6429 }
 0x93e   :  { %v6515_v33 = vmul.f32 %v6507_v1, %v6507_v1 }
 0x93f   :  { %v6388_v58 = vadd.f32 %v6380_v50, %v6368_v11 }
 0x940   :  { %v6421_v27 = vpop.xlane.xlu0 %6420 }
 0x941   :  { %v6408_v2 = vadd.f32 %v6400_v14, %v6388_v58  ;;  %v6455_v44 = vadd.f32 %v6445_v31, %v6421_v27  ;;  %v6424_v53 = vpop.xlane.xlu1 %6423  ;;  %v6389_v14 = vadd.f32 %v6383_v39, %v6369_v8 }
 0x942   :  { %v6456_v63 = vadd.f32 %v6448_v12, %v6424_v53 }
 0x943   :  { %v6479_v46 = vadd.f32 %v6469_v42, %v6455_v44  ;;  %v6508_v37 = vmul.f32 0.0078125, %v6408_v2 }
 0x944   :  { %v6480_v22 = vadd.f32 %v6472_v19, %v6456_v63  ;;  %v6451_v18 = vpop.xlane.xlu0 %6450 }
 0x945   :  { %v6503_v20 = vadd.f32 %v6493_v60, %v6479_v46  ;;  %v6454_v16 = vpop.xlane.xlu1 %6453  ;;  %v6516_v30 = vmul.f32 %v6508_v37, %v6508_v37  ;;  %v6457_v60 = vadd.f32 %v6451_v18, %v6427_v49  ;;  %v6317_v46 = vld [vmem:[%s20615_s6 + $0x8] sm:$0xff] }
 0x946   :  { %v6504_v43 = vadd.f32 %v6496_v26, %v6480_v22  ;;  %v6458_v26 = vadd.f32 %v6454_v16, %v6430_v5  ;;  %v6316_v5 = vld [vmem:[%s20615_s6] sm:$0xff] }
 0x947   :  { %v6511_v34 = vmul.f32 0.0078125, %v6503_v20 }
 0x948   :  { %v6512_v32 = vmul.f32 0.0078125, %v6504_v43  ;;  %v6403_v36 = vpop.xlane.xlu0 %6402  ;;  %v6320_v43 = vld [vmem:[%s20616_s7] sm:$0xff] }
 0x949   :  { %v6519_v17 = vsub.f32 %v6511_v34, %v6515_v33  ;;  %v6406_v41 = vpop.xlane.xlu1 %6405  ;;  %v6409_v42 = vadd.f32 %v6403_v36, %v6389_v14  ;;  %v6321_v34 = vld [vmem:[%s20616_s7 + $0x8] sm:$0xff] }
 0x94a   :  { %v6520_v50 = vsub.f32 %v6512_v32, %v6516_v30  ;;  %v6410_v19 = vadd.f32 %v6406_v41, %v6390_v29  ;;  %v15508_v32 = vld [vmem:[#allocation10 + $0x78] ss:$8 sps:$4 sm:$0xff]   ;;  %v15510_v36 = vld [vmem:[#allocation10 + $0x7c] ss:$8 sps:$4 sm:$0xff]   ;;  %v6318_v41 = vld [vmem:[%s20615_s6 + $0x10] sm:$0xff] }
 0x94b   :  { %v6523_v45 = vmax.f32 %v6519_v17, 0.0  ;;  %v6509_v6 = vmul.f32 0.0078125, %v6409_v42  ;;  %6698 = vmatprep.subr.bf16.mxu0 %v15510_v36 }
 0x94c   :  { %v6524_v31 = vmax.f32 %v6520_v50, 0.0  ;;  %v6475_v12 = vpop.xlane.xlu0 %6474  ;;  %v6510_v15 = vmul.f32 0.0078125, %v6410_v19  ;;  %6699 = vmatpush1.bf16.msra.mxu0 %v15508_v32 }
 0x94d   :  { %v6527_v24 = vadd.f32 1e-05, %v6523_v45  ;;  %v6478_v35 = vpop.xlane.xlu1 %6477  ;;  %v6481_v9 = vadd.f32 %v6475_v12, %v6457_v60  ;;  %v6517_v52 = vmul.f32 %v6509_v6, %v6509_v6 }
 0x94e   :  { %v6528_v3 = vadd.f32 1e-05, %v6524_v31  ;;  %v6482_v54 = vadd.f32 %v6478_v35, %v6458_v26  ;;  %v6518_v27 = vmul.f32 %v6510_v15, %v6510_v15  ;;  %v6322_v31 = vld [vmem:[%s20616_s7 + $0x10] sm:$0xff]  ;;  %v6323_v35 = vld [vmem:[%s20616_s7 + $0x18] sm:$0xff]  ;;  %s16291_s7 = smov 106  }
 0x94f   :  { %16043 = vrsqrt.f32 %v6527_v24  ;;  %v15515_v24 = vld [vmem:[#allocation10 + $0x4] ss:$8 sps:$4 sm:$0xff]  }
 0x950   :  { %16045 = vrsqrt.f32 %v6528_v3  ;;  %v6499_v39 = vpop.xlane.xlu0 %6498 }
 0x951   :  { %v6505_v40 = vadd.f32 %v6499_v39, %v6481_v9  ;;  %v6502_v11 = vpop.xlane.xlu1 %6501 }
 0x952   :  { %v6506_v55 = vadd.f32 %v6502_v11, %v6482_v54 }
 0x953   :  { %v6513_v58 = vmul.f32 0.0078125, %v6505_v40 }
 0x954   :  { %v6514_v2 = vmul.f32 0.0078125, %v6506_v55 }
 0x955   :  { %v6521_v44 = vsub.f32 %v6513_v58, %v6517_v52 }
 0x956   :  { %v6522_v53 = vsub.f32 %v6514_v2, %v6518_v27 }
 0x957   :  { %v6525_v49 = vmax.f32 %v6521_v44, 0.0 }
 0x958   :  { %v6526_v63 = vmax.f32 %v6522_v53, 0.0 }
 0x959   :  { %v16044_v22 = vpop.eup %16043  ;;  %v6529_v18 = vadd.f32 1e-05, %v6525_v49 }
 0x95a   :  { %v16046_v8 = vpop.eup %16045  ;;  %v6530_v20 = vadd.f32 1e-05, %v6526_v63  ;;  %v6535_v16 = vmul.f32 %v16044_v22, %v6316_v5 }
 0x95b   :  { %16047 = vrsqrt.f32 %v6529_v18  ;;  %v6536_v59 = vmul.f32 %v16046_v8, %v6317_v46 }
 0x95c   :  { %16049 = vrsqrt.f32 %v6530_v20  ;;  %6549 = vperm.xlu0 %15400, %v6535_v16   ;;  %v6539_v33 = vmul.f32 %v6535_v16, %v6507_v1  ;;  %v6319_v1 = vld [vmem:[%s20615_s6 + $0x18] sm:$0xff]  ;;  %s16290_s6 = smov 107  }
 0x95d   :  { %6554 = vperm.xlu1 %15401, %v6536_v59   ;;  %v6540_v30 = vmul.f32 %v6536_v59, %v6508_v37  ;;  %v6633_v37 = vld [vmem:[#allocation10 + $0x88] sm:$0xff] }
 0x95e   :  { %v6543_v17 = vsub.f32 %v6320_v43, %v6539_v33  ;;  %v13684_v19 = vcombine.high %v6633_v37, %v6633_v37  ;;  %v13683_v12 = vcombine.low %v6633_v37, %v6633_v37  ;;  %v15513_v59 = vld [vmem:[#allocation10] ss:$8 sps:$4 sm:$0xff]  }
 0x95f   :  { %v6544_v14 = vsub.f32 %v6321_v34, %v6540_v30  ;;  %v15518_v30 = vld [vmem:[#allocation10 + $0x14] ss:$8 sps:$4 sm:$0xff]  }
 0x960   :  { %13685 = vmatprep.subr.msk.bf16.mxu0 %vm6685_vm6, %v13684_v19  ;;  %v6687_v26 = vsel %vm6685_vm6, %v13683_v12, 0 }
 0x961   :  { %6573 = vperm.xlu1 %15401, %v6543_v17   ;;  %6578 = vperm.xlu0 %15400, %v6544_v14   ;;  %v15516_v14 = vld [vmem:[#allocation10 + $0x10] ss:$8 sps:$4 sm:$0xff]  }
 0x962   :  { %6701 = vmatpush1.bf16.msra.mxu0 %v6687_v26  ;;  %v15519_v26 = vld [vmem:[#allocation10 + $0x20] ss:$8 sps:$4 sm:$0xff]  }
 0x963   :  { %6802 = vmatprep.subr.bf16.mxu0 %v15515_v24 }
 0x965   :  { %v16048_v50 = vpop.eup %16047 }
 0x966   :  { %v16050_v29 = vpop.eup %16049  ;;  %v6537_v45 = vmul.f32 %v16048_v50, %v6318_v41 }
 0x967   :  { %v6538_v42 = vmul.f32 %v16050_v29, %v6319_v1  ;;  %v15521_v29 = vld [vmem:[#allocation10 + $0x24] ss:$8 sps:$4 sm:$0xff]  }
 0x968   :  { %6559 = vperm.xlu1 %15401, %v6537_v45   ;;  %v6541_v60 = vmul.f32 %v6537_v45, %v6509_v6 }
 0x969   :  { %6564 = vperm.xlu0 %15400, %v6538_v42   ;;  %v6542_v3 = vmul.f32 %v6538_v42, %v6510_v15 }
 0x96a   :  { %v6545_v9 = vsub.f32 %v6322_v31, %v6541_v60 }
 0x96b   :  { %v6546_v54 = vsub.f32 %v6323_v35, %v6542_v3 }
 0x96c   :  { %6583 = vperm.xlu1 %15401, %v6545_v9  }
 0x96d   :  { %6588 = vperm.xlu0 %15400, %v6546_v54  }
 0x9db   :  { %v6550_v39 = vpop.permute.xlu0 %6549 }
 0x9dc   :  { %v6555_v40 = vpop.permute.xlu1 %6554  ;;  %v6567_v52 = vmul.f32 %v6550_v39, %v19602_v38  ;;  %v6610_v58 = vmul.f32 %v6550_v39, %v19572_v23  ;;  %v6855_v27 = vmul.f32 %v6550_v39, %v19544_v47  ;;  %v6997_v2 = vmul.f32 %v6550_v39, %v19520_v62 }
 0x9dd   :  { %v6568_v6 = vmul.f32 %v6555_v40, %v19608_v57  ;;  %v6611_v11 = vmul.f32 %v6555_v40, %v19582_v28  ;;  %v6856_v55 = vmul.f32 %v6555_v40, %v19554_v21  ;;  %v6998_v15 = vmul.f32 %v6555_v40, %v19528_v0 }
 0x9e0   :  { %v6579_v44 = vpop.permute.xlu0 %6578  ;;  %v6574_v53 = vpop.permute.xlu1 %6573 }
 0x9e1   :  { %v6592_v49 = vadd.f32 %v6579_v44, %v6568_v6  ;;  %v6615_v5 = vadd.f32 %v6611_v11, %v6579_v44  ;;  %v6860_v63 = vadd.f32 %v6856_v55, %v6579_v44  ;;  %v7002_v57 = vadd.f32 %v6998_v15, %v6579_v44  ;;  %v6609_v11 = vld [vmem:[#allocation10 + $0x40] sm:$0xff]  ;;  %v15522_v55 = vld [vmem:[#allocation10 + $0x30] ss:$8 sps:$4 sm:$0xff]  }
 0x9e2   :  { %v6591_v46 = vadd.f32 %v6574_v53, %v6567_v52  ;;  %v6614_v28 = vadd.f32 %v6610_v58, %v6574_v53  ;;  %v6859_v22 = vadd.f32 %v6855_v27, %v6574_v53  ;;  %v7001_v21 = vadd.f32 %v6997_v2, %v6574_v53 }
 0x9e3   :  { %v6596_v18 = vmax.f32 %v6592_v49, 0.0  ;;  %v6619_v0 = vmax.f32 %v6615_v5, 0.0  ;;  %v6864_v8 = vmax.f32 %v6860_v63, 0.0  ;;  %v7006_v38 = vmax.f32 %v7002_v57, 0.0  ;;  %v15529_v49 = vld [vmem:[#allocation10 + $0x94] ss:$8 sps:$4 sm:$0xff]  }
 0x9e4   :  { %v6595_v20 = vmax.f32 %v6591_v46, 0.0  ;;  %v6618_v23 = vmax.f32 %v6614_v28, 0.0  ;;  %v6863_v16 = vmax.f32 %v6859_v22, 0.0  ;;  %v7005_v47 = vmax.f32 %v7001_v21, 0.0  ;;  %v15527_v5 = vld [vmem:[#allocation10 + $0x90] ss:$8 sps:$4 sm:$0xff]  }
 0x9e5   :  { %v13697_v2 = vcombine.high %v6609_v11, %v6609_v11  ;;  %v13696_v44 = vcombine.low %v6609_v11, %v6609_v11  ;;  %v15532_v63 = vld [vmem:[#allocation10 + $0xa4] ss:$8 sps:$4 sm:$0xff]   ;;  %v15530_v57 = vld [vmem:[#allocation10 + $0xa0] ss:$8 sps:$4 sm:$0xff]   ;;  %v15535_v46 = vld [vmem:[#allocation10 + $0xb4] ss:$8 sps:$4 sm:$0xff]  }
 0x9e6   :  { %v19696_v62 = vpack.c.bf16 %v6596_v18, %v6595_v20  ;;  %v6622_v43 = vpack.c.bf16 %v6619_v0, %v6618_v23  ;;  %v19698_v33 = vpack.c.bf16 %v6864_v8, %v6863_v16  ;;  %v19700_v34 = vpack.c.bf16 %v7006_v38, %v7005_v47  ;;  %v15533_v28 = vld [vmem:[#allocation10 + $0xb0] ss:$8 sps:$4 sm:$0xff]   ;;  %v15538_v22 = vld [vmem:[#allocation10 + $0xc4] ss:$8 sps:$4 sm:$0xff]   ;;  %v15536_v18 = vld [vmem:[#allocation10 + $0xc0] ss:$8 sps:$4 sm:$0xff]  }
 0x9e7   :  { %v6560_v32 = vpop.permute.xlu1 %6559  ;;  %v6797_v53 = vsel %vm6685_vm6, %v13696_v44, 0  ;;  %v6878_v21 = vld [vmem:[#allocation10 + $0xd0] sm:$0xff]  ;;  %v15543_v20 = vld [vmem:[#allocation10 + $0xdc] ss:$8 sps:$4 sm:$0xff]   ;;  %v15541_v23 = vld [vmem:[#allocation10 + $0xd8] ss:$8 sps:$4 sm:$0xff]  }
 0x9e8   :  { %13686 = vmatmul.mubr.msk.bf16.vlgmr.msra.gmra.mrb[88].mxu0 %vm6334_vm5, %v6622_v43  ;;  %v6565_v36 = vpop.permute.xlu0 %6564  ;;  %v6569_v17 = vmul.f32 %v19596_v4, %v6560_v32  ;;  %v6612_v41 = vmul.f32 %v19568_v51, %v6560_v32  ;;  %v6857_v1 = vmul.f32 %v19540_v10, %v6560_v32  ;;  %v6999_v50 = vmul.f32 %v19518_v61, %v6560_v32  ;;  %v15546_v16 = vld [vmem:[#allocation10 + $0xec] ss:$8 sps:$4 sm:$0xff]   ;;  %v15544_v47 = vld [vmem:[#allocation10 + $0xe8] ss:$8 sps:$4 sm:$0xff]  }
 0x9e9   :  { %6803 = vmatpush1.bf16.msra.mxu0 %v15513_v59  ;;  %6734 = vmatprep.mubr.bf16.mxu0 %v21295_v13  ;;  %v6570_v45 = vmul.f32 %v19606_v25, %v6565_v36  ;;  %v6613_v37 = vmul.f32 %v19574_v56, %v6565_v36  ;;  %v6858_v42 = vmul.f32 %v19546_v48, %v6565_v36  ;;  %v15524_v48 = vld [vmem:[#allocation10 + $0x34] ss:$8 sps:$4 sm:$0xff]   ;;  %v15550_v32 = vld [vmem:[#allocation10 + $0x108] ss:$8 sps:$4 sm:$0xff]  }
 0x9ea   :  { %6804 = vmatprep.subr.bf16.mxu0 %v15518_v30  ;;  %v7000_v31 = vmul.f32 %v19526_v7, %v6565_v36  ;;  %v13710_v0 = vcombine.high %v6878_v21, %v6878_v21  ;;  %v13709_v8 = vcombine.low %v6878_v21, %v6878_v21  ;;  %v15549_v59 = vld [vmem:[#allocation10 + $0xfc] ss:$8 sps:$4 sm:$0xff]   ;;  %v15552_v43 = vld [vmem:[#allocation10 + $0x10c] ss:$8 sps:$4 sm:$0xff]  }
 0x9eb   :  { %v6584_v4 = vpop.permute.xlu1 %6583  ;;  %v7020_v30 = vld [vmem:[#allocation10 + $0x118] sm:$0xff] }
 0x9ec   :  { %v6593_v19 = vadd.f32 %v6584_v4, %v6569_v17  ;;  %v6616_v12 = vadd.f32 %v6612_v41, %v6584_v4  ;;  %v6861_v51 = vadd.f32 %v6857_v1, %v6584_v4  ;;  %v7003_v24 = vadd.f32 %v6999_v50, %v6584_v4  ;;  %v6589_v10 = vpop.permute.xlu0 %6588 }
 0x9ed   :  { %6805 = vmatpush1.bf16.msra.mxu0 %v15516_v14  ;;  %v6594_v61 = vadd.f32 %v6589_v10, %v6570_v45  ;;  %v6617_v60 = vadd.f32 %v6613_v37, %v6589_v10  ;;  %v6862_v35 = vadd.f32 %v6858_v42, %v6589_v10  ;;  %v7004_v3 = vadd.f32 %v7000_v31, %v6589_v10 }
 0x9ee   :  { %v6597_v9 = vmax.f32 %v6593_v19, 0.0  ;;  %v6620_v25 = vmax.f32 %v6616_v12, 0.0  ;;  %v6865_v54 = vmax.f32 %v6861_v51, 0.0  ;;  %v7007_v56 = vmax.f32 %v7003_v24, 0.0  ;;  %6806 = vmatprep.subr.bf16.mxu0 %v15521_v29 }
 0x9ef   :  { %v6598_v39 = vmax.f32 %v6594_v61, 0.0  ;;  %v6621_v7 = vmax.f32 %v6617_v60, 0.0  ;;  %v6866_v40 = vmax.f32 %v6862_v35, 0.0  ;;  %v7008_v6 = vmax.f32 %v7004_v3, 0.0 }
 0x9f0   :  { %v6931_v38 = vsel %vm6685_vm6, %v13709_v8, 0  ;;  %v13723_v36 = vcombine.high %v7020_v30, %v7020_v30 }
 0x9f1   :  { %6807 = vmatpush1.bf16.msra.mxu0 %v15519_v26  ;;  %v6623_v15 = vpack.c.bf16 %v6621_v7, %v6620_v25  ;;  %v6600_v52 = vpack.c.bf16 %v6598_v39, %v6597_v9  ;;  %v6868_v58 = vpack.c.bf16 %v6866_v40, %v6865_v54  ;;  %v19712_v27 = vpack.c.bf16 %v7008_v6, %v7007_v56  ;;  %v15555_v26 = vld [vmem:[#allocation12 + $0x10] sm:$0xff]   ;;  %v15556_v40 = vld [vmem:[#allocation12] sm:$0xff]  }
 0x9f2   :  { %6808 = vmatprep.subr.bf16.mxu0 %v15524_v48 }
 0x9f3   :  { %13687 = vmatmul.mubr.msk.bf16.gmra.mrb[92].mxu0 %vm6334_vm5, %v6623_v15 }
 0x9f4   :  { %6834 = vmatprep.mubr.bf16.mxu0 %v21295_v13 }
 0x9f5   :  { %6809 = vmatpush1.bf16.msra.mxu0 %v15522_v55 }
 0x9f6   :  { %13698 = vmatprep.subr.msk.bf16.mxu0 %vm6685_vm6, %v13697_v2 }
 0x9f9   :  { %6811 = vmatpush1.bf16.msra.mxu0 %v6797_v53  ;;  %v15558_v53 = vld [vmem:[#allocation12 + $0x8] sm:$0xff]  }
 0x9fa   :  { %6936 = vmatprep.subr.bf16.mxu0 %v15529_v49 }
 0x9fc   :  { %13699 = vmatmul.mubr.msk.bf16.vlgmr.msra.gmra.mrb[88].mxu0 %vm6334_vm5, %v19696_v62  ;;  %v15547_v62 = vld [vmem:[#allocation10 + $0xf8] ss:$8 sps:$4 sm:$0xff]  }
 0x9fd   :  { %6937 = vmatpush1.bf16.msra.mxu0 %v15527_v5  ;;  %6844 = vmatprep.mubr.bf16.mxu0 %v21295_v13 }
 0x9fe   :  { %6938 = vmatprep.subr.bf16.mxu0 %v15532_v63 }
 0xa01   :  { %6939 = vmatpush1.bf16.msra.mxu0 %v15530_v57 }
 0xa02   :  { %6940 = vmatprep.subr.bf16.mxu0 %v15535_v46  ;;  %v15559_v46 = vld [vmem:[#allocation12 + $0x30] sm:$0xff]  }
 0xa04   :  { %13700 = vmatmul.mubr.msk.bf16.gmra.mrb[92].mxu0 %vm6334_vm5, %v6600_v52 }
 0xa05   :  { %6941 = vmatpush1.bf16.msra.mxu0 %v15533_v28  ;;  %6968 = vmatprep.mubr.bf16.mxu0 %v21295_v13 }
 0xa06   :  { %6942 = vmatprep.subr.bf16.mxu0 %v15538_v22 }
 0xa09   :  { %6943 = vmatpush1.bf16.msra.mxu0 %v15536_v18 }
 0xa0a   :  { %13711 = vmatprep.subr.msk.bf16.mxu0 %vm6685_vm6, %v13710_v0 }
 0xa0d   :  { %6945 = vmatpush1.bf16.msra.mxu0 %v6931_v38  ;;  %v15560_v38 = vld [vmem:[#allocation12 + $0x20] sm:$0xff]  }
 0xa0e   :  { %7078 = vmatprep.subr.bf16.mxu0 %v15543_v20 }
 0xa10   :  { %13712 = vmatmul.mubr.msk.bf16.vlgmr.msra.gmra.mrb[88].mxu0 %vm6334_vm5, %v19698_v33  ;;  %v13722_v33 = vcombine.low %v7020_v30, %v7020_v30  ;;  %v15563_v30 = vld [vmem:[#allocation12 + $0x40] sm:$0xff]  }
 0xa11   :  { %7079 = vmatpush1.bf16.msra.mxu0 %v15541_v23  ;;  %6978 = vmatprep.mubr.bf16.mxu0 %v21295_v13 }
 0xa12   :  { %7080 = vmatprep.subr.bf16.mxu0 %v15546_v16  ;;  %v7073_v17 = vsel %vm6685_vm6, %v13722_v33, 0 }
 0xa15   :  { %7081 = vmatpush1.bf16.msra.mxu0 %v15544_v47 }
 0xa16   :  { %7082 = vmatprep.subr.bf16.mxu0 %v15549_v59 }
 0xa18   :  { %13713 = vmatmul.mubr.msk.bf16.gmra.mrb[92].mxu0 %vm6334_vm5, %v6868_v58  ;;  %v15557_v58 = vld [vmem:[#allocation12 + $0x18] sm:$0xff]  }
 0xa19   :  { %7083 = vmatpush1.bf16.msra.mxu0 %v15547_v62  ;;  %7110 = vmatprep.mubr.bf16.mxu0 %v21295_v13  ;;  %v15561_v62 = vld [vmem:[#allocation12 + $0x38] sm:$0xff]  }
 0xa1a   :  { %7084 = vmatprep.subr.bf16.mxu0 %v15552_v43  ;;  %v15562_v43 = vld [vmem:[#allocation12 + $0x28] sm:$0xff]  }
 0xa1d   :  { %7085 = vmatpush1.bf16.msra.mxu0 %v15550_v32  ;;  %v15564_v32 = vld [vmem:[#allocation12 + $0x48] sm:$0xff]  }
 0xa1e   :  { %13724 = vmatprep.subr.msk.bf16.mxu0 %vm6685_vm6, %v13723_v36  ;;  %v15565_v36 = vld [vmem:[#allocation12 + $0x50] sm:$0xff]  }
 0xa21   :  { %7087 = vmatpush1.bf16.msra.mxu0 %v7073_v17 }
 0xa24   :  { %13725 = vmatmul.mubr.msk.bf16.vlgmr.msra.gmra.mrb[88].mxu0 %vm6334_vm5, %v19700_v34 }
 0xa25   :  { %7120 = vmatprep.mubr.bf16.mxu0 %v21295_v13 }
 0xa2c   :  { %13726 = vmatmul.mubr.msk.bf16.gmra.mrb[92].mxu0 %vm6334_vm5, %v19712_v27 }
 0xaf7   :  { %v7112_v14 = vpop.f32.mrb[88].mxu0 }
 0xaf8   :  { %v7114_v41 = vpop.f32.mrb[89].mxu0 }
 0xaf9   :  { %v7116_v1 = vpop.f32.mrb[90].mxu0 }
 0xafa   :  { %v19737_v50 = vpack.c.bf16 %v7116_v1, %v7112_v14  ;;  %v7118_v29 = vpop.f32.mrb[91].mxu0  ;;  %v15566_v14 = vld [vmem:[#allocation12 + $0x58] sm:$0xff]  }
 0xafb   :  { %v7140_v45 = vpack.c.bf16 %v7118_v29, %v7114_v41 }
 0xafc   :  { %7169 = vrot.lane.b32.xlu1 %v19737_v50, %s16290_s6 }
 0xafd   :  { %7145 = vst.msk [vmem:[#allocation3 + $0x8] sm:$0xff] %vm7144_vm7, %v7140_v45 }
 0xaff   :  { %v7122_v37 = vpop.f32.mrb[92].mxu0 }
 0xb00   :  { %v7124_v42 = vpop.f32.mrb[93].mxu0 }
 0xb01   :  { %v7126_v34 = vpop.f32.mrb[94].mxu0 }
 0xb02   :  { %v19740_v31 = vpack.c.bf16 %v7126_v34, %v7122_v37  ;;  %v7128_v4 = vpop.f32.mrb[95].mxu0 }
 0xb03   :  { %v7142_v19 = vpack.c.bf16 %v7128_v4, %v7124_v42  ;;  %v15567_v42 = vld [vmem:[#allocation12 + $0x60] sm:$0xff]  }
 0xb04   :  { %v19742_v12 = vld [vmem:[#allocation3 + $0x8] sm:$0xff]  ;;  %7173 = vrot.lane.b32.xlu1 %v19740_v31, %s16290_s6 }
 0xb05   :  { %7147 = vst.msk [vmem:[#allocation3 + $0x18] sm:$0xff] %vm7144_vm7, %v7142_v19  ;;  %7171 = vrot.lane.b32.xlu0 %v19742_v12, %s16290_s6  ;;  %vm11766_vm7 = vcmask 900096  }
 0xb08   :  { %7236 = vrot.lane.b32.xlu1 %v19737_v50, %s16291_s7 }
 0xb0c   :  { %v19747_v51 = vld [vmem:[#allocation3 + $0x18] sm:$0xff]  ;;  %7240 = vrot.lane.b32.xlu1 %v19740_v31, %s16291_s7 }
 0xb0d   :  { %7175 = vrot.lane.b32.xlu0 %v19747_v51, %s16290_s6 }
 0xb10   :  { %7305 = vrot.lane.b32.xlu1 %v19737_v50, %s16292_s4 }
 0xb11   :  { %7238 = vrot.lane.b32.xlu0 %v19742_v12, %s16291_s7 }
 0xb14   :  { %7309 = vrot.lane.b32.xlu1 %v19740_v31, %s16292_s4 }
 0xb15   :  { %7242 = vrot.lane.b32.xlu0 %v19747_v51, %s16291_s7 }
 0xb18   :  { %7431 = vrot.lane.b32.xlu1 %v19737_v50, %s16293_s3 }
 0xb19   :  { %7307 = vrot.lane.b32.xlu0 %v19742_v12, %s16292_s4 }
 0xb1c   :  { %7435 = vrot.lane.b32.xlu1 %v19740_v31, %s16293_s3 }
 0xb1d   :  { %7311 = vrot.lane.b32.xlu0 %v19747_v51, %s16292_s4 }
 0xb20   :  { %7497 = vrot.lane.b32.xlu1 %v19737_v50, %s16284_s24 }
 0xb21   :  { %7433 = vrot.lane.b32.xlu0 %v19742_v12, %s16293_s3 }
 0xb24   :  { %7501 = vrot.lane.b32.xlu1 %v19740_v31, %s16284_s24 }
 0xb25   :  { %7437 = vrot.lane.b32.xlu0 %v19747_v51, %s16293_s3 }
 0xb28   :  { %7566 = vrot.lane.b32.xlu1 %v19737_v50, %s16294_s26 }
 0xb29   :  { %7499 = vrot.lane.b32.xlu0 %v19742_v12, %s16284_s24 }
 0xb2c   :  { %7570 = vrot.lane.b32.xlu1 %v19740_v31, %s16294_s26 }
 0xb2d   :  { %7503 = vrot.lane.b32.xlu0 %v19747_v51, %s16284_s24 }
 0xb30   :  { %7918 = vrot.lane.b32.xlu1 %v19737_v50, %s16288_s23 }
 0xb31   :  { %7568 = vrot.lane.b32.xlu0 %v19742_v12, %s16294_s26 }
 0xb34   :  { %7922 = vrot.lane.b32.xlu1 %v19740_v31, %s16288_s23 }
 0xb35   :  { %7572 = vrot.lane.b32.xlu0 %v19747_v51, %s16294_s26 }
 0xb38   :  { %7991 = vrot.lane.b32.xlu1 %v19737_v50, %s16289_s27 }
 0xb39   :  { %7920 = vrot.lane.b32.xlu0 %v19742_v12, %s16288_s23 }
 0xb3c   :  { %7995 = vrot.lane.b32.xlu1 %v19740_v31, %s16289_s27 }
 0xb3d   :  { %7924 = vrot.lane.b32.xlu0 %v19747_v51, %s16288_s23 }
 0xb41   :  { %7993 = vrot.lane.b32.xlu0 %v19742_v12, %s16289_s27 }
 0xb45   :  { %7997 = vrot.lane.b32.xlu0 %v19747_v51, %s16289_s27 }
 0xb6e   :  { %v7170_v24 = vpop.permute.xlu1 %7169 }
 0xb76   :  { %v7174_v60 = vpop.permute.xlu1 %7173 }
 0xb77   :  { %v7172_v10 = vpop.permute.xlu0 %7171 }
 0xb78   :  { %7188 = vmatprep.subr.bf16.mxu1 %v7172_v10  ;;  %v7178_v61 = vsel %vm7177_vm8, %v7170_v24, %v7172_v10 }
 0xb79   :  { %7189 = vmatpush1.bf16.msra.mxu1 %v7178_v61 }
 0xb7a   :  { %v7237_v9 = vpop.permute.xlu1 %7236 }
 0xb7e   :  { %v7241_v56 = vpop.permute.xlu1 %7240 }
 0xb7f   :  { %v7176_v35 = vpop.permute.xlu0 %7175 }
 0xb80   :  { %7190 = vmatprep.subr.bf16.mxu1 %v7176_v35  ;;  %v7179_v3 = vsel %vm7177_vm8, %v7174_v60, %v7176_v35  ;;  %v15569_v60 = vld [vmem:[#allocation12 + $0x70] sm:$0xff]   ;;  %vm11465_vm8 = vcmask 891904  }
 0xb81   :  { %7191 = vmatpush1.bf16.msra.mxu1 %v7179_v3 }
 0xb82   :  { %v7306_v6 = vpop.permute.xlu1 %7305 }
 0xb83   :  { %v7239_v25 = vpop.permute.xlu0 %7238 }
 0xb84   :  { %v7245_v54 = vsel %vm7244_vm9, %v7237_v9, %v7239_v25  ;;  %13728 = vmatmul.mubr.msk.bf16.vlgmr.msra.gmra.mrb[64].mxu1 %vm7184_vm10, %v15555_v26  ;;  %7254 = vmatprep.subr.bf16.mxu1 %v7239_v25  ;;  %v8172_v25 = vld [vmem:[#allocation13] sm:$0x3] }
 0xb85   :  { %7255 = vmatpush1.bf16.msra.mxu1 %v7245_v54  ;;  %7286 = vmatprep.mubr.bf16.mxu1 %v21295_v13 }
 0xb86   :  { %v7310_v15 = vpop.permute.xlu1 %7309 }
 0xb87   :  { %v7243_v48 = vpop.permute.xlu0 %7242 }
 0xb88   :  { %v7246_v39 = vsel %vm7244_vm9, %v7241_v56, %v7243_v48  ;;  %7256 = vmatprep.subr.bf16.mxu1 %v7243_v48  ;;  %vm13239_vm9 = vcmask 1042432  }
 0xb89   :  { %7257 = vmatpush1.bf16.msra.mxu1 %v7246_v39 }
 0xb8a   :  { %v7432_v2 = vpop.permute.xlu1 %7431 }
 0xb8b   :  { %v7308_v7 = vpop.permute.xlu0 %7307 }
 0xb8c   :  { %7323 = vmatprep.subr.bf16.mxu1 %v7308_v7  ;;  %v7314_v55 = vsel %vm7313_vm11, %v7306_v6, %v7308_v7 }
 0xb8e   :  { %v7436_v49 = vpop.permute.xlu1 %7435 }
 0xb8f   :  { %v7312_v11 = vpop.permute.xlu0 %7311 }
 0xb90   :  { %13730 = vmatmul.mubr.msk.bf16.vlgmr.msra.gmra.mrb[64].mxu1 %vm7184_vm10, %v15556_v40  ;;  %v7315_v52 = vsel %vm7313_vm11, %v7310_v15, %v7312_v11 }
 0xb91   :  { %7324 = vmatpush1.bf16.msra.mxu1 %v7314_v55  ;;  %7355 = vmatprep.mubr.bf16.mxu1 %v21295_v13 }
 0xb92   :  { %7325 = vmatprep.subr.bf16.mxu1 %v7312_v11  ;;  %v7498_v28 = vpop.permute.xlu1 %7497 }
 0xb93   :  { %v19800_v27 = vpop.permute.xlu0 %7433 }
 0xb94   :  { %v7440_v5 = vsel %vm7439_vm12, %v7432_v2, %v19800_v27 }
 0xb95   :  { %7326 = vmatpush1.bf16.msra.mxu1 %v7315_v52 }
 0xb96   :  { %7374 = vmatprep.subr.bf16.mxu1 %v7172_v10  ;;  %v7502_v18 = vpop.permute.xlu1 %7501 }
 0xb97   :  { %v19804_v44 = vpop.permute.xlu0 %7437 }
 0xb98   :  { %13732 = vmatmul.mubr.msk.bf16.vlgmr.msra.gmra.mrb[68].mxu1 %vm7184_vm10, %v15557_v58  ;;  %v7441_v57 = vsel %vm7439_vm12, %v7436_v49, %v19804_v44 }
 0xb99   :  { %7375 = vmatpush1.bf16.msra.mxu1 %v7178_v61  ;;  %7406 = vmatprep.mubr.bf16.mxu1 %v21295_v13  ;;  %v15568_v61 = vld [vmem:[#allocation12 + $0x68] sm:$0xff]  }
 0xb9a   :  { %7376 = vmatprep.subr.bf16.mxu1 %v7176_v35  ;;  %v7567_v20 = vpop.permute.xlu1 %7566  ;;  %v15570_v35 = vld [vmem:[#allocation12 + $0x78] sm:$0xff]  }
 0xb9b   :  { %v7500_v63 = vpop.permute.xlu0 %7499 }
 0xb9c   :  { %v7506_v21 = vsel %vm7505_vm13, %v7498_v28, %v7500_v63 }
 0xb9d   :  { %7377 = vmatpush1.bf16.msra.mxu1 %v7179_v3  ;;  %v8178_v3 = vlaneseq }
 0xb9e   :  { %7449 = vmatprep.subr.bf16.mxu1 %v19800_v27  ;;  %v7571_v47 = vpop.permute.xlu1 %7570 }
 0xb9f   :  { %v7504_v22 = vpop.permute.xlu0 %7503  ;;  %v19848_v26 = vshrl.u32 %v8178_v3, 7 }
 0xba0   :  { %v7507_v0 = vsel %vm7505_vm13, %v7502_v18, %v7504_v22 }
 0xba1   :  { %v8184_v9 = vsub.s32 1, %v19848_v26 }
 0xba2   :  { %v7919_v17 = vpop.permute.xlu1 %7918 }
 0xba3   :  { %v7569_v8 = vpop.permute.xlu0 %7568  ;;  %v19852_v54 = vrot.slane %v8172_v25, %v8184_v9 }
 0xba4   :  { %13734 = vmatmul.mubr.msk.bf16.vlgmr.msra.gmra.mrb[68].mxu1 %vm7184_vm10, %v15558_v53  ;;  %v7575_v23 = vsel %vm7574_vm14, %v7567_v20, %v7569_v8 }
 0xba5   :  { %7450 = vmatpush1.bf16.msra.mxu1 %v7440_v5  ;;  %7481 = vmatprep.mubr.bf16.mxu1 %v21295_v13 }
 0xba6   :  { %7451 = vmatprep.subr.bf16.mxu1 %v19804_v44  ;;  %v7923_v1 = vpop.permute.xlu1 %7922 }
 0xba7   :  { %v7573_v16 = vpop.permute.xlu0 %7572 }
 0xba8   :  { %v7576_v59 = vsel %vm7574_vm14, %v7571_v47, %v7573_v16 }
 0xba9   :  { %7452 = vmatpush1.bf16.msra.mxu1 %v7441_v57 }
 0xbaa   :  { %7515 = vmatprep.subr.bf16.mxu1 %v7500_v63  ;;  %v7992_v34 = vpop.permute.xlu1 %7991 }
 0xbab   :  { %v7921_v33 = vpop.permute.xlu0 %7920 }
 0xbac   :  { %13736 = vmatmul.mubr.msk.bf16.vlgmr.msra.gmra.mrb[72].mxu1 %vm7184_vm10, %v15559_v46  ;;  %v7927_v29 = vsel %vm7926_vm15, %v7919_v17, %v7921_v33 }
 0xbad   :  { %7516 = vmatpush1.bf16.msra.mxu1 %v7506_v21  ;;  %7547 = vmatprep.mubr.bf16.mxu1 %v21295_v13 }
 0xbae   :  { %7517 = vmatprep.subr.bf16.mxu1 %v7504_v22  ;;  %v7996_v24 = vpop.permute.xlu1 %7995 }
 0xbaf   :  { %v7925_v41 = vpop.permute.xlu0 %7924 }
 0xbb0   :  { %v7928_v37 = vsel %vm7926_vm15, %v7923_v1, %v7925_v41 }
 0xbb1   :  { %7518 = vmatpush1.bf16.msra.mxu1 %v7507_v0 }
 0xbb2   :  { %7584 = vmatprep.subr.bf16.mxu1 %v7569_v8 }
 0xbb3   :  { %v7994_v45 = vpop.permute.xlu0 %7993 }
 0xbb4   :  { %v8000_v4 = vsel %vm7999_vm1, %v7992_v34, %v7994_v45 }
 0xbb7   :  { %v7998_v19 = vpop.permute.xlu0 %7997 }
 0xbb8   :  { %13738 = vmatmul.mubr.msk.bf16.vlgmr.msra.gmra.mrb[72].mxu1 %vm7184_vm10, %v15560_v38  ;;  %v8001_v10 = vsel %vm7999_vm1, %v7996_v24, %v7998_v19 }
 0xbb9   :  { %7585 = vmatpush1.bf16.msra.mxu1 %v7575_v23  ;;  %7616 = vmatprep.mubr.bf16.mxu1 %v21295_v13 }
 0xbba   :  { %7586 = vmatprep.subr.bf16.mxu1 %v7573_v16 }
 0xbbd   :  { %7587 = vmatpush1.bf16.msra.mxu1 %v7576_v59 }
 0xbbe   :  { %7635 = vmatprep.subr.bf16.mxu1 %v19800_v27 }
 0xbc0   :  { %13740 = vmatmul.mubr.msk.bf16.vlgmr.msra.gmra.mrb[76].mxu1 %vm7184_vm10, %v15561_v62 }
 0xbc1   :  { %7636 = vmatpush1.bf16.msra.mxu1 %v7440_v5  ;;  %7667 = vmatprep.mubr.bf16.mxu1 %v21295_v13 }
 0xbc2   :  { %7637 = vmatprep.subr.bf16.mxu1 %v19804_v44 }
 0xbc5   :  { %7638 = vmatpush1.bf16.msra.mxu1 %v7441_v57 }
 0xbc6   :  { %7689 = vmatprep.subr.bf16.mxu1 %v7500_v63 }
 0xbcc   :  { %13742 = vmatmul.mubr.msk.bf16.vlgmr.msra.gmra.mrb[76].mxu1 %vm7184_vm10, %v15562_v43 }
 0xbcd   :  { %7690 = vmatpush1.bf16.msra.mxu1 %v7506_v21  ;;  %7721 = vmatprep.mubr.bf16.mxu1 %v21295_v13 }
 0xbce   :  { %7691 = vmatprep.subr.bf16.mxu1 %v7504_v22 }
 0xbd1   :  { %7692 = vmatpush1.bf16.msra.mxu1 %v7507_v0 }
 0xbd2   :  { %7747 = vmatprep.subr.bf16.mxu1 %v19800_v27 }
 0xbd4   :  { %13744 = vmatmul.mubr.msk.bf16.vlgmr.msra.gmra.mrb[64].mxu1 %vm7184_vm10, %v15563_v30 }
 0xbd5   :  { %7748 = vmatpush1.bf16.msra.mxu1 %v7440_v5  ;;  %7779 = vmatprep.mubr.bf16.mxu1 %v21295_v13 }
 0xbd6   :  { %7749 = vmatprep.subr.bf16.mxu1 %v19804_v44 }
 0xbd9   :  { %7750 = vmatpush1.bf16.msra.mxu1 %v7441_v57 }
 0xbda   :  { %7805 = vmatprep.subr.bf16.mxu1 %v19800_v27 }
 0xbdc   :  { %13746 = vmatmul.mubr.msk.bf16.vlgmr.msra.gmra.mrb[68].mxu1 %vm7184_vm10, %v15564_v32 }
 0xbdd   :  { %7806 = vmatpush1.bf16.msra.mxu1 %v7440_v5  ;;  %7837 = vmatprep.mubr.bf16.mxu1 %v21295_v13 }
 0xbde   :  { %7807 = vmatprep.subr.bf16.mxu1 %v19804_v44 }
 0xbe1   :  { %7808 = vmatpush1.bf16.msra.mxu1 %v7441_v57 }
 0xbe2   :  { %7863 = vmatprep.subr.bf16.mxu1 %v7569_v8 }
 0xbe4   :  { %13748 = vmatmul.mubr.msk.bf16.vlgmr.msra.gmra.mrb[64].mxu1 %vm7184_vm10, %v15565_v36 }
 0xbe5   :  { %7864 = vmatpush1.bf16.msra.mxu1 %v7575_v23  ;;  %7895 = vmatprep.mubr.bf16.mxu1 %v21295_v13 }
 0xbe6   :  { %7865 = vmatprep.subr.bf16.mxu1 %v7573_v16 }
 0xbe9   :  { %7866 = vmatpush1.bf16.msra.mxu1 %v7576_v59 }
 0xbea   :  { %7936 = vmatprep.subr.bf16.mxu1 %v7921_v33 }
 0xbec   :  { %13750 = vmatmul.mubr.msk.bf16.vlgmr.msra.gmra.mrb[68].mxu1 %vm7184_vm10, %v15566_v14 }
 0xbed   :  { %7937 = vmatpush1.bf16.msra.mxu1 %v7927_v29  ;;  %7968 = vmatprep.mubr.bf16.mxu1 %v21295_v13 }
 0xbee   :  { %7938 = vmatprep.subr.bf16.mxu1 %v7925_v41 }
 0xbf1   :  { %7939 = vmatpush1.bf16.msra.mxu1 %v7928_v37 }
 0xbf2   :  { %8009 = vmatprep.subr.bf16.mxu1 %v7994_v45 }
 0xbf4   :  { %13752 = vmatmul.mubr.msk.bf16.vlgmr.msra.gmra.mrb[72].mxu1 %vm7184_vm10, %v15567_v42 }
 0xbf5   :  { %8010 = vmatpush1.bf16.msra.mxu1 %v8000_v4  ;;  %8041 = vmatprep.mubr.bf16.mxu1 %v21295_v13 }
 0xbf6   :  { %8011 = vmatprep.subr.bf16.mxu1 %v7998_v19 }
 0xbf9   :  { %8012 = vmatpush1.bf16.msra.mxu1 %v8001_v10 }
 0xbfa   :  { %8067 = vmatprep.subr.bf16.mxu1 %v7994_v45 }
 0xbfc   :  { %13754 = vmatmul.mubr.msk.bf16.vlgmr.msra.gmra.mrb[76].mxu1 %vm7184_vm10, %v15568_v61 }
 0xbfd   :  { %8068 = vmatpush1.bf16.msra.mxu1 %v8000_v4  ;;  %8099 = vmatprep.mubr.bf16.mxu1 %v21295_v13 }
 0xbfe   :  { %8069 = vmatprep.subr.bf16.mxu1 %v7998_v19 }
 0xc01   :  { %8070 = vmatpush1.bf16.msra.mxu1 %v8001_v10 }
 0xc02   :  { %8125 = vmatprep.subr.bf16.mxu1 %v19742_v12  ;;  %v8180_v12 = vsub.s32 0, %v19848_v26 }
 0xc04   :  { %13756 = vmatmul.mubr.msk.bf16.vlgmr.msra.gmra.mrb[72].mxu1 %vm7184_vm10, %v15569_v60 }
 0xc05   :  { %8126 = vmatpush1.bf16.msra.mxu1 %v19737_v50  ;;  %8157 = vmatprep.mubr.bf16.mxu1 %v21295_v13  ;;  %v19854_v50 = vrot.slane %v8172_v25, %v8180_v12 }
 0xc06   :  { %8127 = vmatprep.subr.bf16.mxu1 %v19747_v51 }
 0xc09   :  { %8128 = vmatpush1.bf16.msra.mxu1 %v19740_v31 }
 0xc0c   :  { %13758 = vmatmul.mubr.msk.bf16.vlgmr.msra.gmra.mrb[76].mxu1 %vm7184_vm10, %v15570_v35  ;;  %vm13286_vm10 = vcmask 60418  }
 0xcb7   :  { %v19856_v56 = vpop.f32.mrb[64].mxu1 }
 0xcb8   :  { %v8298_v51 = vmul.f32 %v19856_v56, %v19856_v56  ;;  %v19860_v31 = vpop.f32.mrb[65].mxu1  ;;  %v8230_v40 = vmul.f32 %v19854_v50, %v19856_v56 }
 0xcb9   :  { %v8231_v48 = vmul.f32 %v19852_v54, %v19860_v31  ;;  %v8299_v39 = vmul.f32 %v19860_v31, %v19860_v31  ;;  %v19866_v7 = vpop.f32.mrb[66].mxu1 }
 0xcba   :  { %v8300_v6 = vmul.f32 %v19866_v7, %v19866_v7  ;;  %v19872_v11 = vpop.f32.mrb[67].mxu1  ;;  %v8302_v27 = vmul.f32 %v8298_v51, %v19854_v50  ;;  %v8232_v2 = vmul.f32 %v19854_v50, %v19866_v7 }
 0xcbb   :  { %v8303_v55 = vmul.f32 %v8299_v39, %v19852_v54  ;;  %v8233_v15 = vmul.f32 %v19852_v54, %v19872_v11  ;;  %v8301_v52 = vmul.f32 %v19872_v11, %v19872_v11  ;;  %v8234_v58 = vsel %vm6334_vm5, %v8231_v48, 0.0 }
 0xcbc   :  { %v8235_v44 = vadd.f32 %v8234_v58, %v8230_v40  ;;  %v8304_v63 = vmul.f32 %v8300_v6, %v19854_v50 }
 0xcbd   :  { %v8305_v53 = vmul.f32 %v8301_v52, %v19852_v54  ;;  %v8238_v49 = vsel %vm6334_vm5, %v8233_v15, 0.0  ;;  %v8306_v5 = vsel %vm6334_vm5, %v8303_v55, 0.0 }
 0xcbe   :  { %8236 = vadd.xlane.f32.xlu0 %v8235_v44  ;;  %v8239_v57 = vadd.f32 %v8238_v49, %v8232_v2  ;;  %v19887_v46 = vadd.f32 %v8306_v5, %v8302_v27 }
 0xcbf   :  { %v19889_v28 = vpop.f32.mrb[68].mxu1  ;;  %v8310_v22 = vsel %vm6334_vm5, %v8305_v53, 0.0 }
 0xcc0   :  { %v8280_v21 = vmul.f32 %v19889_v28, %v19889_v28  ;;  %8240 = vadd.xlane.f32.xlu1 %v8239_v57  ;;  %v19894_v18 = vpop.f32.mrb[69].mxu1  ;;  %v19896_v0 = vadd.f32 %v8310_v22, %v8304_v63  ;;  %v8216_v23 = vmul.f32 %v19854_v50, %v19889_v28 }
 0xcc1   :  { %v8217_v8 = vmul.f32 %v19852_v54, %v19894_v18  ;;  %v8281_v38 = vmul.f32 %v19894_v18, %v19894_v18  ;;  %v19902_v20 = vpop.f32.mrb[70].mxu1 }
 0xcc2   :  { %v8282_v16 = vmul.f32 %v19902_v20, %v19902_v20  ;;  %v19908_v47 = vpop.f32.mrb[71].mxu1  ;;  %v8284_v32 = vmul.f32 %v8280_v21, %v19854_v50  ;;  %v8218_v36 = vmul.f32 %v19854_v50, %v19902_v20 }
 0xcc3   :  { %v8285_v59 = vmul.f32 %v8281_v38, %v19852_v54  ;;  %v8219_v62 = vmul.f32 %v19852_v54, %v19908_v47  ;;  %v8283_v43 = vmul.f32 %v19908_v47, %v19908_v47  ;;  %v8220_v30 = vsel %vm6334_vm5, %v8217_v8, 0.0 }
 0xcc4   :  { %v8221_v33 = vadd.f32 %v8220_v30, %v8216_v23  ;;  %v8286_v1 = vmul.f32 %v8282_v16, %v19854_v50 }
 0xcc5   :  { %v8287_v17 = vmul.f32 %v8283_v43, %v19852_v54  ;;  %v8224_v14 = vsel %vm6334_vm5, %v8219_v62, 0.0  ;;  %v8288_v41 = vsel %vm6334_vm5, %v8285_v59, 0.0 }
 0xcc6   :  { %8222 = vadd.xlane.f32.xlu0 %v8221_v33  ;;  %v8225_v29 = vadd.f32 %v8224_v14, %v8218_v36  ;;  %v8289_v45 = vadd.f32 %v8288_v41, %v8284_v32 }
 0xcc7   :  { %v8292_v37 = vsel %vm6334_vm5, %v8287_v17, 0.0 }
 0xcc8   :  { %8226 = vadd.xlane.f32.xlu1 %v8225_v29  ;;  %v8293_v42 = vadd.f32 %v8292_v37, %v8286_v1  ;;  %v15573_v37 = vld [vmem:[#allocation15 + $0x25c] ss:$24 sps:$4 sm:$0xff]  }
 0xcc9   :  { %8931 = vmatprep.subr.bf16.mxu0 %v15573_v37 }
 0xcca   :  { %8290 = vadd.xlane.f32.xlu0 %v8289_v45 }
 0xccc   :  { %8294 = vadd.xlane.f32.xlu1 %v8293_v42  ;;  %v15574_v42 = vld [vmem:[#allocation15 + $0x8] ss:$24 sps:$4 sm:$0xff]  }
 0xcd7   :  { %v19924_v34 = vpop.f32.mrb[72].mxu1 }
 0xcd8   :  { %v8262_v4 = vmul.f32 %v19924_v34, %v19924_v34  ;;  %v19928_v19 = vpop.f32.mrb[73].mxu1  ;;  %v8202_v60 = vmul.f32 %v19854_v50, %v19924_v34 }
 0xcd9   :  { %v8203_v24 = vmul.f32 %v19852_v54, %v19928_v19  ;;  %v8263_v10 = vmul.f32 %v19928_v19, %v19928_v19  ;;  %v19934_v61 = vpop.f32.mrb[74].mxu1 }
 0xcda   :  { %v8264_v35 = vmul.f32 %v19934_v61, %v19934_v61  ;;  %v19940_v3 = vpop.f32.mrb[75].mxu1  ;;  %v8266_v48 = vmul.f32 %v8262_v4, %v19854_v50  ;;  %v8204_v39 = vmul.f32 %v19854_v50, %v19934_v61  ;;  %v15576_v4 = vld [vmem:[#allocation15 + $0xc] ss:$24 sps:$4 sm:$0xff]  }
 0xcdb   :  { %v8267_v9 = vmul.f32 %v8263_v10, %v19852_v54  ;;  %v8205_v25 = vmul.f32 %v19852_v54, %v19940_v3  ;;  %v8265_v12 = vmul.f32 %v19940_v3, %v19940_v3  ;;  %v8206_v51 = vsel %vm6334_vm5, %v8203_v24, 0.0  ;;  %v15579_v24 = vld [vmem:[#allocation15 + $0x28c] ss:$24 sps:$4 sm:$0xff]   ;;  %9499 = vmatprep.subr.bf16.mxu1 %v15576_v4  ;;  %v15577_v10 = vld [vmem:[#allocation15 + $0x288] ss:$24 sps:$4 sm:$0xff]  }
 0xcdc   :  { %v8207_v40 = vadd.f32 %v8206_v51, %v8202_v60  ;;  %v8268_v52 = vmul.f32 %v8264_v35, %v19854_v50  ;;  %9500 = vmatpush1.bf16.msra.mxu1 %v15574_v42  ;;  %v15580_v60 = vld [vmem:[#allocation15 + $0x38] ss:$24 sps:$4 sm:$0xff]   ;;  %v15585_v35 = vld [vmem:[#allocation15 + $0x2bc] ss:$24 sps:$4 sm:$0xff]   ;;  %v15589_v51 = vld [vmem:[#allocation15 + $0x2e8] ss:$24 sps:$4 sm:$0xff]  }
 0xcdd   :  { %v8269_v6 = vmul.f32 %v8265_v12, %v19852_v54  ;;  %v8210_v55 = vsel %vm6334_vm5, %v8205_v25, 0.0  ;;  %v8270_v15 = vsel %vm6334_vm5, %v8267_v9, 0.0  ;;  %v15588_v9 = vld [vmem:[#allocation15 + $0x6c] ss:$24 sps:$4 sm:$0xff]   ;;  %v15594_v12 = vld [vmem:[#allocation15 + $0x9c] ss:$24 sps:$4 sm:$0xff]  }
 0xcde   :  { %8208 = vadd.xlane.f32.xlu0 %v8207_v40  ;;  %v8211_v58 = vadd.f32 %v8210_v55, %v8204_v39  ;;  %v8271_v27 = vadd.f32 %v8270_v15, %v8266_v48  ;;  %v15591_v25 = vld [vmem:[#allocation15 + $0x2ec] ss:$24 sps:$4 sm:$0xff]   ;;  %v15592_v48 = vld [vmem:[#allocation15 + $0x98] ss:$24 sps:$4 sm:$0xff]   ;;  %v15597_v39 = vld [vmem:[#allocation15 + $0x31c] ss:$24 sps:$4 sm:$0xff]  }
 0xcdf   :  { %v19955_v2 = vpop.f32.mrb[76].mxu1  ;;  %v8274_v44 = vsel %vm6334_vm5, %v8269_v6, 0.0  ;;  %v15600_v40 = vld [vmem:[#allocation15 + $0xcc] ss:$24 sps:$4 sm:$0xff]   ;;  %v15595_v6 = vld [vmem:[#allocation15 + $0x318] ss:$24 sps:$4 sm:$0xff]  }
 0xce0   :  { %v8244_v53 = vmul.f32 %v19955_v2, %v19955_v2  ;;  %8212 = vadd.xlane.f32.xlu1 %v8211_v58  ;;  %v19960_v49 = vpop.f32.mrb[77].mxu1  ;;  %v8275_v5 = vadd.f32 %v8274_v44, %v8268_v52  ;;  %v8188_v21 = vmul.f32 %v19854_v50, %v19955_v2  ;;  %v15598_v55 = vld [vmem:[#allocation15 + $0xc8] ss:$24 sps:$4 sm:$0xff]   ;;  %v15603_v15 = vld [vmem:[#allocation15 + $0x34c] ss:$24 sps:$4 sm:$0xff]  }
 0xce1   :  { %v8189_v63 = vmul.f32 %v19852_v54, %v19960_v49  ;;  %v8245_v57 = vmul.f32 %v19960_v49, %v19960_v49  ;;  %v19966_v22 = vpop.f32.mrb[78].mxu1  ;;  %v15606_v52 = vld [vmem:[#allocation15 + $0xfc] ss:$24 sps:$4 sm:$0xff]   ;;  %v15601_v58 = vld [vmem:[#allocation15 + $0x348] ss:$24 sps:$4 sm:$0xff]  }
 0xce2   :  { %v8246_v8 = vmul.f32 %v19966_v22, %v19966_v22  ;;  %8272 = vadd.xlane.f32.xlu0 %v8271_v27  ;;  %v19972_v38 = vpop.f32.mrb[79].mxu1  ;;  %v8248_v43 = vmul.f32 %v8244_v53, %v19854_v50  ;;  %v8190_v30 = vmul.f32 %v19854_v50, %v19966_v22  ;;  %v15604_v27 = vld [vmem:[#allocation15 + $0xf8] ss:$24 sps:$4 sm:$0xff]   ;;  %v15609_v44 = vld [vmem:[#allocation15 + $0x37c] ss:$24 sps:$4 sm:$0xff]  }
 0xce3   :  { %v8249_v23 = vmul.f32 %v8245_v57, %v19852_v54  ;;  %v8191_v16 = vmul.f32 %v19852_v54, %v19972_v38  ;;  %v8247_v59 = vmul.f32 %v19972_v38, %v19972_v38  ;;  %v8192_v62 = vsel %vm6334_vm5, %v8189_v63, 0.0  ;;  %v15612_v53 = vld [vmem:[#allocation15 + $0x12c] ss:$24 sps:$4 sm:$0xff]   ;;  %v15610_v63 = vld [vmem:[#allocation15 + $0x128] ss:$24 sps:$4 sm:$0xff]  }
 0xce4   :  { %8276 = vadd.xlane.f32.xlu1 %v8275_v5  ;;  %v8193_v32 = vadd.f32 %v8192_v62, %v8188_v21  ;;  %v8250_v14 = vmul.f32 %v8246_v8, %v19854_v50  ;;  %v15582_v50 = vld [vmem:[#allocation15 + $0x3c] ss:$24 sps:$4 sm:$0xff]   ;;  %v15607_v5 = vld [vmem:[#allocation15 + $0x378] ss:$24 sps:$4 sm:$0xff]   ;;  %v15615_v57 = vld [vmem:[#allocation15 + $0x3ac] ss:$24 sps:$4 sm:$0xff]  }
 0xce5   :  { %v8251_v36 = vmul.f32 %v8247_v59, %v19852_v54  ;;  %v8196_v33 = vsel %vm6334_vm5, %v8191_v16, 0.0  ;;  %v8252_v17 = vsel %vm6334_vm5, %v8249_v23, 0.0  ;;  %v15571_v54 = vld [vmem:[#allocation15 + $0x258] ss:$24 sps:$4 sm:$0xff]   ;;  %9501 = vmatprep.subr.bf16.mxu1 %v15582_v50  ;;  %v15618_v21 = vld [vmem:[#allocation15 + $0x15c] ss:$24 sps:$4 sm:$0xff]  }
 0xce6   :  { %v8197_v41 = vadd.f32 %v8196_v33, %v8190_v30  ;;  %v8253_v1 = vadd.f32 %v8252_v17, %v8248_v43  ;;  %8932 = vmatpush1.bf16.msra.mxu0 %v15571_v54  ;;  %9502 = vmatpush1.bf16.msra.mxu1 %v15580_v60  ;;  %v15613_v8 = vld [vmem:[#allocation15 + $0x3a8] ss:$24 sps:$4 sm:$0xff]   ;;  %v15616_v23 = vld [vmem:[#allocation15 + $0x158] ss:$24 sps:$4 sm:$0xff]   ;;  %v15621_v16 = vld [vmem:[#allocation15 + $0x3dc] ss:$24 sps:$4 sm:$0xff]  }
 0xce7   :  { %v8256_v29 = vsel %vm6334_vm5, %v8251_v36, 0.0  ;;  %8933 = vmatprep.subr.bf16.mxu0 %v15579_v24  ;;  %9503 = vmatprep.subr.bf16.mxu1 %v15588_v9  ;;  %v15624_v59 = vld [vmem:[#allocation15 + $0x18c] ss:$24 sps:$4 sm:$0xff]   ;;  %v15619_v62 = vld [vmem:[#allocation15 + $0x3d8] ss:$24 sps:$4 sm:$0xff]  }
 0xce8   :  { %8194 = vadd.xlane.f32.xlu1 %v8193_v32  ;;  %8198 = vadd.xlane.f32.xlu0 %v8197_v41  ;;  %v8257_v45 = vadd.f32 %v8256_v29, %v8250_v14  ;;  %v15622_v43 = vld [vmem:[#allocation15 + $0x188] ss:$24 sps:$4 sm:$0xff]   ;;  %v15627_v30 = vld [vmem:[#allocation15 + $0x40c] ss:$24 sps:$4 sm:$0xff]   ;;  %v15630_v32 = vld [vmem:[#allocation15 + $0x1bc] ss:$24 sps:$4 sm:$0xff]  }
 0xce9   :  { %v15625_v36 = vld [vmem:[#allocation15 + $0x408] ss:$24 sps:$4 sm:$0xff]   ;;  %v15628_v33 = vld [vmem:[#allocation15 + $0x1b8] ss:$24 sps:$4 sm:$0xff]   ;;  %v15633_v17 = vld [vmem:[#allocation15 + $0x43c] ss:$24 sps:$4 sm:$0xff]  }
 0xcea   :  { %8934 = vmatpush1.bf16.msra.mxu0 %v15577_v10  ;;  %v15636_v14 = vld [vmem:[#allocation15 + $0x1ec] ss:$24 sps:$4 sm:$0xff]   ;;  %v15631_v41 = vld [vmem:[#allocation15 + $0x438] ss:$24 sps:$4 sm:$0xff]  }
 0xceb   :  { %8935 = vmatprep.subr.bf16.mxu0 %v15585_v35 }
 0xcec   :  { %8258 = vadd.xlane.f32.xlu1 %v8257_v45  ;;  %8254 = vadd.xlane.f32.xlu0 %v8253_v1  ;;  %v15634_v1 = vld [vmem:[#allocation15 + $0x1e8] ss:$24 sps:$4 sm:$0xff]  }
 0xcf0   :  { %8312 = vadd.xlane.f32.xlu1 %v19896_v0  ;;  %8308 = vadd.xlane.f32.xlu0 %v19887_v46  ;;  %v15583_v0 = vld [vmem:[#allocation15 + $0x2b8] ss:$24 sps:$4 sm:$0xff]   ;;  %v15586_v46 = vld [vmem:[#allocation15 + $0x68] ss:$24 sps:$4 sm:$0xff]  }
 0xcf1   :  { %8936 = vmatpush1.bf16.msra.mxu0 %v15583_v0  ;;  %9504 = vmatpush1.bf16.msra.mxu1 %v15586_v46 }
 0xcf2   :  { %8937 = vmatprep.subr.bf16.mxu0 %v15591_v25  ;;  %9505 = vmatprep.subr.bf16.mxu1 %v15594_v12 }
 0xcf5   :  { %8938 = vmatpush1.bf16.msra.mxu0 %v15589_v51  ;;  %9506 = vmatpush1.bf16.msra.mxu1 %v15592_v48 }
 0xcf6   :  { %8939 = vmatprep.subr.bf16.mxu0 %v15597_v39  ;;  %9507 = vmatprep.subr.bf16.mxu1 %v15600_v40 }
 0xcf9   :  { %8940 = vmatpush1.bf16.msra.mxu0 %v15595_v6  ;;  %9508 = vmatpush1.bf16.msra.mxu1 %v15598_v55 }
 0xcfa   :  { %8941 = vmatprep.subr.bf16.mxu0 %v15603_v15  ;;  %9509 = vmatprep.subr.bf16.mxu1 %v15606_v52 }
 0xcfd   :  { %8942 = vmatpush1.bf16.msra.mxu0 %v15601_v58  ;;  %9510 = vmatpush1.bf16.msra.mxu1 %v15604_v27 }
 0xcfe   :  { %8943 = vmatprep.subr.bf16.mxu0 %v15609_v44  ;;  %9511 = vmatprep.subr.bf16.mxu1 %v15612_v53 }
 0xd01   :  { %8944 = vmatpush1.bf16.msra.mxu0 %v15607_v5  ;;  %9512 = vmatpush1.bf16.msra.mxu1 %v15610_v63 }
 0xd02   :  { %8945 = vmatprep.subr.bf16.mxu0 %v15615_v57  ;;  %9513 = vmatprep.subr.bf16.mxu1 %v15618_v21 }
 0xd05   :  { %8946 = vmatpush1.bf16.msra.mxu0 %v15613_v8  ;;  %9514 = vmatpush1.bf16.msra.mxu1 %v15616_v23 }
 0xd06   :  { %8947 = vmatprep.subr.bf16.mxu0 %v15621_v16  ;;  %9515 = vmatprep.subr.bf16.mxu1 %v15624_v59 }
 0xd09   :  { %8948 = vmatpush1.bf16.msra.mxu0 %v15619_v62  ;;  %9516 = vmatpush1.bf16.msra.mxu1 %v15622_v43 }
 0xd0a   :  { %8949 = vmatprep.subr.bf16.mxu0 %v15627_v30  ;;  %9517 = vmatprep.subr.bf16.mxu1 %v15630_v32 }
 0xd0d   :  { %8950 = vmatpush1.bf16.msra.mxu0 %v15625_v36  ;;  %9518 = vmatpush1.bf16.msra.mxu1 %v15628_v33  ;;  %v8174_v36 = vld [vmem:[%s20620_s11 + $0x8] sm:$0xff]  ;;  %v8173_v33 = vld [vmem:[%s20620_s11] sm:$0xff]  ;;  %s16295_s11 = smov 91  }
 0xd0e   :  { %8951 = vmatprep.subr.bf16.mxu0 %v15633_v17  ;;  %9519 = vmatprep.subr.bf16.mxu1 %v15636_v14 }
 0xd11   :  { %8952 = vmatpush1.bf16.msra.mxu0 %v15631_v41  ;;  %9520 = vmatpush1.bf16.msra.mxu1 %v15634_v1 }
 0xd4b   :  { %v8237_v29 = vpop.xlane.xlu0 %8236 }
 0xd4d   :  { %v8241_v45 = vpop.xlane.xlu1 %8240 }
 0xd53   :  { %v8223_v54 = vpop.xlane.xlu0 %8222 }
 0xd55   :  { %v8227_v37 = vpop.xlane.xlu1 %8226 }
 0xd57   :  { %v8291_v42 = vpop.xlane.xlu0 %8290 }
 0xd59   :  { %v8295_v4 = vpop.xlane.xlu1 %8294 }
 0xd6b   :  { %v8209_v24 = vpop.xlane.xlu0 %8208 }
 0xd6d   :  { %v8213_v50 = vpop.xlane.xlu1 %8212 }
 0xd6f   :  { %v8273_v10 = vpop.xlane.xlu0 %8272 }
 0xd71   :  { %v8277_v60 = vpop.xlane.xlu1 %8276 }
 0xd75   :  { %v8195_v35 = vpop.xlane.xlu1 %8194  ;;  %v8199_v9 = vpop.xlane.xlu0 %8198 }
 0xd76   :  { %v8214_v0 = vadd.f32 %v8209_v24, %v8195_v35  ;;  %v8215_v46 = vadd.f32 %v8213_v50, %v8199_v9  ;;  %v15642_v50 = vld [vmem:[#allocation15 + $0x21c] ss:$24 sps:$4 sm:$0xff]   ;;  %v8443_v9 = vld [vmem:[#allocation15 + $0x248] sm:$0xff] }
 0xd77   :  { %9521 = vmatprep.subr.bf16.mxu1 %v15642_v50  ;;  %v8532_v35 = vld [vmem:[#allocation15 + $0x498] sm:$0xff]  ;;  %v15658_v50 = vld [vmem:[#allocation15 + $0x4ec] ss:$24 sps:$4 sm:$0xff]  }
 0xd78   :  { %v8228_v25 = vadd.f32 %v8223_v54, %v8214_v0  ;;  %v8229_v12 = vadd.f32 %v8227_v37, %v8215_v46  ;;  %v15637_v37 = vld [vmem:[#allocation15 + $0x468] ss:$24 sps:$4 sm:$0xff]   ;;  %v13832_v0 = vcombine.high %v8532_v35, %v8532_v35  ;;  %v13918_v46 = vcombine.high %v8443_v9, %v8443_v9 }
 0xd79   :  { %v8259_v51 = vpop.xlane.xlu1 %8258  ;;  %v8255_v48 = vpop.xlane.xlu0 %8254 }
 0xd7a   :  { %v8242_v39 = vadd.f32 %v8237_v29, %v8228_v25  ;;  %v8243_v40 = vadd.f32 %v8241_v45, %v8229_v12  ;;  %v8279_v6 = vadd.f32 %v8277_v60, %v8259_v51  ;;  %v8278_v55 = vadd.f32 %v8273_v10, %v8255_v48  ;;  %v8176_v29 = vld [vmem:[%s20621_s12 + $0x8] sm:$0xff]  ;;  %v8175_v45 = vld [vmem:[%s20621_s12] sm:$0xff]  ;;  %s16296_s12 = smov 90  }
 0xd7b   :  { %v13831_v25 = vcombine.low %v8532_v35, %v8532_v35  ;;  %v13917_v12 = vcombine.low %v8443_v9, %v8443_v9 }
 0xd7c   :  { %v8316_v15 = vmul.f32 0.001953125, %v8242_v39  ;;  %v8317_v52 = vmul.f32 0.001953125, %v8243_v40  ;;  %v8297_v58 = vadd.f32 %v8295_v4, %v8279_v6  ;;  %v8296_v27 = vadd.f32 %v8291_v42, %v8278_v55  ;;  %v15639_v42 = vld [vmem:[#allocation15 + $0x46c] ss:$24 sps:$4 sm:$0xff]   ;;  %v15640_v4 = vld [vmem:[#allocation15 + $0x218] ss:$24 sps:$4 sm:$0xff]  }
 0xd7d   :  { %v8313_v44 = vpop.xlane.xlu1 %8312  ;;  %v8309_v53 = vpop.xlane.xlu0 %8308  ;;  %8953 = vmatprep.subr.bf16.mxu0 %v15639_v42  ;;  %9522 = vmatpush1.bf16.msra.mxu1 %v15640_v4  ;;  %v8914_v51 = vsel %vm6685_vm6, %v13831_v25, 0  ;;  %v9445_v48 = vsel %vm6685_vm6, %v13917_v12, 0  ;;  %v15649_v39 = vld [vmem:[#allocation15 + $0x264] ss:$24 sps:$4 sm:$0xff]   ;;  %v15653_v12 = vld [vmem:[#allocation15 + $0x290] ss:$24 sps:$4 sm:$0xff]  }
 0xd7e   :  { %v8315_v5 = vadd.f32 %v8313_v44, %v8297_v58  ;;  %v8314_v63 = vadd.f32 %v8309_v53, %v8296_v27  ;;  %v8321_v21 = vmul.f32 %v8317_v52, %v8317_v52  ;;  %v8320_v8 = vmul.f32 %v8316_v15, %v8316_v15  ;;  %8954 = vmatpush1.bf16.msra.mxu0 %v15637_v37  ;;  %v15652_v40 = vld [vmem:[#allocation15 + $0x4bc] ss:$24 sps:$4 sm:$0xff]  }
 0xd7f   :  { %13837 = vmatprep.subr.msk.bf16.mxu0 %vm6685_vm6, %v13832_v0  ;;  %13923 = vmatprep.subr.msk.bf16.mxu1 %vm6685_vm6, %v13918_v46 }
 0xd80   :  { %v8319_v57 = vmul.f32 0.001953125, %v8315_v5  ;;  %v8318_v23 = vmul.f32 0.001953125, %v8314_v63 }
 0xd81   :  { %9524 = vmatpush1.bf16.msra.mxu1 %v9445_v48 }
 0xd82   :  { %v8323_v16 = vsub.f32 %v8319_v57, %v8321_v21  ;;  %v8322_v59 = vsub.f32 %v8318_v23, %v8320_v8  ;;  %8956 = vmatpush1.bf16.msra.mxu0 %v8914_v51  ;;  %10114 = vmatprep.subr.bf16.mxu1 %v15652_v40  ;;  %v15656_v51 = vld [vmem:[#allocation15 + $0x4e8] ss:$24 sps:$4 sm:$0xff]   ;;  %v15661_v40 = vld [vmem:[#allocation15 + $0x2c4] ss:$24 sps:$4 sm:$0xff]  }
 0xd83   :  { %8974 = vmatprep.subr.bf16.mxu0 %v15649_v39 }
 0xd84   :  { %v8325_v62 = vmax.f32 %v8323_v16, 0.0  ;;  %v8324_v43 = vmax.f32 %v8322_v59, 0.0 }
 0xd86   :  { %v8327_v30 = vadd.f32 1e-05, %v8325_v62  ;;  %v8326_v32 = vadd.f32 1e-05, %v8324_v43 }
 0xd88   :  { %16051 = vrsqrt.f32 %v8327_v30 }
 0xd89   :  { %16053 = vrsqrt.f32 %v8326_v32 }
 0xd92   :  { %v16052_v17 = vpop.eup %16051 }
 0xd93   :  { %v16054_v14 = vpop.eup %16053  ;;  %v8331_v41 = vmul.f32 %v16052_v17, %v8174_v36 }
 0xd94   :  { %v8330_v1 = vmul.f32 %v16054_v14, %v8173_v33  ;;  %v15650_v14 = vld [vmem:[#allocation15 + $0x4b8] ss:$24 sps:$4 sm:$0xff]  }
 0xd95   :  { %8343 = vperm.xlu1 %15401, %v8331_v41   ;;  %v8333_v54 = vmul.f32 %v8331_v41, %v8317_v52 }
 0xd96   :  { %8338 = vperm.xlu0 %15400, %v8330_v1   ;;  %v8332_v24 = vmul.f32 %v8330_v1, %v8316_v15 }
 0xd97   :  { %v8335_v10 = vsub.f32 %v8176_v29, %v8333_v54  ;;  %v15655_v54 = vld [vmem:[#allocation15 + $0x294] ss:$24 sps:$4 sm:$0xff]  }
 0xd98   :  { %v8334_v60 = vsub.f32 %v8175_v45, %v8332_v24 }
 0xd9a   :  { %8357 = vperm.xlu0 %15400, %v8335_v10   ;;  %8352 = vperm.xlu1 %15401, %v8334_v60  }
 0xe14   :  { %v8344_v6 = vpop.permute.xlu1 %8343 }
 0xe15   :  { %v8339_v55 = vpop.permute.xlu0 %8338  ;;  %v8448_v15 = vmul.f32 %v8344_v6, %v19940_v3  ;;  %v8349_v52 = vmul.f32 %v8344_v6, %v19972_v38  ;;  %v8447_v58 = vmul.f32 %v8344_v6, %v19934_v61  ;;  %v8348_v27 = vmul.f32 %v8344_v6, %v19966_v22 }
 0xe16   :  { %v8446_v44 = vmul.f32 %v8339_v55, %v19928_v19  ;;  %v8347_v53 = vmul.f32 %v8339_v55, %v19960_v49  ;;  %v8445_v5 = vmul.f32 %v8339_v55, %v19924_v34  ;;  %v8346_v63 = vmul.f32 %v8339_v55, %v19955_v2 }
 0xe17   :  { %v9586_v57 = vmul.f32 %v8339_v55, %v19894_v18  ;;  %v9588_v21 = vmul.f32 %v8344_v6, %v19908_v47  ;;  %v10212_v3 = vmul.f32 %v8339_v55, %v19856_v56  ;;  %v10214_v38 = vmul.f32 %v8344_v6, %v19866_v7 }
 0xe18   :  { %v9585_v22 = vmul.f32 %v8339_v55, %v19889_v28  ;;  %v9587_v19 = vmul.f32 %v8344_v6, %v19902_v20  ;;  %v10213_v49 = vmul.f32 %v8339_v55, %v19860_v31  ;;  %v10215_v34 = vmul.f32 %v8344_v6, %v19872_v11  ;;  %v15647_v31 = vld [vmem:[#allocation15 + $0x260] ss:$24 sps:$4 sm:$0xff]   ;;  %v15664_v6 = vld [vmem:[#allocation15 + $0x51c] ss:$24 sps:$4 sm:$0xff]  }
 0xe19   :  { %v8358_v8 = vpop.permute.xlu0 %8357  ;;  %v8353_v61 = vpop.permute.xlu1 %8352 }
 0xe1a   :  { %v8450_v23 = vadd.f32 %v8446_v44, %v8353_v61  ;;  %v8452_v2 = vadd.f32 %v8448_v15, %v8358_v8  ;;  %v8361_v16 = vadd.f32 %v8353_v61, %v8347_v53  ;;  %v8363_v18 = vadd.f32 %v8358_v8, %v8349_v52  ;;  %v15659_v44 = vld [vmem:[#allocation15 + $0x2c0] ss:$24 sps:$4 sm:$0xff]  }
 0xe1b   :  { %v8449_v59 = vadd.f32 %v8445_v5, %v8353_v61  ;;  %v8451_v47 = vadd.f32 %v8447_v58, %v8358_v8  ;;  %v8360_v62 = vadd.f32 %v8353_v61, %v8346_v63  ;;  %v8362_v56 = vadd.f32 %v8358_v8, %v8348_v27  ;;  %v15662_v53 = vld [vmem:[#allocation15 + $0x518] ss:$24 sps:$4 sm:$0xff]   ;;  %v15667_v5 = vld [vmem:[#allocation15 + $0x2f4] ss:$24 sps:$4 sm:$0xff]  }
 0xe1c   :  { %v8454_v43 = vmax.f32 %v8450_v23, 0.0  ;;  %v8456_v7 = vmax.f32 %v8452_v2, 0.0  ;;  %v8365_v30 = vmax.f32 %v8361_v16, 0.0  ;;  %v8367_v32 = vmax.f32 %v8363_v18, 0.0  ;;  %v15670_v63 = vld [vmem:[#allocation15 + $0x54c] ss:$24 sps:$4 sm:$0xff]  }
 0xe1d   :  { %v8453_v36 = vmax.f32 %v8449_v59, 0.0  ;;  %v8455_v28 = vmax.f32 %v8451_v47, 0.0  ;;  %v8364_v33 = vmax.f32 %v8360_v62, 0.0  ;;  %v8366_v20 = vmax.f32 %v8362_v56, 0.0  ;;  %v15685_v23 = vld [vmem:[#allocation15 + $0x384] ss:$24 sps:$4 sm:$0xff]  }
 0xe1e   :  { %v20022_v17 = vpack.c.bf16 %v8456_v7, %v8454_v43  ;;  %v20024_v11 = vpack.c.bf16 %v8367_v32, %v8365_v30  ;;  %v9590_v41 = vadd.f32 %v9586_v57, %v8353_v61  ;;  %v9592_v1 = vadd.f32 %v9588_v21, %v8358_v8  ;;  %v15665_v57 = vld [vmem:[#allocation15 + $0x2f0] ss:$24 sps:$4 sm:$0xff]   ;;  %v15688_v2 = vld [vmem:[#allocation15 + $0x5dc] ss:$24 sps:$4 sm:$0xff]   ;;  %v15683_v16 = vld [vmem:[#allocation15 + $0x380] ss:$24 sps:$4 sm:$0xff]  }
 0xe1f   :  { %v20026_v29 = vpack.c.bf16 %v8455_v28, %v8453_v36  ;;  %v20028_v45 = vpack.c.bf16 %v8366_v20, %v8364_v33  ;;  %v9589_v37 = vadd.f32 %v9585_v22, %v8353_v61  ;;  %v9591_v42 = vadd.f32 %v9587_v19, %v8358_v8  ;;  %v15668_v21 = vld [vmem:[#allocation15 + $0x548] ss:$24 sps:$4 sm:$0xff]   ;;  %v15679_v22 = vld [vmem:[#allocation15 + $0x354] ss:$24 sps:$4 sm:$0xff]   ;;  %v15686_v18 = vld [vmem:[#allocation15 + $0x5d8] ss:$24 sps:$4 sm:$0xff]  }
 0xe20   :  { %13838 = vmatprep.mubr.msk.bf16.mxu0 %vm6334_vm5, %v20022_v17  ;;  %13924 = vmatprep.mubr.msk.bf16.mxu1 %vm6334_vm5, %v20024_v11  ;;  %v9594_v4 = vmax.f32 %v9590_v41, 0.0  ;;  %v9596_v24 = vmax.f32 %v9592_v1, 0.0  ;;  %v10217_v10 = vadd.f32 %v10213_v49, %v8353_v61  ;;  %v10219_v60 = vadd.f32 %v10215_v34, %v8358_v8  ;;  %v15682_v19 = vld [vmem:[#allocation15 + $0x5ac] ss:$24 sps:$4 sm:$0xff]   ;;  %v15677_v49 = vld [vmem:[#allocation15 + $0x350] ss:$24 sps:$4 sm:$0xff]  }
 0xe21   :  { %8964 = vmatmul.mubr.bf16.vlgmr.msra.gmra.mrb[96].mxu0 %v20026_v29  ;;  %9532 = vmatmul.mubr.bf16.vlgmr.msra.gmra.mrb[80].mxu1 %v20028_v45  ;;  %v9593_v35 = vmax.f32 %v9589_v37, 0.0  ;;  %v9595_v9 = vmax.f32 %v9591_v42, 0.0  ;;  %v10216_v0 = vadd.f32 %v10212_v3, %v8353_v61  ;;  %v10218_v46 = vadd.f32 %v10214_v38, %v8358_v8  ;;  %v15673_v3 = vld [vmem:[#allocation15 + $0x324] ss:$24 sps:$4 sm:$0xff]   ;;  %v15671_v8 = vld [vmem:[#allocation15 + $0x320] ss:$24 sps:$4 sm:$0xff]  }
 0xe22   :  { %8975 = vmatpush1.bf16.msra.mxu0 %v15647_v31  ;;  %10115 = vmatpush1.bf16.msra.mxu1 %v15650_v14  ;;  %v20036_v25 = vpack.c.bf16 %v9596_v24, %v9594_v4  ;;  %v10221_v48 = vmax.f32 %v10217_v10, 0.0  ;;  %v10223_v39 = vmax.f32 %v10219_v60, 0.0  ;;  %v15676_v38 = vld [vmem:[#allocation15 + $0x57c] ss:$24 sps:$4 sm:$0xff]   ;;  %v15674_v61 = vld [vmem:[#allocation15 + $0x578] ss:$24 sps:$4 sm:$0xff]  }
 0xe23   :  { %13840 = vmatprep.mubr.msk.bf16.mxu0 %vm6334_vm5, %v20022_v17  ;;  %8976 = vmatprep.subr.bf16.mxu0 %v15655_v54  ;;  %v20040_v55 = vpack.c.bf16 %v9595_v9, %v9593_v35  ;;  %v10220_v15 = vmax.f32 %v10216_v0, 0.0  ;;  %v10222_v52 = vmax.f32 %v10218_v46, 0.0  ;;  %v15680_v34 = vld [vmem:[#allocation15 + $0x5a8] ss:$24 sps:$4 sm:$0xff]   ;;  %v15691_v59 = vld [vmem:[#allocation15 + $0x3b4] ss:$24 sps:$4 sm:$0xff]  }
 0xe24   :  { %14008 = vmatprep.mubr.msk.bf16.mxu1 %vm6334_vm5, %v20036_v25  ;;  %10116 = vmatprep.subr.bf16.mxu1 %v15658_v50  ;;  %v20044_v58 = vpack.c.bf16 %v10223_v39, %v10221_v48  ;;  %v15694_v47 = vld [vmem:[#allocation15 + $0x60c] ss:$24 sps:$4 sm:$0xff]   ;;  %v15689_v62 = vld [vmem:[#allocation15 + $0x3b0] ss:$24 sps:$4 sm:$0xff]   ;;  %v15700_v7 = vld [vmem:[#allocation15 + $0x63c] ss:$24 sps:$4 sm:$0xff]  }
 0xe25   :  { %v20046_v27 = vpack.c.bf16 %v10222_v52, %v10220_v15  ;;  %v15692_v56 = vld [vmem:[#allocation15 + $0x608] ss:$24 sps:$4 sm:$0xff]   ;;  %v15697_v43 = vld [vmem:[#allocation15 + $0x3e4] ss:$24 sps:$4 sm:$0xff]   ;;  %v15698_v32 = vld [vmem:[#allocation15 + $0x638] ss:$24 sps:$4 sm:$0xff]  }
 0xe26   :  { %8977 = vmatpush1.bf16.msra.mxu0 %v15653_v12  ;;  %10117 = vmatpush1.bf16.msra.mxu1 %v15656_v51  ;;  %v15695_v30 = vld [vmem:[#allocation15 + $0x3e0] ss:$24 sps:$4 sm:$0xff]   ;;  %v15703_v36 = vld [vmem:[#allocation15 + $0x414] ss:$24 sps:$4 sm:$0xff]   ;;  %v15701_v33 = vld [vmem:[#allocation15 + $0x410] ss:$24 sps:$4 sm:$0xff]  }
 0xe27   :  { %8978 = vmatprep.subr.bf16.mxu0 %v15661_v40  ;;  %10118 = vmatprep.subr.bf16.mxu1 %v15664_v6  ;;  %v15706_v28 = vld [vmem:[#allocation15 + $0x66c] ss:$24 sps:$4 sm:$0xff]   ;;  %v15704_v20 = vld [vmem:[#allocation15 + $0x668] ss:$24 sps:$4 sm:$0xff]   ;;  %v15712_v14 = vld [vmem:[#allocation15 + $0x69c] ss:$24 sps:$4 sm:$0xff]  }
 0xe28   :  { %v15709_v31 = vld [vmem:[#allocation15 + $0x444] ss:$24 sps:$4 sm:$0xff]   ;;  %v15707_v41 = vld [vmem:[#allocation15 + $0x440] ss:$24 sps:$4 sm:$0xff]   ;;  %v15715_v54 = vld [vmem:[#allocation15 + $0x474] ss:$24 sps:$4 sm:$0xff]  }
 0xe29   :  { %v15710_v1 = vld [vmem:[#allocation15 + $0x698] ss:$24 sps:$4 sm:$0xff]   ;;  %v15718_v37 = vld [vmem:[#allocation15 + $0x6cc] ss:$24 sps:$4 sm:$0xff]   ;;  %v15716_v50 = vld [vmem:[#allocation15 + $0x6c8] ss:$24 sps:$4 sm:$0xff]  }
 0xe2a   :  { %8979 = vmatpush1.bf16.msra.mxu0 %v15659_v44  ;;  %10119 = vmatpush1.bf16.msra.mxu1 %v15662_v53  ;;  %v8533_v42 = vld [vmem:[#allocation15 + $0x4a0] sm:$0xff]  ;;  %v9673_v4 = vld [vmem:[#allocation15 + $0x6f8] sm:$0xff]  ;;  %v15713_v24 = vld [vmem:[#allocation15 + $0x470] ss:$24 sps:$4 sm:$0xff]  }
 0xe2b   :  { %8980 = vmatprep.subr.bf16.mxu0 %v15667_v5  ;;  %10120 = vmatprep.subr.bf16.mxu1 %v15670_v63  ;;  %v13834_v10 = vcombine.high %v8533_v42, %v8533_v42  ;;  %v14002_v60 = vcombine.high %v9673_v4, %v9673_v4  ;;  %v13833_v35 = vcombine.low %v8533_v42, %v8533_v42  ;;  %v15725_v12 = vld [vmem:[#allocation15 + $0x26c] ss:$24 sps:$4 sm:$0xff]   ;;  %v15723_v48 = vld [vmem:[#allocation15 + $0x268] ss:$24 sps:$4 sm:$0xff]   ;;  %v15731_v40 = vld [vmem:[#allocation15 + $0x29c] ss:$24 sps:$4 sm:$0xff]  }
 0xe2c   :  { %v14001_v9 = vcombine.low %v9673_v4, %v9673_v4  ;;  %v15728_v51 = vld [vmem:[#allocation15 + $0x714] ss:$24 sps:$4 sm:$0xff]   ;;  %v15726_v39 = vld [vmem:[#allocation15 + $0x710] ss:$24 sps:$4 sm:$0xff]   ;;  %v15734_v6 = vld [vmem:[#allocation15 + $0x744] ss:$24 sps:$4 sm:$0xff]  }
 0xe2d   :  { %v8920_v0 = vsel %vm6685_vm6, %v13833_v35, 0  ;;  %v15729_v15 = vld [vmem:[#allocation15 + $0x298] ss:$24 sps:$4 sm:$0xff]   ;;  %v15737_v44 = vld [vmem:[#allocation15 + $0x2cc] ss:$24 sps:$4 sm:$0xff]  }
 0xe2e   :  { %8981 = vmatpush1.bf16.msra.mxu0 %v15665_v57  ;;  %10121 = vmatpush1.bf16.msra.mxu1 %v15668_v21  ;;  %v10060_v46 = vsel %vm6685_vm6, %v14001_v9, 0  ;;  %v15732_v52 = vld [vmem:[#allocation15 + $0x740] ss:$24 sps:$4 sm:$0xff]   ;;  %v15740_v53 = vld [vmem:[#allocation15 + $0x774] ss:$24 sps:$4 sm:$0xff]  }
 0xe2f   :  { %8982 = vmatprep.subr.bf16.mxu0 %v15673_v3  ;;  %10122 = vmatprep.subr.bf16.mxu1 %v15676_v38  ;;  %v15735_v5 = vld [vmem:[#allocation15 + $0x2c8] ss:$24 sps:$4 sm:$0xff]   ;;  %v15743_v57 = vld [vmem:[#allocation15 + $0x2fc] ss:$24 sps:$4 sm:$0xff]   ;;  %v15749_v38 = vld [vmem:[#allocation15 + $0x32c] ss:$24 sps:$4 sm:$0xff]  }
 0xe30   :  { %v15738_v63 = vld [vmem:[#allocation15 + $0x770] ss:$24 sps:$4 sm:$0xff]   ;;  %v15746_v21 = vld [vmem:[#allocation15 + $0x7a4] ss:$24 sps:$4 sm:$0xff]   ;;  %v15744_v3 = vld [vmem:[#allocation15 + $0x7a0] ss:$24 sps:$4 sm:$0xff]  }
 0xe31   :  { %v15794_v42 = vld [vmem:[#allocation15 + $0x924] ss:$24 sps:$4 sm:$0xff]   ;;  %v8534_v4 = vld [vmem:[#allocation15 + $0x4a8] sm:$0xff] }
 0xe32   :  { %8983 = vmatpush1.bf16.msra.mxu0 %v15671_v8  ;;  %10123 = vmatpush1.bf16.msra.mxu1 %v15674_v61  ;;  %v15752_v8 = vld [vmem:[#allocation15 + $0x7d4] ss:$24 sps:$4 sm:$0xff]   ;;  %v15747_v61 = vld [vmem:[#allocation15 + $0x328] ss:$24 sps:$4 sm:$0xff]   ;;  %v13835_v35 = vcombine.low %v8534_v4, %v8534_v4 }
 0xe33   :  { %8984 = vmatprep.subr.bf16.mxu0 %v15679_v22  ;;  %10124 = vmatprep.subr.bf16.mxu1 %v15682_v19  ;;  %v15750_v22 = vld [vmem:[#allocation15 + $0x7d0] ss:$24 sps:$4 sm:$0xff]   ;;  %v15755_v19 = vld [vmem:[#allocation15 + $0x35c] ss:$24 sps:$4 sm:$0xff]  }
 0xe36   :  { %8985 = vmatpush1.bf16.msra.mxu0 %v15677_v49  ;;  %10125 = vmatpush1.bf16.msra.mxu1 %v15680_v34  ;;  %v15758_v49 = vld [vmem:[#allocation15 + $0x804] ss:$24 sps:$4 sm:$0xff]   ;;  %v15753_v34 = vld [vmem:[#allocation15 + $0x358] ss:$24 sps:$4 sm:$0xff]  }
 0xe37   :  { %8986 = vmatprep.subr.bf16.mxu0 %v15685_v23  ;;  %10126 = vmatprep.subr.bf16.mxu1 %v15688_v2  ;;  %v15756_v23 = vld [vmem:[#allocation15 + $0x800] ss:$24 sps:$4 sm:$0xff]   ;;  %v15761_v2 = vld [vmem:[#allocation15 + $0x38c] ss:$24 sps:$4 sm:$0xff]  }
 0xe3a   :  { %8987 = vmatpush1.bf16.msra.mxu0 %v15683_v16  ;;  %10127 = vmatpush1.bf16.msra.mxu1 %v15686_v18  ;;  %v15764_v16 = vld [vmem:[#allocation15 + $0x834] ss:$24 sps:$4 sm:$0xff]   ;;  %v15759_v18 = vld [vmem:[#allocation15 + $0x388] ss:$24 sps:$4 sm:$0xff]  }
 0xe3b   :  { %8988 = vmatprep.subr.bf16.mxu0 %v15691_v59  ;;  %10128 = vmatprep.subr.bf16.mxu1 %v15694_v47  ;;  %v15762_v59 = vld [vmem:[#allocation15 + $0x830] ss:$24 sps:$4 sm:$0xff]   ;;  %v15767_v47 = vld [vmem:[#allocation15 + $0x3bc] ss:$24 sps:$4 sm:$0xff]  }
 0xe3e   :  { %8989 = vmatpush1.bf16.msra.mxu0 %v15689_v62  ;;  %10129 = vmatpush1.bf16.msra.mxu1 %v15692_v56  ;;  %v15770_v62 = vld [vmem:[#allocation15 + $0x864] ss:$24 sps:$4 sm:$0xff]   ;;  %v15765_v56 = vld [vmem:[#allocation15 + $0x3b8] ss:$24 sps:$4 sm:$0xff]  }
 0xe3f   :  { %8990 = vmatprep.subr.bf16.mxu0 %v15697_v43  ;;  %10130 = vmatprep.subr.bf16.mxu1 %v15700_v7  ;;  %v15768_v43 = vld [vmem:[#allocation15 + $0x860] ss:$24 sps:$4 sm:$0xff]   ;;  %v15773_v7 = vld [vmem:[#allocation15 + $0x3ec] ss:$24 sps:$4 sm:$0xff]  }
 0xe42   :  { %8991 = vmatpush1.bf16.msra.mxu0 %v15695_v30  ;;  %10131 = vmatpush1.bf16.msra.mxu1 %v15698_v32  ;;  %v15776_v30 = vld [vmem:[#allocation15 + $0x894] ss:$24 sps:$4 sm:$0xff]   ;;  %v15771_v32 = vld [vmem:[#allocation15 + $0x3e8] ss:$24 sps:$4 sm:$0xff]  }
 0xe43   :  { %8992 = vmatprep.subr.bf16.mxu0 %v15703_v36  ;;  %10132 = vmatprep.subr.bf16.mxu1 %v15706_v28  ;;  %v15774_v36 = vld [vmem:[#allocation15 + $0x890] ss:$24 sps:$4 sm:$0xff]   ;;  %v15779_v28 = vld [vmem:[#allocation15 + $0x41c] ss:$24 sps:$4 sm:$0xff]  }
 0xe46   :  { %8993 = vmatpush1.bf16.msra.mxu0 %v15701_v33  ;;  %10133 = vmatpush1.bf16.msra.mxu1 %v15704_v20  ;;  %v15782_v33 = vld [vmem:[#allocation15 + $0x8c4] ss:$24 sps:$4 sm:$0xff]   ;;  %v15777_v20 = vld [vmem:[#allocation15 + $0x418] ss:$24 sps:$4 sm:$0xff]  }
 0xe47   :  { %8994 = vmatprep.subr.bf16.mxu0 %v15709_v31  ;;  %10134 = vmatprep.subr.bf16.mxu1 %v15712_v14  ;;  %v15780_v31 = vld [vmem:[#allocation15 + $0x8c0] ss:$24 sps:$4 sm:$0xff]   ;;  %v15785_v14 = vld [vmem:[#allocation15 + $0x44c] ss:$24 sps:$4 sm:$0xff]  }
 0xe4a   :  { %8995 = vmatpush1.bf16.msra.mxu0 %v15707_v41  ;;  %10135 = vmatpush1.bf16.msra.mxu1 %v15710_v1  ;;  %v15788_v41 = vld [vmem:[#allocation15 + $0x8f4] ss:$24 sps:$4 sm:$0xff]   ;;  %v15783_v1 = vld [vmem:[#allocation15 + $0x448] ss:$24 sps:$4 sm:$0xff]  }
 0xe4b   :  { %8996 = vmatprep.subr.bf16.mxu0 %v15715_v54  ;;  %10136 = vmatprep.subr.bf16.mxu1 %v15718_v37  ;;  %v15786_v54 = vld [vmem:[#allocation15 + $0x8f0] ss:$24 sps:$4 sm:$0xff]   ;;  %v15791_v37 = vld [vmem:[#allocation15 + $0x47c] ss:$24 sps:$4 sm:$0xff]  }
 0xe4e   :  { %8997 = vmatpush1.bf16.msra.mxu0 %v15713_v24  ;;  %10137 = vmatpush1.bf16.msra.mxu1 %v15716_v50  ;;  %v10300_v24 = vld [vmem:[#allocation15 + $0x950] sm:$0xff] }
 0xe4f   :  { %13839 = vmatprep.subr.msk.bf16.mxu0 %vm6685_vm6, %v13834_v10  ;;  %14007 = vmatprep.subr.msk.bf16.mxu1 %vm6685_vm6, %v14002_v60  ;;  %v15789_v50 = vld [vmem:[#allocation15 + $0x478] ss:$24 sps:$4 sm:$0xff]   ;;  %v13836_v60 = vcombine.high %v8534_v4, %v8534_v4  ;;  %v14086_v9 = vcombine.high %v10300_v24, %v10300_v24 }
 0xe50   :  { %v15792_v10 = vld [vmem:[#allocation15 + $0x920] ss:$24 sps:$4 sm:$0xff]  }
 0xe51   :  { %v15864_v4 = vld [vmem:[#allocation15 + $0x1c0] ss:$24 sps:$4 sm:$0xff]  }
 0xe52   :  { %8999 = vmatpush1.bf16.msra.mxu0 %v8920_v0  ;;  %10139 = vmatpush1.bf16.msra.mxu1 %v10060_v46  ;;  %v14085_v0 = vcombine.low %v10300_v24, %v10300_v24  ;;  %v8926_v46 = vsel %vm6685_vm6, %v13835_v35, 0  ;;  %v15869_v24 = vld [vmem:[#allocation15 + $0x1f4] ss:$24 sps:$4 sm:$0xff]   ;;  %v15870_v35 = vld [vmem:[#allocation15 + $0x220] ss:$24 sps:$4 sm:$0xff]  }
 0xe53   :  { %9017 = vmatprep.subr.bf16.mxu0 %v15725_v12  ;;  %10741 = vmatprep.subr.bf16.mxu1 %v15728_v51  ;;  %v15801_v12 = vld [vmem:[#allocation15 + $0x4] ss:$24 sps:$4 sm:$0xff]  }
 0xe54   :  { %v10687_v51 = vsel %vm6685_vm6, %v14085_v0, 0 }
 0xe55   :  { %9007 = vmatmul.mubr.bf16.vlgmr.msra.gmra.mrb[100].mxu0 %v20026_v29  ;;  %10147 = vmatmul.mubr.bf16.vlgmr.msra.gmra.mrb[80].mxu1 %v20040_v55 }
 0xe56   :  { %9018 = vmatpush1.bf16.msra.mxu0 %v15723_v48  ;;  %13842 = vmatprep.mubr.msk.bf16.mxu0 %vm6334_vm5, %v20022_v17  ;;  %v15741_v17 = vld [vmem:[#allocation15 + $0x2f8] ss:$24 sps:$4 sm:$0xff]  }
 0xe57   :  { %10742 = vmatpush1.bf16.msra.mxu1 %v15726_v39  ;;  %14092 = vmatprep.mubr.msk.bf16.mxu1 %vm6334_vm5, %v20044_v58  ;;  %v15799_v48 = vld [vmem:[#allocation15] ss:$24 sps:$4 sm:$0xff]   ;;  %v15804_v39 = vld [vmem:[#allocation15 + $0x34] ss:$24 sps:$4 sm:$0xff]  }
 0xe58   :  { %9019 = vmatprep.subr.bf16.mxu0 %v15731_v40  ;;  %10743 = vmatprep.subr.bf16.mxu1 %v15734_v6  ;;  %v15802_v40 = vld [vmem:[#allocation15 + $0x30] ss:$24 sps:$4 sm:$0xff]   ;;  %v15807_v6 = vld [vmem:[#allocation15 + $0x64] ss:$24 sps:$4 sm:$0xff]  }
 0xe5a   :  { %9020 = vmatpush1.bf16.msra.mxu0 %v15729_v15  ;;  %v15805_v15 = vld [vmem:[#allocation15 + $0x60] ss:$24 sps:$4 sm:$0xff]  }
 0xe5b   :  { %10744 = vmatpush1.bf16.msra.mxu1 %v15732_v52  ;;  %9021 = vmatprep.subr.bf16.mxu0 %v15737_v44  ;;  %v15810_v52 = vld [vmem:[#allocation15 + $0x94] ss:$24 sps:$4 sm:$0xff]   ;;  %v15808_v44 = vld [vmem:[#allocation15 + $0x90] ss:$24 sps:$4 sm:$0xff]  }
 0xe5c   :  { %10745 = vmatprep.subr.bf16.mxu1 %v15740_v53  ;;  %v15813_v53 = vld [vmem:[#allocation15 + $0xc4] ss:$24 sps:$4 sm:$0xff]  }
 0xe5e   :  { %9022 = vmatpush1.bf16.msra.mxu0 %v15735_v5  ;;  %v15816_v5 = vld [vmem:[#allocation15 + $0xf4] ss:$24 sps:$4 sm:$0xff]  }
 0xe5f   :  { %10746 = vmatpush1.bf16.msra.mxu1 %v15738_v63  ;;  %9023 = vmatprep.subr.bf16.mxu0 %v15743_v57  ;;  %v15814_v63 = vld [vmem:[#allocation15 + $0xf0] ss:$24 sps:$4 sm:$0xff]   ;;  %v15819_v57 = vld [vmem:[#allocation15 + $0x124] ss:$24 sps:$4 sm:$0xff]  }
 0xe60   :  { %10747 = vmatprep.subr.bf16.mxu1 %v15746_v21  ;;  %v15817_v21 = vld [vmem:[#allocation15 + $0x120] ss:$24 sps:$4 sm:$0xff]  }
 0xe62   :  { %9024 = vmatpush1.bf16.msra.mxu0 %v15741_v17  ;;  %v15822_v17 = vld [vmem:[#allocation15 + $0x154] ss:$24 sps:$4 sm:$0xff]  }
 0xe63   :  { %10748 = vmatpush1.bf16.msra.mxu1 %v15744_v3  ;;  %9025 = vmatprep.subr.bf16.mxu0 %v15749_v38  ;;  %v15820_v3 = vld [vmem:[#allocation15 + $0x150] ss:$24 sps:$4 sm:$0xff]   ;;  %v15825_v38 = vld [vmem:[#allocation15 + $0x184] ss:$24 sps:$4 sm:$0xff]  }
 0xe64   :  { %10749 = vmatprep.subr.bf16.mxu1 %v15752_v8  ;;  %v15823_v8 = vld [vmem:[#allocation15 + $0x180] ss:$24 sps:$4 sm:$0xff]  }
 0xe66   :  { %9026 = vmatpush1.bf16.msra.mxu0 %v15747_v61  ;;  %v15828_v61 = vld [vmem:[#allocation15 + $0x1b4] ss:$24 sps:$4 sm:$0xff]  }
 0xe67   :  { %10750 = vmatpush1.bf16.msra.mxu1 %v15750_v22  ;;  %9027 = vmatprep.subr.bf16.mxu0 %v15755_v19  ;;  %v15826_v22 = vld [vmem:[#allocation15 + $0x1b0] ss:$24 sps:$4 sm:$0xff]   ;;  %v15831_v19 = vld [vmem:[#allocation15 + $0x1e4] ss:$24 sps:$4 sm:$0xff]  }
 0xe68   :  { %10751 = vmatprep.subr.bf16.mxu1 %v15758_v49  ;;  %v15829_v49 = vld [vmem:[#allocation15 + $0x1e0] ss:$24 sps:$4 sm:$0xff]  }
 0xe6a   :  { %9028 = vmatpush1.bf16.msra.mxu0 %v15753_v34  ;;  %v15834_v34 = vld [vmem:[#allocation15 + $0x214] ss:$24 sps:$4 sm:$0xff]  }
 0xe6b   :  { %10752 = vmatpush1.bf16.msra.mxu1 %v15756_v23  ;;  %9029 = vmatprep.subr.bf16.mxu0 %v15761_v2  ;;  %v8442_v23 = vld [vmem:[#allocation15 + $0x240] sm:$0xff]  ;;  %v15832_v2 = vld [vmem:[#allocation15 + $0x210] ss:$24 sps:$4 sm:$0xff]  }
 0xe6c   :  { %10753 = vmatprep.subr.bf16.mxu1 %v15764_v16  ;;  %v13916_v16 = vcombine.high %v8442_v23, %v8442_v23 }
 0xe6e   :  { %9030 = vmatpush1.bf16.msra.mxu0 %v15759_v18  ;;  %v13915_v18 = vcombine.low %v8442_v23, %v8442_v23 }
 0xe6f   :  { %10754 = vmatpush1.bf16.msra.mxu1 %v15762_v59  ;;  %9031 = vmatprep.subr.bf16.mxu0 %v15767_v47  ;;  %v15839_v47 = vld [vmem:[#allocation15 + $0x14] ss:$24 sps:$4 sm:$0xff]  }
 0xe70   :  { %10755 = vmatprep.subr.bf16.mxu1 %v15770_v62  ;;  %v9439_v59 = vsel %vm6685_vm6, %v13915_v18, 0  ;;  %v15837_v62 = vld [vmem:[#allocation15 + $0x10] ss:$24 sps:$4 sm:$0xff]   ;;  %v15915_v18 = vld [vmem:[#allocation15 + $0x4c4] ss:$24 sps:$4 sm:$0xff]  }
 0xe72   :  { %9032 = vmatpush1.bf16.msra.mxu0 %v15765_v56  ;;  %v15842_v56 = vld [vmem:[#allocation15 + $0x44] ss:$24 sps:$4 sm:$0xff]  }
 0xe73   :  { %10756 = vmatpush1.bf16.msra.mxu1 %v15768_v43  ;;  %9033 = vmatprep.subr.bf16.mxu0 %v15773_v7  ;;  %v15840_v43 = vld [vmem:[#allocation15 + $0x40] ss:$24 sps:$4 sm:$0xff]   ;;  %v15845_v7 = vld [vmem:[#allocation15 + $0x74] ss:$24 sps:$4 sm:$0xff]  }
 0xe74   :  { %10757 = vmatprep.subr.bf16.mxu1 %v15776_v30  ;;  %v15843_v30 = vld [vmem:[#allocation15 + $0x70] ss:$24 sps:$4 sm:$0xff]  }
 0xe76   :  { %9034 = vmatpush1.bf16.msra.mxu0 %v15771_v32  ;;  %v15848_v32 = vld [vmem:[#allocation15 + $0xa4] ss:$24 sps:$4 sm:$0xff]  }
 0xe77   :  { %10758 = vmatpush1.bf16.msra.mxu1 %v15774_v36  ;;  %9035 = vmatprep.subr.bf16.mxu0 %v15779_v28  ;;  %v15846_v36 = vld [vmem:[#allocation15 + $0xa0] ss:$24 sps:$4 sm:$0xff]   ;;  %v15851_v28 = vld [vmem:[#allocation15 + $0xd4] ss:$24 sps:$4 sm:$0xff]  }
 0xe78   :  { %10759 = vmatprep.subr.bf16.mxu1 %v15782_v33  ;;  %v15849_v33 = vld [vmem:[#allocation15 + $0xd0] ss:$24 sps:$4 sm:$0xff]  }
 0xe7a   :  { %9036 = vmatpush1.bf16.msra.mxu0 %v15777_v20  ;;  %v15854_v20 = vld [vmem:[#allocation15 + $0x104] ss:$24 sps:$4 sm:$0xff]  }
 0xe7b   :  { %10760 = vmatpush1.bf16.msra.mxu1 %v15780_v31  ;;  %9037 = vmatprep.subr.bf16.mxu0 %v15785_v14  ;;  %v15852_v31 = vld [vmem:[#allocation15 + $0x100] ss:$24 sps:$4 sm:$0xff]   ;;  %v15857_v14 = vld [vmem:[#allocation15 + $0x134] ss:$24 sps:$4 sm:$0xff]  }
 0xe7c   :  { %10761 = vmatprep.subr.bf16.mxu1 %v15788_v41  ;;  %v15860_v41 = vld [vmem:[#allocation15 + $0x164] ss:$24 sps:$4 sm:$0xff]  }
 0xe7e   :  { %9038 = vmatpush1.bf16.msra.mxu0 %v15783_v1  ;;  %v15858_v1 = vld [vmem:[#allocation15 + $0x160] ss:$24 sps:$4 sm:$0xff]  }
 0xe7f   :  { %10762 = vmatpush1.bf16.msra.mxu1 %v15786_v54  ;;  %9039 = vmatprep.subr.bf16.mxu0 %v15791_v37  ;;  %v15863_v54 = vld [vmem:[#allocation15 + $0x194] ss:$24 sps:$4 sm:$0xff]   ;;  %v15861_v37 = vld [vmem:[#allocation15 + $0x190] ss:$24 sps:$4 sm:$0xff]  }
 0xe80   :  { %10763 = vmatprep.subr.bf16.mxu1 %v15794_v42  ;;  %v15866_v42 = vld [vmem:[#allocation15 + $0x1c4] ss:$24 sps:$4 sm:$0xff]  }
 0xe82   :  { %9040 = vmatpush1.bf16.msra.mxu0 %v15789_v50  ;;  %v15867_v50 = vld [vmem:[#allocation15 + $0x1f0] ss:$24 sps:$4 sm:$0xff]  }
 0xe83   :  { %10764 = vmatpush1.bf16.msra.mxu1 %v15792_v10  ;;  %13841 = vmatprep.subr.msk.bf16.mxu0 %vm6685_vm6, %v13836_v60  ;;  %v15872_v10 = vld [vmem:[#allocation15 + $0x224] ss:$24 sps:$4 sm:$0xff]   ;;  %v8444_v60 = vld [vmem:[#allocation15 + $0x250] sm:$0xff] }
 0xe84   :  { %14091 = vmatprep.subr.msk.bf16.mxu1 %vm6685_vm6, %v14086_v9  ;;  %v13920_v9 = vcombine.high %v8444_v60, %v8444_v60  ;;  %v13919_v0 = vcombine.low %v8444_v60, %v8444_v60  ;;  %v15948_v60 = vld [vmem:[#allocation15 + $0x6d4] ss:$24 sps:$4 sm:$0xff]  }
 0xe86   :  { %9042 = vmatpush1.bf16.msra.mxu0 %v8926_v46  ;;  %v9451_v46 = vsel %vm6685_vm6, %v13919_v0, 0 }
 0xe87   :  { %10766 = vmatpush1.bf16.msra.mxu1 %v10687_v51  ;;  %9456 = vmatprep.subr.bf16.mxu0 %v15801_v12  ;;  %v15877_v12 = vld [vmem:[#allocation15 + $0x4b4] ss:$24 sps:$4 sm:$0xff]   ;;  %v15875_v51 = vld [vmem:[#allocation15 + $0x4b0] ss:$24 sps:$4 sm:$0xff]  }
 0xe89   :  { %9050 = vmatmul.mubr.bf16.vlgmr.msra.gmra.mrb[104].mxu0 %v20026_v29  ;;  %v15811_v29 = vld [vmem:[#allocation15 + $0xc0] ss:$24 sps:$4 sm:$0xff]  }
 0xe8a   :  { %10774 = vmatmul.mubr.bf16.vlgmr.msra.gmra.mrb[80].mxu1 %v20046_v27  ;;  %9457 = vmatpush1.bf16.msra.mxu0 %v15799_v48  ;;  %v15880_v48 = vld [vmem:[#allocation15 + $0x4e4] ss:$24 sps:$4 sm:$0xff]  }
 0xe8b   :  { %13922 = vmatprep.mubr.msk.bf16.mxu0 %vm6334_vm5, %v20024_v11  ;;  %9458 = vmatprep.subr.bf16.mxu0 %v15804_v39  ;;  %v15878_v39 = vld [vmem:[#allocation15 + $0x4e0] ss:$24 sps:$4 sm:$0xff]  }
 0xe8c   :  { %10928 = vmatprep.mubr.bf16.mxu1 %v21295_v13 }
 0xe8e   :  { %9459 = vmatpush1.bf16.msra.mxu0 %v15802_v40  ;;  %v15883_v40 = vld [vmem:[#allocation15 + $0x514] ss:$24 sps:$4 sm:$0xff]  }
 0xe8f   :  { %9460 = vmatprep.subr.bf16.mxu0 %v15807_v6  ;;  %v15881_v6 = vld [vmem:[#allocation15 + $0x510] ss:$24 sps:$4 sm:$0xff]  }
 0xe92   :  { %9461 = vmatpush1.bf16.msra.mxu0 %v15805_v15  ;;  %v15886_v15 = vld [vmem:[#allocation15 + $0x544] ss:$24 sps:$4 sm:$0xff]  }
 0xe93   :  { %9462 = vmatprep.subr.bf16.mxu0 %v15810_v52  ;;  %v15884_v52 = vld [vmem:[#allocation15 + $0x540] ss:$24 sps:$4 sm:$0xff]  }
 0xe96   :  { %9463 = vmatpush1.bf16.msra.mxu0 %v15808_v44  ;;  %v15889_v44 = vld [vmem:[#allocation15 + $0x574] ss:$24 sps:$4 sm:$0xff]  }
 0xe97   :  { %9464 = vmatprep.subr.bf16.mxu0 %v15813_v53  ;;  %v15887_v53 = vld [vmem:[#allocation15 + $0x570] ss:$24 sps:$4 sm:$0xff]  }
 0xe9a   :  { %9465 = vmatpush1.bf16.msra.mxu0 %v15811_v29  ;;  %v15892_v29 = vld [vmem:[#allocation15 + $0x5a4] ss:$24 sps:$4 sm:$0xff]  }
 0xe9b   :  { %9466 = vmatprep.subr.bf16.mxu0 %v15816_v5  ;;  %v15895_v5 = vld [vmem:[#allocation15 + $0x5d4] ss:$24 sps:$4 sm:$0xff]  }
 0xe9e   :  { %9467 = vmatpush1.bf16.msra.mxu0 %v15814_v63  ;;  %v15893_v63 = vld [vmem:[#allocation15 + $0x5d0] ss:$24 sps:$4 sm:$0xff]  }
 0xe9f   :  { %9468 = vmatprep.subr.bf16.mxu0 %v15819_v57  ;;  %v15898_v57 = vld [vmem:[#allocation15 + $0x604] ss:$24 sps:$4 sm:$0xff]  }
 0xea2   :  { %9469 = vmatpush1.bf16.msra.mxu0 %v15817_v21  ;;  %v15896_v21 = vld [vmem:[#allocation15 + $0x600] ss:$24 sps:$4 sm:$0xff]  }
 0xea3   :  { %9470 = vmatprep.subr.bf16.mxu0 %v15822_v17  ;;  %v15901_v17 = vld [vmem:[#allocation15 + $0x634] ss:$24 sps:$4 sm:$0xff]  }
 0xea6   :  { %9471 = vmatpush1.bf16.msra.mxu0 %v15820_v3  ;;  %v15899_v3 = vld [vmem:[#allocation15 + $0x630] ss:$24 sps:$4 sm:$0xff]  }
 0xea7   :  { %9472 = vmatprep.subr.bf16.mxu0 %v15825_v38  ;;  %v15904_v38 = vld [vmem:[#allocation15 + $0x664] ss:$24 sps:$4 sm:$0xff]  }
 0xeaa   :  { %9473 = vmatpush1.bf16.msra.mxu0 %v15823_v8  ;;  %v15902_v8 = vld [vmem:[#allocation15 + $0x660] ss:$24 sps:$4 sm:$0xff]  }
 0xeab   :  { %9474 = vmatprep.subr.bf16.mxu0 %v15828_v61  ;;  %v15907_v61 = vld [vmem:[#allocation15 + $0x694] ss:$24 sps:$4 sm:$0xff]  }
 0xeae   :  { %9475 = vmatpush1.bf16.msra.mxu0 %v15826_v22  ;;  %v15905_v22 = vld [vmem:[#allocation15 + $0x690] ss:$24 sps:$4 sm:$0xff]  }
 0xeaf   :  { %9476 = vmatprep.subr.bf16.mxu0 %v15831_v19  ;;  %v15910_v19 = vld [vmem:[#allocation15 + $0x6c4] ss:$24 sps:$4 sm:$0xff]  }
 0xeb2   :  { %9477 = vmatpush1.bf16.msra.mxu0 %v15829_v49  ;;  %v9672_v49 = vld [vmem:[#allocation15 + $0x6f0] sm:$0xff] }
 0xeb3   :  { %9478 = vmatprep.subr.bf16.mxu0 %v15834_v34  ;;  %v15908_v34 = vld [vmem:[#allocation15 + $0x6c0] ss:$24 sps:$4 sm:$0xff]   ;;  %v14000_v23 = vcombine.high %v9672_v49, %v9672_v49 }
 0xeb6   :  { %9479 = vmatpush1.bf16.msra.mxu0 %v15832_v2  ;;  %v13999_v2 = vcombine.low %v9672_v49, %v9672_v49  ;;  %v15969_v49 = vld [vmem:[#allocation15 + $0x828] ss:$24 sps:$4 sm:$0xff]  }
 0xeb7   :  { %13921 = vmatprep.subr.msk.bf16.mxu0 %vm6685_vm6, %v13916_v16 }
 0xeb8   :  { %v10054_v16 = vsel %vm6685_vm6, %v13999_v2, 0  ;;  %v15977_v2 = vld [vmem:[#allocation15 + $0x88c] ss:$24 sps:$4 sm:$0xff]  }
 0xeba   :  { %9481 = vmatpush1.bf16.msra.mxu0 %v9439_v59  ;;  %v15913_v59 = vld [vmem:[#allocation15 + $0x4c0] ss:$24 sps:$4 sm:$0xff]  }
 0xebb   :  { %9542 = vmatprep.subr.bf16.mxu0 %v15839_v47  ;;  %v15918_v47 = vld [vmem:[#allocation15 + $0x4f4] ss:$24 sps:$4 sm:$0xff]  }
 0xebd   :  { %9489 = vmatmul.mubr.bf16.vlgmr.msra.gmra.mrb[96].mxu0 %v20028_v45 }
 0xebe   :  { %9543 = vmatpush1.bf16.msra.mxu0 %v15837_v62  ;;  %13926 = vmatprep.mubr.msk.bf16.mxu0 %vm6334_vm5, %v20024_v11  ;;  %v15855_v11 = vld [vmem:[#allocation15 + $0x130] ss:$24 sps:$4 sm:$0xff]  }
 0xebf   :  { %9544 = vmatprep.subr.bf16.mxu0 %v15842_v56  ;;  %v15916_v62 = vld [vmem:[#allocation15 + $0x4f0] ss:$24 sps:$4 sm:$0xff]   ;;  %v15921_v56 = vld [vmem:[#allocation15 + $0x524] ss:$24 sps:$4 sm:$0xff]  }
 0xec2   :  { %9545 = vmatpush1.bf16.msra.mxu0 %v15840_v43 }
 0xec3   :  { %9546 = vmatprep.subr.bf16.mxu0 %v15845_v7 }
 0xec6   :  { %9547 = vmatpush1.bf16.msra.mxu0 %v15843_v30 }
 0xec7   :  { %9548 = vmatprep.subr.bf16.mxu0 %v15848_v32  ;;  %v15919_v32 = vld [vmem:[#allocation15 + $0x520] ss:$24 sps:$4 sm:$0xff]  }
 0xeca   :  { %9549 = vmatpush1.bf16.msra.mxu0 %v15846_v36 }
 0xecb   :  { %9550 = vmatprep.subr.bf16.mxu0 %v15851_v28  ;;  %v15924_v28 = vld [vmem:[#allocation15 + $0x554] ss:$24 sps:$4 sm:$0xff]  }
 0xece   :  { %9551 = vmatpush1.bf16.msra.mxu0 %v15849_v33  ;;  %v15922_v33 = vld [vmem:[#allocation15 + $0x550] ss:$24 sps:$4 sm:$0xff]  }
 0xecf   :  { %9552 = vmatprep.subr.bf16.mxu0 %v15854_v20  ;;  %v15927_v20 = vld [vmem:[#allocation15 + $0x584] ss:$24 sps:$4 sm:$0xff]  }
 0xed2   :  { %9553 = vmatpush1.bf16.msra.mxu0 %v15852_v31  ;;  %v15930_v31 = vld [vmem:[#allocation15 + $0x5b4] ss:$24 sps:$4 sm:$0xff]  }
 0xed3   :  { %9554 = vmatprep.subr.bf16.mxu0 %v15857_v14  ;;  %v15928_v14 = vld [vmem:[#allocation15 + $0x5b0] ss:$24 sps:$4 sm:$0xff]  }
 0xed6   :  { %9555 = vmatpush1.bf16.msra.mxu0 %v15855_v11  ;;  %v15933_v11 = vld [vmem:[#allocation15 + $0x5e4] ss:$24 sps:$4 sm:$0xff]  }
 0xed7   :  { %9556 = vmatprep.subr.bf16.mxu0 %v15860_v41  ;;  %v15931_v41 = vld [vmem:[#allocation15 + $0x5e0] ss:$24 sps:$4 sm:$0xff]  }
 0xeda   :  { %9557 = vmatpush1.bf16.msra.mxu0 %v15858_v1  ;;  %v15936_v1 = vld [vmem:[#allocation15 + $0x614] ss:$24 sps:$4 sm:$0xff]  }
 0xedb   :  { %9558 = vmatprep.subr.bf16.mxu0 %v15863_v54  ;;  %v15934_v54 = vld [vmem:[#allocation15 + $0x610] ss:$24 sps:$4 sm:$0xff]  }
 0xede   :  { %9559 = vmatpush1.bf16.msra.mxu0 %v15861_v37  ;;  %v15939_v37 = vld [vmem:[#allocation15 + $0x644] ss:$24 sps:$4 sm:$0xff]  }
 0xedf   :  { %9560 = vmatprep.subr.bf16.mxu0 %v15866_v42  ;;  %v15937_v42 = vld [vmem:[#allocation15 + $0x640] ss:$24 sps:$4 sm:$0xff]  }
 0xee2   :  { %9561 = vmatpush1.bf16.msra.mxu0 %v15864_v4  ;;  %v15942_v4 = vld [vmem:[#allocation15 + $0x674] ss:$24 sps:$4 sm:$0xff]  }
 0xee3   :  { %9562 = vmatprep.subr.bf16.mxu0 %v15869_v24  ;;  %v15940_v24 = vld [vmem:[#allocation15 + $0x670] ss:$24 sps:$4 sm:$0xff]  }
 0xee6   :  { %9563 = vmatpush1.bf16.msra.mxu0 %v15867_v50  ;;  %v15945_v50 = vld [vmem:[#allocation15 + $0x6a4] ss:$24 sps:$4 sm:$0xff]  }
 0xee7   :  { %9564 = vmatprep.subr.bf16.mxu0 %v15872_v10  ;;  %v15943_v10 = vld [vmem:[#allocation15 + $0x6a0] ss:$24 sps:$4 sm:$0xff]  }
 0xeea   :  { %9565 = vmatpush1.bf16.msra.mxu0 %v15870_v35  ;;  %v9674_v35 = vld [vmem:[#allocation15 + $0x700] sm:$0xff] }
 0xeeb   :  { %13925 = vmatprep.subr.msk.bf16.mxu0 %vm6685_vm6, %v13920_v9  ;;  %v15946_v9 = vld [vmem:[#allocation15 + $0x6d0] ss:$24 sps:$4 sm:$0xff]   ;;  %v14004_v0 = vcombine.high %v9674_v35, %v9674_v35 }
 0xeee   :  { %9567 = vmatpush1.bf16.msra.mxu0 %v9451_v46  ;;  %v14003_v46 = vcombine.low %v9674_v35, %v9674_v35  ;;  %v16018_v35 = vld [vmem:[#allocation15 + $0x8cc] ss:$24 sps:$4 sm:$0xff]  }
 0xeef   :  { %10071 = vmatprep.subr.bf16.mxu0 %v15877_v12 }
 0xef0   :  { %v10066_v12 = vsel %vm6685_vm6, %v14003_v46, 0  ;;  %v16019_v46 = vld [vmem:[#allocation15 + $0x8f8] ss:$24 sps:$4 sm:$0xff]  }
 0xef1   :  { %9575 = vmatmul.mubr.bf16.vlgmr.msra.gmra.mrb[104].mxu0 %v20028_v45  ;;  %v15890_v45 = vld [vmem:[#allocation15 + $0x5a0] ss:$24 sps:$4 sm:$0xff]  }
 0xef2   :  { %10072 = vmatpush1.bf16.msra.mxu0 %v15875_v51  ;;  %14006 = vmatprep.mubr.msk.bf16.mxu0 %vm6334_vm5, %v20036_v25  ;;  %v15953_v51 = vld [vmem:[#allocation15 + $0x70c] ss:$24 sps:$4 sm:$0xff]  }
 0xef3   :  { %10073 = vmatprep.subr.bf16.mxu0 %v15880_v48  ;;  %v15951_v48 = vld [vmem:[#allocation15 + $0x708] ss:$24 sps:$4 sm:$0xff]  }
 0xef6   :  { %10074 = vmatpush1.bf16.msra.mxu0 %v15878_v39  ;;  %v15956_v39 = vld [vmem:[#allocation15 + $0x73c] ss:$24 sps:$4 sm:$0xff]  }
 0xef7   :  { %10075 = vmatprep.subr.bf16.mxu0 %v15883_v40  ;;  %v15954_v40 = vld [vmem:[#allocation15 + $0x738] ss:$24 sps:$4 sm:$0xff]  }
 0xefa   :  { %10076 = vmatpush1.bf16.msra.mxu0 %v15881_v6  ;;  %v15959_v6 = vld [vmem:[#allocation15 + $0x76c] ss:$24 sps:$4 sm:$0xff]  }
 0xefb   :  { %10077 = vmatprep.subr.bf16.mxu0 %v15886_v15 }
 0xefe   :  { %10078 = vmatpush1.bf16.msra.mxu0 %v15884_v52 }
 0xeff   :  { %10079 = vmatprep.subr.bf16.mxu0 %v15889_v44 }
 0xf02   :  { %10080 = vmatpush1.bf16.msra.mxu0 %v15887_v53  ;;  %v15957_v53 = vld [vmem:[#allocation15 + $0x768] ss:$24 sps:$4 sm:$0xff]  }
 0xf03   :  { %10081 = vmatprep.subr.bf16.mxu0 %v15892_v29 }
 0xf06   :  { %10082 = vmatpush1.bf16.msra.mxu0 %v15890_v45 }
 0xf07   :  { %10083 = vmatprep.subr.bf16.mxu0 %v15895_v5  ;;  %v15962_v5 = vld [vmem:[#allocation15 + $0x79c] ss:$24 sps:$4 sm:$0xff]  }
 0xf0a   :  { %10084 = vmatpush1.bf16.msra.mxu0 %v15893_v63 }
 0xf0b   :  { %10085 = vmatprep.subr.bf16.mxu0 %v15898_v57 }
 0xf0e   :  { %10086 = vmatpush1.bf16.msra.mxu0 %v15896_v21 }
 0xf0f   :  { %10087 = vmatprep.subr.bf16.mxu0 %v15901_v17  ;;  %v15960_v17 = vld [vmem:[#allocation15 + $0x798] ss:$24 sps:$4 sm:$0xff]  }
 0xf12   :  { %10088 = vmatpush1.bf16.msra.mxu0 %v15899_v3 }
 0xf13   :  { %10089 = vmatprep.subr.bf16.mxu0 %v15904_v38  ;;  %v15965_v38 = vld [vmem:[#allocation15 + $0x7cc] ss:$24 sps:$4 sm:$0xff]  }
 0xf16   :  { %10090 = vmatpush1.bf16.msra.mxu0 %v15902_v8  ;;  %v15963_v8 = vld [vmem:[#allocation15 + $0x7c8] ss:$24 sps:$4 sm:$0xff]  }
 0xf17   :  { %10091 = vmatprep.subr.bf16.mxu0 %v15907_v61  ;;  %v15968_v61 = vld [vmem:[#allocation15 + $0x7fc] ss:$24 sps:$4 sm:$0xff]  }
 0xf1a   :  { %10092 = vmatpush1.bf16.msra.mxu0 %v15905_v22  ;;  %v15966_v22 = vld [vmem:[#allocation15 + $0x7f8] ss:$24 sps:$4 sm:$0xff]  }
 0xf1b   :  { %10093 = vmatprep.subr.bf16.mxu0 %v15910_v19  ;;  %v15971_v19 = vld [vmem:[#allocation15 + $0x82c] ss:$24 sps:$4 sm:$0xff]  }
 0xf1e   :  { %10094 = vmatpush1.bf16.msra.mxu0 %v15908_v34  ;;  %v15974_v34 = vld [vmem:[#allocation15 + $0x85c] ss:$24 sps:$4 sm:$0xff]  }
 0xf1f   :  { %14005 = vmatprep.subr.msk.bf16.mxu0 %vm6685_vm6, %v14000_v23  ;;  %v15972_v23 = vld [vmem:[#allocation15 + $0x858] ss:$24 sps:$4 sm:$0xff]  }
 0xf22   :  { %10096 = vmatpush1.bf16.msra.mxu0 %v10054_v16  ;;  %v15975_v16 = vld [vmem:[#allocation15 + $0x888] ss:$24 sps:$4 sm:$0xff]  }
 0xf23   :  { %10157 = vmatprep.subr.bf16.mxu0 %v15915_v18  ;;  %v15980_v18 = vld [vmem:[#allocation15 + $0x8bc] ss:$24 sps:$4 sm:$0xff]  }
 0xf25   :  { %10104 = vmatmul.mubr.bf16.vlgmr.msra.gmra.mrb[96].mxu0 %v20040_v55 }
 0xf26   :  { %10158 = vmatpush1.bf16.msra.mxu0 %v15913_v59  ;;  %14010 = vmatprep.mubr.msk.bf16.mxu0 %vm6334_vm5, %v20036_v25  ;;  %v15925_v25 = vld [vmem:[#allocation15 + $0x580] ss:$24 sps:$4 sm:$0xff]  }
 0xf27   :  { %10159 = vmatprep.subr.bf16.mxu0 %v15918_v47  ;;  %v15978_v59 = vld [vmem:[#allocation15 + $0x8b8] ss:$24 sps:$4 sm:$0xff]   ;;  %v15983_v47 = vld [vmem:[#allocation15 + $0x8ec] ss:$24 sps:$4 sm:$0xff]  }
 0xf28   :  { %v9008_v43 = vpop.f32.mrb[100].mxu0 }
 0xf29   :  { %v20082_v7 = vpop.f32.mrb[101].mxu0 }
 0xf2a   :  { %v20084_v30 = vpop.f32.mrb[102].mxu0  ;;  %10160 = vmatpush1.bf16.msra.mxu0 %v15916_v62  ;;  %v15981_v62 = vld [vmem:[#allocation15 + $0x8e8] ss:$24 sps:$4 sm:$0xff]  }
 0xf2b   :  { %v20086_v36 = vpop.f32.mrb[103].mxu0  ;;  %10161 = vmatprep.subr.bf16.mxu0 %v15921_v56  ;;  %v15986_v56 = vld [vmem:[#allocation15 + $0x91c] ss:$24 sps:$4 sm:$0xff]  }
 0xf2e   :  { %10162 = vmatpush1.bf16.msra.mxu0 %v15919_v32 }
 0xf2f   :  { %10163 = vmatprep.subr.bf16.mxu0 %v15924_v28  ;;  %v15991_v28 = vld [vmem:[#allocation15 + $0x71c] ss:$24 sps:$4 sm:$0xff]  }
 0xf32   :  { %10164 = vmatpush1.bf16.msra.mxu0 %v15922_v33  ;;  %v15989_v33 = vld [vmem:[#allocation15 + $0x718] ss:$24 sps:$4 sm:$0xff]  }
 0xf33   :  { %10165 = vmatprep.subr.bf16.mxu0 %v15927_v20  ;;  %v15994_v20 = vld [vmem:[#allocation15 + $0x74c] ss:$24 sps:$4 sm:$0xff]  }
 0xf36   :  { %10166 = vmatpush1.bf16.msra.mxu0 %v15925_v25  ;;  %v15992_v25 = vld [vmem:[#allocation15 + $0x748] ss:$24 sps:$4 sm:$0xff]  }
 0xf37   :  { %10167 = vmatprep.subr.bf16.mxu0 %v15930_v31  ;;  %v15997_v31 = vld [vmem:[#allocation15 + $0x77c] ss:$24 sps:$4 sm:$0xff]  }
 0xf3a   :  { %10168 = vmatpush1.bf16.msra.mxu0 %v15928_v14  ;;  %v15995_v14 = vld [vmem:[#allocation15 + $0x778] ss:$24 sps:$4 sm:$0xff]  }
 0xf3b   :  { %10169 = vmatprep.subr.bf16.mxu0 %v15933_v11  ;;  %v16000_v11 = vld [vmem:[#allocation15 + $0x7ac] ss:$24 sps:$4 sm:$0xff]  }
 0xf3e   :  { %10170 = vmatpush1.bf16.msra.mxu0 %v15931_v41  ;;  %v15998_v41 = vld [vmem:[#allocation15 + $0x7a8] ss:$24 sps:$4 sm:$0xff]  }
 0xf3f   :  { %10171 = vmatprep.subr.bf16.mxu0 %v15936_v1  ;;  %v16003_v1 = vld [vmem:[#allocation15 + $0x7dc] ss:$24 sps:$4 sm:$0xff]  }
 0xf42   :  { %10172 = vmatpush1.bf16.msra.mxu0 %v15934_v54  ;;  %v16001_v54 = vld [vmem:[#allocation15 + $0x7d8] ss:$24 sps:$4 sm:$0xff]  }
 0xf43   :  { %10173 = vmatprep.subr.bf16.mxu0 %v15939_v37  ;;  %v16006_v37 = vld [vmem:[#allocation15 + $0x80c] ss:$24 sps:$4 sm:$0xff]  }
 0xf46   :  { %10174 = vmatpush1.bf16.msra.mxu0 %v15937_v42  ;;  %v16004_v42 = vld [vmem:[#allocation15 + $0x808] ss:$24 sps:$4 sm:$0xff]  }
 0xf47   :  { %10175 = vmatprep.subr.bf16.mxu0 %v15942_v4  ;;  %v16009_v4 = vld [vmem:[#allocation15 + $0x83c] ss:$24 sps:$4 sm:$0xff]  }
 0xf4a   :  { %10176 = vmatpush1.bf16.msra.mxu0 %v15940_v24  ;;  %v16012_v24 = vld [vmem:[#allocation15 + $0x86c] ss:$24 sps:$4 sm:$0xff]  }
 0xf4b   :  { %10177 = vmatprep.subr.bf16.mxu0 %v15945_v50  ;;  %v16010_v50 = vld [vmem:[#allocation15 + $0x868] ss:$24 sps:$4 sm:$0xff]  }
 0xf4e   :  { %10178 = vmatpush1.bf16.msra.mxu0 %v15943_v10  ;;  %v16015_v10 = vld [vmem:[#allocation15 + $0x89c] ss:$24 sps:$4 sm:$0xff]  }
 0xf4f   :  { %10179 = vmatprep.subr.bf16.mxu0 %v15948_v60  ;;  %v16013_v60 = vld [vmem:[#allocation15 + $0x898] ss:$24 sps:$4 sm:$0xff]  }
 0xf52   :  { %10180 = vmatpush1.bf16.msra.mxu0 %v15946_v9  ;;  %v16016_v9 = vld [vmem:[#allocation15 + $0x8c8] ss:$24 sps:$4 sm:$0xff]  }
 0xf53   :  { %14009 = vmatprep.subr.msk.bf16.mxu0 %vm6685_vm6, %v14004_v0  ;;  %v16021_v0 = vld [vmem:[#allocation15 + $0x8fc] ss:$24 sps:$4 sm:$0xff]  }
 0xf56   :  { %10182 = vmatpush1.bf16.msra.mxu0 %v10066_v12  ;;  %v16024_v12 = vld [vmem:[#allocation15 + $0x92c] ss:$24 sps:$4 sm:$0xff]  }
 0xf57   :  { %10698 = vmatprep.subr.bf16.mxu0 %v15953_v51  ;;  %v10301_v51 = vld [vmem:[#allocation15 + $0x958] sm:$0xff] }
 0xf59   :  { %10190 = vmatmul.mubr.bf16.vlgmr.msra.gmra.mrb[104].mxu0 %v20040_v55 }
 0xf5a   :  { %10699 = vmatpush1.bf16.msra.mxu0 %v15951_v48  ;;  %14090 = vmatprep.mubr.msk.bf16.mxu0 %vm6334_vm5, %v20044_v58  ;;  %v16022_v48 = vld [vmem:[#allocation15 + $0x928] ss:$24 sps:$4 sm:$0xff]  }
 0xf5b   :  { %10700 = vmatprep.subr.bf16.mxu0 %v15956_v39  ;;  %v14088_v39 = vcombine.high %v10301_v51, %v10301_v51 }
 0xf5d   :  { %v10775_v15 = vpop.f32.mrb[80].mxu1 }
 0xf5e   :  { %v14929_v52 = vadd.f32 %v10775_v15, %v9008_v43  ;;  %v10777_v44 = vpop.f32.mrb[81].mxu1  ;;  %10701 = vmatpush1.bf16.msra.mxu0 %v15954_v40  ;;  %v10299_v43 = vld [vmem:[#allocation15 + $0x948] sm:$0xff]  ;;  %v14087_v40 = vcombine.low %v10301_v51, %v10301_v51 }
 0xf5f   :  { %v14930_v29 = vadd.f32 %v10777_v44, %v20082_v7  ;;  %v10779_v45 = vpop.f32.mrb[82].mxu1  ;;  %10702 = vmatprep.subr.bf16.mxu0 %v15959_v6  ;;  %v15984_v7 = vld [vmem:[#allocation15 + $0x918] ss:$24 sps:$4 sm:$0xff]   ;;  %v14083_v32 = vcombine.low %v10299_v43, %v10299_v43 }
 0xf60   :  { %v14931_v63 = vadd.f32 %v10779_v45, %v20084_v30  ;;  %v10781_v55 = vpop.f32.mrb[83].mxu1  ;;  %v14084_v30 = vcombine.high %v10299_v43, %v10299_v43  ;;  %v10693_v6 = vsel %vm6685_vm6, %v14087_v40, 0 }
 0xf61   :  { %v14932_v57 = vadd.f32 %v10781_v55, %v20086_v36  ;;  %v10681_v36 = vsel %vm6685_vm6, %v14083_v32, 0 }
 0xf62   :  { %v20096_v21 = vpack.c.bf16 %v14931_v63, %v14929_v52  ;;  %10703 = vmatpush1.bf16.msra.mxu0 %v15957_v53 }
 0xf63   :  { %v20098_v3 = vpack.c.bf16 %v14932_v57, %v14930_v29  ;;  %10704 = vmatprep.subr.bf16.mxu0 %v15962_v5 }
 0xf64   :  { %10873 = vrot.lane.b32.xlu0 %v20096_v21, %s16295_s11 }
 0xf66   :  { %10705 = vmatpush1.bf16.msra.mxu0 %v15960_v17 }
 0xf67   :  { %10706 = vmatprep.subr.bf16.mxu0 %v15965_v38 }
 0xf68   :  { %10875 = vrot.lane.b32.xlu0 %v20098_v3, %s16295_s11 }
 0xf6a   :  { %10707 = vmatpush1.bf16.msra.mxu0 %v15963_v8 }
 0xf6b   :  { %10708 = vmatprep.subr.bf16.mxu0 %v15968_v61 }
 0xf6e   :  { %10709 = vmatpush1.bf16.msra.mxu0 %v15966_v22 }
 0xf6f   :  { %10710 = vmatprep.subr.bf16.mxu0 %v15971_v19 }
 0xf72   :  { %10711 = vmatpush1.bf16.msra.mxu0 %v15969_v49 }
 0xf73   :  { %10712 = vmatprep.subr.bf16.mxu0 %v15974_v34  ;;  %v14096_v34 = vld [vmem:[%s20624_s15 + $0x2] sm:$0x1] }
 0xf76   :  { %10713 = vmatpush1.bf16.msra.mxu0 %v15972_v23 }
 0xf77   :  { %10714 = vmatprep.subr.bf16.mxu0 %v15977_v2 }
 0xf7a   :  { %10715 = vmatpush1.bf16.msra.mxu0 %v15975_v16 }
 0xf7b   :  { %10716 = vmatprep.subr.bf16.mxu0 %v15980_v18 }
 0xf7e   :  { %10717 = vmatpush1.bf16.msra.mxu0 %v15978_v59 }
 0xf7f   :  { %10718 = vmatprep.subr.bf16.mxu0 %v15983_v47 }
 0xf82   :  { %10719 = vmatpush1.bf16.msra.mxu0 %v15981_v62 }
 0xf83   :  { %10720 = vmatprep.subr.bf16.mxu0 %v15986_v56 }
 0xf86   :  { %10721 = vmatpush1.bf16.msra.mxu0 %v15984_v7 }
 0xf87   :  { %14089 = vmatprep.subr.msk.bf16.mxu0 %vm6685_vm6, %v14084_v30 }
 0xf8a   :  { %10723 = vmatpush1.bf16.msra.mxu0 %v10681_v36 }
 0xf8b   :  { %10784 = vmatprep.subr.bf16.mxu0 %v15991_v28 }
 0xf8d   :  { %10731 = vmatmul.mubr.bf16.vlgmr.msra.gmra.mrb[96].mxu0 %v20046_v27 }
 0xf8e   :  { %10785 = vmatpush1.bf16.msra.mxu0 %v15989_v33  ;;  %14094 = vmatprep.mubr.msk.bf16.mxu0 %vm6334_vm5, %v20044_v58  ;;  %v16007_v58 = vld [vmem:[#allocation15 + $0x838] ss:$24 sps:$4 sm:$0xff]   ;;  %vm11031_vm5 = vcmask 736256  }
 0xf8f   :  { %10786 = vmatprep.subr.bf16.mxu0 %v15994_v20  ;;  %v10858_v20 = vld [vmem:[%s20624_s15] sm:$0x1] }
 0xf92   :  { %10787 = vmatpush1.bf16.msra.mxu0 %v15992_v25 }
 0xf93   :  { %10788 = vmatprep.subr.bf16.mxu0 %v15997_v31 }
 0xf96   :  { %10789 = vmatpush1.bf16.msra.mxu0 %v15995_v14 }
 0xf97   :  { %10790 = vmatprep.subr.bf16.mxu0 %v16000_v11 }
 0xf9a   :  { %10791 = vmatpush1.bf16.msra.mxu0 %v15998_v41 }
 0xf9b   :  { %10792 = vmatprep.subr.bf16.mxu0 %v16003_v1 }
 0xf9e   :  { %10793 = vmatpush1.bf16.msra.mxu0 %v16001_v54 }
 0xf9f   :  { %10794 = vmatprep.subr.bf16.mxu0 %v16006_v37 }
 0xfa2   :  { %10795 = vmatpush1.bf16.msra.mxu0 %v16004_v42 }
 0xfa3   :  { %10796 = vmatprep.subr.bf16.mxu0 %v16009_v4 }
 0xfa6   :  { %10797 = vmatpush1.bf16.msra.mxu0 %v16007_v58 }
 0xfa7   :  { %10798 = vmatprep.subr.bf16.mxu0 %v16012_v24 }
 0xfaa   :  { %10799 = vmatpush1.bf16.msra.mxu0 %v16010_v50 }
 0xfab   :  { %10800 = vmatprep.subr.bf16.mxu0 %v16015_v10 }
 0xfae   :  { %10801 = vmatpush1.bf16.msra.mxu0 %v16013_v60 }
 0xfaf   :  { %10802 = vmatprep.subr.bf16.mxu0 %v16018_v35 }
 0xfb2   :  { %10803 = vmatpush1.bf16.msra.mxu0 %v16016_v9 }
 0xfb3   :  { %10804 = vmatprep.subr.bf16.mxu0 %v16021_v0  ;;  %v14103_v0 = vld [vmem:[%s20624_s15 + $0x3] sm:$0x1] }
 0xfb6   :  { %10805 = vmatpush1.bf16.msra.mxu0 %v16019_v46 }
 0xfb7   :  { %10806 = vmatprep.subr.bf16.mxu0 %v16024_v12 }
 0xfba   :  { %10807 = vmatpush1.bf16.msra.mxu0 %v16022_v48 }
 0xfbb   :  { %14093 = vmatprep.subr.msk.bf16.mxu0 %vm6685_vm6, %v14088_v39  ;;  %vm11183_vm6 = vcmask 752640  }
 0xfbe   :  { %10809 = vmatpush1.bf16.msra.mxu0 %v10693_v6 }
 0xfc1   :  { %10817 = vmatmul.mubr.bf16.vlgmr.msra.gmra.mrb[104].mxu0 %v20046_v27 }
 0xfc2   :  { %11895 = vmatprep.mubr.bf16.mxu0 %v21295_v13 }
 0xfd6   :  { %v10874_v8 = vpop.permute.xlu0 %10873 }
 0xfda   :  { %v10876_v23 = vpop.permute.xlu0 %10875 }
 0xfdb   :  { %v20206_v18 = vsel %vm10881_vm4, %v10874_v8, %v10876_v23 }
0x1060   :  { %v10732_v15 = vpop.f32.mrb[96].mxu0 }
0x1061   :  { %v10734_v52 = vpop.f32.mrb[97].mxu0 }
0x1062   :  { %v10736_v44 = vpop.f32.mrb[98].mxu0 }
0x1063   :  { %v20113_v53 = vpack.c.bf16 %v10736_v44, %v10732_v15  ;;  %v10738_v29 = vpop.f32.mrb[99].mxu0 }
0x1064   :  { %v20115_v45 = vpack.c.bf16 %v10738_v29, %v10734_v52 }
0x1066   :  { %10871 = vrot.lane.b32.xlu1 %v20115_v45, %s16295_s11 }
0x106a   :  { %10869 = vrot.lane.b32.xlu1 %v20113_v53, %s16295_s11 }
0x1094   :  { %v10818_v5 = vpop.f32.mrb[104].mxu0 }
0x1095   :  { %v10820_v63 = vpop.f32.mrb[105].mxu0 }
0x1096   :  { %v10822_v55 = vpop.f32.mrb[106].mxu0 }
0x1097   :  { %v20121_v27 = vpack.c.bf16 %v10822_v55, %v10818_v5  ;;  %v10824_v57 = vpop.f32.mrb[107].mxu0 }
0x1098   :  { %v10844_v17 = vpack.c.bf16 %v10824_v57, %v10820_v63 }
0x1099   :  { %10877 = vrot.lane.b32.xlu1 %v20121_v27, %s16295_s11 }
0x109a   :  { %10851 = vst.msk [vmem:[#allocation4 + $0x28] sm:$0xff] %vm10850_vm3, %v10844_v17 }
0x109d   :  { %11021 = vrot.lane.b32.xlu1 %v20115_v45, %s16296_s12 }
0x10a1   :  { %v20126_v38 = vld [vmem:[#allocation4 + $0x28] sm:$0xff]  ;;  %11019 = vrot.lane.b32.xlu1 %v20113_v53, %s16296_s12 }
0x10a2   :  { %10879 = vrot.lane.b32.xlu0 %v20126_v38, %s16295_s11 }
0x10a5   :  { %11027 = vrot.lane.b32.xlu1 %v20121_v27, %s16296_s12 }
0x10a6   :  { %11023 = vrot.lane.b32.xlu0 %v20096_v21, %s16296_s12 }
0x10a9   :  { %11173 = vrot.lane.b32.xlu1 %v20115_v45, %s16297_s9 }
0x10aa   :  { %11025 = vrot.lane.b32.xlu0 %v20098_v3, %s16296_s12 }
0x10ad   :  { %11171 = vrot.lane.b32.xlu1 %v20113_v53, %s16297_s9 }
0x10ae   :  { %11029 = vrot.lane.b32.xlu0 %v20126_v38, %s16296_s12 }
0x10b1   :  { %11179 = vrot.lane.b32.xlu1 %v20121_v27, %s16297_s9 }
0x10b2   :  { %11175 = vrot.lane.b32.xlu0 %v20096_v21, %s16297_s9 }
0x10b5   :  { %11455 = vrot.lane.b32.xlu1 %v20115_v45, %s16298_s5 }
0x10b6   :  { %11177 = vrot.lane.b32.xlu0 %v20098_v3, %s16297_s9 }
0x10b9   :  { %11453 = vrot.lane.b32.xlu1 %v20113_v53, %s16298_s5 }
0x10ba   :  { %11181 = vrot.lane.b32.xlu0 %v20126_v38, %s16297_s9 }
0x10bd   :  { %11461 = vrot.lane.b32.xlu1 %v20121_v27, %s16298_s5 }
0x10be   :  { %11457 = vrot.lane.b32.xlu0 %v20096_v21, %s16298_s5 }
0x10c1   :  { %11605 = vrot.lane.b32.xlu1 %v20115_v45, %s16292_s4 }
0x10c2   :  { %11459 = vrot.lane.b32.xlu0 %v20098_v3, %s16298_s5 }
0x10c5   :  { %11603 = vrot.lane.b32.xlu1 %v20113_v53, %s16292_s4 }
0x10c6   :  { %11463 = vrot.lane.b32.xlu0 %v20126_v38, %s16298_s5 }
0x10c9   :  { %11611 = vrot.lane.b32.xlu1 %v20121_v27, %s16292_s4 }
0x10ca   :  { %11607 = vrot.lane.b32.xlu0 %v20096_v21, %s16292_s4 }
0x10cd   :  { %11756 = vrot.lane.b32.xlu1 %v20115_v45, %s16299_s8 }
0x10ce   :  { %11609 = vrot.lane.b32.xlu0 %v20098_v3, %s16292_s4 }
0x10d1   :  { %11754 = vrot.lane.b32.xlu1 %v20113_v53, %s16299_s8 }
0x10d2   :  { %11613 = vrot.lane.b32.xlu0 %v20126_v38, %s16292_s4 }
0x10d5   :  { %11762 = vrot.lane.b32.xlu1 %v20121_v27, %s16299_s8 }
0x10d6   :  { %11758 = vrot.lane.b32.xlu0 %v20096_v21, %s16299_s8 }
0x10d8   :  { %v10872_v61 = vpop.permute.xlu1 %10871 }
0x10d9   :  { %12570 = vrot.lane.b32.xlu1 %v20115_v45, %s16288_s23  ;;  %v20166_v22 = vsel %vm10881_vm4, %v10872_v61, %v10874_v8 }
0x10da   :  { %11760 = vrot.lane.b32.xlu0 %v20098_v3, %s16299_s8  ;;  %10896 = vmatprep.subr.bf16.mxu1 %v20166_v22 }
0x10dc   :  { %v10870_v19 = vpop.permute.xlu1 %10869 }
0x10dd   :  { %v20171_v49 = vsel %vm10881_vm4, %v10870_v19, %v10872_v61  ;;  %12568 = vrot.lane.b32.xlu1 %v20113_v53, %s16288_s23  ;;  %v14095_v19 = vld [vmem:[%s20624_s15 + $0x1] sm:$0x1] }
0x10de   :  { %11764 = vrot.lane.b32.xlu0 %v20126_v38, %s16299_s8  ;;  %10897 = vmatpush1.bf16.msra.mxu1 %v20171_v49 }
0x10e1   :  { %12576 = vrot.lane.b32.xlu1 %v20121_v27, %s16288_s23  ;;  %14097 = vmatmul.mubr.msk.bf16.vlgmr.msra.gmra.mrb[84].mxu1 %vm181_vm0, %v14096_v34 }
0x10e2   :  { %12572 = vrot.lane.b32.xlu0 %v20096_v21, %s16288_s23  ;;  %10969 = vmatprep.mubr.bf16.mxu1 %v21295_v13 }
0x10e5   :  { %12727 = vrot.lane.b32.xlu1 %v20115_v45, %s16289_s27 }
0x10e6   :  { %12574 = vrot.lane.b32.xlu0 %v20098_v3, %s16288_s23 }
0x10e9   :  { %12725 = vrot.lane.b32.xlu1 %v20113_v53, %s16289_s27 }
0x10ea   :  { %12578 = vrot.lane.b32.xlu0 %v20126_v38, %s16288_s23 }
0x10ed   :  { %12733 = vrot.lane.b32.xlu1 %v20121_v27, %s16289_s27 }
0x10ee   :  { %12729 = vrot.lane.b32.xlu0 %v20096_v21, %s16289_s27 }
0x10f2   :  { %12731 = vrot.lane.b32.xlu0 %v20098_v3, %s16289_s27 }
0x10f6   :  { %12735 = vrot.lane.b32.xlu0 %v20126_v38, %s16289_s27 }
0x110b   :  { %v10878_v2 = vpop.permute.xlu1 %10877 }
0x110c   :  { %v20203_v16 = vsel %vm10881_vm4, %v10876_v23, %v10878_v2 }
0x110d   :  { %10937 = vmatprep.subr.bf16.mxu1 %v20203_v16 }
0x110e   :  { %10938 = vmatpush1.bf16.msra.mxu1 %v20206_v18 }
0x110f   :  { %v11022_v59 = vpop.permute.xlu1 %11021 }
0x1111   :  { %14098 = vmatmul.mubr.msk.bf16.vlgmr.msra.gmra.mrb[88].mxu1 %vm181_vm0, %v14096_v34 }
0x1112   :  { %11010 = vmatprep.mubr.bf16.mxu1 %v21295_v13 }
0x1113   :  { %v11020_v47 = vpop.permute.xlu1 %11019 }
0x1114   :  { %v20212_v62 = vpop.permute.xlu0 %10879  ;;  %v11032_v32 = vsel %vm11031_vm5, %v11020_v47, %v11022_v59 }
0x1115   :  { %10978 = vmatprep.subr.bf16.mxu1 %v20212_v62  ;;  %v20217_v56 = vsel %vm10881_vm4, %v10878_v2, %v20212_v62 }
0x1116   :  { %10979 = vmatpush1.bf16.msra.mxu1 %v20217_v56 }
0x1117   :  { %v11028_v43 = vpop.permute.xlu1 %11027 }
0x1118   :  { %v11024_v7 = vpop.permute.xlu0 %11023 }
0x1119   :  { %v11033_v30 = vsel %vm11031_vm5, %v11022_v59, %v11024_v7  ;;  %14099 = vmatmul.mubr.msk.bf16.vlgmr.msra.gmra.mrb[92].mxu1 %vm181_vm0, %v14096_v34 }
0x111a   :  { %11046 = vmatprep.subr.bf16.mxu1 %v11033_v30  ;;  %11078 = vmatprep.mubr.bf16.mxu1 %v21295_v13 }
0x111b   :  { %11047 = vmatpush1.bf16.msra.mxu1 %v11032_v32  ;;  %v11174_v36 = vpop.permute.xlu1 %11173 }
0x111c   :  { %v11026_v28 = vpop.permute.xlu0 %11025 }
0x111d   :  { %v11035_v33 = vsel %vm11031_vm5, %v11026_v28, %v11028_v43  ;;  %v11034_v14 = vsel %vm11031_vm5, %v11024_v7, %v11026_v28 }
0x111e   :  { %11087 = vmatprep.subr.bf16.mxu1 %v11035_v33 }
0x111f   :  { %v11172_v25 = vpop.permute.xlu1 %11171 }
0x1120   :  { %v11030_v31 = vpop.permute.xlu0 %11029  ;;  %v11184_v10 = vsel %vm11183_vm6, %v11172_v25, %v11174_v36  ;;  %v20356_v25 = vld [vmem:[%s20624_s15 + $0x5] sm:$0x1] }
0x1121   :  { %14100 = vmatmul.mubr.msk.bf16.vlgmr.msra.gmra.mrb[84].mxu1 %vm181_vm0, %v10858_v20  ;;  %v11036_v37 = vsel %vm11031_vm5, %v11028_v43, %v11030_v31 }
0x1122   :  { %11088 = vmatpush1.bf16.msra.mxu1 %v11034_v14  ;;  %11119 = vmatprep.mubr.bf16.mxu1 %v21295_v13 }
0x1123   :  { %11128 = vmatprep.subr.bf16.mxu1 %v11030_v31  ;;  %v11180_v11 = vpop.permute.xlu1 %11179 }
0x1124   :  { %v11176_v41 = vpop.permute.xlu0 %11175 }
0x1125   :  { %v11185_v42 = vsel %vm11183_vm6, %v11174_v36, %v11176_v41 }
0x1127   :  { %v20231_v1 = vpop.permute.xlu1 %11455 }
0x1128   :  { %v11178_v54 = vpop.permute.xlu0 %11177 }
0x1129   :  { %14101 = vmatmul.mubr.msk.bf16.vlgmr.msra.gmra.mrb[88].mxu1 %vm181_vm0, %v10858_v20  ;;  %v11187_v60 = vsel %vm11183_vm6, %v11178_v54, %v11180_v11  ;;  %v11186_v51 = vsel %vm11183_vm6, %v11176_v41, %v11178_v54 }
0x112a   :  { %11129 = vmatpush1.bf16.msra.mxu1 %v11036_v37  ;;  %11160 = vmatprep.mubr.bf16.mxu1 %v21295_v13 }
0x112b   :  { %11198 = vmatprep.subr.bf16.mxu1 %v11185_v42  ;;  %v20237_v4 = vpop.permute.xlu1 %11453  ;;  %v14112_v42 = vld [vmem:[%s20624_s15 + $0x6] sm:$0x1] }
0x112c   :  { %v11182_v58 = vpop.permute.xlu0 %11181 }
0x112d   :  { %v11188_v15 = vsel %vm11183_vm6, %v11180_v11, %v11182_v58 }
0x112f   :  { %v20239_v24 = vpop.permute.xlu1 %11461 }
0x1130   :  { %v20241_v50 = vpop.permute.xlu0 %11457 }
0x1131   :  { %14102 = vmatmul.mubr.msk.bf16.vlgmr.msra.gmra.mrb[92].mxu1 %vm181_vm0, %v10858_v20  ;;  %v20343_v36 = vsel %vm11465_vm8, %v20231_v1, %v20241_v50 }
0x1132   :  { %11199 = vmatpush1.bf16.msra.mxu1 %v11184_v10  ;;  %11230 = vmatprep.mubr.bf16.mxu1 %v21295_v13  ;;  %v20404_v10 = vld [vmem:[%s20624_s15 + $0xd] sm:$0x1] }
0x1133   :  { %11239 = vmatprep.subr.bf16.mxu1 %v11187_v60  ;;  %v20247_v35 = vpop.permute.xlu1 %11605  ;;  %v14110_v60 = vld [vmem:[%s20624_s15 + $0x4] sm:$0x1] }
0x1134   :  { %v20249_v9 = vpop.permute.xlu0 %11459 }
0x1135   :  { %v20372_v11 = vsel %vm11465_vm8, %v20249_v9, %v20239_v24 }
0x1137   :  { %v20254_v46 = vpop.permute.xlu1 %11603 }
0x1138   :  { %v20256_v12 = vpop.permute.xlu0 %11463 }
0x1139   :  { %14104 = vmatmul.mubr.msk.bf16.vlgmr.msra.gmra.mrb[96].mxu1 %vm181_vm0, %v14103_v0  ;;  %v20325_v43 = vsel %vm11465_vm8, %v20239_v24, %v20256_v12 }
0x113a   :  { %11240 = vmatpush1.bf16.msra.mxu1 %v11186_v51  ;;  %11271 = vmatprep.mubr.bf16.mxu1 %v21295_v13  ;;  %v14134_v51 = vld [vmem:[%s20624_s15 + $0xa] sm:$0x1] }
0x113b   :  { %11280 = vmatprep.subr.bf16.mxu1 %v11182_v58  ;;  %v20261_v48 = vpop.permute.xlu1 %11611  ;;  %v20392_v58 = vsel %vm11465_vm8, %v20241_v50, %v20249_v9  ;;  %v14126_v9 = vld [vmem:[%s20624_s15 + $0x8] sm:$0x1] }
0x113c   :  { %v20263_v39 = vpop.permute.xlu0 %11607 }
0x113d   :  { %v11616_v50 = vsel %vm7313_vm11, %v20247_v35, %v20263_v39 }
0x113f   :  { %v11757_v40 = vpop.permute.xlu1 %11756 }
0x1140   :  { %v20265_v6 = vpop.permute.xlu0 %11609 }
0x1141   :  { %v20271_v52 = vsel %vm7313_vm11, %v20263_v39, %v20265_v6  ;;  %14105 = vmatmul.mubr.msk.bf16.vlgmr.msra.gmra.mrb[100].mxu1 %vm181_vm0, %v14103_v0 }
0x1142   :  { %11281 = vmatpush1.bf16.msra.mxu1 %v11188_v15  ;;  %11312 = vmatprep.mubr.bf16.mxu1 %v21295_v13 }
0x1143   :  { %11324 = vmatprep.subr.bf16.mxu1 %v20166_v22  ;;  %v11755_v44 = vpop.permute.xlu1 %11754 }
0x1144   :  { %v20276_v29 = vpop.permute.xlu0 %11613  ;;  %v20279_v5 = vsel %vm11766_vm7, %v11755_v44, %v11757_v40 }
0x1147   :  { %v11763_v63 = vpop.permute.xlu1 %11762 }
0x1148   :  { %v11759_v55 = vpop.permute.xlu0 %11758 }
0x1149   :  { %14106 = vmatmul.mubr.msk.bf16.vlgmr.msra.gmra.mrb[104].mxu1 %vm181_vm0, %v14103_v0  ;;  %v20283_v57 = vsel %vm11766_vm7, %v11757_v40, %v11759_v55  ;;  %v20474_v0 = vld [vmem:[%s20624_s15 + $0xf] sm:$0x1]  ;;  %v14150_v40 = vld [vmem:[%s20624_s15 + $0xe] sm:$0x1] }
0x114a   :  { %11325 = vmatpush1.bf16.msra.mxu1 %v20171_v49  ;;  %11356 = vmatprep.mubr.bf16.mxu1 %v21295_v13 }
0x114b   :  { %11365 = vmatprep.subr.bf16.mxu1 %v20203_v16  ;;  %v12571_v17 = vpop.permute.xlu1 %12570  ;;  %v20312_v16 = vld [vmem:[%s20624_s15 + $0x7] sm:$0x1] }
0x114c   :  { %v11761_v8 = vpop.permute.xlu0 %11760 }
0x114d   :  { %v20289_v61 = vsel %vm11766_vm7, %v11759_v55, %v11761_v8  ;;  %v20292_v22 = vsel %vm11766_vm7, %v11761_v8, %v11763_v63 }
0x114f   :  { %v12569_v34 = vpop.permute.xlu1 %12568 }
0x1150   :  { %v20297_v23 = vpop.permute.xlu0 %11764  ;;  %v20300_v49 = vsel %vm7926_vm15, %v12569_v34, %v12571_v17 }
0x1151   :  { %11863 = vmatprep.subr.bf16.mxu0 %v20297_v23  ;;  %v20305_v2 = vsel %vm11766_vm7, %v11763_v63, %v20297_v23  ;;  %14107 = vmatmul.mubr.msk.bf16.vlgmr.msra.gmra.mrb[96].mxu1 %vm181_vm0, %v14095_v19 }
0x1152   :  { %11864 = vmatpush1.bf16.msra.mxu0 %v20305_v2  ;;  %11366 = vmatpush1.bf16.msra.mxu1 %v20206_v18 }
0x1153   :  { %11989 = vmatprep.subr.bf16.mxu0 %v20256_v12  ;;  %11406 = vmatprep.subr.bf16.mxu1 %v20212_v62  ;;  %v20317_v59 = vpop.permute.xlu1 %12576 }
0x1154   :  { %v12573_v47 = vpop.permute.xlu0 %12572  ;;  %11397 = vmatprep.mubr.bf16.mxu1 %v21295_v13 }
0x1155   :  { %14122 = vmatmul.mubr.msk.bf16.vlgmr.msra.gmra.mrb[108].mxu0 %vm181_vm0, %v20312_v16  ;;  %v20328_v18 = vsel %vm7926_vm15, %v12571_v17, %v12573_v47 }
0x1156   :  { %11990 = vmatpush1.bf16.msra.mxu0 %v20325_v43  ;;  %12021 = vmatprep.mubr.bf16.mxu0 %v21295_v13 }
0x1157   :  { %v12728_v62 = vpop.permute.xlu1 %12727 }
0x1158   :  { %v12575_v7 = vpop.permute.xlu0 %12574 }
0x1159   :  { %v20333_v30 = vsel %vm7926_vm15, %v12573_v47, %v12575_v7  ;;  %14108 = vmatmul.mubr.msk.bf16.vlgmr.msra.gmra.mrb[100].mxu1 %vm181_vm0, %v14095_v19  ;;  %v20338_v32 = vsel %vm7926_vm15, %v12575_v7, %v20317_v59 }
0x115a   :  { %11407 = vmatpush1.bf16.msra.mxu1 %v20217_v56  ;;  %11438 = vmatprep.mubr.bf16.mxu1 %v21295_v13  ;;  %v20361_v56 = vsel %vm11465_vm8, %v20237_v4, %v20231_v1 }
0x115b   :  { %11480 = vmatprep.subr.bf16.mxu1 %v20343_v36  ;;  %v12726_v28 = vpop.permute.xlu1 %12725 }
0x115c   :  { %v20348_v33 = vpop.permute.xlu0 %12578  ;;  %v20351_v20 = vsel %vm7999_vm1, %v12726_v28, %v12728_v62 }
0x115d   :  { %v12584_v39 = vsel %vm7926_vm15, %v20317_v59, %v20348_v33 }
0x115f   :  { %v12734_v1 = vpop.permute.xlu1 %12733 }
0x1160   :  { %v12730_v31 = vpop.permute.xlu0 %12729 }
0x1161   :  { %14125 = vmatmul.mubr.msk.bf16.vlgmr.msra.gmra.mrb[108].mxu0 %vm181_vm0, %v20356_v25  ;;  %14109 = vmatmul.mubr.msk.bf16.vlgmr.msra.gmra.mrb[104].mxu1 %vm181_vm0, %v14095_v19  ;;  %v20367_v14 = vsel %vm7999_vm1, %v12728_v62, %v12730_v31 }
0x1162   :  { %11481 = vmatpush1.bf16.msra.mxu1 %v20361_v56  ;;  %12865 = vmatprep.mubr.bf16.mxu0 %v21295_v13 }
0x1163   :  { %11521 = vmatprep.subr.bf16.mxu1 %v20372_v11  ;;  %11512 = vmatprep.mubr.bf16.mxu1 %v21295_v13 }
0x1164   :  { %v12732_v41 = vpop.permute.xlu0 %12731 }
0x1165   :  { %v20379_v54 = vsel %vm7999_vm1, %v12730_v31, %v12732_v41  ;;  %v20382_v37 = vsel %vm7999_vm1, %v12732_v41, %v12734_v1 }
0x1168   :  { %v20387_v4 = vpop.permute.xlu0 %12735 }
0x1169   :  { %v20396_v24 = vsel %vm7999_vm1, %v12734_v1, %v20387_v4  ;;  %12833 = vmatprep.subr.bf16.mxu0 %v20387_v4  ;;  %14113 = vmatmul.mubr.msk.bf16.vlgmr.msra.gmra.mrb[108].mxu1 %vm181_vm0, %v14112_v42 }
0x116a   :  { %12834 = vmatpush1.bf16.msra.mxu0 %v20396_v24  ;;  %11522 = vmatpush1.bf16.msra.mxu1 %v20392_v58 }
0x116b   :  { %13101 = vmatprep.subr.bf16.mxu0 %v20126_v38  ;;  %11562 = vmatprep.subr.bf16.mxu1 %v20256_v12  ;;  %v11615_v38 = vsel %vm7313_vm11, %v20254_v46, %v20247_v35  ;;  %v11619_v35 = vsel %vm7313_vm11, %v20261_v48, %v20276_v29  ;;  %v14130_v46 = vld [vmem:[%s20624_s15 + $0x9] sm:$0x1] }
0x116c   :  { %11553 = vmatprep.mubr.bf16.mxu1 %v21295_v13 }
0x116d   :  { %14149 = vmatmul.mubr.msk.bf16.vlgmr.msra.gmra.mrb[108].mxu0 %vm181_vm0, %v20404_v10 }
0x116e   :  { %13102 = vmatpush1.bf16.msra.mxu0 %v20121_v27  ;;  %13133 = vmatprep.mubr.bf16.mxu0 %v21295_v13  ;;  %v11618_v27 = vsel %vm7313_vm11, %v20265_v6, %v20261_v48  ;;  %v14142_v48 = vld [vmem:[%s20624_s15 + $0xc] sm:$0x1] }
0x1171   :  { %14114 = vmatmul.mubr.msk.bf16.vlgmr.msra.gmra.mrb[112].mxu1 %vm181_vm0, %v14112_v42 }
0x1172   :  { %11563 = vmatpush1.bf16.msra.mxu1 %v20325_v43  ;;  %11594 = vmatprep.mubr.bf16.mxu1 %v21295_v13 }
0x1173   :  { %11629 = vmatprep.subr.bf16.mxu1 %v11616_v50 }
0x1179   :  { %14115 = vmatmul.mubr.msk.bf16.vlgmr.msra.gmra.mrb[116].mxu1 %vm181_vm0, %v14112_v42  ;;  %14157 = vmatmul.mubr.msk.bf16.vlgmr.msra.gmra.mrb[108].mxu0 %vm181_vm0, %v20474_v0 }
0x117a   :  { %11630 = vmatpush1.bf16.msra.mxu1 %v11615_v38  ;;  %11661 = vmatprep.mubr.bf16.mxu1 %v21295_v13 }
0x117b   :  { %11670 = vmatprep.subr.bf16.mxu1 %v11618_v27 }
0x1181   :  { %14116 = vmatmul.mubr.msk.bf16.vlgmr.msra.gmra.mrb[108].mxu1 %vm181_vm0, %v14110_v60 }
0x1182   :  { %11671 = vmatpush1.bf16.msra.mxu1 %v20271_v52  ;;  %11702 = vmatprep.mubr.bf16.mxu1 %v21295_v13 }
0x1183   :  { %11711 = vmatprep.subr.bf16.mxu1 %v20276_v29 }
0x1189   :  { %14117 = vmatmul.mubr.msk.bf16.vlgmr.msra.gmra.mrb[112].mxu1 %vm181_vm0, %v14110_v60 }
0x118a   :  { %11712 = vmatpush1.bf16.msra.mxu1 %v11619_v35  ;;  %11743 = vmatprep.mubr.bf16.mxu1 %v21295_v13 }
0x118b   :  { %11781 = vmatprep.subr.bf16.mxu1 %v20283_v57 }
0x1191   :  { %14118 = vmatmul.mubr.msk.bf16.vlgmr.msra.gmra.mrb[116].mxu1 %vm181_vm0, %v14110_v60 }
0x1192   :  { %11782 = vmatpush1.bf16.msra.mxu1 %v20279_v5  ;;  %11813 = vmatprep.mubr.bf16.mxu1 %v21295_v13 }
0x1193   :  { %11822 = vmatprep.subr.bf16.mxu1 %v20292_v22 }
0x1199   :  { %14120 = vmatmul.mubr.msk.bf16.vlgmr.msra.gmra.mrb[120].mxu1 %vm181_vm0, %v20312_v16 }
0x119a   :  { %11823 = vmatpush1.bf16.msra.mxu1 %v20289_v61  ;;  %11854 = vmatprep.mubr.bf16.mxu1 %v21295_v13 }
0x119b   :  { %11907 = vmatprep.subr.bf16.mxu1 %v20343_v36 }
0x11a1   :  { %14121 = vmatmul.mubr.msk.bf16.vlgmr.msra.gmra.mrb[124].mxu1 %vm181_vm0, %v20312_v16 }
0x11a2   :  { %11908 = vmatpush1.bf16.msra.mxu1 %v20361_v56  ;;  %11939 = vmatprep.mubr.bf16.mxu1 %v21295_v13 }
0x11a3   :  { %11948 = vmatprep.subr.bf16.mxu1 %v20372_v11 }
0x11a9   :  { %14123 = vmatmul.mubr.msk.bf16.vlgmr.msra.gmra.mrb[120].mxu1 %vm181_vm0, %v20356_v25 }
0x11aa   :  { %11949 = vmatpush1.bf16.msra.mxu1 %v20392_v58  ;;  %11980 = vmatprep.mubr.bf16.mxu1 %v21295_v13 }
0x11ab   :  { %12035 = vmatprep.subr.bf16.mxu1 %v11616_v50 }
0x11b1   :  { %14124 = vmatmul.mubr.msk.bf16.vlgmr.msra.gmra.mrb[124].mxu1 %vm181_vm0, %v20356_v25 }
0x11b2   :  { %12036 = vmatpush1.bf16.msra.mxu1 %v11615_v38  ;;  %12067 = vmatprep.mubr.bf16.mxu1 %v21295_v13 }
0x11b3   :  { %12076 = vmatprep.subr.bf16.mxu1 %v11618_v27 }
0x11b9   :  { %14127 = vmatmul.mubr.msk.bf16.vlgmr.msra.gmra.mrb[84].mxu1 %vm181_vm0, %v14126_v9 }
0x11ba   :  { %12077 = vmatpush1.bf16.msra.mxu1 %v20271_v52  ;;  %12108 = vmatprep.mubr.bf16.mxu1 %v21295_v13 }
0x11bb   :  { %12117 = vmatprep.subr.bf16.mxu1 %v20276_v29 }
0x11c1   :  { %14128 = vmatmul.mubr.msk.bf16.vlgmr.msra.gmra.mrb[88].mxu1 %vm181_vm0, %v14126_v9 }
0x11c2   :  { %12118 = vmatpush1.bf16.msra.mxu1 %v11619_v35  ;;  %12149 = vmatprep.mubr.bf16.mxu1 %v21295_v13 }
0x11c3   :  { %12169 = vmatprep.subr.bf16.mxu1 %v20343_v36 }
0x11c9   :  { %14129 = vmatmul.mubr.msk.bf16.vlgmr.msra.gmra.mrb[92].mxu1 %vm181_vm0, %v14126_v9 }
0x11ca   :  { %12170 = vmatpush1.bf16.msra.mxu1 %v20361_v56  ;;  %12201 = vmatprep.mubr.bf16.mxu1 %v21295_v13 }
0x11cb   :  { %12210 = vmatprep.subr.bf16.mxu1 %v20372_v11 }
0x11d1   :  { %14131 = vmatmul.mubr.msk.bf16.vlgmr.msra.gmra.mrb[96].mxu1 %vm181_vm0, %v14130_v46 }
0x11d2   :  { %12211 = vmatpush1.bf16.msra.mxu1 %v20392_v58  ;;  %12242 = vmatprep.mubr.bf16.mxu1 %v21295_v13 }
0x11d3   :  { %12251 = vmatprep.subr.bf16.mxu1 %v20256_v12 }
0x11d9   :  { %14132 = vmatmul.mubr.msk.bf16.vlgmr.msra.gmra.mrb[100].mxu1 %vm181_vm0, %v14130_v46 }
0x11da   :  { %12252 = vmatpush1.bf16.msra.mxu1 %v20325_v43  ;;  %12283 = vmatprep.mubr.bf16.mxu1 %v21295_v13 }
0x11db   :  { %12303 = vmatprep.subr.bf16.mxu1 %v20343_v36 }
0x11e1   :  { %14133 = vmatmul.mubr.msk.bf16.vlgmr.msra.gmra.mrb[104].mxu1 %vm181_vm0, %v14130_v46 }
0x11e2   :  { %12304 = vmatpush1.bf16.msra.mxu1 %v20361_v56  ;;  %12335 = vmatprep.mubr.bf16.mxu1 %v21295_v13 }
0x11e3   :  { %12344 = vmatprep.subr.bf16.mxu1 %v20372_v11 }
0x11e9   :  { %14135 = vmatmul.mubr.msk.bf16.vlgmr.msra.gmra.mrb[84].mxu1 %vm181_vm0, %v14134_v51 }
0x11ea   :  { %12345 = vmatpush1.bf16.msra.mxu1 %v20392_v58  ;;  %12376 = vmatprep.mubr.bf16.mxu1 %v21295_v13 }
0x11eb   :  { %12385 = vmatprep.subr.bf16.mxu1 %v20256_v12  ;;  %v14138_v12 = vld [vmem:[%s20624_s15 + $0xb] sm:$0x1] }
0x11f1   :  { %14136 = vmatmul.mubr.msk.bf16.vlgmr.msra.gmra.mrb[88].mxu1 %vm181_vm0, %v14134_v51 }
0x11f2   :  { %12386 = vmatpush1.bf16.msra.mxu1 %v20325_v43  ;;  %12417 = vmatprep.mubr.bf16.mxu1 %v21295_v13 }
0x11f3   :  { %12437 = vmatprep.subr.bf16.mxu1 %v20283_v57 }
0x11f9   :  { %14137 = vmatmul.mubr.msk.bf16.vlgmr.msra.gmra.mrb[92].mxu1 %vm181_vm0, %v14134_v51 }
0x11fa   :  { %12438 = vmatpush1.bf16.msra.mxu1 %v20279_v5  ;;  %12469 = vmatprep.mubr.bf16.mxu1 %v21295_v13 }
0x11fb   :  { %12478 = vmatprep.subr.bf16.mxu1 %v20292_v22 }
0x1201   :  { %14139 = vmatmul.mubr.msk.bf16.vlgmr.msra.gmra.mrb[96].mxu1 %vm181_vm0, %v14138_v12 }
0x1202   :  { %12479 = vmatpush1.bf16.msra.mxu1 %v20289_v61  ;;  %12510 = vmatprep.mubr.bf16.mxu1 %v21295_v13 }
0x1203   :  { %12519 = vmatprep.subr.bf16.mxu1 %v20297_v23 }
0x1209   :  { %14140 = vmatmul.mubr.msk.bf16.vlgmr.msra.gmra.mrb[100].mxu1 %vm181_vm0, %v14138_v12 }
0x120a   :  { %12520 = vmatpush1.bf16.msra.mxu1 %v20305_v2  ;;  %12551 = vmatprep.mubr.bf16.mxu1 %v21295_v13 }
0x120b   :  { %12594 = vmatprep.subr.bf16.mxu1 %v20328_v18 }
0x1211   :  { %14141 = vmatmul.mubr.msk.bf16.vlgmr.msra.gmra.mrb[104].mxu1 %vm181_vm0, %v14138_v12 }
0x1212   :  { %12595 = vmatpush1.bf16.msra.mxu1 %v20300_v49  ;;  %12626 = vmatprep.mubr.bf16.mxu1 %v21295_v13 }
0x1213   :  { %12635 = vmatprep.subr.bf16.mxu1 %v20338_v32 }
0x1219   :  { %14143 = vmatmul.mubr.msk.bf16.vlgmr.msra.gmra.mrb[108].mxu1 %vm181_vm0, %v14142_v48 }
0x121a   :  { %12636 = vmatpush1.bf16.msra.mxu1 %v20333_v30  ;;  %12667 = vmatprep.mubr.bf16.mxu1 %v21295_v13 }
0x121b   :  { %12676 = vmatprep.subr.bf16.mxu1 %v20348_v33 }
0x1221   :  { %14144 = vmatmul.mubr.msk.bf16.vlgmr.msra.gmra.mrb[112].mxu1 %vm181_vm0, %v14142_v48 }
0x1222   :  { %12677 = vmatpush1.bf16.msra.mxu1 %v12584_v39  ;;  %12708 = vmatprep.mubr.bf16.mxu1 %v21295_v13 }
0x1223   :  { %12751 = vmatprep.subr.bf16.mxu1 %v20367_v14 }
0x1229   :  { %14145 = vmatmul.mubr.msk.bf16.vlgmr.msra.gmra.mrb[116].mxu1 %vm181_vm0, %v14142_v48 }
0x122a   :  { %12752 = vmatpush1.bf16.msra.mxu1 %v20351_v20  ;;  %12783 = vmatprep.mubr.bf16.mxu1 %v21295_v13 }
0x122b   :  { %12792 = vmatprep.subr.bf16.mxu1 %v20382_v37 }
0x1231   :  { %14147 = vmatmul.mubr.msk.bf16.vlgmr.msra.gmra.mrb[120].mxu1 %vm181_vm0, %v20404_v10 }
0x1232   :  { %12793 = vmatpush1.bf16.msra.mxu1 %v20379_v54  ;;  %12824 = vmatprep.mubr.bf16.mxu1 %v21295_v13 }
0x1233   :  { %12885 = vmatprep.subr.bf16.mxu1 %v20367_v14 }
0x1239   :  { %14148 = vmatmul.mubr.msk.bf16.vlgmr.msra.gmra.mrb[124].mxu1 %vm181_vm0, %v20404_v10 }
0x123a   :  { %12886 = vmatpush1.bf16.msra.mxu1 %v20351_v20  ;;  %12917 = vmatprep.mubr.bf16.mxu1 %v21295_v13 }
0x123b   :  { %12926 = vmatprep.subr.bf16.mxu1 %v20382_v37  ;;  %v16300_v37 = vmov 1983009808  }
0x123c   :  { %v13261_v42 = vunpack.c.l.s4 %v16300_v37 }
0x123e   :  { %v13262_v9 = vunpack.c.0.s8 %v13261_v42 }
0x1241   :  { %14151 = vmatmul.mubr.msk.bf16.vlgmr.msra.gmra.mrb[108].mxu1 %vm181_vm0, %v14150_v40 }
0x1242   :  { %12927 = vmatpush1.bf16.msra.mxu1 %v20379_v54  ;;  %12958 = vmatprep.mubr.bf16.mxu1 %v21295_v13 }
0x1243   :  { %12967 = vmatprep.subr.bf16.mxu1 %v20387_v4 }
0x1249   :  { %14152 = vmatmul.mubr.msk.bf16.vlgmr.msra.gmra.mrb[112].mxu1 %vm181_vm0, %v14150_v40 }
0x124a   :  { %12968 = vmatpush1.bf16.msra.mxu1 %v20396_v24  ;;  %12999 = vmatprep.mubr.bf16.mxu1 %v21295_v13 }
0x124b   :  { %13019 = vmatprep.subr.bf16.mxu1 %v20115_v45 }
0x124c   :  { %v13135_v6 = vpop.f32.mrb[108].mxu0 }
0x124d   :  { %v13137_v45 = vpop.f32.mrb[109].mxu0  ;;  %16055 = vtanh.f32 %v13135_v6 }
0x124e   :  { %v13139_v15 = vpop.f32.mrb[110].mxu0  ;;  %16057 = vtanh.f32 %v13137_v45 }
0x124f   :  { %v13140_v52 = vpop.f32.mrb[111].mxu0 }
0x1251   :  { %14153 = vmatmul.mubr.msk.bf16.vlgmr.msra.gmra.mrb[116].mxu1 %vm181_vm0, %v14150_v40 }
0x1252   :  { %13020 = vmatpush1.bf16.msra.mxu1 %v20113_v53  ;;  %13051 = vmatprep.mubr.bf16.mxu1 %v21295_v13 }
0x1253   :  { %13060 = vmatprep.subr.bf16.mxu1 %v20098_v3 }
0x1257   :  { %v16056_v11 = vpop.eup %16055 }
0x1258   :  { %v16058_v41 = vpop.eup %16057 }
0x1259   :  { %14155 = vmatmul.mubr.msk.bf16.vlgmr.msra.gmra.mrb[120].mxu1 %vm181_vm0, %v20474_v0 }
0x125a   :  { %13061 = vmatpush1.bf16.msra.mxu1 %v20096_v21  ;;  %13092 = vmatprep.mubr.bf16.mxu1 %v21295_v13 }
0x1261   :  { %14156 = vmatmul.mubr.msk.bf16.vlgmr.msra.gmra.mrb[124].mxu1 %vm181_vm0, %v20474_v0  ;;  %vm13232_vm0 = vcmask 1041408  }
0x1262   :  { %vm13287_vm11 = vmor %vm13286_vm10, %vm13232_vm0 }
0x12bc   :  { %v12337_v44 = vpop.f32.mrb[84].mxu1 }
0x12bd   :  { %v12339_v53 = vpop.f32.mrb[85].mxu1 }
0x12be   :  { %v12341_v29 = vpop.f32.mrb[86].mxu1 }
0x12bf   :  { %v12342_v5 = vpop.f32.mrb[87].mxu1 }
0x12c0   :  { %v13265_v5 = vsub.s32 %v13262_v9, %v19848_v26 }
0x12c4   :  { %v12378_v63 = vpop.f32.mrb[88].mxu1 }
0x12c5   :  { %v20576_v3 = vpop.f32.mrb[89].mxu1 }
0x12c6   :  { %v12382_v55 = vpop.f32.mrb[90].mxu1 }
0x12c7   :  { %v12383_v57 = vpop.f32.mrb[91].mxu1 }
0x12cc   :  { %v12419_v17 = vpop.f32.mrb[92].mxu1 }
0x12cd   :  { %v12421_v21 = vpop.f32.mrb[93].mxu1  ;;  %16059 = vtanh.f32 %v12419_v17 }
0x12ce   :  { %v12423_v8 = vpop.f32.mrb[94].mxu1  ;;  %16061 = vtanh.f32 %v12421_v21 }
0x12cf   :  { %v12424_v13 = vpop.f32.mrb[95].mxu1 }
0x12d4   :  { %v12471_v61 = vpop.f32.mrb[96].mxu1 }
0x12d5   :  { %v12473_v22 = vpop.f32.mrb[97].mxu1 }
0x12d6   :  { %v12475_v19 = vpop.f32.mrb[98].mxu1 }
0x12d7   :  { %v12476_v34 = vpop.f32.mrb[99].mxu1  ;;  %v16060_v1 = vpop.eup %16059 }
0x12d8   :  { %v16062_v54 = vpop.eup %16061  ;;  %v13218_v48 = vrot.slane %v16060_v1, 5 }
0x12d9   :  { %v13219_v45 = vrot.slane %v16062_v54, 5 }
0x12dc   :  { %v12512_v23 = vpop.f32.mrb[100].mxu1 }
0x12dd   :  { %v20578_v49 = vpop.f32.mrb[101].mxu1 }
0x12de   :  { %v12516_v2 = vpop.f32.mrb[102].mxu1 }
0x12df   :  { %v12517_v16 = vpop.f32.mrb[103].mxu1 }
0x12e4   :  { %v12553_v59 = vpop.f32.mrb[104].mxu1 }
0x12e5   :  { %v12555_v47 = vpop.f32.mrb[105].mxu1  ;;  %16063 = vtanh.f32 %v12553_v59 }
0x12e6   :  { %v12557_v43 = vpop.f32.mrb[106].mxu1  ;;  %16065 = vtanh.f32 %v12555_v47 }
0x12e7   :  { %v12558_v18 = vpop.f32.mrb[107].mxu1 }
0x12ef   :  { %v16064_v58 = vpop.eup %16063 }
0x12f0   :  { %v16066_v10 = vpop.eup %16065  ;;  %v13200_v46 = vrot.slane %v16064_v58, 6 }
0x12f1   :  { %v13201_v39 = vrot.slane %v16066_v10, 6 }
0x1314   :  { %v12919_v62 = vpop.f32.mrb[108].mxu1 }
0x1315   :  { %v12921_v7 = vpop.f32.mrb[109].mxu1 }
0x1316   :  { %v12923_v30 = vpop.f32.mrb[110].mxu1 }
0x1317   :  { %v12924_v32 = vpop.f32.mrb[111].mxu1 }
0x131c   :  { %v12960_v36 = vpop.f32.mrb[112].mxu1 }
0x131d   :  { %v12962_v28 = vpop.f32.mrb[113].mxu1 }
0x131e   :  { %v12964_v33 = vpop.f32.mrb[114].mxu1 }
0x131f   :  { %v12965_v20 = vpop.f32.mrb[115].mxu1 }
0x1324   :  { %v13001_v25 = vpop.f32.mrb[116].mxu1 }
0x1325   :  { %16067 = vtanh.f32 %v13001_v25  ;;  %v13003_v31 = vpop.f32.mrb[117].mxu1 }
0x1326   :  { %16069 = vtanh.f32 %v13003_v31  ;;  %v13005_v56 = vpop.f32.mrb[118].mxu1 }
0x1327   :  { %16071 = vtanh.f32 %v12337_v44  ;;  %v13006_v14 = vpop.f32.mrb[119].mxu1 }
0x1328   :  { %16073 = vtanh.f32 %v12471_v61 }
0x1329   :  { %16075 = vtanh.f32 %v12919_v62 }
0x132a   :  { %16077 = vtanh.f32 %v12921_v7 }
0x132b   :  { %16079 = vtanh.f32 %v12473_v22 }
0x132c   :  { %16081 = vtanh.f32 %v12339_v53  ;;  %v13053_v4 = vpop.f32.mrb[120].mxu1 }
0x132d   :  { %16083 = vtanh.f32 %v13053_v4  ;;  %v13055_v24 = vpop.f32.mrb[121].mxu1 }
0x132e   :  { %16085 = vtanh.f32 %v13055_v24  ;;  %v13057_v50 = vpop.f32.mrb[122].mxu1 }
0x132f   :  { %v16068_v38 = vpop.eup %16067  ;;  %16087 = vtanh.f32 %v12378_v63  ;;  %v13058_v27 = vpop.f32.mrb[123].mxu1 }
0x1330   :  { %v16070_v60 = vpop.eup %16069  ;;  %16089 = vtanh.f32 %v12512_v23  ;;  %v13182_v35 = vrot.slane %v16068_v38, 7 }
0x1331   :  { %v16072_v0 = vpop.eup %16071  ;;  %16091 = vtanh.f32 %v12960_v36  ;;  %v13183_v51 = vrot.slane %v16070_v60, 7 }
0x1332   :  { %v16074_v12 = vpop.eup %16073  ;;  %16093 = vtanh.f32 %v12962_v28  ;;  %v13230_v40 = vsel %vm3249_vm2, %v16056_v11, %v13182_v35  ;;  %v13214_v26 = vrot.slane %v16072_v0, 5 }
0x1333   :  { %v16076_v6 = vpop.eup %16075  ;;  %16095 = vtanh.f32 %v20578_v49  ;;  %v13237_v15 = vsel %vm13232_vm0, %v13230_v40, %v13200_v46  ;;  %v13231_v52 = vsel %vm3249_vm2, %v16058_v41, %v13183_v51  ;;  %v13196_v19 = vrot.slane %v16074_v12, 6 }
0x1334   :  { %v16078_v44 = vpop.eup %16077  ;;  %16097 = vtanh.f32 %v20576_v3  ;;  %v13244_v53 = vsel %vm13239_vm9, %v13237_v15, %v13218_v48  ;;  %v13238_v29 = vsel %vm13232_vm0, %v13231_v52, %v13201_v39  ;;  %v13094_v63 = vpop.f32.mrb[124].mxu1  ;;  %v13178_v8 = vrot.slane %v16076_v6, 7 }
0x1335   :  { %v16080_v55 = vpop.eup %16079  ;;  %v13245_v57 = vsel %vm13239_vm9, %v13238_v29, %v13219_v45  ;;  %16099 = vtanh.f32 %v13094_v63  ;;  %v13096_v17 = vpop.f32.mrb[125].mxu1  ;;  %v13179_v3 = vrot.slane %v16078_v44, 7 }
0x1336   :  { %v16082_v21 = vpop.eup %16081  ;;  %v14160_v13 = vpack.c.bf16 %v13245_v57, %v13244_v53  ;;  %16101 = vtanh.f32 %v13096_v17  ;;  %v13098_v61 = vpop.f32.mrb[126].mxu1  ;;  %v13197_v49 = vrot.slane %v16080_v55, 6 }
0x1337   :  { %v16084_v22 = vpop.eup %16083  ;;  %v13099_v34 = vpop.f32.mrb[127].mxu1  ;;  %v13215_v47 = vrot.slane %v16082_v21, 5 }
0x1338   :  { %v16086_v23 = vpop.eup %16085  ;;  %v13282_v2 = vrot.slane %v14160_v13, %v13265_v5  ;;  %v13226_v16 = vsel %vm3249_vm2, %v16084_v22, %v13178_v8 }
0x1339   :  { %v16088_v59 = vpop.eup %16087  ;;  %v13233_v43 = vsel %vm13232_vm0, %v13226_v16, %v13196_v19  ;;  %v13227_v18 = vsel %vm3249_vm2, %v16086_v23, %v13179_v3 }
0x133a   :  { %v16090_v62 = vpop.eup %16089  ;;  %13288 = vst.msk [vmem:[%s20625_s16 + $0x8] sm:$0xf] %vm13287_vm11, %v13282_v2  ;;  %v13240_v7 = vsel %vm13239_vm9, %v13233_v43, %v13214_v26  ;;  %v13234_v30 = vsel %vm13232_vm0, %v13227_v18, %v13197_v49  ;;  %v13216_v1 = vrot.slane %v16088_v59, 5 }
0x133b   :  { %v16092_v32 = vpop.eup %16091  ;;  %v13241_v36 = vsel %vm13239_vm9, %v13234_v30, %v13215_v47  ;;  %v13198_v14 = vrot.slane %v16090_v62, 6 }
0x133c   :  { %v16094_v28 = vpop.eup %16093  ;;  %v14158_v33 = vpack.c.bf16 %v13241_v36, %v13240_v7  ;;  %v13180_v31 = vrot.slane %v16092_v32, 7 }
0x133d   :  { %v16096_v20 = vpop.eup %16095  ;;  %v13181_v11 = vrot.slane %v16094_v28, 7 }
0x133e   :  { %v16098_v25 = vpop.eup %16097  ;;  %v13199_v54 = vrot.slane %v16096_v20, 6  ;;  %v13266_v27 = vrot.slane %v14158_v33, %v13265_v5 }
0x133f   :  { %v16100_v56 = vpop.eup %16099  ;;  %v13217_v42 = vrot.slane %v16098_v25, 5 }
0x1340   :  { %v16102_v41 = vpop.eup %16101  ;;  %v13228_v37 = vsel %vm3249_vm2, %v16100_v56, %v13180_v31 }
0x1341   :  { %v13235_v4 = vsel %vm13232_vm0, %v13228_v37, %v13198_v14  ;;  %v13229_v58 = vsel %vm3249_vm2, %v16102_v41, %v13181_v11 }
0x1342   :  { %v13242_v24 = vsel %vm13239_vm9, %v13235_v4, %v13216_v1  ;;  %v13236_v10 = vsel %vm13232_vm0, %v13229_v58, %v13199_v54 }
0x1343   :  { %v13243_v50 = vsel %vm13239_vm9, %v13236_v10, %v13217_v42 }
0x1344   :  { %v14159_v38 = vpack.c.bf16 %v13243_v50, %v13242_v24 }
0x1346   :  { %v13273_v60 = vrot.slane %v14159_v38, %v13265_v5 }
0x1348   :  { %v13274_v35 = vcombine.low %v13266_v27, %v13273_v60 }
0x134a   :  { %13285 = vst [vmem:[%s20625_s16] sm:$0xff] %v13274_v35 }
0x134b   :  { %13293 = vsyncpa [#allocation6], 1 }
0x134c   :  { %13294 = vsyncpa [#allocation8], 1 }
0x134d   :  { %13295 = vsyncpa [#allocation11], 1 }
0x134e   :  { %13296 = vsyncpa [#allocation14], 1 }

</bundles_post_ra>
